<compile_context>
chip_gen: v5e
topology: v5e:2x2
jax: 0.10.0
libtpu: 0.0.40
codegen_flags: <defaults>
</compile_context>

<pallas_src>
import jax
import jax.numpy as jnp
from jax.experimental import pallas as pl
from jax.experimental.pallas import tpu as pltpu


RAW_FEATURES = 119
LIFT_FEATURES = 300
NUM_CLASSES = 2

# lane/sublane-aligned padded sizes
RAW_PAD = 128      # 119 -> 128
LIFT_PAD = 384     # 300 -> 384 (3 x 128 lanes)
CLS_PAD = 128      # 2   -> 128 (lane-dense output store)
ROW_TILE = 128     # node rows padded to a multiple of 128 (fills MXU rows)
SUBLANE = 8


def _round_up(n, m):
    return ((n + m - 1) // m) * m


def _pad2(a, rows, cols):
    return jnp.pad(a, ((0, rows - a.shape[0]), (0, cols - a.shape[1])))


# ------------------------------ fused kernel --------------------------------

def _mpnn_kernel(x_ref, adj_ref, seg_ref,
                 wl_ref, bl_ref,
                 w11_ref, b11_ref, w12_ref, b12_ref,
                 w21_ref, b21_ref, w22_ref, b22_ref,
                 w31_ref, b31_ref, w32_ref, b32_ref,
                 wro_ref, bro_ref,
                 o_ref):
    # Lifting layer (no activation).  h stays resident on-chip (VMEM/vregs)
    # for the whole fused forward pass -- no HBM round trips between layers.
    h = (jnp.dot(x_ref[...], wl_ref[...], preferred_element_type=jnp.float32)
         + bl_ref[...])
    adj = adj_ref[...]

    layers = ((w11_ref, b11_ref, w12_ref, b12_ref),
              (w21_ref, b21_ref, w22_ref, b22_ref),
              (w31_ref, b31_ref, w32_ref, b32_ref))
    # 3 rounds of message passing, statically unrolled.
    for w1, b1, w2, b2 in layers:
        # messages:  m = relu(h @ W1 + b1)   (per-source-node message)
        m = jnp.maximum(
            jnp.dot(h, w1[...], preferred_element_type=jnp.float32) + b1[...],
            0.0)
        # aggregate: sum of incoming messages (DGL send/recv with sum reduce)
        agg = jnp.dot(adj, m, preferred_element_type=jnp.float32)
        # transform: f2 + outer relu from Model.forward
        h = jnp.maximum(
            jnp.dot(agg, w2[...], preferred_element_type=jnp.float32)
            + b2[...],
            0.0)

    # Readout, reassociated:
    #   sum_n seg[g,n] * (h_n @ W + b) = (seg @ h) @ W + (seg @ 1) * b
    seg = seg_ref[...]
    pooled = jnp.dot(seg, h, preferred_element_type=jnp.float32)   # (B, F)
    counts = jnp.sum(seg, axis=-1, keepdims=True)                  # (B, 1)
    o_ref[...] = (jnp.dot(pooled, wro_ref[...],
                          preferred_element_type=jnp.float32)
                  + counts * bro_ref[...])


def _fused_call(args, out_rows):
    def idx(i):
        return (0, 0)

    out_shape = (out_rows, CLS_PAD)
    return pl.pallas_call(
        _mpnn_kernel,
        out_shape=jax.ShapeDtypeStruct(out_shape, jnp.float32),
        grid=(1,),
        in_specs=[pl.BlockSpec(a.shape, idx) for a in args],
        out_specs=pl.BlockSpec(out_shape, idx),
        compiler_params=pltpu.CompilerParams(
            dimension_semantics=("arbitrary",)),
    )(*args)


# ------------------------------- Model wrapper ------------------------------

def init_linear(key, fan_in, fan_out):
    # deterministic init mimicking torch.nn.Linear default U[-1/sqrt(in), 1/sqrt(in)]
    kw, kb = jax.random.split(key)
    bound = 1.0 / jnp.sqrt(jnp.float32(fan_in))
    w = jax.random.uniform(kw, (fan_in, fan_out), jnp.float32, -bound, bound)
    b = jax.random.uniform(kb, (1, fan_out), jnp.float32, -bound, bound)
    return w, b


def init_params(key):
    keys = jax.random.split(key, 8)
    return {
        "lifting": init_linear(keys[0], RAW_FEATURES, LIFT_FEATURES),
        "mp1_f1": init_linear(keys[1], LIFT_FEATURES, LIFT_FEATURES),
        "mp1_f2": init_linear(keys[2], LIFT_FEATURES, LIFT_FEATURES),
        "mp2_f1": init_linear(keys[3], LIFT_FEATURES, LIFT_FEATURES),
        "mp2_f2": init_linear(keys[4], LIFT_FEATURES, LIFT_FEATURES),
        "mp3_f1": init_linear(keys[5], LIFT_FEATURES, LIFT_FEATURES),
        "mp3_f2": init_linear(keys[6], LIFT_FEATURES, LIFT_FEATURES),
        "read_out": init_linear(keys[7], LIFT_FEATURES, NUM_CLASSES),
    }


@jax.jit
def model_forward(params, x, adj, seg):
    n, b = x.shape[0], seg.shape[0]
    n_pad = _round_up(max(n, 1), ROW_TILE)
    b_pad = _round_up(max(b, 1), SUBLANE)

    # Zero-pad inputs: padded node rows / graph rows / feature lanes all
    # contribute exactly 0 through the matmuls, the ReLUs (via adj/seg zeros)
    # and the readout, so results for the real rows are bit-identical.
    xp = _pad2(x, n_pad, RAW_PAD)
    adjp = _pad2(adj, n_pad, n_pad)
    segp = _pad2(seg, b_pad, n_pad)

    wl, bl = params["lifting"]
    wlp, blp = _pad2(wl, RAW_PAD, LIFT_PAD), _pad2(bl, 1, LIFT_PAD)

    def pad_mp(name):
        w1, b1 = params[name + "_f1"]
        w2, b2 = params[name + "_f2"]
        return (_pad2(w1, LIFT_PAD, LIFT_PAD), _pad2(b1, 1, LIFT_PAD),
                _pad2(w2, LIFT_PAD, LIFT_PAD), _pad2(b2, 1, LIFT_PAD))

    wro, bro = params["read_out"]
    wrop, brop = _pad2(wro, LIFT_PAD, CLS_PAD), _pad2(bro, 1, CLS_PAD)

    args = [xp, adjp, segp, wlp, blp,
            *pad_mp("mp1"), *pad_mp("mp2"), *pad_mp("mp3"),
            wrop, brop]

    out = _fused_call(args, b_pad)
    return out[:b, :NUM_CLASSES]


# ------------------------------- reference ----------------------------------

def reference_forward(params, x, adj, seg):
    def lin(h, wb):
        return h @ wb[0] + wb[1]

    h = lin(x, params["lifting"])
    for name in ("mp1", "mp2", "mp3"):
        m = jax.nn.relu(lin(h, params[name + "_f1"]))
        agg = adj @ m
        h = jax.nn.relu(lin(agg, params[name + "_f2"]))
    return seg @ lin(h, params["read_out"])


# --------------------------------- main --------------------------------------

if __name__ == "__main__":
    key = jax.random.PRNGKey(0)
    k_params, k_x = jax.random.split(key)

    params = init_params(k_params)

    # small batched graph: 2 molecules with 5 and 3 atoms -> N = 8 nodes total
    graph_sizes = [5, 3]
    N = sum(graph_sizes)
    B = len(graph_sizes)

    # node features (N, 119)
    x = jax.random.normal(k_x, (N, RAW_FEATURES), jnp.float32)

    # dense adjacency: bidirectional ring inside each molecule so every node
    # receives at least one message (adj[dst, src] = 1)
    adj = jnp.zeros((N, N), jnp.float32)
    offset = 0
    for sz in graph_sizes:
        for i in range(sz):
            j = (i + 1) % sz
            adj = adj.at[offset + j, offset + i].set(1.0)
            adj = adj.at[offset + i, offset + j].set(1.0)
        offset += sz

    # graph membership matrix for dgl.sum_nodes: seg[g, n] = 1 iff node n in graph g
    seg = jnp.zeros((B, N), jnp.float32)
    offset = 0
    for g, sz in enumerate(graph_sizes):
        seg = seg.at[g, offset:offset + sz].set(1.0)
        offset += sz

    logits = model_forward(params, x, adj, seg)
    jax.block_until_ready(logits)

    ref = reference_forward(params, x, adj, seg)
    assert logits.shape == (B, NUM_CLASSES)
    assert jnp.allclose(logits, ref, rtol=1e-4, atol=1e-3), (logits, ref)

    print("KERNEL_OK")
</pallas_src>

<mosaic_0001>
module attributes {stable_mosaic.version = 11 : i64} {
  func.func @_mpnn_kernel(%arg0: i32, %arg1: memref<128x128xf32, #tpu.memory_space<vmem>>, %arg2: memref<128x128xf32, #tpu.memory_space<vmem>>, %arg3: memref<8x128xf32, #tpu.memory_space<vmem>>, %arg4: memref<128x384xf32, #tpu.memory_space<vmem>>, %arg5: memref<1x384xf32, #tpu.memory_space<vmem>>, %arg6: memref<384x384xf32, #tpu.memory_space<vmem>>, %arg7: memref<1x384xf32, #tpu.memory_space<vmem>>, %arg8: memref<384x384xf32, #tpu.memory_space<vmem>>, %arg9: memref<1x384xf32, #tpu.memory_space<vmem>>, %arg10: memref<384x384xf32, #tpu.memory_space<vmem>>, %arg11: memref<1x384xf32, #tpu.memory_space<vmem>>, %arg12: memref<384x384xf32, #tpu.memory_space<vmem>>, %arg13: memref<1x384xf32, #tpu.memory_space<vmem>>, %arg14: memref<384x384xf32, #tpu.memory_space<vmem>>, %arg15: memref<1x384xf32, #tpu.memory_space<vmem>>, %arg16: memref<384x384xf32, #tpu.memory_space<vmem>>, %arg17: memref<1x384xf32, #tpu.memory_space<vmem>>, %arg18: memref<384x128xf32, #tpu.memory_space<vmem>>, %arg19: memref<1x128xf32, #tpu.memory_space<vmem>>, %arg20: memref<8x128xf32, #tpu.memory_space<vmem>>) attributes {dimension_semantics = [#tpu.dimension_semantics<arbitrary>], iteration_bounds = array<i64: 1>, scalar_prefetch = 0 : i64, scratch_operands = 0 : i64, tpu.core_type = #tpu.core_type<tc>, window_params = [{pipeline_mode = #tpu.pipeline_mode<synchronous>, transform_indices = @transform_0, window_bounds = array<i64: 128, 128>}, {pipeline_mode = #tpu.pipeline_mode<synchronous>, transform_indices = @transform_1, window_bounds = array<i64: 128, 128>}, {pipeline_mode = #tpu.pipeline_mode<synchronous>, transform_indices = @transform_2, window_bounds = array<i64: 8, 128>}, {pipeline_mode = #tpu.pipeline_mode<synchronous>, transform_indices = @transform_3, window_bounds = array<i64: 128, 384>}, {pipeline_mode = #tpu.pipeline_mode<synchronous>, transform_indices = @transform_4, window_bounds = array<i64: 1, 384>}, {pipeline_mode = #tpu.pipeline_mode<synchronous>, transform_indices = @transform_5, window_bounds = array<i64: 384, 384>}, {pipeline_mode = #tpu.pipeline_mode<synchronous>, transform_indices = @transform_6, window_bounds = array<i64: 1, 384>}, {pipeline_mode = #tpu.pipeline_mode<synchronous>, transform_indices = @transform_7, window_bounds = array<i64: 384, 384>}, {pipeline_mode = #tpu.pipeline_mode<synchronous>, transform_indices = @transform_8, window_bounds = array<i64: 1, 384>}, {pipeline_mode = #tpu.pipeline_mode<synchronous>, transform_indices = @transform_9, window_bounds = array<i64: 384, 384>}, {pipeline_mode = #tpu.pipeline_mode<synchronous>, transform_indices = @transform_10, window_bounds = array<i64: 1, 384>}, {pipeline_mode = #tpu.pipeline_mode<synchronous>, transform_indices = @transform_11, window_bounds = array<i64: 384, 384>}, {pipeline_mode = #tpu.pipeline_mode<synchronous>, transform_indices = @transform_12, window_bounds = array<i64: 1, 384>}, {pipeline_mode = #tpu.pipeline_mode<synchronous>, transform_indices = @transform_13, window_bounds = array<i64: 384, 384>}, {pipeline_mode = #tpu.pipeline_mode<synchronous>, transform_indices = @transform_14, window_bounds = array<i64: 1, 384>}, {pipeline_mode = #tpu.pipeline_mode<synchronous>, transform_indices = @transform_15, window_bounds = array<i64: 384, 384>}, {pipeline_mode = #tpu.pipeline_mode<synchronous>, transform_indices = @transform_16, window_bounds = array<i64: 1, 384>}, {pipeline_mode = #tpu.pipeline_mode<synchronous>, transform_indices = @transform_17, window_bounds = array<i64: 384, 128>}, {pipeline_mode = #tpu.pipeline_mode<synchronous>, transform_indices = @transform_18, window_bounds = array<i64: 1, 128>}, {pipeline_mode = #tpu.pipeline_mode<synchronous>, transform_indices = @transform_19, window_bounds = array<i64: 8, 128>}]} {
    %c0 = arith.constant 0 : index
    %c0_0 = arith.constant 0 : index
    %0 = vector.load %arg1[%c0, %c0_0] : memref<128x128xf32, #tpu.memory_space<vmem>>, vector<128x128xf32>
    %c0_1 = arith.constant 0 : index
    %c0_2 = arith.constant 0 : index
    %1 = vector.load %arg4[%c0_1, %c0_2] : memref<128x384xf32, #tpu.memory_space<vmem>>, vector<128x384xf32>
    %cst = arith.constant dense<0.000000e+00> : vector<128x384xf32>
    %2 = tpu.matmul %0, %1, %cst {dimension_numbers = #tpu.dot_dimension_numbers<[1], [0], [0], [1], [0, 0, 1, 1], [], []>} : vector<128x128xf32>, vector<128x384xf32>, vector<128x384xf32> -> vector<128x384xf32>
    %c0_3 = arith.constant 0 : index
    %c0_4 = arith.constant 0 : index
    %3 = vector.load %arg5[%c0_3, %c0_4] : memref<1x384xf32, #tpu.memory_space<vmem>>, vector<1x384xf32>
    %4 = vector.broadcast %3 : vector<1x384xf32> to vector<128x384xf32>
    %5 = arith.addf %2, %4 : vector<128x384xf32>
    %c0_5 = arith.constant 0 : index
    %c0_6 = arith.constant 0 : index
    %6 = vector.load %arg2[%c0_5, %c0_6] : memref<128x128xf32, #tpu.memory_space<vmem>>, vector<128x128xf32>
    %c0_7 = arith.constant 0 : index
    %c0_8 = arith.constant 0 : index
    %7 = vector.load %arg6[%c0_7, %c0_8] : memref<384x384xf32, #tpu.memory_space<vmem>>, vector<384x384xf32>
    %cst_9 = arith.constant dense<0.000000e+00> : vector<128x384xf32>
    %8 = tpu.matmul %5, %7, %cst_9 {dimension_numbers = #tpu.dot_dimension_numbers<[1], [0], [0], [1], [0, 0, 1, 1], [], []>} : vector<128x384xf32>, vector<384x384xf32>, vector<128x384xf32> -> vector<128x384xf32>
    %c0_10 = arith.constant 0 : index
    %c0_11 = arith.constant 0 : index
    %9 = vector.load %arg7[%c0_10, %c0_11] : memref<1x384xf32, #tpu.memory_space<vmem>>, vector<1x384xf32>
    %10 = vector.broadcast %9 : vector<1x384xf32> to vector<128x384xf32>
    %11 = arith.addf %8, %10 : vector<128x384xf32>
    %cst_12 = arith.constant 0.000000e+00 : f32
    %12 = vector.broadcast %cst_12 : f32 to vector<128x384xf32>
    %13 = arith.maximumf %11, %12 : vector<128x384xf32>
    %cst_13 = arith.constant dense<0.000000e+00> : vector<128x384xf32>
    %14 = tpu.matmul %6, %13, %cst_13 {dimension_numbers = #tpu.dot_dimension_numbers<[1], [0], [0], [1], [0, 0, 1, 1], [], []>} : vector<128x128xf32>, vector<128x384xf32>, vector<128x384xf32> -> vector<128x384xf32>
    %c0_14 = arith.constant 0 : index
    %c0_15 = arith.constant 0 : index
    %15 = vector.load %arg8[%c0_14, %c0_15] : memref<384x384xf32, #tpu.memory_space<vmem>>, vector<384x384xf32>
    %cst_16 = arith.constant dense<0.000000e+00> : vector<128x384xf32>
    %16 = tpu.matmul %14, %15, %cst_16 {dimension_numbers = #tpu.dot_dimension_numbers<[1], [0], [0], [1], [0, 0, 1, 1], [], []>} : vector<128x384xf32>, vector<384x384xf32>, vector<128x384xf32> -> vector<128x384xf32>
    %c0_17 = arith.constant 0 : index
    %c0_18 = arith.constant 0 : index
    %17 = vector.load %arg9[%c0_17, %c0_18] : memref<1x384xf32, #tpu.memory_space<vmem>>, vector<1x384xf32>
    %18 = vector.broadcast %17 : vector<1x384xf32> to vector<128x384xf32>
    %19 = arith.addf %16, %18 : vector<128x384xf32>
    %cst_19 = arith.constant 0.000000e+00 : f32
    %20 = vector.broadcast %cst_19 : f32 to vector<128x384xf32>
    %21 = arith.maximumf %19, %20 : vector<128x384xf32>
    %c0_20 = arith.constant 0 : index
    %c0_21 = arith.constant 0 : index
    %22 = vector.load %arg10[%c0_20, %c0_21] : memref<384x384xf32, #tpu.memory_space<vmem>>, vector<384x384xf32>
    %cst_22 = arith.constant dense<0.000000e+00> : vector<128x384xf32>
    %23 = tpu.matmul %21, %22, %cst_22 {dimension_numbers = #tpu.dot_dimension_numbers<[1], [0], [0], [1], [0, 0, 1, 1], [], []>} : vector<128x384xf32>, vector<384x384xf32>, vector<128x384xf32> -> vector<128x384xf32>
    %c0_23 = arith.constant 0 : index
    %c0_24 = arith.constant 0 : index
    %24 = vector.load %arg11[%c0_23, %c0_24] : memref<1x384xf32, #tpu.memory_space<vmem>>, vector<1x384xf32>
    %25 = vector.broadcast %24 : vector<1x384xf32> to vector<128x384xf32>
    %26 = arith.addf %23, %25 : vector<128x384xf32>
    %cst_25 = arith.constant 0.000000e+00 : f32
    %27 = vector.broadcast %cst_25 : f32 to vector<128x384xf32>
    %28 = arith.maximumf %26, %27 : vector<128x384xf32>
    %cst_26 = arith.constant dense<0.000000e+00> : vector<128x384xf32>
    %29 = tpu.matmul %6, %28, %cst_26 {dimension_numbers = #tpu.dot_dimension_numbers<[1], [0], [0], [1], [0, 0, 1, 1], [], []>} : vector<128x128xf32>, vector<128x384xf32>, vector<128x384xf32> -> vector<128x384xf32>
    %c0_27 = arith.constant 0 : index
    %c0_28 = arith.constant 0 : index
    %30 = vector.load %arg12[%c0_27, %c0_28] : memref<384x384xf32, #tpu.memory_space<vmem>>, vector<384x384xf32>
    %cst_29 = arith.constant dense<0.000000e+00> : vector<128x384xf32>
    %31 = tpu.matmul %29, %30, %cst_29 {dimension_numbers = #tpu.dot_dimension_numbers<[1], [0], [0], [1], [0, 0, 1, 1], [], []>} : vector<128x384xf32>, vector<384x384xf32>, vector<128x384xf32> -> vector<128x384xf32>
    %c0_30 = arith.constant 0 : index
    %c0_31 = arith.constant 0 : index
    %32 = vector.load %arg13[%c0_30, %c0_31] : memref<1x384xf32, #tpu.memory_space<vmem>>, vector<1x384xf32>
    %33 = vector.broadcast %32 : vector<1x384xf32> to vector<128x384xf32>
    %34 = arith.addf %31, %33 : vector<128x384xf32>
    %cst_32 = arith.constant 0.000000e+00 : f32
    %35 = vector.broadcast %cst_32 : f32 to vector<128x384xf32>
    %36 = arith.maximumf %34, %35 : vector<128x384xf32>
    %c0_33 = arith.constant 0 : index
    %c0_34 = arith.constant 0 : index
    %37 = vector.load %arg14[%c0_33, %c0_34] : memref<384x384xf32, #tpu.memory_space<vmem>>, vector<384x384xf32>
    %cst_35 = arith.constant dense<0.000000e+00> : vector<128x384xf32>
    %38 = tpu.matmul %36, %37, %cst_35 {dimension_numbers = #tpu.dot_dimension_numbers<[1], [0], [0], [1], [0, 0, 1, 1], [], []>} : vector<128x384xf32>, vector<384x384xf32>, vector<128x384xf32> -> vector<128x384xf32>
    %c0_36 = arith.constant 0 : index
    %c0_37 = arith.constant 0 : index
    %39 = vector.load %arg15[%c0_36, %c0_37] : memref<1x384xf32, #tpu.memory_space<vmem>>, vector<1x384xf32>
    %40 = vector.broadcast %39 : vector<1x384xf32> to vector<128x384xf32>
    %41 = arith.addf %38, %40 : vector<128x384xf32>
    %cst_38 = arith.constant 0.000000e+00 : f32
    %42 = vector.broadcast %cst_38 : f32 to vector<128x384xf32>
    %43 = arith.maximumf %41, %42 : vector<128x384xf32>
    %cst_39 = arith.constant dense<0.000000e+00> : vector<128x384xf32>
    %44 = tpu.matmul %6, %43, %cst_39 {dimension_numbers = #tpu.dot_dimension_numbers<[1], [0], [0], [1], [0, 0, 1, 1], [], []>} : vector<128x128xf32>, vector<128x384xf32>, vector<128x384xf32> -> vector<128x384xf32>
    %c0_40 = arith.constant 0 : index
    %c0_41 = arith.constant 0 : index
    %45 = vector.load %arg16[%c0_40, %c0_41] : memref<384x384xf32, #tpu.memory_space<vmem>>, vector<384x384xf32>
    %cst_42 = arith.constant dense<0.000000e+00> : vector<128x384xf32>
    %46 = tpu.matmul %44, %45, %cst_42 {dimension_numbers = #tpu.dot_dimension_numbers<[1], [0], [0], [1], [0, 0, 1, 1], [], []>} : vector<128x384xf32>, vector<384x384xf32>, vector<128x384xf32> -> vector<128x384xf32>
    %c0_43 = arith.constant 0 : index
    %c0_44 = arith.constant 0 : index
    %47 = vector.load %arg17[%c0_43, %c0_44] : memref<1x384xf32, #tpu.memory_space<vmem>>, vector<1x384xf32>
    %48 = vector.broadcast %47 : vector<1x384xf32> to vector<128x384xf32>
    %49 = arith.addf %46, %48 : vector<128x384xf32>
    %cst_45 = arith.constant 0.000000e+00 : f32
    %50 = vector.broadcast %cst_45 : f32 to vector<128x384xf32>
    %51 = arith.maximumf %49, %50 : vector<128x384xf32>
    %c0_46 = arith.constant 0 : index
    %c0_47 = arith.constant 0 : index
    %52 = vector.load %arg3[%c0_46, %c0_47] : memref<8x128xf32, #tpu.memory_space<vmem>>, vector<8x128xf32>
    %cst_48 = arith.constant dense<0.000000e+00> : vector<8x384xf32>
    %53 = tpu.matmul %52, %51, %cst_48 {dimension_numbers = #tpu.dot_dimension_numbers<[1], [0], [0], [1], [0, 0, 1, 1], [], []>} : vector<8x128xf32>, vector<128x384xf32>, vector<8x384xf32> -> vector<8x384xf32>
    %cst_49 = arith.constant dense<0.000000e+00> : vector<8xf32>
    %54 = vector.multi_reduction <add>, %52, %cst_49 [1] : vector<8x128xf32> to vector<8xf32>
    %55 = vector.shape_cast %54 : vector<8xf32> to vector<8x1xf32>
    %c0_50 = arith.constant 0 : index
    %c0_51 = arith.constant 0 : index
    %56 = vector.load %arg18[%c0_50, %c0_51] : memref<384x128xf32, #tpu.memory_space<vmem>>, vector<384x128xf32>
    %cst_52 = arith.constant dense<0.000000e+00> : vector<8x128xf32>
    %57 = tpu.matmul %53, %56, %cst_52 {dimension_numbers = #tpu.dot_dimension_numbers<[1], [0], [0], [1], [0, 0, 1, 1], [], []>} : vector<8x384xf32>, vector<384x128xf32>, vector<8x128xf32> -> vector<8x128xf32>
    %c0_53 = arith.constant 0 : index
    %c0_54 = arith.constant 0 : index
    %58 = vector.load %arg19[%c0_53, %c0_54] : memref<1x128xf32, #tpu.memory_space<vmem>>, vector<1x128xf32>
    %59 = vector.broadcast %55 : vector<8x1xf32> to vector<8x128xf32>
    %60 = vector.broadcast %58 : vector<1x128xf32> to vector<8x128xf32>
    %61 = arith.mulf %59, %60 : vector<8x128xf32>
    %62 = arith.addf %57, %61 : vector<8x128xf32>
    %c0_55 = arith.constant 0 : index
    %c0_56 = arith.constant 0 : index
    %63 = vector.load %arg20[%c0_55, %c0_56] : memref<8x128xf32, #tpu.memory_space<vmem>>, vector<8x128xf32>
    tpu.vector_store %arg20[%c0_55, %c0_56], %62 {strides = array<i32>} : memref<8x128xf32, #tpu.memory_space<vmem>>, vector<8x128xf32>,
    return
  }
  func.func @transform_0(%arg0: i32) -> (i32, i32) {
    %c0_i32 = arith.constant 0 : i32
    %c0_i32_0 = arith.constant 0 : i32
    %c0_i32_1 = arith.constant 0 : i32
    return %c0_i32, %c0_i32_0 : i32, i32
  }
  func.func @transform_1(%arg0: i32) -> (i32, i32) {
    %c0_i32 = arith.constant 0 : i32
    %c0_i32_0 = arith.constant 0 : i32
    %c0_i32_1 = arith.constant 0 : i32
    return %c0_i32, %c0_i32_0 : i32, i32
  }
  func.func @transform_2(%arg0: i32) -> (i32, i32) {
    %c0_i32 = arith.constant 0 : i32
    %c0_i32_0 = arith.constant 0 : i32
    %c0_i32_1 = arith.constant 0 : i32
    return %c0_i32, %c0_i32_0 : i32, i32
  }
  func.func @transform_3(%arg0: i32) -> (i32, i32) {
    %c0_i32 = arith.constant 0 : i32
    %c0_i32_0 = arith.constant 0 : i32
    %c0_i32_1 = arith.constant 0 : i32
    return %c0_i32, %c0_i32_0 : i32, i32
  }
  func.func @transform_4(%arg0: i32) -> (i32, i32) {
    %c0_i32 = arith.constant 0 : i32
    %c0_i32_0 = arith.constant 0 : i32
    %c0_i32_1 = arith.constant 0 : i32
    return %c0_i32, %c0_i32_0 : i32, i32
  }
  func.func @transform_5(%arg0: i32) -> (i32, i32) {
    %c0_i32 = arith.constant 0 : i32
    %c0_i32_0 = arith.constant 0 : i32
    %c0_i32_1 = arith.constant 0 : i32
    return %c0_i32, %c0_i32_0 : i32, i32
  }
  func.func @transform_6(%arg0: i32) -> (i32, i32) {
    %c0_i32 = arith.constant 0 : i32
    %c0_i32_0 = arith.constant 0 : i32
    %c0_i32_1 = arith.constant 0 : i32
    return %c0_i32, %c0_i32_0 : i32, i32
  }
  func.func @transform_7(%arg0: i32) -> (i32, i32) {
    %c0_i32 = arith.constant 0 : i32
    %c0_i32_0 = arith.constant 0 : i32
    %c0_i32_1 = arith.constant 0 : i32
    return %c0_i32, %c0_i32_0 : i32, i32
  }
  func.func @transform_8(%arg0: i32) -> (i32, i32) {
    %c0_i32 = arith.constant 0 : i32
    %c0_i32_0 = arith.constant 0 : i32
    %c0_i32_1 = arith.constant 0 : i32
    return %c0_i32, %c0_i32_0 : i32, i32
  }
  func.func @transform_9(%arg0: i32) -> (i32, i32) {
    %c0_i32 = arith.constant 0 : i32
    %c0_i32_0 = arith.constant 0 : i32
    %c0_i32_1 = arith.constant 0 : i32
    return %c0_i32, %c0_i32_0 : i32, i32
  }
  func.func @transform_10(%arg0: i32) -> (i32, i32) {
    %c0_i32 = arith.constant 0 : i32
    %c0_i32_0 = arith.constant 0 : i32
    %c0_i32_1 = arith.constant 0 : i32
    return %c0_i32, %c0_i32_0 : i32, i32
  }
  func.func @transform_11(%arg0: i32) -> (i32, i32) {
    %c0_i32 = arith.constant 0 : i32
    %c0_i32_0 = arith.constant 0 : i32
    %c0_i32_1 = arith.constant 0 : i32
    return %c0_i32, %c0_i32_0 : i32, i32
  }
  func.func @transform_12(%arg0: i32) -> (i32, i32) {
    %c0_i32 = arith.constant 0 : i32
    %c0_i32_0 = arith.constant 0 : i32
    %c0_i32_1 = arith.constant 0 : i32
    return %c0_i32, %c0_i32_0 : i32, i32
  }
  func.func @transform_13(%arg0: i32) -> (i32, i32) {
    %c0_i32 = arith.constant 0 : i32
    %c0_i32_0 = arith.constant 0 : i32
    %c0_i32_1 = arith.constant 0 : i32
    return %c0_i32, %c0_i32_0 : i32, i32
  }
  func.func @transform_14(%arg0: i32) -> (i32, i32) {
    %c0_i32 = arith.constant 0 : i32
    %c0_i32_0 = arith.constant 0 : i32
    %c0_i32_1 = arith.constant 0 : i32
    return %c0_i32, %c0_i32_0 : i32, i32
  }
  func.func @transform_15(%arg0: i32) -> (i32, i32) {
    %c0_i32 = arith.constant 0 : i32
    %c0_i32_0 = arith.constant 0 : i32
    %c0_i32_1 = arith.constant 0 : i32
    return %c0_i32, %c0_i32_0 : i32, i32
  }
  func.func @transform_16(%arg0: i32) -> (i32, i32) {
    %c0_i32 = arith.constant 0 : i32
    %c0_i32_0 = arith.constant 0 : i32
    %c0_i32_1 = arith.constant 0 : i32
    return %c0_i32, %c0_i32_0 : i32, i32
  }
  func.func @transform_17(%arg0: i32) -> (i32, i32) {
    %c0_i32 = arith.constant 0 : i32
    %c0_i32_0 = arith.constant 0 : i32
    %c0_i32_1 = arith.constant 0 : i32
    return %c0_i32, %c0_i32_0 : i32, i32
  }
  func.func @transform_18(%arg0: i32) -> (i32, i32) {
    %c0_i32 = arith.constant 0 : i32
    %c0_i32_0 = arith.constant 0 : i32
    %c0_i32_1 = arith.constant 0 : i32
    return %c0_i32, %c0_i32_0 : i32, i32
  }
  func.func @transform_19(%arg0: i32) -> (i32, i32) {
    %c0_i32 = arith.constant 0 : i32
    %c0_i32_0 = arith.constant 0 : i32
    %c0_i32_1 = arith.constant 0 : i32
    return %c0_i32, %c0_i32_0 : i32, i32
  }
}

</mosaic_0001>

<bundles_post_ra>
// kernel: model_forward.1
= control target key start
LH: loop header
LB: loop body
LE: loop exit
PB: predicated region body
PF: predicated region fallthrough
CT: control target
= control target key end

     0   :  { %s12687_s3 = inlined_call_operand.vmem [shape: f32[128,384], index: 3, kind: input, shape index: {}]   ;;  %s12688_s0 = inlined_call_operand.vmem [shape: f32[128,128], index: 0, kind: input, shape index: {}]   ;;  %s12689_s5 = inlined_call_operand.vmem [shape: f32[384,384], index: 5, kind: input, shape index: {}]   ;;  %s12690_s4 = inlined_call_operand.vmem [shape: f32[1,384], index: 4, kind: input, shape index: {}]   ;;  %s12691_s6 = inlined_call_operand.vmem [shape: f32[1,384], index: 6, kind: input, shape index: {}]   ;;  %s12692_s1 = inlined_call_operand.vmem [shape: f32[128,128], index: 1, kind: input, shape index: {}]   ;;  %s12693_s7 = inlined_call_operand.vmem [shape: f32[384,384], index: 7, kind: input, shape index: {}]   ;;  %s12694_s9 = inlined_call_operand.vmem [shape: f32[384,384], index: 9, kind: input, shape index: {}]   ;;  %s12695_s8 = inlined_call_operand.vmem [shape: f32[1,384], index: 8, kind: input, shape index: {}]   ;;  %s12696_s10 = inlined_call_operand.vmem [shape: f32[1,384], index: 10, kind: input, shape index: {}]   ;;  %s12697_s11 = inlined_call_operand.vmem [shape: f32[384,384], index: 11, kind: input, shape index: {}]   ;;  %s12698_s12 = inlined_call_operand.vmem [shape: f32[1,384], index: 12, kind: input, shape index: {}]   ;;  %s12699_s13 = inlined_call_operand.vmem [shape: f32[384,384], index: 13, kind: input, shape index: {}]   ;;  %s12700_s14 = inlined_call_operand.vmem [shape: f32[1,384], index: 14, kind: input, shape index: {}]   ;;  %s12701_s15 = inlined_call_operand.vmem [shape: f32[384,384], index: 15, kind: input, shape index: {}]   ;;  %s12702_s16 = inlined_call_operand.vmem [shape: f32[1,384], index: 16, kind: input, shape index: {}]   ;;  %s12703_s2 = inlined_call_operand.vmem [shape: f32[8,128], index: 2, kind: input, shape index: {}]   ;;  %s12704_s17 = inlined_call_operand.vmem [shape: f32[384,128], index: 17, kind: input, shape index: {}]   ;;  %s12705_s18 = inlined_call_operand.vmem [shape: f32[1,128], index: 18, kind: input, shape index: {}]   ;;  %s12706_s19 = inlined_call_operand.vmem [shape: f32[8,128], index: 19, kind: output, shape index: {}]  }
   0x1   :  { %12799 = sst [smem:[#allocation51_spill]] %s12687_s3 }
   0x2   :  { %12800 = sst [smem:[#allocation52_spill]] %s12688_s0 }
   0x3   :  { %12801 = sst [smem:[#allocation53_spill]] %s12689_s5 }
   0x4   :  { %12802 = sst [smem:[#allocation54_spill]] %s12690_s4 }
   0x5   :  { %s12803_s20 = sld [smem:[#allocation51_spill]] }
   0x6   :  { %s12804_s28 = sld [smem:[#allocation52_spill]] }
   0x7   :  { %s12806_s22 = sld [smem:[#allocation54_spill]] }
   0xb   :  { %v123_v0 = vld [vmem:[%s12803_s20 + $0x168] sm:$0xff]  ;;  %v125_v1 = vld [vmem:[%s12803_s20 + $0x178] sm:$0xff]  ;;  %v120_v2 = vld [vmem:[%s12803_s20 + $0x150] sm:$0xff] }
   0xc   :  { %134 = vmatpush.msra.mxu0 %v123_v0  ;;  %264 = vmatpush.msra.mxu2 %v125_v1  ;;  %v124_v3 = vld [vmem:[%s12803_s20 + $0x170] sm:$0xff]  ;;  %v122_v4 = vld [vmem:[%s12803_s20 + $0x160] sm:$0xff]  ;;  %v117_v5 = vld [vmem:[%s12803_s20 + $0x138] sm:$0xff] }
   0xd   :  { %199 = vmatpush.msra.mxu1 %v124_v3  ;;  %v121_v6 = vld [vmem:[%s12803_s20 + $0x158] sm:$0xff]  ;;  %v119_v7 = vld [vmem:[%s12803_s20 + $0x148] sm:$0xff]  ;;  %v118_v8 = vld [vmem:[%s12803_s20 + $0x140] sm:$0xff] }
   0xe   :  { %135 = vmatpush.msra.mxu0 %v120_v2  ;;  %265 = vmatpush.msra.mxu2 %v122_v4  ;;  %v114_v9 = vld [vmem:[%s12803_s20 + $0x120] sm:$0xff]  ;;  %v116_v10 = vld [vmem:[%s12803_s20 + $0x130] sm:$0xff]  ;;  %v115_v11 = vld [vmem:[%s12803_s20 + $0x128] sm:$0xff] }
   0xf   :  { %200 = vmatpush.msra.mxu1 %v121_v6  ;;  %v111_v12 = vld [vmem:[%s12803_s20 + $0x108] sm:$0xff]  ;;  %v113_v13 = vld [vmem:[%s12803_s20 + $0x118] sm:$0xff]  ;;  %v112_v14 = vld [vmem:[%s12803_s20 + $0x110] sm:$0xff] }
  0x10   :  { %136 = vmatpush.msra.mxu0 %v117_v5  ;;  %266 = vmatpush.msra.mxu2 %v119_v7  ;;  %v108_v15 = vld [vmem:[%s12803_s20 + $0xf0] sm:$0xff]  ;;  %v110_v16 = vld [vmem:[%s12803_s20 + $0x100] sm:$0xff]  ;;  %v109_v17 = vld [vmem:[%s12803_s20 + $0xf8] sm:$0xff] }
  0x11   :  { %201 = vmatpush.msra.mxu1 %v118_v8  ;;  %v105_v18 = vld [vmem:[%s12803_s20 + $0xd8] sm:$0xff]  ;;  %v107_v19 = vld [vmem:[%s12803_s20 + $0xe8] sm:$0xff]  ;;  %v106_v20 = vld [vmem:[%s12803_s20 + $0xe0] sm:$0xff] }
  0x12   :  { %137 = vmatpush.msra.mxu0 %v114_v9  ;;  %267 = vmatpush.msra.mxu2 %v116_v10  ;;  %v102_v21 = vld [vmem:[%s12803_s20 + $0xc0] sm:$0xff]  ;;  %v104_v22 = vld [vmem:[%s12803_s20 + $0xd0] sm:$0xff]  ;;  %v103_v23 = vld [vmem:[%s12803_s20 + $0xc8] sm:$0xff] }
  0x13   :  { %202 = vmatpush.msra.mxu1 %v115_v11  ;;  %v99_v24 = vld [vmem:[%s12803_s20 + $0xa8] sm:$0xff]  ;;  %v101_v25 = vld [vmem:[%s12803_s20 + $0xb8] sm:$0xff]  ;;  %v100_v26 = vld [vmem:[%s12803_s20 + $0xb0] sm:$0xff] }
  0x14   :  { %138 = vmatpush.msra.mxu0 %v111_v12  ;;  %268 = vmatpush.msra.mxu2 %v113_v13  ;;  %v96_v27 = vld [vmem:[%s12803_s20 + $0x90] sm:$0xff]  ;;  %v98_v28 = vld [vmem:[%s12803_s20 + $0xa0] sm:$0xff]  ;;  %v97_v29 = vld [vmem:[%s12803_s20 + $0x98] sm:$0xff] }
  0x15   :  { %203 = vmatpush.msra.mxu1 %v112_v14  ;;  %v93_v30 = vld [vmem:[%s12803_s20 + $0x78] sm:$0xff]  ;;  %v95_v31 = vld [vmem:[%s12803_s20 + $0x88] sm:$0xff]  ;;  %v94_v32 = vld [vmem:[%s12803_s20 + $0x80] sm:$0xff] }
  0x16   :  { %139 = vmatpush.msra.mxu0 %v108_v15  ;;  %269 = vmatpush.msra.mxu2 %v110_v16  ;;  %v90_v33 = vld [vmem:[%s12803_s20 + $0x60] sm:$0xff]  ;;  %v92_v34 = vld [vmem:[%s12803_s20 + $0x70] sm:$0xff]  ;;  %v91_v35 = vld [vmem:[%s12803_s20 + $0x68] sm:$0xff] }
  0x17   :  { %204 = vmatpush.msra.mxu1 %v109_v17  ;;  %v87_v36 = vld [vmem:[%s12803_s20 + $0x48] sm:$0xff]  ;;  %v89_v37 = vld [vmem:[%s12803_s20 + $0x58] sm:$0xff]  ;;  %v88_v38 = vld [vmem:[%s12803_s20 + $0x50] sm:$0xff] }
  0x18   :  { %140 = vmatpush.msra.mxu0 %v105_v18  ;;  %270 = vmatpush.msra.mxu2 %v107_v19  ;;  %v84_v39 = vld [vmem:[%s12803_s20 + $0x30] sm:$0xff]  ;;  %v86_v40 = vld [vmem:[%s12803_s20 + $0x40] sm:$0xff]  ;;  %v85_v41 = vld [vmem:[%s12803_s20 + $0x38] sm:$0xff] }
  0x19   :  { %205 = vmatpush.msra.mxu1 %v106_v20  ;;  %v81_v42 = vld [vmem:[%s12803_s20 + $0x18] sm:$0xff]  ;;  %v83_v43 = vld [vmem:[%s12803_s20 + $0x28] sm:$0xff]  ;;  %v82_v44 = vld [vmem:[%s12803_s20 + $0x20] sm:$0xff] }
  0x1a   :  { %141 = vmatpush.msra.mxu0 %v102_v21  ;;  %271 = vmatpush.msra.mxu2 %v104_v22  ;;  %v78_v45 = vld [vmem:[%s12803_s20] sm:$0xff]  ;;  %v80_v46 = vld [vmem:[%s12803_s20 + $0x10] sm:$0xff]  ;;  %v79_v48 = vld [vmem:[%s12803_s20 + $0x8] sm:$0xff]  ;;  %s12805_s20 = sld [smem:[#allocation53_spill]] }
  0x1b   :  { %206 = vmatpush.msra.mxu1 %v103_v23  ;;  %v62_v47 = vld [vmem:[%s12804_s28] sm:$0xff]  ;;  %v63_v49 = vld [vmem:[%s12804_s28 + $0x8] sm:$0xff]  ;;  %v64_v50 = vld [vmem:[%s12804_s28 + $0x10] sm:$0xff] }
  0x1c   :  { %142 = vmatpush.msra.mxu0 %v99_v24  ;;  %272 = vmatpush.msra.mxu2 %v101_v25  ;;  %v65_v51 = vld [vmem:[%s12804_s28 + $0x18] sm:$0xff]  ;;  %v66_v52 = vld [vmem:[%s12804_s28 + $0x20] sm:$0xff]  ;;  %v67_v53 = vld [vmem:[%s12804_s28 + $0x28] sm:$0xff] }
  0x1d   :  { %207 = vmatpush.msra.mxu1 %v100_v26  ;;  %v68_v54 = vld [vmem:[%s12804_s28 + $0x30] sm:$0xff]  ;;  %v69_v55 = vld [vmem:[%s12804_s28 + $0x38] sm:$0xff]  ;;  %v70_v56 = vld [vmem:[%s12804_s28 + $0x40] sm:$0xff] }
  0x1e   :  { %143 = vmatpush.msra.mxu0 %v96_v27  ;;  %273 = vmatpush.msra.mxu2 %v98_v28  ;;  %v71_v4 = vld [vmem:[%s12804_s28 + $0x48] sm:$0xff]  ;;  %v72_v18 = vld [vmem:[%s12804_s28 + $0x50] sm:$0xff] }
  0x1f   :  { %208 = vmatpush.msra.mxu1 %v97_v29 }
  0x20   :  { %144 = vmatpush.msra.mxu0 %v93_v30  ;;  %274 = vmatpush.msra.mxu2 %v95_v31  ;;  %v390_v57 = vld [vmem:[%s12805_s20 + $0x168] sm:$0xff]  ;;  %v391_v58 = vld [vmem:[%s12805_s20 + $0x170] sm:$0xff]  ;;  %v388_v61 = vld [vmem:[%s12805_s20 + $0x158] sm:$0xff] }
  0x21   :  { %209 = vmatpush.msra.mxu1 %v94_v32  ;;  %497 = vmatpush.msra.mxu3 %v390_v57  ;;  %v387_v59 = vld [vmem:[%s12805_s20 + $0x150] sm:$0xff]  ;;  %v438_v60 = vld [vmem:[%s12805_s20 + $0x2e8] sm:$0xff]  ;;  %v384_v62 = vld [vmem:[%s12805_s20 + $0x138] sm:$0xff] }
  0x22   :  { %145 = vmatpush.msra.mxu0 %v90_v33  ;;  %275 = vmatpush.msra.mxu2 %v92_v34  ;;  %v435_v63 = vld [vmem:[%s12805_s20 + $0x2d0] sm:$0xff]  ;;  %v385_v0 = vld [vmem:[%s12805_s20 + $0x140] sm:$0xff]  ;;  %v432_v2 = vld [vmem:[%s12805_s20 + $0x2b8] sm:$0xff] }
  0x23   :  { %210 = vmatpush.msra.mxu1 %v91_v35  ;;  %498 = vmatpush.msra.mxu3 %v387_v59  ;;  %v381_v1 = vld [vmem:[%s12805_s20 + $0x120] sm:$0xff]  ;;  %v486_v3 = vld [vmem:[%s12805_s20 + $0x468] sm:$0xff]  ;;  %v483_v8 = vld [vmem:[%s12805_s20 + $0x450] sm:$0xff] }
  0x24   :  { %146 = vmatpush.msra.mxu0 %v87_v36  ;;  %276 = vmatpush.msra.mxu2 %v89_v37  ;;  %v382_v5 = vld [vmem:[%s12805_s20 + $0x128] sm:$0xff]  ;;  %v429_v7 = vld [vmem:[%s12805_s20 + $0x2a0] sm:$0xff]  ;;  %v379_v9 = vld [vmem:[%s12805_s20 + $0x110] sm:$0xff] }
  0x25   :  { %211 = vmatpush.msra.mxu1 %v88_v38  ;;  %499 = vmatpush.msra.mxu3 %v384_v62  ;;  %v378_v6 = vld [vmem:[%s12805_s20 + $0x108] sm:$0xff]  ;;  %v375_v10 = vld [vmem:[%s12805_s20 + $0xf0] sm:$0xff]  ;;  %v480_v12 = vld [vmem:[%s12805_s20 + $0x438] sm:$0xff] }
  0x26   :  { %147 = vmatpush.msra.mxu0 %v84_v39  ;;  %277 = vmatpush.msra.mxu2 %v86_v40  ;;  %v426_v11 = vld [vmem:[%s12805_s20 + $0x288] sm:$0xff]  ;;  %v376_v13 = vld [vmem:[%s12805_s20 + $0xf8] sm:$0xff]  ;;  %v423_v15 = vld [vmem:[%s12805_s20 + $0x270] sm:$0xff] }
  0x27   :  { %212 = vmatpush.msra.mxu1 %v85_v41  ;;  %500 = vmatpush.msra.mxu3 %v381_v1  ;;  %v372_v14 = vld [vmem:[%s12805_s20 + $0xd8] sm:$0xff]  ;;  %v477_v16 = vld [vmem:[%s12805_s20 + $0x420] sm:$0xff]  ;;  %v370_v21 = vld [vmem:[%s12805_s20 + $0xc8] sm:$0xff] }
  0x28   :  { %148 = vmatpush.msra.mxu0 %v81_v42  ;;  %278 = vmatpush.msra.mxu2 %v83_v43  ;;  %v373_v17 = vld [vmem:[%s12805_s20 + $0xe0] sm:$0xff]  ;;  %v420_v20 = vld [vmem:[%s12805_s20 + $0x258] sm:$0xff]  ;;  %v474_v22 = vld [vmem:[%s12805_s20 + $0x408] sm:$0xff] }
  0x29   :  { %213 = vmatpush.msra.mxu1 %v82_v44  ;;  %501 = vmatpush.msra.mxu3 %v378_v6  ;;  %v369_v19 = vld [vmem:[%s12805_s20 + $0xc0] sm:$0xff]  ;;  %v366_v23 = vld [vmem:[%s12805_s20 + $0xa8] sm:$0xff]  ;;  %v367_v25 = vld [vmem:[%s12805_s20 + $0xb0] sm:$0xff] }
  0x2a   :  { %149 = vmatpush.msra.mxu0 %v78_v45  ;;  %279 = vmatpush.msra.mxu2 %v80_v46  ;;  %v417_v24 = vld [vmem:[%s12805_s20 + $0x240] sm:$0xff]  ;;  %v471_v26 = vld [vmem:[%s12805_s20 + $0x3f0] sm:$0xff]  ;;  %v414_v28 = vld [vmem:[%s12805_s20 + $0x228] sm:$0xff] }
  0x2b   :  { %150 = vmatmul.f32.vlgmr.msra.gmra.mxu0 %v62_v47  ;;  %280 = vmatmul.f32.vlgmr.msra.gmra.mxu2 %v62_v47  ;;  %v363_v27 = vld [vmem:[%s12805_s20 + $0x90] sm:$0xff]  ;;  %v364_v29 = vld [vmem:[%s12805_s20 + $0x98] sm:$0xff]  ;;  %v465_v34 = vld [vmem:[%s12805_s20 + $0x3c0] sm:$0xff] }
  0x2c   :  { %214 = vmatpush.msra.mxu1 %v79_v48  ;;  %692 = vmatpush.msrb.mxu2 %v391_v58  ;;  %v468_v30 = vld [vmem:[%s12805_s20 + $0x3d8] sm:$0xff]  ;;  %v411_v33 = vld [vmem:[%s12805_s20 + $0x210] sm:$0xff]  ;;  %v361_v35 = vld [vmem:[%s12805_s20 + $0x80] sm:$0xff] }
  0x2d   :  { %215 = vmatmul.f32.vlgmr.msra.gmra.mxu1 %v62_v47  ;;  %562 = vmatpush.msrb.mxu0 %v438_v60  ;;  %v360_v31 = vld [vmem:[%s12805_s20 + $0x78] sm:$0xff]  ;;  %v357_v36 = vld [vmem:[%s12805_s20 + $0x60] sm:$0xff]  ;;  %v462_v38 = vld [vmem:[%s12805_s20 + $0x3a8] sm:$0xff] }
  0x2e   :  { %693 = vmatpush.msrb.mxu2 %v388_v61  ;;  %627 = vmatpush.msrb.mxu1 %v486_v3  ;;  %v73_v32 = vld [vmem:[%s12804_s28 + $0x58] sm:$0xff]  ;;  %v358_v39 = vld [vmem:[%s12805_s20 + $0x68] sm:$0xff]  ;;  %v405_v41 = vld [vmem:[%s12805_s20 + $0x1e0] sm:$0xff] }
  0x2f   :  { %563 = vmatpush.msrb.mxu0 %v435_v63  ;;  %502 = vmatpush.msra.mxu3 %v375_v10  ;;  %v408_v37 = vld [vmem:[%s12805_s20 + $0x1f8] sm:$0xff]  ;;  %v354_v40 = vld [vmem:[%s12805_s20 + $0x48] sm:$0xff]  ;;  %v459_v42 = vld [vmem:[%s12805_s20 + $0x390] sm:$0xff] }
  0x30   :  { %694 = vmatpush.msrb.mxu2 %v385_v0  ;;  %628 = vmatpush.msrb.mxu1 %v483_v8  ;;  %v355_v43 = vld [vmem:[%s12805_s20 + $0x50] sm:$0xff]  ;;  %v402_v45 = vld [vmem:[%s12805_s20 + $0x1c8] sm:$0xff]  ;;  %v74_v46 = vld [vmem:[%s12804_s28 + $0x60] sm:$0xff] }
  0x31   :  { %564 = vmatpush.msrb.mxu0 %v432_v2  ;;  %503 = vmatpush.msra.mxu3 %v372_v14  ;;  %v351_v44 = vld [vmem:[%s12805_s20 + $0x30] sm:$0xff]  ;;  %v456_v47 = vld [vmem:[%s12805_s20 + $0x378] sm:$0xff]  ;;  %v393_v57 = vld [vmem:[%s12805_s20 + $0x180] sm:$0xff] }
  0x32   :  { %695 = vmatpush.msrb.mxu2 %v382_v5  ;;  %629 = vmatpush.msrb.mxu1 %v480_v12  ;;  %v352_v48 = vld [vmem:[%s12805_s20 + $0x38] sm:$0xff]  ;;  %v447_v58 = vld [vmem:[%s12805_s20 + $0x330] sm:$0xff]  ;;  %v75_v59 = vld [vmem:[%s12804_s28 + $0x68] sm:$0xff] }
  0x33   :  { %153 = vmatmul.f32.gmra.mxu0 %v63_v49  ;;  %283 = vmatmul.f32.gmra.mxu2 %v63_v49  ;;  %v444_v60 = vld [vmem:[%s12805_s20 + $0x318] sm:$0xff]  ;;  %v441_v61 = vld [vmem:[%s12805_s20 + $0x300] sm:$0xff]  ;;  %v76_v62 = vld [vmem:[%s12804_s28 + $0x70] sm:$0xff] }
  0x34   :  { %565 = vmatpush.msrb.mxu0 %v429_v7  ;;  %696 = vmatpush.msrb.mxu2 %v379_v9  ;;  %v77_v63 = vld [vmem:[%s12804_s28 + $0x78] sm:$0xff]  ;;  %v126_v0 = vld [vmem:[%s12806_s22] sm:$0x7] }
  0x35   :  { %218 = vmatmul.f32.gmra.mxu1 %v63_v49  ;;  %504 = vmatpush.msra.mxu3 %v369_v19  ;;  %v348_v49 = vld [vmem:[%s12805_s20 + $0x18] sm:$0xff]  ;;  %v6342_v1 = vperm.slane %v126_v0, 0  ;;  %v6344_v2 = vperm.slane %v126_v0, 1  ;;  %v6354_v7 = vperm.slane %v126_v0, 2 }
  0x36   :  { %566 = vmatpush.msrb.mxu0 %v426_v11  ;;  %697 = vmatpush.msrb.mxu2 %v376_v13  ;;  %v484_v0 = vld [vmem:[%s12805_s20 + $0x458] sm:$0xff] }
  0x37   :  { %630 = vmatpush.msrb.mxu1 %v477_v16  ;;  %505 = vmatpush.msra.mxu3 %v366_v23 }
  0x38   :  { %567 = vmatpush.msrb.mxu0 %v423_v15  ;;  %698 = vmatpush.msrb.mxu2 %v373_v17 }
  0x39   :  { %631 = vmatpush.msrb.mxu1 %v474_v22  ;;  %506 = vmatpush.msra.mxu3 %v363_v27 }
  0x3a   :  { %568 = vmatpush.msrb.mxu0 %v420_v20  ;;  %699 = vmatpush.msrb.mxu2 %v370_v21 }
  0x3b   :  { %156 = vmatmul.f32.gmra.mxu0 %v64_v50  ;;  %286 = vmatmul.f32.gmra.mxu2 %v64_v50 }
  0x3c   :  { %569 = vmatpush.msrb.mxu0 %v417_v24  ;;  %700 = vmatpush.msrb.mxu2 %v367_v25 }
  0x3d   :  { %221 = vmatmul.f32.gmra.mxu1 %v64_v50  ;;  %507 = vmatpush.msra.mxu3 %v360_v31  ;;  %v399_v50 = vld [vmem:[%s12805_s20 + $0x1b0] sm:$0xff] }
  0x3e   :  { %632 = vmatpush.msrb.mxu1 %v471_v26  ;;  %570 = vmatpush.msrb.mxu0 %v414_v28 }
  0x3f   :  { %701 = vmatpush.msrb.mxu2 %v364_v29  ;;  %508 = vmatpush.msra.mxu3 %v357_v36 }
  0x40   :  { %633 = vmatpush.msrb.mxu1 %v468_v30  ;;  %571 = vmatpush.msrb.mxu0 %v411_v33 }
  0x41   :  { %702 = vmatpush.msrb.mxu2 %v361_v35  ;;  %509 = vmatpush.msra.mxu3 %v354_v40 }
  0x42   :  { %634 = vmatpush.msrb.mxu1 %v465_v34  ;;  %572 = vmatpush.msrb.mxu0 %v408_v37 }
  0x43   :  { %159 = vmatmul.f32.gmra.mxu0 %v65_v51  ;;  %289 = vmatmul.f32.gmra.mxu2 %v65_v51 }
  0x44   :  { %635 = vmatpush.msrb.mxu1 %v462_v38  ;;  %703 = vmatpush.msrb.mxu2 %v358_v39 }
  0x45   :  { %224 = vmatmul.f32.gmra.mxu1 %v65_v51  ;;  %573 = vmatpush.msrb.mxu0 %v405_v41  ;;  %v453_v51 = vld [vmem:[%s12805_s20 + $0x360] sm:$0xff] }
  0x46   :  { %636 = vmatpush.msrb.mxu1 %v459_v42  ;;  %704 = vmatpush.msrb.mxu2 %v355_v43 }
  0x47   :  { %510 = vmatpush.msra.mxu3 %v351_v44  ;;  %574 = vmatpush.msrb.mxu0 %v402_v45 }
  0x48   :  { %637 = vmatpush.msrb.mxu1 %v456_v47  ;;  %705 = vmatpush.msrb.mxu2 %v352_v48 }
  0x49   :  { %511 = vmatpush.msra.mxu3 %v348_v49  ;;  %575 = vmatpush.msrb.mxu0 %v399_v50 }
  0x4a   :  { %638 = vmatpush.msrb.mxu1 %v453_v51 }
  0x4b   :  { %162 = vmatmul.f32.gmra.mxu0 %v66_v52  ;;  %292 = vmatmul.f32.gmra.mxu2 %v66_v52 }
  0x4d   :  { %227 = vmatmul.f32.gmra.mxu1 %v66_v52  ;;  %v349_v52 = vld [vmem:[%s12805_s20 + $0x20] sm:$0xff] }
  0x4e   :  { %706 = vmatpush.msrb.mxu2 %v349_v52 }
  0x53   :  { %165 = vmatmul.f32.gmra.mxu0 %v67_v53  ;;  %295 = vmatmul.f32.gmra.mxu2 %v67_v53 }
  0x55   :  { %230 = vmatmul.f32.gmra.mxu1 %v67_v53  ;;  %v345_v53 = vld [vmem:[%s12805_s20] sm:$0xff] }
  0x56   :  { %512 = vmatpush.msra.mxu3 %v345_v53 }
  0x5b   :  { %168 = vmatmul.f32.gmra.mxu0 %v68_v54  ;;  %298 = vmatmul.f32.gmra.mxu2 %v68_v54 }
  0x5d   :  { %233 = vmatmul.f32.gmra.mxu1 %v68_v54  ;;  %v396_v54 = vld [vmem:[%s12805_s20 + $0x198] sm:$0xff] }
  0x5e   :  { %576 = vmatpush.msrb.mxu0 %v396_v54 }
  0x60   :  { %577 = vmatpush.msrb.mxu0 %v393_v57  ;;  %v440_v57 = vld [vmem:[%s12805_s20 + $0x2f8] sm:$0xff] }
  0x63   :  { %171 = vmatmul.f32.gmra.mxu0 %v69_v55  ;;  %301 = vmatmul.f32.gmra.mxu2 %v69_v55 }
  0x65   :  { %236 = vmatmul.f32.gmra.mxu1 %v69_v55  ;;  %v450_v55 = vld [vmem:[%s12805_s20 + $0x348] sm:$0xff] }
  0x66   :  { %639 = vmatpush.msrb.mxu1 %v450_v55 }
  0x68   :  { %640 = vmatpush.msrb.mxu1 %v447_v58  ;;  %v436_v58 = vld [vmem:[%s12805_s20 + $0x2d8] sm:$0xff] }
  0x6a   :  { %641 = vmatpush.msrb.mxu1 %v444_v60  ;;  %v437_v60 = vld [vmem:[%s12805_s20 + $0x2e0] sm:$0xff] }
  0x6b   :  { %174 = vmatmul.f32.gmra.mxu0 %v70_v56  ;;  %304 = vmatmul.f32.gmra.mxu2 %v70_v56 }
  0x6c   :  { %642 = vmatpush.msrb.mxu1 %v441_v61 }
  0x6d   :  { %239 = vmatmul.f32.gmra.mxu1 %v70_v56  ;;  %v346_v56 = vld [vmem:[%s12805_s20 + $0x8] sm:$0xff] }
  0x6e   :  { %707 = vmatpush.msrb.mxu2 %v346_v56  ;;  %v439_v56 = vld [vmem:[%s12805_s20 + $0x2f0] sm:$0xff] }
  0x6f   :  { %757 = vmatpush.msrb.mxu3 %v439_v56  ;;  %v418_v56 = vld [vmem:[%s12805_s20 + $0x248] sm:$0xff] }
  0x70   :  { %952 = vmatpush.msra.mxu2 %v440_v57 }
  0x71   :  { %758 = vmatpush.msrb.mxu3 %v436_v58  ;;  %v469_v58 = vld [vmem:[%s12805_s20 + $0x3e0] sm:$0xff] }
  0x72   :  { %953 = vmatpush.msra.mxu2 %v437_v60  ;;  %v419_v60 = vld [vmem:[%s12805_s20 + $0x250] sm:$0xff] }
  0x73   :  { %177 = vmatmul.f32.gmra.mxu0 %v71_v4  ;;  %307 = vmatmul.f32.gmra.mxu2 %v71_v4 }
  0x75   :  { %242 = vmatmul.f32.gmra.mxu1 %v71_v4 }
  0x7b   :  { %180 = vmatmul.f32.gmra.mxu0 %v72_v18  ;;  %310 = vmatmul.f32.gmra.mxu2 %v72_v18 }
  0x7d   :  { %245 = vmatmul.f32.gmra.mxu1 %v72_v18 }
  0x83   :  { %183 = vmatmul.f32.gmra.mxu0 %v73_v32  ;;  %313 = vmatmul.f32.gmra.mxu2 %v73_v32 }
  0x85   :  { %248 = vmatmul.f32.gmra.mxu1 %v73_v32 }
  0x8b   :  { %186 = vmatmul.f32.gmra.mxu0 %v74_v46  ;;  %316 = vmatmul.f32.gmra.mxu2 %v74_v46 }
  0x8d   :  { %251 = vmatmul.f32.gmra.mxu1 %v74_v46 }
  0x93   :  { %189 = vmatmul.f32.gmra.mxu0 %v75_v59  ;;  %319 = vmatmul.f32.gmra.mxu2 %v75_v59 }
  0x95   :  { %254 = vmatmul.f32.gmra.mxu1 %v75_v59  ;;  %v487_v59 = vld [vmem:[%s12805_s20 + $0x470] sm:$0xff] }
  0x96   :  { %822 = vmatpush.msra.mxu0 %v487_v59  ;;  %v380_v59 = vld [vmem:[%s12805_s20 + $0x118] sm:$0xff] }
  0x98   :  { %823 = vmatpush.msra.mxu0 %v484_v0  ;;  %v377_v0 = vld [vmem:[%s12805_s20 + $0x100] sm:$0xff] }
  0x9b   :  { %192 = vmatmul.f32.gmra.mxu0 %v76_v62  ;;  %322 = vmatmul.f32.gmra.mxu2 %v76_v62 }
  0x9d   :  { %257 = vmatmul.f32.gmra.mxu1 %v76_v62 }
  0xa3   :  { %195 = vmatmul.f32.gmra.mxu0 %v77_v63  ;;  %325 = vmatmul.f32.gmra.mxu2 %v77_v63 }
  0xa5   :  { %260 = vmatmul.f32.gmra.mxu1 %v77_v63  ;;  %v433_v63 = vld [vmem:[%s12805_s20 + $0x2c0] sm:$0xff] }
  0xa6   :  { %759 = vmatpush.msrb.mxu3 %v433_v63  ;;  %v466_v63 = vld [vmem:[%s12805_s20 + $0x3c8] sm:$0xff] }
  0xa8   :  { %v151_v3 = vpop.f32.mrf.mxu0 }
  0xa9   :  { %v6347_v4 = vadd.f32 %v151_v3, %v6342_v1  ;;  %v434_v3 = vld [vmem:[%s12805_s20 + $0x2c8] sm:$0xff] }
  0xaa   :  { %v216_v5 = vpop.f32.mrf.mxu1  ;;  %954 = vmatpush.msra.mxu2 %v434_v3 }
  0xab   :  { %v6350_v6 = vadd.f32 %v216_v5, %v6344_v2  ;;  %513 = vmatmul.f32.vlgmr.msra.gmra.mxu3 %v6347_v4  ;;  %708 = vmatmul.f32.vlgmr.msrb.gmra.mxu2 %v6347_v4 }
  0xad   :  { %578 = vmatmul.f32.vlgmr.msrb.gmra.mxu0 %v6350_v6 }
  0xae   :  { %v281_v8 = vpop.f32.mrf.mxu2 }
  0xaf   :  { %v6358_v9 = vadd.f32 %v281_v8, %v6354_v7 }
  0xb0   :  { %v154_v10 = vpop.f32.mrf.mxu0 }
  0xb1   :  { %v6361_v11 = vadd.f32 %v154_v10, %v6342_v1  ;;  %643 = vmatmul.f32.vlgmr.msrb.gmra.mxu1 %v6358_v9  ;;  %v430_v10 = vld [vmem:[%s12805_s20 + $0x2a8] sm:$0xff] }
  0xb2   :  { %v219_v12 = vpop.f32.mrf.mxu1  ;;  %760 = vmatpush.msrb.mxu3 %v430_v10 }
  0xb3   :  { %v6365_v13 = vadd.f32 %v219_v12, %v6344_v2  ;;  %516 = vmatmul.f32.gmra.mxu3 %v6361_v11  ;;  %711 = vmatmul.f32.gmra.mxu2 %v6361_v11  ;;  %v481_v12 = vld [vmem:[%s12805_s20 + $0x440] sm:$0xff] }
  0xb4   :  { %824 = vmatpush.msra.mxu0 %v481_v12  ;;  %v412_v12 = vld [vmem:[%s12805_s20 + $0x218] sm:$0xff] }
  0xb5   :  { %581 = vmatmul.f32.gmra.mxu0 %v6365_v13 }
  0xb6   :  { %v284_v14 = vpop.f32.mrf.mxu2 }
  0xb7   :  { %v6371_v15 = vadd.f32 %v284_v14, %v6354_v7  ;;  %v392_v14 = vld [vmem:[%s12805_s20 + $0x178] sm:$0xff] }
  0xb8   :  { %v157_v16 = vpop.f32.mrf.mxu0  ;;  %887 = vmatpush.msra.mxu1 %v392_v14  ;;  %v463_v14 = vld [vmem:[%s12805_s20 + $0x3b0] sm:$0xff] }
  0xb9   :  { %v6374_v17 = vadd.f32 %v157_v16, %v6342_v1  ;;  %646 = vmatmul.f32.gmra.mxu1 %v6371_v15 }
  0xba   :  { %v222_v18 = vpop.f32.mrf.mxu1 }
  0xbb   :  { %v6378_v19 = vadd.f32 %v222_v18, %v6344_v2  ;;  %519 = vmatmul.f32.gmra.mxu3 %v6374_v17  ;;  %714 = vmatmul.f32.gmra.mxu2 %v6374_v17  ;;  %v431_v18 = vld [vmem:[%s12805_s20 + $0x2b0] sm:$0xff] }
  0xbc   :  { %955 = vmatpush.msra.mxu2 %v431_v18 }
  0xbd   :  { %584 = vmatmul.f32.gmra.mxu0 %v6378_v19 }
  0xbe   :  { %v287_v20 = vpop.f32.mrf.mxu2 }
  0xbf   :  { %v6384_v21 = vadd.f32 %v287_v20, %v6354_v7 }
  0xc0   :  { %v160_v22 = vpop.f32.mrf.mxu0 }
  0xc1   :  { %v6387_v23 = vadd.f32 %v160_v22, %v6342_v1  ;;  %649 = vmatmul.f32.gmra.mxu1 %v6384_v21  ;;  %v427_v22 = vld [vmem:[%s12805_s20 + $0x290] sm:$0xff] }
  0xc2   :  { %v225_v24 = vpop.f32.mrf.mxu1  ;;  %761 = vmatpush.msrb.mxu3 %v427_v22  ;;  %v374_v22 = vld [vmem:[%s12805_s20 + $0xe8] sm:$0xff] }
  0xc3   :  { %v6391_v25 = vadd.f32 %v225_v24, %v6344_v2  ;;  %522 = vmatmul.f32.gmra.mxu3 %v6387_v23  ;;  %717 = vmatmul.f32.gmra.mxu2 %v6387_v23  ;;  %v478_v24 = vld [vmem:[%s12805_s20 + $0x428] sm:$0xff] }
  0xc4   :  { %825 = vmatpush.msra.mxu0 %v478_v24  ;;  %v413_v24 = vld [vmem:[%s12805_s20 + $0x220] sm:$0xff] }
  0xc5   :  { %587 = vmatmul.f32.gmra.mxu0 %v6391_v25 }
  0xc6   :  { %v290_v26 = vpop.f32.mrf.mxu2 }
  0xc7   :  { %v6397_v27 = vadd.f32 %v290_v26, %v6354_v7  ;;  %v389_v26 = vld [vmem:[%s12805_s20 + $0x160] sm:$0xff] }
  0xc8   :  { %v163_v28 = vpop.f32.mrf.mxu0  ;;  %888 = vmatpush.msra.mxu1 %v389_v26 }
  0xc9   :  { %v6400_v29 = vadd.f32 %v163_v28, %v6342_v1  ;;  %652 = vmatmul.f32.gmra.mxu1 %v6397_v27  ;;  %v428_v28 = vld [vmem:[%s12805_s20 + $0x298] sm:$0xff] }
  0xca   :  { %v228_v30 = vpop.f32.mrf.mxu1  ;;  %956 = vmatpush.msra.mxu2 %v428_v28  ;;  %v409_v28 = vld [vmem:[%s12805_s20 + $0x200] sm:$0xff] }
  0xcb   :  { %v6404_v31 = vadd.f32 %v228_v30, %v6344_v2  ;;  %525 = vmatmul.f32.gmra.mxu3 %v6400_v29  ;;  %720 = vmatmul.f32.gmra.mxu2 %v6400_v29  ;;  %v424_v30 = vld [vmem:[%s12805_s20 + $0x278] sm:$0xff] }
  0xcc   :  { %762 = vmatpush.msrb.mxu3 %v424_v30 }
  0xcd   :  { %590 = vmatmul.f32.gmra.mxu0 %v6404_v31 }
  0xce   :  { %v293_v32 = vpop.f32.mrf.mxu2 }
  0xcf   :  { %v6410_v33 = vadd.f32 %v293_v32, %v6354_v7  ;;  %v475_v32 = vld [vmem:[%s12805_s20 + $0x410] sm:$0xff] }
  0xd0   :  { %v166_v34 = vpop.f32.mrf.mxu0  ;;  %826 = vmatpush.msra.mxu0 %v475_v32  ;;  %v460_v32 = vld [vmem:[%s12805_s20 + $0x398] sm:$0xff] }
  0xd1   :  { %v6413_v35 = vadd.f32 %v166_v34, %v6342_v1  ;;  %655 = vmatmul.f32.gmra.mxu1 %v6410_v33  ;;  %v386_v34 = vld [vmem:[%s12805_s20 + $0x148] sm:$0xff] }
  0xd2   :  { %v231_v36 = vpop.f32.mrf.mxu1  ;;  %889 = vmatpush.msra.mxu1 %v386_v34  ;;  %v371_v34 = vld [vmem:[%s12805_s20 + $0xd0] sm:$0xff] }
  0xd3   :  { %v6417_v37 = vadd.f32 %v231_v36, %v6344_v2  ;;  %528 = vmatmul.f32.gmra.mxu3 %v6413_v35  ;;  %723 = vmatmul.f32.gmra.mxu2 %v6413_v35 }
  0xd5   :  { %593 = vmatmul.f32.gmra.mxu0 %v6417_v37 }
  0xd6   :  { %v296_v38 = vpop.f32.mrf.mxu2 }
  0xd7   :  { %v6423_v39 = vadd.f32 %v296_v38, %v6354_v7  ;;  %v425_v38 = vld [vmem:[%s12805_s20 + $0x280] sm:$0xff] }
  0xd8   :  { %v169_v40 = vpop.f32.mrf.mxu0  ;;  %957 = vmatpush.msra.mxu2 %v425_v38  ;;  %v406_v38 = vld [vmem:[%s12805_s20 + $0x1e8] sm:$0xff] }
  0xd9   :  { %v6426_v41 = vadd.f32 %v169_v40, %v6342_v1  ;;  %658 = vmatmul.f32.gmra.mxu1 %v6423_v39 }
  0xda   :  { %v234_v42 = vpop.f32.mrf.mxu1 }
  0xdb   :  { %v6430_v43 = vadd.f32 %v234_v42, %v6344_v2  ;;  %531 = vmatmul.f32.gmra.mxu3 %v6426_v41  ;;  %726 = vmatmul.f32.gmra.mxu2 %v6426_v41  ;;  %v421_v42 = vld [vmem:[%s12805_s20 + $0x260] sm:$0xff] }
  0xdc   :  { %763 = vmatpush.msrb.mxu3 %v421_v42  ;;  %v457_v42 = vld [vmem:[%s12805_s20 + $0x380] sm:$0xff] }
  0xdd   :  { %596 = vmatmul.f32.gmra.mxu0 %v6430_v43 }
  0xde   :  { %v299_v44 = vpop.f32.mrf.mxu2  ;;  %764 = vmatpush.msrb.mxu3 %v418_v56  ;;  %v454_v56 = vld [vmem:[%s12805_s20 + $0x368] sm:$0xff] }
  0xdf   :  { %v6436_v45 = vadd.f32 %v299_v44, %v6354_v7  ;;  %v472_v44 = vld [vmem:[%s12805_s20 + $0x3f8] sm:$0xff] }
  0xe0   :  { %v172_v46 = vpop.f32.mrf.mxu0  ;;  %827 = vmatpush.msra.mxu0 %v472_v44  ;;  %v368_v44 = vld [vmem:[%s12805_s20 + $0xb8] sm:$0xff] }
  0xe1   :  { %v6439_v47 = vadd.f32 %v172_v46, %v6342_v1  ;;  %661 = vmatmul.f32.gmra.mxu1 %v6436_v45 }
  0xe2   :  { %v237_v48 = vpop.f32.mrf.mxu1  ;;  %828 = vmatpush.msra.mxu0 %v469_v58 }
  0xe3   :  { %v6443_v49 = vadd.f32 %v237_v48, %v6344_v2  ;;  %534 = vmatmul.f32.gmra.mxu3 %v6439_v47  ;;  %729 = vmatmul.f32.gmra.mxu2 %v6439_v47 }
  0xe4   :  { %829 = vmatpush.msra.mxu0 %v466_v63 }
  0xe5   :  { %599 = vmatmul.f32.gmra.mxu0 %v6443_v49 }
  0xe6   :  { %v302_v50 = vpop.f32.mrf.mxu2  ;;  %830 = vmatpush.msra.mxu0 %v463_v14  ;;  %v401_v14 = vld [vmem:[%s12805_s20 + $0x1c0] sm:$0xff] }
  0xe7   :  { %v6449_v51 = vadd.f32 %v302_v50, %v6354_v7  ;;  %v383_v50 = vld [vmem:[%s12805_s20 + $0x130] sm:$0xff] }
  0xe8   :  { %v175_v52 = vpop.f32.mrf.mxu0  ;;  %890 = vmatpush.msra.mxu1 %v383_v50  ;;  %831 = vmatpush.msra.mxu0 %v460_v32  ;;  %v407_v50 = vld [vmem:[%s12805_s20 + $0x1f0] sm:$0xff] }
  0xe9   :  { %v6452_v53 = vadd.f32 %v175_v52, %v6342_v1  ;;  %664 = vmatmul.f32.gmra.mxu1 %v6449_v51  ;;  %v422_v52 = vld [vmem:[%s12805_s20 + $0x268] sm:$0xff] }
  0xea   :  { %v240_v54 = vpop.f32.mrf.mxu1  ;;  %958 = vmatpush.msra.mxu2 %v422_v52  ;;  %891 = vmatpush.msra.mxu1 %v380_v59 }
  0xeb   :  { %v6456_v55 = vadd.f32 %v240_v54, %v6344_v2  ;;  %537 = vmatmul.f32.gmra.mxu3 %v6452_v53  ;;  %732 = vmatmul.f32.gmra.mxu2 %v6452_v53 }
  0xec   :  { %959 = vmatpush.msra.mxu2 %v419_v60  ;;  %892 = vmatpush.msra.mxu1 %v377_v0  ;;  %v365_v60 = vld [vmem:[%s12805_s20 + $0xa0] sm:$0xff]  ;;  %v400_v0 = vld [vmem:[%s12805_s20 + $0x1b8] sm:$0xff] }
  0xed   :  { %602 = vmatmul.f32.gmra.mxu0 %v6456_v55 }
  0xee   :  { %v305_v61 = vpop.f32.mrf.mxu2  ;;  %893 = vmatpush.msra.mxu1 %v374_v22  ;;  %832 = vmatpush.msra.mxu0 %v457_v42  ;;  %v448_v22 = vld [vmem:[%s12805_s20 + $0x338] sm:$0xff] }
  0xef   :  { %v6477_v62 = vadd.f32 %v305_v61, %v6354_v7  ;;  %v415_v61 = vld [vmem:[%s12805_s20 + $0x230] sm:$0xff] }
  0xf0   :  { %v178_v5 = vpop.f32.mrf.mxu0  ;;  %765 = vmatpush.msrb.mxu3 %v415_v61  ;;  %894 = vmatpush.msra.mxu1 %v371_v34  ;;  %v404_v61 = vld [vmem:[%s12805_s20 + $0x1d8] sm:$0xff]  ;;  %v394_v34 = vld [vmem:[%s12805_s20 + $0x188] sm:$0xff] }
  0xf1   :  { %v6489_v8 = vadd.f32 %v178_v5, %v6342_v1  ;;  %667 = vmatmul.f32.gmra.mxu1 %v6477_v62  ;;  %v416_v5 = vld [vmem:[%s12805_s20 + $0x238] sm:$0xff]  ;;  %833 = vmatpush.msra.mxu0 %v454_v56  ;;  %v442_v56 = vld [vmem:[%s12805_s20 + $0x308] sm:$0xff] }
  0xf2   :  { %v243_v16 = vpop.f32.mrf.mxu1  ;;  %960 = vmatpush.msra.mxu2 %v416_v5  ;;  %766 = vmatpush.msrb.mxu3 %v412_v12  ;;  %v451_v5 = vld [vmem:[%s12805_s20 + $0x350] sm:$0xff]  ;;  %v362_v12 = vld [vmem:[%s12805_s20 + $0x88] sm:$0xff] }
  0xf3   :  { %v6505_v20 = vadd.f32 %v243_v16, %v6344_v2  ;;  %540 = vmatmul.f32.gmra.mxu3 %v6489_v8  ;;  %735 = vmatmul.f32.gmra.mxu2 %v6489_v8 }
  0xf4   :  { %961 = vmatpush.msra.mxu2 %v413_v24  ;;  %767 = vmatpush.msrb.mxu3 %v409_v28  ;;  %v359_v24 = vld [vmem:[%s12805_s20 + $0x70] sm:$0xff]  ;;  %v398_v28 = vld [vmem:[%s12805_s20 + $0x1a8] sm:$0xff] }
  0xf5   :  { %605 = vmatmul.f32.gmra.mxu0 %v6505_v20  ;;  %895 = vmatpush.msra.mxu1 %v368_v44  ;;  %v356_v44 = vld [vmem:[%s12805_s20 + $0x58] sm:$0xff] }
  0xf6   :  { %v308_v36 = vpop.f32.mrf.mxu2  ;;  %768 = vmatpush.msrb.mxu3 %v406_v38  ;;  %834 = vmatpush.msra.mxu0 %v451_v5 }
  0xf7   :  { %v6535_v40 = vadd.f32 %v308_v36, %v6354_v7  ;;  %v410_v36 = vld [vmem:[%s12805_s20 + $0x208] sm:$0xff]  ;;  %896 = vmatpush.msra.mxu1 %v365_v60 }
  0xf8   :  { %v181_v46 = vpop.f32.mrf.mxu0  ;;  %962 = vmatpush.msra.mxu2 %v410_v36  ;;  %v445_v36 = vld [vmem:[%s12805_s20 + $0x320] sm:$0xff]  ;;  %835 = vmatpush.msra.mxu0 %v448_v22  ;;  %v350_v60 = vld [vmem:[%s12805_s20 + $0x28] sm:$0xff] }
  0xf9   :  { %v6544_v48 = vadd.f32 %v181_v46, %v6342_v1  ;;  %670 = vmatmul.f32.gmra.mxu1 %v6535_v40 }
  0xfa   :  { %v246_v54 = vpop.f32.mrf.mxu1  ;;  %963 = vmatpush.msra.mxu2 %v407_v50  ;;  %897 = vmatpush.msra.mxu1 %v362_v12 }
  0xfb   :  { %v6557_v57 = vadd.f32 %v246_v54, %v6344_v2  ;;  %543 = vmatmul.f32.gmra.mxu3 %v6544_v48  ;;  %738 = vmatmul.f32.gmra.mxu2 %v6544_v48  ;;  %v403_v54 = vld [vmem:[%s12805_s20 + $0x1d0] sm:$0xff] }
  0xfc   :  { %769 = vmatpush.msrb.mxu3 %v403_v54  ;;  %964 = vmatpush.msra.mxu2 %v404_v61 }
  0xfd   :  { %608 = vmatmul.f32.gmra.mxu0 %v6557_v57  ;;  %898 = vmatpush.msra.mxu1 %v359_v24 }
  0xfe   :  { %v311_v3 = vpop.f32.mrf.mxu2  ;;  %770 = vmatpush.msrb.mxu3 %v400_v0  ;;  %965 = vmatpush.msra.mxu2 %v401_v14  ;;  %v347_v0 = vld [vmem:[%s12805_s20 + $0x10] sm:$0xff] }
  0xff   :  { %v6584_v10 = vadd.f32 %v311_v3, %v6354_v7  ;;  %836 = vmatpush.msra.mxu0 %v445_v36  ;;  %899 = vmatpush.msra.mxu1 %v356_v44 }
 0x100   :  { %v184_v16 = vpop.f32.mrf.mxu0  ;;  %966 = vmatpush.msra.mxu2 %v398_v28 }
 0x101   :  { %v6593_v18 = vadd.f32 %v184_v16, %v6342_v1  ;;  %673 = vmatmul.f32.gmra.mxu1 %v6584_v10  ;;  %v397_v16 = vld [vmem:[%s12805_s20 + $0x1a0] sm:$0xff]  ;;  %837 = vmatpush.msra.mxu0 %v442_v56 }
 0x102   :  { %v249_v26 = vpop.f32.mrf.mxu1  ;;  %771 = vmatpush.msrb.mxu3 %v397_v16 }
 0x103   :  { %v6606_v30 = vadd.f32 %v249_v26, %v6344_v2  ;;  %546 = vmatmul.f32.gmra.mxu3 %v6593_v18  ;;  %741 = vmatmul.f32.gmra.mxu2 %v6593_v18 }
 0x104   :  { %772 = vmatpush.msrb.mxu3 %v394_v34 }
 0x105   :  { %611 = vmatmul.f32.gmra.mxu0 %v6606_v30 }
 0x106   :  { %v314_v46 = vpop.f32.mrf.mxu2 }
 0x107   :  { %v6633_v52 = vadd.f32 %v314_v46, %v6354_v7  ;;  %v395_v46 = vld [vmem:[%s12805_s20 + $0x190] sm:$0xff] }
 0x108   :  { %v187_v58 = vpop.f32.mrf.mxu0  ;;  %967 = vmatpush.msra.mxu2 %v395_v46 }
 0x109   :  { %12807 = vst [vmem:[#allocation2_spill] sm:$0xff] %v6633_v52  ;;  %v6642_v59 = vadd.f32 %v187_v58, %v6342_v1  ;;  %676 = vmatmul.f32.gmra.mxu1 %v6633_v52  ;;  %v353_v58 = vld [vmem:[%s12805_s20 + $0x40] sm:$0xff] }
 0x10a   :  { %v252_v63 = vpop.f32.mrf.mxu1  ;;  %900 = vmatpush.msra.mxu1 %v353_v58 }
 0x10b   :  { %v6655_v3 = vadd.f32 %v252_v63, %v6344_v2  ;;  %549 = vmatmul.f32.gmra.mxu3 %v6642_v59  ;;  %744 = vmatmul.f32.gmra.mxu2 %v6642_v59 }
 0x10c   :  { %901 = vmatpush.msra.mxu1 %v350_v60 }
 0x10d   :  { %614 = vmatmul.f32.gmra.mxu0 %v6655_v3 }
 0x10e   :  { %v317_v26 = vpop.f32.mrf.mxu2  ;;  %902 = vmatpush.msra.mxu1 %v347_v0 }
 0x10f   :  { %v6682_v32 = vadd.f32 %v317_v26, %v6354_v7 }
 0x110   :  { %v190_v38 = vpop.f32.mrf.mxu0 }
 0x111   :  { %12808 = vst [vmem:[#allocation3_spill] sm:$0xff] %v6682_v32  ;;  %v6691_v42 = vadd.f32 %v190_v38, %v6342_v1  ;;  %679 = vmatmul.f32.gmra.mxu1 %v6682_v32 }
 0x112   :  { %v255_v50 = vpop.f32.mrf.mxu1 }
 0x113   :  { %v6701_v54 = vadd.f32 %v255_v50, %v6344_v2  ;;  %552 = vmatmul.f32.gmra.mxu3 %v6691_v42  ;;  %747 = vmatmul.f32.gmra.mxu2 %v6691_v42 }
 0x115   :  { %617 = vmatmul.f32.gmra.mxu0 %v6701_v54 }
 0x116   :  { %v320_v61 = vpop.f32.mrf.mxu2 }
 0x117   :  { %v6716_v63 = vadd.f32 %v320_v61, %v6354_v7 }
 0x118   :  { %v193_v5 = vpop.f32.mrf.mxu0 }
 0x119   :  { %12809 = vst [vmem:[#allocation4_spill] sm:$0xff] %v6716_v63  ;;  %v6722_v12 = vadd.f32 %v193_v5, %v6342_v1  ;;  %682 = vmatmul.f32.gmra.mxu1 %v6716_v63 }
 0x11a   :  { %v258_v14 = vpop.f32.mrf.mxu1 }
 0x11b   :  { %v6726_v16 = vadd.f32 %v258_v14, %v6344_v2  ;;  %555 = vmatmul.f32.gmra.mxu3 %v6722_v12  ;;  %750 = vmatmul.f32.gmra.mxu2 %v6722_v12 }
 0x11d   :  { %620 = vmatmul.f32.gmra.mxu0 %v6726_v16 }
 0x11e   :  { %v323_v22 = vpop.f32.mrf.mxu2 }
 0x11f   :  { %v6732_v24 = vadd.f32 %v323_v22, %v6354_v7 }
 0x120   :  { %v196_v26 = vpop.f32.mrf.mxu0 }
 0x121   :  { %12810 = vst [vmem:[#allocation5_spill] sm:$0xff] %v6732_v24  ;;  %v6735_v28 = vadd.f32 %v196_v26, %v6342_v1  ;;  %685 = vmatmul.f32.gmra.mxu1 %v6732_v24  ;;  %v6750_v1 = vld [vmem:[%s12691_s6] sm:$0x7] }
 0x122   :  { %v261_v34 = vpop.f32.mrf.mxu1 }
 0x123   :  { %v6739_v36 = vadd.f32 %v261_v34, %v6344_v2  ;;  %558 = vmatmul.f32.gmra.mxu3 %v6735_v28  ;;  %753 = vmatmul.f32.gmra.mxu2 %v6735_v28  ;;  %v6756_v2 = vperm.slane %v6750_v1, 0 }
 0x125   :  { %623 = vmatmul.f32.gmra.mxu0 %v6739_v36 }
 0x126   :  { %v326_v38 = vpop.f32.mrf.mxu2 }
 0x127   :  { %v6745_v44 = vadd.f32 %v326_v38, %v6354_v7 }
 0x129   :  { %12811 = vst [vmem:[#allocation6_spill] sm:$0xff] %v6745_v44  ;;  %688 = vmatmul.f32.gmra.mxu1 %v6745_v44 }
 0x12a   :  { %v579_v46 = vpop.f32.mrf.mxu0 }
 0x12b   :  { %773 = vmatmul.f32.vlgmr.msrb.gmra.mxu3 %v6350_v6  ;;  %968 = vmatmul.f32.vlgmr.msra.gmra.mxu2 %v6350_v6 }
 0x12d   :  { %838 = vmatmul.f32.vlgmr.msra.gmra.mxu0 %v6358_v9 }
 0x12e   :  { %v514_v50 = vpop.f32.mrf.mxu3  ;;  %v644_v7 = vpop.f32.mrf.mxu1 }
 0x12f   :  { %v515_v56 = vadd.f32 %v514_v50, %v6756_v2 }
 0x131   :  { %v580_v58 = vadd.f32 %v579_v46, %v515_v56  ;;  %903 = vmatmul.f32.vlgmr.msra.gmra.mxu1 %v6347_v4 }
 0x132   :  { %v582_v60 = vpop.f32.mrf.mxu0 }
 0x133   :  { %v6761_v61 = vadd.f32 %v644_v7, %v580_v58  ;;  %776 = vmatmul.f32.gmra.mxu3 %v6365_v13  ;;  %971 = vmatmul.f32.gmra.mxu2 %v6365_v13 }
 0x135   :  { %841 = vmatmul.f32.gmra.mxu0 %v6371_v15 }
 0x136   :  { %v517_v6 = vpop.f32.mrf.mxu3  ;;  %v647_v0 = vpop.f32.mrf.mxu1 }
 0x137   :  { %v518_v5 = vadd.f32 %v517_v6, %v6756_v2 }
 0x139   :  { %v583_v14 = vadd.f32 %v582_v60, %v518_v5  ;;  %906 = vmatmul.f32.gmra.mxu1 %v6361_v11 }
 0x13a   :  { %v585_v22 = vpop.f32.mrf.mxu0 }
 0x13b   :  { %v6768_v26 = vadd.f32 %v647_v0, %v583_v14  ;;  %779 = vmatmul.f32.gmra.mxu3 %v6378_v19  ;;  %974 = vmatmul.f32.gmra.mxu2 %v6378_v19 }
 0x13d   :  { %844 = vmatmul.f32.gmra.mxu0 %v6384_v21 }
 0x13e   :  { %v520_v4 = vpop.f32.mrf.mxu3  ;;  %v650_v13 = vpop.f32.mrf.mxu1 }
 0x13f   :  { %v521_v34 = vadd.f32 %v520_v4, %v6756_v2 }
 0x141   :  { %v586_v38 = vadd.f32 %v585_v22, %v521_v34  ;;  %909 = vmatmul.f32.gmra.mxu1 %v6374_v17 }
 0x142   :  { %v588_v46 = vpop.f32.mrf.mxu0 }
 0x143   :  { %v6775_v50 = vadd.f32 %v650_v13, %v586_v38  ;;  %782 = vmatmul.f32.gmra.mxu3 %v6391_v25  ;;  %977 = vmatmul.f32.gmra.mxu2 %v6391_v25 }
 0x145   :  { %847 = vmatmul.f32.gmra.mxu0 %v6397_v27 }
 0x146   :  { %v523_v11 = vpop.f32.mrf.mxu3  ;;  %v653_v19 = vpop.f32.mrf.mxu1 }
 0x147   :  { %v524_v7 = vadd.f32 %v523_v11, %v6756_v2 }
 0x149   :  { %v589_v56 = vadd.f32 %v588_v46, %v524_v7  ;;  %912 = vmatmul.f32.gmra.mxu1 %v6387_v23 }
 0x14a   :  { %v591_v58 = vpop.f32.mrf.mxu0 }
 0x14b   :  { %v6782_v60 = vadd.f32 %v653_v19, %v589_v56  ;;  %785 = vmatmul.f32.gmra.mxu3 %v6404_v31  ;;  %980 = vmatmul.f32.gmra.mxu2 %v6404_v31 }
 0x14d   :  { %850 = vmatmul.f32.gmra.mxu0 %v6410_v33 }
 0x14e   :  { %v526_v17 = vpop.f32.mrf.mxu3  ;;  %v656_v25 = vpop.f32.mrf.mxu1 }
 0x14f   :  { %v527_v6 = vadd.f32 %v526_v17, %v6756_v2 }
 0x151   :  { %v592_v0 = vadd.f32 %v591_v58, %v527_v6  ;;  %915 = vmatmul.f32.gmra.mxu1 %v6400_v29  ;;  %v6800_v29 = vpop.f32.mrf.mxu2 }
 0x152   :  { %v594_v5 = vpop.f32.mrf.mxu0 }
 0x153   :  { %v6789_v14 = vadd.f32 %v656_v25, %v592_v0  ;;  %788 = vmatmul.f32.gmra.mxu3 %v6417_v37  ;;  %983 = vmatmul.f32.gmra.mxu2 %v6417_v37 }
 0x155   :  { %853 = vmatmul.f32.gmra.mxu0 %v6423_v39 }
 0x156   :  { %v529_v23 = vpop.f32.mrf.mxu3  ;;  %v659_v31 = vpop.f32.mrf.mxu1 }
 0x157   :  { %v530_v22 = vadd.f32 %v529_v23, %v6756_v2 }
 0x159   :  { %v595_v4 = vadd.f32 %v594_v5, %v530_v22  ;;  %918 = vmatmul.f32.gmra.mxu1 %v6413_v35  ;;  %v6810_v56 = vpop.f32.mrf.mxu2  ;;  %v476_v22 = vld [vmem:[%s12805_s20 + $0x418] sm:$0xff] }
 0x15a   :  { %v597_v13 = vpop.f32.mrf.mxu0 }
 0x15b   :  { %v6796_v34 = vadd.f32 %v659_v31, %v595_v4  ;;  %791 = vmatmul.f32.gmra.mxu3 %v6430_v43  ;;  %986 = vmatmul.f32.gmra.mxu2 %v6430_v43  ;;  %v479_v31 = vld [vmem:[%s12805_s20 + $0x430] sm:$0xff] }
 0x15d   :  { %856 = vmatmul.f32.gmra.mxu0 %v6436_v45 }
 0x15e   :  { %v532_v37 = vpop.f32.mrf.mxu3  ;;  %v662_v38 = vpop.f32.mrf.mxu1 }
 0x15f   :  { %v533_v46 = vadd.f32 %v532_v37, %v6756_v2 }
 0x161   :  { %v598_v11 = vadd.f32 %v597_v13, %v533_v46  ;;  %921 = vmatmul.f32.gmra.mxu1 %v6426_v41  ;;  %v6834_v5 = vpop.f32.mrf.mxu2  ;;  %v473_v13 = vld [vmem:[%s12805_s20 + $0x400] sm:$0xff] }
 0x162   :  { %v600_v19 = vpop.f32.mrf.mxu0 }
 0x163   :  { %v6805_v35 = vadd.f32 %v662_v38, %v598_v11  ;;  %794 = vmatmul.f32.gmra.mxu3 %v6443_v49  ;;  %989 = vmatmul.f32.gmra.mxu2 %v6443_v49  ;;  %v488_v49 = vld [vmem:[%s12805_s20 + $0x478] sm:$0xff]  ;;  %v467_v38 = vld [vmem:[%s12805_s20 + $0x3d0] sm:$0xff] }
 0x164   :  { %1017 = vmatpush.msra.mxu3 %v488_v49  ;;  %v464_v11 = vld [vmem:[%s12805_s20 + $0x3b8] sm:$0xff] }
 0x165   :  { %859 = vmatmul.f32.gmra.mxu0 %v6449_v51 }
 0x166   :  { %v535_v43 = vpop.f32.mrf.mxu3  ;;  %v665_v7 = vpop.f32.mrf.mxu1 }
 0x167   :  { %v536_v58 = vadd.f32 %v535_v43, %v6756_v2  ;;  %v461_v43 = vld [vmem:[%s12805_s20 + $0x3a0] sm:$0xff] }
 0x169   :  { %v601_v17 = vadd.f32 %v600_v19, %v536_v58  ;;  %924 = vmatmul.f32.gmra.mxu1 %v6439_v47  ;;  %v485_v47 = vld [vmem:[%s12805_s20 + $0x460] sm:$0xff]  ;;  %v6864_v46 = vpop.f32.mrf.mxu2  ;;  %v455_v58 = vld [vmem:[%s12805_s20 + $0x370] sm:$0xff] }
 0x16a   :  { %v6814_v25 = vpop.f32.mrf.mxu0  ;;  %1018 = vmatpush.msra.mxu3 %v485_v47 }
 0x16b   :  { %v6816_v41 = vadd.f32 %v665_v7, %v601_v17  ;;  %797 = vmatmul.f32.gmra.mxu3 %v6456_v55  ;;  %992 = vmatmul.f32.gmra.mxu2 %v6456_v55  ;;  %v482_v55 = vld [vmem:[%s12805_s20 + $0x448] sm:$0xff]  ;;  %v452_v17 = vld [vmem:[%s12805_s20 + $0x358] sm:$0xff] }
 0x16c   :  { %1019 = vmatpush.msra.mxu3 %v482_v55  ;;  %v449_v55 = vld [vmem:[%s12805_s20 + $0x340] sm:$0xff] }
 0x16d   :  { %862 = vmatmul.f32.gmra.mxu0 %v6477_v62 }
 0x16e   :  { %v6824_v6 = vpop.f32.mrf.mxu3  ;;  %v6826_v0 = vpop.f32.mrf.mxu1  ;;  %1020 = vmatpush.msra.mxu3 %v479_v31 }
 0x170   :  { %1021 = vmatpush.msra.mxu3 %v476_v22  ;;  %v443_v22 = vld [vmem:[%s12805_s20 + $0x310] sm:$0xff] }
 0x171   :  { %927 = vmatmul.f32.gmra.mxu1 %v6452_v53  ;;  %v6893_v49 = vpop.f32.mrf.mxu2 }
 0x172   :  { %v6837_v23 = vpop.f32.mrf.mxu0  ;;  %1022 = vmatpush.msra.mxu3 %v473_v13 }
 0x173   :  { %800 = vmatmul.f32.gmra.mxu3 %v6505_v20  ;;  %995 = vmatmul.f32.gmra.mxu2 %v6505_v20  ;;  %v470_v20 = vld [vmem:[%s12805_s20 + $0x3e8] sm:$0xff] }
 0x174   :  { %1023 = vmatpush.msra.mxu3 %v470_v20 }
 0x175   :  { %865 = vmatmul.f32.gmra.mxu0 %v6535_v40 }
 0x176   :  { %v6848_v4 = vpop.f32.mrf.mxu3  ;;  %v6850_v53 = vpop.f32.mrf.mxu1  ;;  %1024 = vmatpush.msra.mxu3 %v467_v38 }
 0x178   :  { %1025 = vmatpush.msra.mxu3 %v464_v11 }
 0x179   :  { %930 = vmatmul.f32.gmra.mxu1 %v6489_v8  ;;  %v6911_v38 = vpop.f32.mrf.mxu2 }
 0x17a   :  { %v6859_v37 = vpop.f32.mrf.mxu0  ;;  %1026 = vmatpush.msra.mxu3 %v461_v43 }
 0x17b   :  { %803 = vmatmul.f32.gmra.mxu3 %v6557_v57  ;;  %998 = vmatmul.f32.gmra.mxu2 %v6557_v57  ;;  %v458_v57 = vld [vmem:[%s12805_s20 + $0x388] sm:$0xff] }
 0x17c   :  { %1027 = vmatpush.msra.mxu3 %v458_v57 }
 0x17d   :  { %868 = vmatmul.f32.gmra.mxu0 %v6584_v10 }
 0x17e   :  { %v6872_v8 = vpop.f32.mrf.mxu3  ;;  %v6874_v19 = vpop.f32.mrf.mxu1  ;;  %1028 = vmatpush.msra.mxu3 %v455_v58 }
 0x180   :  { %1029 = vmatpush.msra.mxu3 %v452_v17 }
 0x181   :  { %933 = vmatmul.f32.gmra.mxu1 %v6544_v48  ;;  %v6917_v57 = vpop.f32.mrf.mxu2 }
 0x182   :  { %v6883_v7 = vpop.f32.mrf.mxu0  ;;  %1030 = vmatpush.msra.mxu3 %v449_v55 }
 0x183   :  { %806 = vmatmul.f32.gmra.mxu3 %v6606_v30  ;;  %1001 = vmatmul.f32.gmra.mxu2 %v6606_v30  ;;  %v446_v30 = vld [vmem:[%s12805_s20 + $0x328] sm:$0xff] }
 0x184   :  { %1031 = vmatpush.msra.mxu3 %v446_v30 }
 0x185   :  { %871 = vmatmul.f32.gmra.mxu0 %v6633_v52 }
 0x186   :  { %v547_v48 = vpop.f32.mrf.mxu3  ;;  %v6896_v47 = vpop.f32.mrf.mxu1  ;;  %1032 = vmatpush.msra.mxu3 %v443_v22 }
 0x189   :  { %936 = vmatmul.f32.gmra.mxu1 %v6593_v18  ;;  %v6924_v17 = vpop.f32.mrf.mxu2 }
 0x18a   :  { %v615_v31 = vpop.f32.mrf.mxu0 }
 0x18b   :  { %809 = vmatmul.f32.gmra.mxu3 %v6655_v3  ;;  %1004 = vmatmul.f32.gmra.mxu2 %v6655_v3 }
 0x18d   :  { %874 = vmatmul.f32.gmra.mxu0 %v6682_v32 }
 0x18e   :  { %v550_v13 = vpop.f32.mrf.mxu3  ;;  %v680_v20 = vpop.f32.mrf.mxu1 }
 0x18f   :  { %v551_v30 = vadd.f32 %v550_v13, %v6756_v2 }
 0x191   :  { %939 = vmatmul.f32.gmra.mxu1 %v6642_v59 }
 0x192   :  { %v618_v18 = vpop.f32.mrf.mxu0 }
 0x193   :  { %812 = vmatmul.f32.gmra.mxu3 %v6701_v54  ;;  %1007 = vmatmul.f32.gmra.mxu2 %v6701_v54 }
 0x195   :  { %877 = vmatmul.f32.gmra.mxu0 %v6716_v63  ;;  %v548_v63 = vadd.f32 %v547_v48, %v6756_v2  ;;  %v542_v48 = vadd.f32 %v6848_v4, %v6756_v2 }
 0x196   :  { %v553_v11 = vpop.f32.mrf.mxu3  ;;  %v683_v43 = vpop.f32.mrf.mxu1 }
 0x199   :  { %942 = vmatmul.f32.gmra.mxu1 %v6691_v42  ;;  %v554_v42 = vadd.f32 %v553_v11, %v6756_v2  ;;  %v545_v11 = vadd.f32 %v6872_v8, %v6756_v2 }
 0x19a   :  { %v621_v3 = vpop.f32.mrf.mxu0 }
 0x19b   :  { %815 = vmatmul.f32.gmra.mxu3 %v6726_v16  ;;  %1010 = vmatmul.f32.gmra.mxu2 %v6726_v16  ;;  %v610_v8 = vadd.f32 %v6859_v37, %v545_v11  ;;  %v1088_v11 = vmax.f32 %v6775_v50, 0.0 }
 0x19d   :  { %880 = vmatmul.f32.gmra.mxu0 %v6732_v24 }
 0x19e   :  { %v556_v59 = vpop.f32.mrf.mxu3  ;;  %v686_v58 = vpop.f32.mrf.mxu1 }
 0x19f   :  { %v557_v55 = vadd.f32 %v556_v59, %v6756_v2  ;;  %v619_v59 = vadd.f32 %v618_v18, %v554_v42 }
 0x1a1   :  { %945 = vmatmul.f32.gmra.mxu1 %v6722_v12  ;;  %v622_v22 = vadd.f32 %v621_v3, %v557_v55  ;;  %v6934_v12 = vperm.slane %v6750_v1, 1 }
 0x1a2   :  { %v624_v54 = vpop.f32.mrf.mxu0 }
 0x1a3   :  { %818 = vmatmul.f32.gmra.mxu3 %v6739_v36  ;;  %1013 = vmatmul.f32.gmra.mxu2 %v6739_v36  ;;  %v687_v13 = vadd.f32 %v686_v58, %v622_v22  ;;  %v710_v1 = vadd.f32 %v6800_v29, %v6934_v12  ;;  %v722_v50 = vadd.f32 %v6893_v49, %v6934_v12 }
 0x1a4   :  { %v725_v49 = vadd.f32 %v6911_v38, %v6934_v12 }
 0x1a5   :  { %883 = vmatmul.f32.gmra.mxu0 %v6745_v44  ;;  %v616_v44 = vadd.f32 %v615_v31, %v551_v30  ;;  %v1100_v30 = vmax.f32 %v6805_v35, 0.0 }
 0x1a6   :  { %v559_v16 = vpop.f32.mrf.mxu3  ;;  %v689_v36 = vpop.f32.mrf.mxu1 }
 0x1a7   :  { %v560_v24 = vadd.f32 %v559_v16, %v6756_v2  ;;  %v681_v31 = vadd.f32 %v680_v20, %v616_v44  ;;  %v713_v44 = vadd.f32 %v6810_v56, %v6934_v12  ;;  %v716_v56 = vadd.f32 %v6834_v5, %v6934_v12  ;;  %v6972_v16 = vpop.f32.mrf.mxu2 }
 0x1a8   :  { %v719_v5 = vadd.f32 %v6864_v46, %v6934_v12 }
 0x1a9   :  { %v625_v32 = vadd.f32 %v624_v54, %v560_v24  ;;  %948 = vmatmul.f32.gmra.mxu1 %v6735_v28  ;;  %v613_v24 = vadd.f32 %v6883_v7, %v548_v63  ;;  %v684_v28 = vadd.f32 %v683_v43, %v619_v59  ;;  %v539_v54 = vadd.f32 %v6824_v6, %v6756_v2 }
 0x1aa   :  { %v6938_v52 = vpop.f32.mrf.mxu0  ;;  %v675_v2 = vadd.f32 %v6874_v19, %v610_v8  ;;  %v1118_v6 = vmax.f32 %v681_v31, 0.0  ;;  %v1097_v59 = vmax.f32 %v6796_v34, 0.0  ;;  %v731_v31 = vadd.f32 %v6924_v17, %v6934_v12 }
 0x1ab   :  { %v690_v3 = vadd.f32 %v689_v36, %v625_v32  ;;  %1033 = vmatmul.f32.vlgmr.msra.gmra.mxu3 %v6358_v9  ;;  %v1124_v32 = vmax.f32 %v687_v13, 0.0  ;;  %v607_v9 = vadd.f32 %v6837_v23, %v542_v48  ;;  %v678_v29 = vadd.f32 %v6896_v47, %v613_v24 }
 0x1ac   :  { %v1121_v4 = vmax.f32 %v684_v28, 0.0  ;;  %v604_v7 = vadd.f32 %v6814_v25, %v539_v54  ;;  %v1112_v43 = vmax.f32 %v675_v2, 0.0  ;;  %v728_v54 = vadd.f32 %v6917_v57, %v6934_v12  ;;  %v7069_v2 = vld [vmem:[%s12692_s1 + $0x28] sm:$0xff] }
 0x1ad   :  { %v1127_v18 = vmax.f32 %v690_v3, 0.0  ;;  %v672_v37 = vadd.f32 %v6850_v53, %v607_v9  ;;  %v1115_v23 = vmax.f32 %v678_v29, 0.0  ;;  %v1103_v53 = vmax.f32 %v6816_v41, 0.0  ;;  %12812 = vst [vmem:[#allocation7_spill] sm:$0xff] %v7069_v2 }
 0x1ae   :  { %v774_v55 = vpop.f32.mrf.mxu3  ;;  %v669_v20 = vadd.f32 %v6826_v0, %v604_v7  ;;  %v1091_v41 = vmax.f32 %v6782_v60, 0.0  ;;  %v1085_v3 = vmax.f32 %v6768_v26, 0.0  ;;  %v6998_v60 = vld [vmem:[%s12692_s1] sm:$0xff] }
 0x1af   :  { %v6951_v58 = vadd.f32 %v774_v55, %v710_v1  ;;  %1130 = vmatpush.msrb.mxu0 %v1127_v18  ;;  %v1109_v25 = vmax.f32 %v672_v37, 0.0  ;;  %v6988_v34 = vpop.f32.mrf.mxu2  ;;  %v7080_v37 = vld [vmem:[%s12692_s1 + $0x30] sm:$0xff] }
 0x1b0   :  { %12813 = vst [vmem:[#allocation8_spill] sm:$0xff] %v7080_v37 }
 0x1b1   :  { %1131 = vmatpush.msrb.mxu0 %v1124_v32 }
 0x1b2   :  { %v6955_v63 = vpop.f32.mrf.mxu0 }
 0x1b3   :  { %1036 = vmatmul.f32.gmra.mxu3 %v6371_v15  ;;  %1132 = vmatpush.msrb.mxu0 %v1121_v4  ;;  %v1106_v15 = vmax.f32 %v669_v20, 0.0  ;;  %v7091_v20 = vld [vmem:[%s12692_s1 + $0x38] sm:$0xff] }
 0x1b5   :  { %1133 = vmatpush.msrb.mxu0 %v1118_v6 }
 0x1b6   :  { %v777_v47 = vpop.f32.mrf.mxu3 }
 0x1b7   :  { %v6964_v42 = vadd.f32 %v777_v47, %v713_v44  ;;  %1134 = vmatpush.msrb.mxu0 %v1115_v23  ;;  %v7005_v1 = vpop.f32.mrf.mxu2  ;;  %v12814_v47 = vld [vmem:[#allocation2_spill] sm:$0xff] }
 0x1b8   :  { %12815 = vst [vmem:[#allocation2_spill] sm:$0xff] %v7091_v20 }
 0x1b9   :  { %1135 = vmatpush.msrb.mxu0 %v1112_v43 }
 0x1ba   :  { %v6966_v19 = vpop.f32.mrf.mxu0 }
 0x1bb   :  { %1039 = vmatmul.f32.gmra.mxu3 %v6384_v21  ;;  %1136 = vmatpush.msrb.mxu0 %v1109_v25  ;;  %v1094_v21 = vmax.f32 %v6789_v14, 0.0  ;;  %v7096_v25 = vpop.f32.mrf.mxu1 }
 0x1bc   :  { %12816 = vst [vmem:[#allocation9_spill] sm:$0xff] %v7096_v25 }
 0x1bd   :  { %1137 = vmatpush.msrb.mxu0 %v1106_v15 }
 0x1be   :  { %v780_v0 = vpop.f32.mrf.mxu3 }
 0x1bf   :  { %v6975_v22 = vadd.f32 %v780_v0, %v716_v56  ;;  %1138 = vmatpush.msrb.mxu0 %v1103_v53  ;;  %v7028_v18 = vpop.f32.mrf.mxu2  ;;  %v12817_v56 = vld [vmem:[#allocation3_spill] sm:$0xff]  ;;  %v7104_v53 = vld [vmem:[%s12692_s1 + $0x40] sm:$0xff] }
 0x1c0   :  { %12818 = vst [vmem:[#allocation3_spill] sm:$0xff] %v7104_v53 }
 0x1c1   :  { %1139 = vmatpush.msrb.mxu0 %v1100_v30 }
 0x1c2   :  { %v6978_v36 = vpop.f32.mrf.mxu0 }
 0x1c3   :  { %1042 = vmatmul.f32.gmra.mxu3 %v6397_v27  ;;  %1140 = vmatpush.msrb.mxu0 %v1097_v59  ;;  %v1082_v27 = vmax.f32 %v6761_v61, 0.0  ;;  %v1370_v59 = vld [vmem:[%s12693_s7 + $0x168] sm:$0xff] }
 0x1c4   :  { %1477 = vmatpush.msrb.mxu3 %v1370_v59 }
 0x1c5   :  { %1141 = vmatpush.msrb.mxu0 %v1094_v21  ;;  %v1367_v21 = vld [vmem:[%s12693_s7 + $0x150] sm:$0xff] }
 0x1c6   :  { %v783_v35 = vpop.f32.mrf.mxu3  ;;  %1478 = vmatpush.msrb.mxu3 %v1367_v21  ;;  %v1346_v21 = vld [vmem:[%s12693_s7 + $0xa8] sm:$0xff] }
 0x1c7   :  { %v6986_v13 = vadd.f32 %v783_v35, %v719_v5  ;;  %1142 = vmatpush.msrb.mxu0 %v1091_v41  ;;  %v7045_v32 = vpop.f32.mrf.mxu2  ;;  %v7115_v41 = vpop.f32.mrf.mxu1  ;;  %v12820_v5 = vld [vmem:[#allocation4_spill] sm:$0xff]  ;;  %v7121_v35 = vld [vmem:[%s12692_s1 + $0x48] sm:$0xff] }
 0x1c8   :  { %12821 = vst [vmem:[#allocation4_spill] sm:$0xff] %v7121_v35 }
 0x1c9   :  { %1143 = vmatpush.msrb.mxu0 %v1088_v11  ;;  %v1364_v11 = vld [vmem:[%s12693_s7 + $0x138] sm:$0xff] }
 0x1ca   :  { %v6991_v14 = vpop.f32.mrf.mxu0  ;;  %1479 = vmatpush.msrb.mxu3 %v1364_v11 }
 0x1cb   :  { %1045 = vmatmul.f32.gmra.mxu3 %v6410_v33  ;;  %1144 = vmatpush.msrb.mxu0 %v1085_v3  ;;  %v7013_v33 = vld [vmem:[%s12692_s1 + $0x8] sm:$0xff] }
 0x1cd   :  { %1145 = vmatpush.msrb.mxu0 %v1082_v27  ;;  %v1361_v27 = vld [vmem:[%s12693_s7 + $0x120] sm:$0xff] }
 0x1ce   :  { %v786_v46 = vpop.f32.mrf.mxu3  ;;  %1146 = vmatmul.f32.vlgmr.msrb.gmra.mxu0 %v6998_v60  ;;  %1480 = vmatpush.msrb.mxu3 %v1361_v27 }
 0x1cf   :  { %v7003_v26 = vadd.f32 %v786_v46, %v722_v50  ;;  %v7061_v17 = vpop.f32.mrf.mxu2  ;;  %v1358_v46 = vld [vmem:[%s12693_s7 + $0x108] sm:$0xff] }
 0x1d0   :  { %1481 = vmatpush.msrb.mxu3 %v1358_v46  ;;  %v12826_v46 = vld [vmem:[#allocation6_spill] sm:$0xff] }
 0x1d2   :  { %v7007_v61 = vpop.f32.mrf.mxu0 }
 0x1d3   :  { %1048 = vmatmul.f32.gmra.mxu3 %v6423_v39  ;;  %v7026_v39 = vld [vmem:[%s12692_s1 + $0x10] sm:$0xff] }
 0x1d6   :  { %v789_v48 = vpop.f32.mrf.mxu3  ;;  %1149 = vmatmul.f32.gmra.mxu0 %v7013_v33 }
 0x1d7   :  { %v7018_v24 = vadd.f32 %v789_v48, %v725_v49  ;;  %v751_v6 = vpop.f32.mrf.mxu2  ;;  %v1355_v48 = vld [vmem:[%s12693_s7 + $0xf0] sm:$0xff] }
 0x1d8   :  { %1482 = vmatpush.msrb.mxu3 %v1355_v48  ;;  %v752_v27 = vadd.f32 %v751_v6, %v6934_v12  ;;  %v7166_v48 = vld [vmem:[%s12692_s1 + $0x58] sm:$0xff]  ;;  %v1337_v6 = vld [vmem:[%s12693_s7 + $0x60] sm:$0xff] }
 0x1d9   :  { %12827 = vst [vmem:[#allocation6_spill] sm:$0xff] %v7166_v48 }
 0x1da   :  { %v7020_v28 = vpop.f32.mrf.mxu0 }
 0x1db   :  { %1051 = vmatmul.f32.gmra.mxu3 %v6436_v45  ;;  %v7041_v45 = vld [vmem:[%s12692_s1 + $0x18] sm:$0xff] }
 0x1de   :  { %v792_v38 = vpop.f32.mrf.mxu3  ;;  %1152 = vmatmul.f32.gmra.mxu0 %v7026_v39 }
 0x1df   :  { %v7033_v55 = vadd.f32 %v792_v38, %v728_v54  ;;  %v754_v43 = vpop.f32.mrf.mxu2  ;;  %v12823_v54 = vld [vmem:[#allocation5_spill] sm:$0xff]  ;;  %v7142_v38 = vld [vmem:[%s12692_s1 + $0x50] sm:$0xff] }
 0x1e0   :  { %12824 = vst [vmem:[#allocation5_spill] sm:$0xff] %v7142_v38 }
 0x1e2   :  { %v7035_v8 = vpop.f32.mrf.mxu0 }
 0x1e3   :  { %1054 = vmatmul.f32.gmra.mxu3 %v6449_v51  ;;  %v7056_v51 = vld [vmem:[%s12692_s1 + $0x20] sm:$0xff] }
 0x1e6   :  { %v795_v57 = vpop.f32.mrf.mxu3  ;;  %1155 = vmatmul.f32.gmra.mxu0 %v7041_v45 }
 0x1e7   :  { %v7048_v9 = vadd.f32 %v795_v57, %v731_v31  ;;  %v7106_v0 = vpop.f32.mrf.mxu2  ;;  %v1352_v31 = vld [vmem:[%s12693_s7 + $0xd8] sm:$0xff]  ;;  %v7147_v57 = vpop.f32.mrf.mxu1 }
 0x1e8   :  { %12819 = vst [vmem:[#allocation10_spill] sm:$0xff] %v7106_v0  ;;  %1483 = vmatpush.msrb.mxu3 %v1352_v31  ;;  %v749_v31 = vadd.f32 %v7061_v17, %v6934_v12  ;;  %v746_v0 = vadd.f32 %v7045_v32, %v6934_v12  ;;  %v1334_v17 = vld [vmem:[%s12693_s7 + $0x48] sm:$0xff]  ;;  %v740_v32 = vadd.f32 %v7005_v1, %v6934_v12 }
 0x1e9   :  { %v737_v1 = vadd.f32 %v6988_v34, %v6934_v12 }
 0x1ea   :  { %v7050_v29 = vpop.f32.mrf.mxu0 }
 0x1eb   :  { %1057 = vmatmul.f32.gmra.mxu3 %v6477_v62 }
 0x1ee   :  { %v7058_v4 = vpop.f32.mrf.mxu3  ;;  %1158 = vmatmul.f32.gmra.mxu0 %v7056_v51 }
 0x1ef   :  { %v7133_v49 = vpop.f32.mrf.mxu2 }
 0x1f0   :  { %12822 = vst [vmem:[#allocation11_spill] sm:$0xff] %v7133_v49 }
 0x1f2   :  { %v7063_v7 = vpop.f32.mrf.mxu0 }
 0x1f3   :  { %1060 = vmatmul.f32.gmra.mxu3 %v6535_v40 }
 0x1f6   :  { %v7071_v62 = vpop.f32.mrf.mxu3  ;;  %1161 = vmatmul.f32.gmra.mxu0 %v7069_v2 }
 0x1f7   :  { %v7159_v11 = vpop.f32.mrf.mxu2 }
 0x1f8   :  { %12825 = vst [vmem:[#allocation12_spill] sm:$0xff] %v7159_v11 }
 0x1fa   :  { %v7074_v44 = vpop.f32.mrf.mxu0 }
 0x1fb   :  { %1063 = vmatmul.f32.gmra.mxu3 %v6584_v10 }
 0x1fe   :  { %v7082_v40 = vpop.f32.mrf.mxu3  ;;  %1164 = vmatmul.f32.gmra.mxu0 %v7080_v37 }
 0x202   :  { %v7085_v23 = vpop.f32.mrf.mxu0 }
 0x203   :  { %1066 = vmatmul.f32.gmra.mxu3 %v12814_v47  ;;  %v1349_v47 = vld [vmem:[%s12693_s7 + $0xc0] sm:$0xff] }
 0x204   :  { %1484 = vmatpush.msrb.mxu3 %v1349_v47  ;;  %v755_v47 = vadd.f32 %v754_v43, %v6934_v12 }
 0x206   :  { %v7093_v10 = vpop.f32.mrf.mxu3  ;;  %1167 = vmatmul.f32.gmra.mxu0 %v7091_v20  ;;  %1485 = vmatpush.msrb.mxu3 %v1346_v21 }
 0x20a   :  { %v7098_v15 = vpop.f32.mrf.mxu0 }
 0x20b   :  { %1069 = vmatmul.f32.gmra.mxu3 %v12817_v56 }
 0x20e   :  { %v810_v30 = vpop.f32.mrf.mxu3  ;;  %1170 = vmatmul.f32.gmra.mxu0 %v7104_v53 }
 0x212   :  { %v878_v3 = vpop.f32.mrf.mxu0 }
 0x213   :  { %1072 = vmatmul.f32.gmra.mxu3 %v12820_v5  ;;  %v1343_v5 = vld [vmem:[%s12693_s7 + $0x90] sm:$0xff] }
 0x214   :  { %1486 = vmatpush.msrb.mxu3 %v1343_v5  ;;  %v7177_v5 = vpop.f32.mrf.mxu1 }
 0x216   :  { %v813_v50 = vpop.f32.mrf.mxu3  ;;  %1173 = vmatmul.f32.gmra.mxu0 %v7121_v35 }
 0x21a   :  { %v881_v56 = vpop.f32.mrf.mxu0 }
 0x21b   :  { %1075 = vmatmul.f32.gmra.mxu3 %v12823_v54  ;;  %v1340_v54 = vld [vmem:[%s12693_s7 + $0x78] sm:$0xff] }
 0x21c   :  { %1487 = vmatpush.msrb.mxu3 %v1340_v54  ;;  %v814_v54 = vadd.f32 %v813_v50, %v749_v31 }
 0x21e   :  { %v816_v59 = vpop.f32.mrf.mxu3  ;;  %1176 = vmatmul.f32.gmra.mxu0 %v7142_v38  ;;  %1488 = vmatpush.msrb.mxu3 %v1337_v6  ;;  %v1331_v6 = vld [vmem:[%s12693_s7 + $0x30] sm:$0xff]  ;;  %v879_v31 = vadd.f32 %v878_v3, %v814_v54 }
 0x21f   :  { %v817_v21 = vadd.f32 %v816_v59, %v752_v27  ;;  %v743_v59 = vadd.f32 %v7028_v18, %v6934_v12  ;;  %v811_v27 = vadd.f32 %v810_v30, %v746_v0  ;;  %v1328_v18 = vld [vmem:[%s12693_s7 + $0x18] sm:$0xff]  ;;  %v1325_v0 = vld [vmem:[%s12693_s7] sm:$0xff]  ;;  %v7204_v30 = vpop.f32.mrf.mxu2 }
 0x220   :  { %1489 = vmatpush.msrb.mxu3 %v1334_v17  ;;  %v1122_v34 = vmax.f32 %v879_v31, 0.0  ;;  %v7217_v17 = vpop.f32.mrf.mxu1  ;;  %v7244_v31 = vld [vmem:[%s12692_s1 + $0x70] sm:$0xff] }
 0x221   :  { %v882_v11 = vadd.f32 %v881_v56, %v817_v21  ;;  %v808_v50 = vadd.f32 %v7093_v10, %v743_v59  ;;  %v805_v10 = vadd.f32 %v7082_v40, %v740_v32  ;;  %v734_v56 = vadd.f32 %v6972_v16, %v6934_v12  ;;  %v7225_v12 = vld [vmem:[%s12692_s1 + $0x68] sm:$0xff] }
 0x222   :  { %v884_v43 = vpop.f32.mrf.mxu0  ;;  %1490 = vmatpush.msrb.mxu3 %v1331_v6  ;;  %v802_v21 = vadd.f32 %v7071_v62, %v737_v1 }
 0x223   :  { %1078 = vmatmul.f32.gmra.mxu3 %v12826_v46  ;;  %v1125_v3 = vmax.f32 %v882_v11, 0.0  ;;  %v873_v54 = vadd.f32 %v7085_v23, %v808_v50  ;;  %v799_v40 = vadd.f32 %v7058_v4, %v734_v56 }
 0x224   :  { %1491 = vmatpush.msrb.mxu3 %v1328_v18 }
 0x225   :  { %v1116_v59 = vmax.f32 %v873_v54, 0.0  ;;  %v864_v16 = vadd.f32 %v7050_v29, %v799_v40  ;;  %v855_v29 = vadd.f32 %v7007_v61, %v7018_v24 }
 0x226   :  { %v819_v46 = vpop.f32.mrf.mxu3  ;;  %1179 = vmatmul.f32.gmra.mxu0 %v7166_v48  ;;  %1492 = vmatpush.msrb.mxu3 %v1325_v0  ;;  %v7262_v0 = vld [vmem:[%s12692_s1 + $0x78] sm:$0xff] }
 0x227   :  { %v820_v49 = vadd.f32 %v819_v46, %v755_v47  ;;  %v7196_v46 = vld [vmem:[%s12692_s1 + $0x60] sm:$0xff]  ;;  %v7228_v23 = vpop.f32.mrf.mxu2  ;;  %v1107_v6 = vmax.f32 %v864_v16, 0.0  ;;  %v1098_v61 = vmax.f32 %v855_v29, 0.0 }
 0x228   :  { %v7237_v32 = vpop.f32.mrf.mxu1 }
 0x229   :  { %v885_v25 = vadd.f32 %v884_v43, %v820_v49  ;;  %v867_v43 = vadd.f32 %v7063_v7, %v802_v21  ;;  %v861_v7 = vadd.f32 %v7035_v8, %v7048_v9  ;;  %v852_v8 = vadd.f32 %v6991_v14, %v7003_v26 }
 0x22a   :  { %v843_v14 = vadd.f32 %v6955_v63, %v6964_v42 }
 0x22b   :  { %v1128_v47 = vmax.f32 %v885_v25, 0.0  ;;  %v876_v25 = vadd.f32 %v7098_v15, %v811_v27  ;;  %v870_v15 = vadd.f32 %v7074_v44, %v805_v10  ;;  %v1110_v44 = vmax.f32 %v867_v43, 0.0 }
 0x22c   :  { %v858_v27 = vadd.f32 %v7020_v28, %v7033_v55  ;;  %v1104_v50 = vmax.f32 %v861_v7, 0.0  ;;  %v849_v55 = vadd.f32 %v6978_v36, %v6986_v13  ;;  %v1095_v18 = vmax.f32 %v852_v8, 0.0 }
 0x22d   :  { %1195 = vmatpush.msrb.mxu1 %v1128_v47  ;;  %v1119_v11 = vmax.f32 %v876_v25, 0.0  ;;  %v1113_v62 = vmax.f32 %v870_v15, 0.0  ;;  %v846_v47 = vadd.f32 %v6966_v19, %v6975_v22  ;;  %v840_v13 = vadd.f32 %v6938_v52, %v6951_v58 }
 0x22e   :  { %v7210_v49 = vpop.f32.mrf.mxu3  ;;  %1182 = vmatmul.f32.gmra.mxu0 %v7196_v46  ;;  %v1101_v9 = vmax.f32 %v858_v27, 0.0  ;;  %v1092_v26 = vmax.f32 %v849_v55, 0.0  ;;  %v1086_v63 = vmax.f32 %v843_v14, 0.0 }
 0x22f   :  { %1196 = vmatpush.msrb.mxu1 %v1125_v3  ;;  %v7253_v24 = vpop.f32.mrf.mxu2  ;;  %v1089_v1 = vmax.f32 %v846_v47, 0.0  ;;  %v1083_v42 = vmax.f32 %v840_v13, 0.0 }
 0x230   :  { %v7264_v36 = vpop.f32.mrf.mxu1 }
 0x231   :  { %1197 = vmatpush.msrb.mxu1 %v1122_v34 }
 0x233   :  { %1198 = vmatpush.msrb.mxu1 %v1119_v11 }
 0x235   :  { %1199 = vmatpush.msrb.mxu1 %v1116_v59 }
 0x236   :  { %v7230_v4 = vpop.f32.mrf.mxu3  ;;  %1185 = vmatmul.f32.gmra.mxu0 %v7225_v12 }
 0x237   :  { %1200 = vmatpush.msrb.mxu1 %v1113_v62  ;;  %v7271_v22 = vpop.f32.mrf.mxu2 }
 0x238   :  { %v7277_v52 = vpop.f32.mrf.mxu1 }
 0x239   :  { %1201 = vmatpush.msrb.mxu1 %v1110_v44 }
 0x23b   :  { %1202 = vmatpush.msrb.mxu1 %v1107_v6 }
 0x23d   :  { %1203 = vmatpush.msrb.mxu1 %v1104_v50 }
 0x23e   :  { %v7248_v28 = vpop.f32.mrf.mxu3  ;;  %1188 = vmatmul.f32.gmra.mxu0 %v7244_v31 }
 0x23f   :  { %1204 = vmatpush.msrb.mxu1 %v1101_v9  ;;  %v7283_v3 = vpop.f32.mrf.mxu2 }
 0x240   :  { %v7289_v21 = vpop.f32.mrf.mxu1 }
 0x241   :  { %1205 = vmatpush.msrb.mxu1 %v1098_v61 }
 0x243   :  { %1206 = vmatpush.msrb.mxu1 %v1095_v18 }
 0x245   :  { %1207 = vmatpush.msrb.mxu1 %v1092_v26 }
 0x246   :  { %v7268_v19 = vpop.f32.mrf.mxu3  ;;  %1191 = vmatmul.f32.gmra.mxu0 %v7262_v0 }
 0x247   :  { %1208 = vmatpush.msrb.mxu1 %v1089_v1  ;;  %v7295_v34 = vpop.f32.mrf.mxu2  ;;  %v1418_v1 = vld [vmem:[%s12693_s7 + $0x2e8] sm:$0xff] }
 0x248   :  { %v7299_v15 = vpop.f32.mrf.mxu1  ;;  %1542 = vmatpush.msra.mxu0 %v1418_v1  ;;  %v1413_v1 = vld [vmem:[%s12693_s7 + $0x2c0] sm:$0xff] }
 0x249   :  { %1209 = vmatpush.msrb.mxu1 %v1086_v63  ;;  %v1419_v63 = vld [vmem:[%s12693_s7 + $0x2f0] sm:$0xff] }
 0x24a   :  { %1737 = vmatpush.msra.mxu3 %v1419_v63 }
 0x24b   :  { %1210 = vmatpush.msrb.mxu1 %v1083_v42  ;;  %v7273_v10 = vpop.f32.mrf.mxu0 }
 0x24c   :  { %12828 = vst [vmem:[#allocation13_spill] sm:$0xff] %v7273_v10  ;;  %1493 = vmatmul.f32.vlgmr.msrb.gmra.mxu3 %v7273_v10  ;;  %1211 = vmatmul.f32.vlgmr.msrb.gmra.mxu1 %v6998_v60  ;;  %v5822_v10 = vld [vmem:[%s12691_s6] sm:$0x7] }
 0x24e   :  { %v7279_v58 = vpop.f32.mrf.mxu3 }
 0x24f   :  { %v7307_v59 = vpop.f32.mrf.mxu2 }
 0x250   :  { %v7311_v62 = vpop.f32.mrf.mxu1 }
 0x253   :  { %v7281_v25 = vpop.f32.mrf.mxu0 }
 0x254   :  { %12829 = vst [vmem:[#allocation14_spill] sm:$0xff] %v7281_v25  ;;  %1496 = vmatmul.f32.gmra.mxu3 %v7281_v25  ;;  %1214 = vmatmul.f32.gmra.mxu1 %v7013_v33 }
 0x256   :  { %v7287_v56 = vpop.f32.mrf.mxu3 }
 0x257   :  { %v7317_v44 = vpop.f32.mrf.mxu2 }
 0x258   :  { %v7323_v6 = vpop.f32.mrf.mxu1 }
 0x25b   :  { %v7291_v54 = vpop.f32.mrf.mxu0 }
 0x25c   :  { %12830 = vst [vmem:[#allocation15_spill] sm:$0xff] %v7291_v54  ;;  %1499 = vmatmul.f32.gmra.mxu3 %v7291_v54  ;;  %1217 = vmatmul.f32.gmra.mxu1 %v7026_v39  ;;  %v1400_v54 = vld [vmem:[%s12693_s7 + $0x258] sm:$0xff] }
 0x25e   :  { %v7297_v40 = vpop.f32.mrf.mxu3 }
 0x25f   :  { %v7329_v8 = vpop.f32.mrf.mxu2 }
 0x260   :  { %v7335_v55 = vpop.f32.mrf.mxu1 }
 0x263   :  { %v7301_v11 = vpop.f32.mrf.mxu0 }
 0x264   :  { %12831 = vst [vmem:[#allocation16_spill] sm:$0xff] %v7301_v11  ;;  %1502 = vmatmul.f32.gmra.mxu3 %v7301_v11  ;;  %1220 = vmatmul.f32.gmra.mxu1 %v7041_v45  ;;  %v1406_v11 = vld [vmem:[%s12693_s7 + $0x288] sm:$0xff] }
 0x266   :  { %v7305_v43 = vpop.f32.mrf.mxu3 }
 0x267   :  { %v7341_v47 = vpop.f32.mrf.mxu2 }
 0x268   :  { %v943_v14 = vpop.f32.mrf.mxu1 }
 0x26b   :  { %v7309_v16 = vpop.f32.mrf.mxu0 }
 0x26c   :  { %12832 = vst [vmem:[#allocation17_spill] sm:$0xff] %v7309_v16  ;;  %1505 = vmatmul.f32.gmra.mxu3 %v7309_v16  ;;  %1223 = vmatmul.f32.gmra.mxu1 %v7056_v51 }
 0x26e   :  { %v7315_v7 = vpop.f32.mrf.mxu3 }
 0x26f   :  { %v7357_v42 = vpop.f32.mrf.mxu2 }
 0x270   :  { %v946_v63 = vpop.f32.mrf.mxu1 }
 0x273   :  { %v7319_v27 = vpop.f32.mrf.mxu0 }
 0x274   :  { %12833 = vst [vmem:[#allocation18_spill] sm:$0xff] %v7319_v27  ;;  %1508 = vmatmul.f32.gmra.mxu3 %v7319_v27  ;;  %1226 = vmatmul.f32.gmra.mxu1 %v7069_v2  ;;  %v1412_v27 = vld [vmem:[%s12693_s7 + $0x2b8] sm:$0xff] }
 0x276   :  { %v7325_v29 = vpop.f32.mrf.mxu3 }
 0x27b   :  { %v7327_v50 = vpop.f32.mrf.mxu0 }
 0x27c   :  { %12834 = vst [vmem:[#allocation19_spill] sm:$0xff] %v7327_v50  ;;  %1511 = vmatmul.f32.gmra.mxu3 %v7327_v50  ;;  %1229 = vmatmul.f32.gmra.mxu1 %v7080_v37 }
 0x27e   :  { %v7333_v9 = vpop.f32.mrf.mxu3 }
 0x283   :  { %v7337_v61 = vpop.f32.mrf.mxu0 }
 0x284   :  { %12835 = vst [vmem:[#allocation20_spill] sm:$0xff] %v7337_v61  ;;  %1514 = vmatmul.f32.gmra.mxu3 %v7337_v61  ;;  %1232 = vmatmul.f32.gmra.mxu1 %v7091_v20  ;;  %v1416_v61 = vld [vmem:[%s12693_s7 + $0x2d8] sm:$0xff] }
 0x285   :  { %1738 = vmatpush.msra.mxu3 %v1416_v61  ;;  %v1409_v61 = vld [vmem:[%s12693_s7 + $0x2a0] sm:$0xff] }
 0x286   :  { %v7343_v18 = vpop.f32.mrf.mxu3 }
 0x287   :  { %1739 = vmatpush.msra.mxu3 %v1413_v1  ;;  %v1403_v1 = vld [vmem:[%s12693_s7 + $0x270] sm:$0xff] }
 0x28b   :  { %v7345_v26 = vpop.f32.mrf.mxu0 }
 0x28c   :  { %12836 = vst [vmem:[#allocation21_spill] sm:$0xff] %v7345_v26  ;;  %1517 = vmatmul.f32.gmra.mxu3 %v7345_v26  ;;  %1235 = vmatmul.f32.gmra.mxu1 %v7104_v53  ;;  %v1415_v26 = vld [vmem:[%s12693_s7 + $0x2d0] sm:$0xff] }
 0x28d   :  { %1543 = vmatpush.msra.mxu0 %v1415_v26  ;;  %v1410_v26 = vld [vmem:[%s12693_s7 + $0x2a8] sm:$0xff] }
 0x28e   :  { %v7349_v13 = vpop.f32.mrf.mxu3  ;;  %1740 = vmatpush.msra.mxu3 %v1410_v26 }
 0x28f   :  { %1544 = vmatpush.msra.mxu0 %v1412_v27  ;;  %v1407_v27 = vld [vmem:[%s12693_s7 + $0x290] sm:$0xff] }
 0x290   :  { %1741 = vmatpush.msra.mxu3 %v1407_v27  ;;  %v1397_v27 = vld [vmem:[%s12693_s7 + $0x240] sm:$0xff] }
 0x291   :  { %1545 = vmatpush.msra.mxu0 %v1409_v61  ;;  %v1011_v61 = vpop.f32.mrf.mxu2 }
 0x293   :  { %v7365_v50 = vpop.f32.mrf.mxu0  ;;  %1546 = vmatpush.msra.mxu0 %v1406_v11  ;;  %v1401_v11 = vld [vmem:[%s12693_s7 + $0x260] sm:$0xff] }
 0x294   :  { %12837 = vst [vmem:[#allocation22_spill] sm:$0xff] %v7365_v50  ;;  %1520 = vmatmul.f32.gmra.mxu3 %v7365_v50  ;;  %1238 = vmatmul.f32.gmra.mxu1 %v7121_v35  ;;  %v1404_v50 = vld [vmem:[%s12693_s7 + $0x278] sm:$0xff]  ;;  %v7412_v35 = vperm.slane %v5822_v10, 2  ;;  %v1391_v10 = vld [vmem:[%s12693_s7 + $0x210] sm:$0xff] }
 0x295   :  { %1547 = vmatpush.msra.mxu0 %v1403_v1  ;;  %1742 = vmatpush.msra.mxu3 %v1404_v50  ;;  %v1398_v50 = vld [vmem:[%s12693_s7 + $0x248] sm:$0xff]  ;;  %v949_v1 = vpop.f32.mrf.mxu1 }
 0x296   :  { %v1073_v16 = vpop.f32.mrf.mxu3 }
 0x297   :  { %1548 = vmatpush.msra.mxu0 %v1400_v54  ;;  %1743 = vmatpush.msra.mxu3 %v1401_v11  ;;  %v1394_v54 = vld [vmem:[%s12693_s7 + $0x228] sm:$0xff]  ;;  %v1395_v11 = vld [vmem:[%s12693_s7 + $0x230] sm:$0xff] }
 0x299   :  { %1549 = vmatpush.msra.mxu0 %v1397_v27  ;;  %1744 = vmatpush.msra.mxu3 %v1398_v50  ;;  %v1392_v27 = vld [vmem:[%s12693_s7 + $0x218] sm:$0xff]  ;;  %v944_v50 = vadd.f32 %v943_v14, %v7412_v35  ;;  %v941_v14 = vadd.f32 %v7335_v55, %v7412_v35 }
 0x29b   :  { %v7393_v26 = vpop.f32.mrf.mxu0  ;;  %1550 = vmatpush.msra.mxu0 %v1394_v54  ;;  %1745 = vmatpush.msra.mxu3 %v1395_v11  ;;  %v1014_v54 = vpop.f32.mrf.mxu2 }
 0x29c   :  { %12838 = vst [vmem:[#allocation23_spill] sm:$0xff] %v7393_v26  ;;  %1523 = vmatmul.f32.gmra.mxu3 %v7393_v26  ;;  %1241 = vmatmul.f32.gmra.mxu1 %v7142_v38  ;;  %v947_v26 = vadd.f32 %v946_v63, %v7412_v35  ;;  %v950_v38 = vadd.f32 %v949_v1, %v7412_v35  ;;  %v1388_v63 = vld [vmem:[%s12693_s7 + $0x1f8] sm:$0xff]  ;;  %v1389_v1 = vld [vmem:[%s12693_s7 + $0x200] sm:$0xff] }
 0x29d   :  { %1551 = vmatpush.msra.mxu0 %v1391_v10  ;;  %1746 = vmatpush.msra.mxu3 %v1392_v27  ;;  %v1385_v10 = vld [vmem:[%s12693_s7 + $0x1e0] sm:$0xff]  ;;  %v1386_v27 = vld [vmem:[%s12693_s7 + $0x1e8] sm:$0xff] }
 0x29e   :  { %v1076_v25 = vpop.f32.mrf.mxu3  ;;  %v1012_v11 = vadd.f32 %v1011_v61, %v947_v26  ;;  %v1015_v20 = vadd.f32 %v1014_v54, %v950_v38  ;;  %v1382_v38 = vld [vmem:[%s12693_s7 + $0x1c8] sm:$0xff]  ;;  %v1383_v61 = vld [vmem:[%s12693_s7 + $0x1d0] sm:$0xff]  ;;  %v935_v26 = vadd.f32 %v7311_v62, %v7412_v35 }
 0x29f   :  { %1552 = vmatpush.msra.mxu0 %v1388_v63  ;;  %1747 = vmatpush.msra.mxu3 %v1389_v1  ;;  %v1374_v54 = vld [vmem:[%s12693_s7 + $0x188] sm:$0xff] }
 0x2a0   :  { %v1077_v2 = vadd.f32 %v1076_v25, %v1012_v11  ;;  %v932_v25 = vadd.f32 %v7299_v15, %v7412_v35  ;;  %v1377_v15 = vld [vmem:[%s12693_s7 + $0x1a0] sm:$0xff]  ;;  %v923_v11 = vadd.f32 %v7264_v36, %v7412_v35  ;;  %v917_v36 = vadd.f32 %v7217_v17, %v7412_v35 }
 0x2a1   :  { %1553 = vmatpush.msra.mxu0 %v1385_v10  ;;  %1748 = vmatpush.msra.mxu3 %v1386_v27 }
 0x2a2   :  { %v982_v17 = vadd.f32 %v7228_v23, %v917_v36  ;;  %v1368_v36 = vld [vmem:[%s12693_s7 + $0x158] sm:$0xff] }
 0x2a3   :  { %v7429_v53 = vpop.f32.mrf.mxu0  ;;  %1554 = vmatpush.msra.mxu0 %v1382_v38  ;;  %1749 = vmatpush.msra.mxu3 %v1383_v61 }
 0x2a4   :  { %12839 = vst [vmem:[#allocation24_spill] sm:$0xff] %v7429_v53  ;;  %1526 = vmatmul.f32.gmra.mxu3 %v7429_v53  ;;  %1244 = vmatmul.f32.gmra.mxu1 %v7166_v48  ;;  %v938_v53 = vadd.f32 %v7323_v6, %v7412_v35  ;;  %v1009_v48 = vadd.f32 %v7357_v42, %v944_v50  ;;  %v1373_v50 = vld [vmem:[%s12693_s7 + $0x180] sm:$0xff] }
 0x2a5   :  { %v1006_v6 = vadd.f32 %v7341_v47, %v941_v14  ;;  %v1126_v47 = vmax.f32 %v1077_v2, 0.0  ;;  %v1000_v2 = vadd.f32 %v7317_v44, %v935_v26  ;;  %v926_v14 = vadd.f32 %v7277_v52, %v7412_v35 }
 0x2a6   :  { %v1079_v37 = vpop.f32.mrf.mxu3  ;;  %v1074_v63 = vadd.f32 %v1073_v16, %v1009_v48  ;;  %v1003_v42 = vadd.f32 %v7329_v8, %v938_v53  ;;  %v1376_v16 = vld [vmem:[%s12693_s7 + $0x198] sm:$0xff]  ;;  %v929_v53 = vadd.f32 %v7289_v21, %v7412_v35  ;;  %v997_v21 = vadd.f32 %v7307_v59, %v932_v25 }
 0x2a7   :  { %v1080_v55 = vadd.f32 %v1079_v37, %v1015_v20  ;;  %v1379_v37 = vld [vmem:[%s12693_s7 + $0x1b0] sm:$0xff]  ;;  %v1380_v20 = vld [vmem:[%s12693_s7 + $0x1b8] sm:$0xff]  ;;  %v1071_v62 = vadd.f32 %v7349_v13, %v1006_v6  ;;  %v1065_v44 = vadd.f32 %v7333_v9, %v1000_v2  ;;  %v920_v52 = vadd.f32 %v7237_v32, %v7412_v35 }
 0x2a8   :  { %1555 = vmatpush.msra.mxu0 %v1379_v37  ;;  %v1068_v8 = vadd.f32 %v7343_v18, %v1003_v42  ;;  %v1123_v13 = vmax.f32 %v1074_v63, 0.0  ;;  %1750 = vmatpush.msra.mxu3 %v1380_v20  ;;  %v994_v10 = vadd.f32 %v7295_v34, %v929_v53  ;;  %v1062_v27 = vadd.f32 %v7325_v29, %v997_v21 }
 0x2a9   :  { %v1129_v1 = vmax.f32 %v1080_v55, 0.0  ;;  %v1120_v18 = vmax.f32 %v1071_v62, 0.0  ;;  %v991_v59 = vadd.f32 %v7283_v3, %v926_v14  ;;  %v1114_v38 = vmax.f32 %v1065_v44, 0.0 }
 0x2aa   :  { %1556 = vmatpush.msra.mxu0 %v1376_v16  ;;  %1751 = vmatpush.msra.mxu3 %v1377_v15  ;;  %v1117_v55 = vmax.f32 %v1068_v8, 0.0  ;;  %v1059_v9 = vadd.f32 %v7315_v7, %v994_v10  ;;  %v988_v34 = vadd.f32 %v7271_v22, %v923_v11  ;;  %v1111_v32 = vmax.f32 %v1062_v27, 0.0  ;;  %v12848_v10 = vld [vmem:[#allocation8_spill] sm:$0xff] }
 0x2ab   :  { %1260 = vmatpush.msrb.mxu2 %v1129_v1  ;;  %v7469_v48 = vpop.f32.mrf.mxu0  ;;  %v1056_v29 = vadd.f32 %v7305_v43, %v991_v59  ;;  %v914_v3 = vadd.f32 %v7177_v5, %v7412_v35  ;;  %v985_v7 = vadd.f32 %v7253_v24, %v920_v52  ;;  %v911_v63 = vadd.f32 %v7147_v57, %v7412_v35  ;;  %v12842_v57 = vld [vmem:[#allocation9_spill] sm:$0xff] }
 0x2ac   :  { %1529 = vmatmul.f32.gmra.mxu3 %v7469_v48  ;;  %1247 = vmatmul.f32.gmra.mxu1 %v7196_v46  ;;  %v1053_v26 = vadd.f32 %v7297_v40, %v988_v34  ;;  %v1108_v6 = vmax.f32 %v1059_v9, 0.0  ;;  %v908_v43 = vadd.f32 %v7115_v41, %v7412_v35  ;;  %v1047_v24 = vadd.f32 %v7279_v58, %v982_v17  ;;  %v12850_v9 = vld [vmem:[#allocation3_spill] sm:$0xff] }
 0x2ad   :  { %1261 = vmatpush.msrb.mxu2 %v1126_v47  ;;  %1557 = vmatpush.msra.mxu0 %v1373_v50  ;;  %v1050_v22 = vadd.f32 %v7287_v56, %v985_v7  ;;  %v1105_v1 = vmax.f32 %v1056_v29, 0.0  ;;  %v979_v5 = vadd.f32 %v7204_v30, %v914_v3  ;;  %v905_v23 = vadd.f32 %v12842_v57, %v7412_v35  ;;  %v12843_v56 = vld [vmem:[#allocation12_spill] sm:$0xff]  ;;  %v12844_v30 = vld [vmem:[#allocation11_spill] sm:$0xff]  ;;  %v12845_v47 = vld [vmem:[#allocation10_spill] sm:$0xff] }
 0x2ae   :  { %1752 = vmatpush.msra.mxu3 %v1374_v54  ;;  %v1102_v37 = vmax.f32 %v1053_v26, 0.0  ;;  %v976_v20 = vadd.f32 %v12843_v56, %v911_v63  ;;  %v973_v42 = vadd.f32 %v12844_v30, %v908_v43  ;;  %v1096_v62 = vmax.f32 %v1047_v24, 0.0  ;;  %v1466_v34 = vld [vmem:[%s12693_s7 + $0x468] sm:$0xff]  ;;  %v1365_v29 = vld [vmem:[%s12693_s7 + $0x140] sm:$0xff]  ;;  %v1468_v3 = vld [vmem:[%s12693_s7 + $0x478] sm:$0xff] }
 0x2af   :  { %1262 = vmatpush.msrb.mxu2 %v1123_v13  ;;  %v1044_v25 = vadd.f32 %v7268_v19, %v979_v5  ;;  %v1099_v41 = vmax.f32 %v1050_v22, 0.0  ;;  %v970_v16 = vadd.f32 %v12845_v47, %v905_v23  ;;  %1607 = vmatpush.msra.mxu1 %v1466_v34  ;;  %v1463_v26 = vld [vmem:[%s12693_s7 + $0x450] sm:$0xff]  ;;  %v1464_v63 = vld [vmem:[%s12693_s7 + $0x458] sm:$0xff]  ;;  %v1465_v22 = vld [vmem:[%s12693_s7 + $0x460] sm:$0xff] }
 0x2b0   :  { %v1041_v58 = vadd.f32 %v7248_v28, %v976_v20  ;;  %v1038_v15 = vadd.f32 %v7230_v4, %v973_v42  ;;  %1997 = vmatpush.msrb.mxu3 %v1468_v3  ;;  %v1460_v43 = vld [vmem:[%s12693_s7 + $0x438] sm:$0xff]  ;;  %v1359_v5 = vld [vmem:[%s12693_s7 + $0x110] sm:$0xff]  ;;  %v1461_v24 = vld [vmem:[%s12693_s7 + $0x440] sm:$0xff] }
 0x2b1   :  { %1263 = vmatpush.msrb.mxu2 %v1120_v18  ;;  %v1093_v53 = vmax.f32 %v1044_v25, 0.0  ;;  %v1035_v35 = vadd.f32 %v7210_v49, %v970_v16  ;;  %v12847_v18 = vld [vmem:[#allocation7_spill] sm:$0xff]  ;;  %1608 = vmatpush.msra.mxu1 %v1463_v26  ;;  %v1457_v57 = vld [vmem:[%s12693_s7 + $0x420] sm:$0xff]  ;;  %v1356_v23 = vld [vmem:[%s12693_s7 + $0xf8] sm:$0xff] }
 0x2b2   :  { %v1090_v2 = vmax.f32 %v1041_v58, 0.0  ;;  %v1087_v19 = vmax.f32 %v1038_v15, 0.0  ;;  %1998 = vmatpush.msrb.mxu3 %v1465_v22  ;;  %v1458_v56 = vld [vmem:[%s12693_s7 + $0x428] sm:$0xff]  ;;  %v1459_v20 = vld [vmem:[%s12693_s7 + $0x430] sm:$0xff]  ;;  %v1456_v58 = vld [vmem:[%s12693_s7 + $0x418] sm:$0xff] }
 0x2b3   :  { %1264 = vmatpush.msrb.mxu2 %v1117_v55  ;;  %v7501_v61 = vpop.f32.mrf.mxu0  ;;  %v1084_v28 = vmax.f32 %v1035_v35, 0.0  ;;  %v12849_v55 = vld [vmem:[#allocation2_spill] sm:$0xff]  ;;  %1609 = vmatpush.msra.mxu1 %v1460_v43  ;;  %v1454_v25 = vld [vmem:[%s12693_s7 + $0x408] sm:$0xff]  ;;  %v1455_v30 = vld [vmem:[%s12693_s7 + $0x410] sm:$0xff] }
 0x2b4   :  { %12840 = vst [vmem:[#allocation25_spill] sm:$0xff] %v7501_v61  ;;  %1532 = vmatmul.f32.gmra.mxu3 %v7501_v61  ;;  %1250 = vmatmul.f32.gmra.mxu1 %v7225_v12  ;;  %v1350_v16 = vld [vmem:[%s12693_s7 + $0xc8] sm:$0xff]  ;;  %v12853_v15 = vld [vmem:[#allocation5_spill] sm:$0xff]  ;;  %v1453_v35 = vld [vmem:[%s12693_s7 + $0x400] sm:$0xff] }
 0x2b5   :  { %1265 = vmatpush.msrb.mxu2 %v1114_v38  ;;  %v1371_v38 = vld [vmem:[%s12693_s7 + $0x170] sm:$0xff]  ;;  %1610 = vmatpush.msra.mxu1 %v1457_v57  ;;  %v1442_v34 = vld [vmem:[%s12693_s7 + $0x3a8] sm:$0xff]  ;;  %v12855_v26 = vld [vmem:[#allocation6_spill] sm:$0xff] }
 0x2b6   :  { %v1443_v3 = vld [vmem:[%s12693_s7 + $0x3b0] sm:$0xff]  ;;  %v1338_v22 = vld [vmem:[%s12693_s7 + $0x68] sm:$0xff]  ;;  %v1441_v43 = vld [vmem:[%s12693_s7 + $0x3a0] sm:$0xff] }
 0x2b7   :  { %1266 = vmatpush.msrb.mxu2 %v1111_v32  ;;  %v1467_v32 = vld [vmem:[%s12693_s7 + $0x470] sm:$0xff]  ;;  %1611 = vmatpush.msra.mxu1 %v1454_v25  ;;  %v1438_v57 = vld [vmem:[%s12693_s7 + $0x388] sm:$0xff] }
 0x2b8   :  { %1802 = vmatpush.msrb.mxu0 %v1467_v32  ;;  %v1434_v25 = vld [vmem:[%s12693_s7 + $0x368] sm:$0xff] }
 0x2b9   :  { %1267 = vmatpush.msrb.mxu2 %v1108_v6  ;;  %v1362_v6 = vld [vmem:[%s12693_s7 + $0x128] sm:$0xff] }
 0x2ba   :  { %1803 = vmatpush.msrb.mxu0 %v1464_v63  ;;  %v1439_v63 = vld [vmem:[%s12693_s7 + $0x390] sm:$0xff] }
 0x2bb   :  { %1268 = vmatpush.msrb.mxu2 %v1105_v1  ;;  %v7521_v40 = vpop.f32.mrf.mxu0  ;;  %v12851_v1 = vld [vmem:[#allocation4_spill] sm:$0xff] }
 0x2bc   :  { %12841 = vst [vmem:[#allocation26_spill] sm:$0xff] %v7521_v40  ;;  %1535 = vmatmul.f32.gmra.mxu3 %v7521_v40  ;;  %1253 = vmatmul.f32.gmra.mxu1 %v7244_v31 }
 0x2bd   :  { %1269 = vmatpush.msrb.mxu2 %v1102_v37  ;;  %v1462_v37 = vld [vmem:[%s12693_s7 + $0x448] sm:$0xff]  ;;  %1804 = vmatpush.msrb.mxu0 %v1461_v24  ;;  %v1335_v24 = vld [vmem:[%s12693_s7 + $0x50] sm:$0xff] }
 0x2be   :  { %1999 = vmatpush.msrb.mxu3 %v1462_v37  ;;  %v1437_v37 = vld [vmem:[%s12693_s7 + $0x380] sm:$0xff] }
 0x2bf   :  { %1270 = vmatpush.msrb.mxu2 %v1099_v41  ;;  %v1353_v41 = vld [vmem:[%s12693_s7 + $0xe0] sm:$0xff]  ;;  %1805 = vmatpush.msrb.mxu0 %v1458_v56 }
 0x2c0   :  { %2000 = vmatpush.msrb.mxu3 %v1459_v20  ;;  %v1332_v20 = vld [vmem:[%s12693_s7 + $0x38] sm:$0xff] }
 0x2c1   :  { %1271 = vmatpush.msrb.mxu2 %v1096_v62  ;;  %v1451_v62 = vld [vmem:[%s12693_s7 + $0x3f0] sm:$0xff]  ;;  %1806 = vmatpush.msrb.mxu0 %v1455_v30  ;;  %v1430_v30 = vld [vmem:[%s12693_s7 + $0x348] sm:$0xff] }
 0x2c2   :  { %2001 = vmatpush.msrb.mxu3 %v1456_v58  ;;  %1612 = vmatpush.msra.mxu1 %v1451_v62  ;;  %v1435_v58 = vld [vmem:[%s12693_s7 + $0x370] sm:$0xff]  ;;  %v1329_v62 = vld [vmem:[%s12693_s7 + $0x20] sm:$0xff] }
 0x2c3   :  { %1272 = vmatpush.msrb.mxu2 %v1093_v53  ;;  %v7534_v8 = vpop.f32.mrf.mxu0  ;;  %v1452_v53 = vld [vmem:[%s12693_s7 + $0x3f8] sm:$0xff] }
 0x2c4   :  { %12846 = vst [vmem:[#allocation9_spill] sm:$0xff] %v7534_v8  ;;  %1538 = vmatmul.f32.gmra.mxu3 %v7534_v8  ;;  %1256 = vmatmul.f32.gmra.mxu1 %v7262_v0 }
 0x2c5   :  { %1273 = vmatpush.msrb.mxu2 %v1090_v2  ;;  %v1448_v2 = vld [vmem:[%s12693_s7 + $0x3d8] sm:$0xff]  ;;  %1807 = vmatpush.msrb.mxu0 %v1452_v53  ;;  %v1326_v53 = vld [vmem:[%s12693_s7 + $0x8] sm:$0xff] }
 0x2c6   :  { %2002 = vmatpush.msrb.mxu3 %v1453_v35  ;;  %1613 = vmatpush.msra.mxu1 %v1448_v2  ;;  %v1428_v35 = vld [vmem:[%s12693_s7 + $0x338] sm:$0xff] }
 0x2c7   :  { %1274 = vmatpush.msrb.mxu2 %v1087_v19  ;;  %v1347_v19 = vld [vmem:[%s12693_s7 + $0xb0] sm:$0xff]  ;;  %v1424_v2 = vld [vmem:[%s12693_s7 + $0x318] sm:$0xff] }
 0x2c9   :  { %1275 = vmatpush.msrb.mxu2 %v1084_v28  ;;  %v7538_v13 = vpop.f32.mrf.mxu1  ;;  %v1449_v28 = vld [vmem:[%s12693_s7 + $0x3e0] sm:$0xff] }
 0x2ca   :  { %1276 = vmatmul.f32.vlgmr.msrb.gmra.mxu2 %v6998_v60  ;;  %1558 = vmatmul.f32.vlgmr.msra.gmra.mxu0 %v7538_v13 }
 0x2cb   :  { %1672 = vmatpush.msra.mxu2 %v1371_v38  ;;  %v1447_v38 = vld [vmem:[%s12693_s7 + $0x3d0] sm:$0xff]  ;;  %1808 = vmatpush.msrb.mxu0 %v1449_v28 }
 0x2cc   :  { %1753 = vmatmul.f32.vlgmr.msra.gmra.mxu3 %v7538_v13 }
 0x2cd   :  { %1673 = vmatpush.msra.mxu2 %v1368_v36 }
 0x2cf   :  { %v7543_v49 = vpop.f32.mrf.mxu3  ;;  %1674 = vmatpush.msra.mxu2 %v1365_v29  ;;  %v1341_v29 = vld [vmem:[%s12693_s7 + $0x80] sm:$0xff] }
 0x2d1   :  { %v7545_v4 = vpop.f32.mrf.mxu1  ;;  %1675 = vmatpush.msra.mxu2 %v1362_v6  ;;  %v1444_v6 = vld [vmem:[%s12693_s7 + $0x3b8] sm:$0xff] }
 0x2d2   :  { %1279 = vmatmul.f32.gmra.mxu2 %v7013_v33  ;;  %1561 = vmatmul.f32.gmra.mxu0 %v7545_v4 }
 0x2d3   :  { %1676 = vmatpush.msra.mxu2 %v1359_v5  ;;  %v1436_v5 = vld [vmem:[%s12693_s7 + $0x378] sm:$0xff] }
 0x2d4   :  { %1756 = vmatmul.f32.gmra.mxu3 %v7545_v4 }
 0x2d5   :  { %1677 = vmatpush.msra.mxu2 %v1356_v23  ;;  %v1433_v23 = vld [vmem:[%s12693_s7 + $0x360] sm:$0xff] }
 0x2d7   :  { %v7550_v50 = vpop.f32.mrf.mxu3  ;;  %1678 = vmatpush.msra.mxu2 %v1353_v41 }
 0x2d9   :  { %v7552_v54 = vpop.f32.mrf.mxu1  ;;  %1679 = vmatpush.msra.mxu2 %v1350_v16  ;;  %v1431_v16 = vld [vmem:[%s12693_s7 + $0x350] sm:$0xff] }
 0x2da   :  { %1282 = vmatmul.f32.gmra.mxu2 %v7026_v39  ;;  %1564 = vmatmul.f32.gmra.mxu0 %v7552_v54 }
 0x2db   :  { %1680 = vmatpush.msra.mxu2 %v1347_v19  ;;  %v1429_v19 = vld [vmem:[%s12693_s7 + $0x340] sm:$0xff] }
 0x2dc   :  { %1759 = vmatmul.f32.gmra.mxu3 %v7552_v54 }
 0x2df   :  { %v7557_v60 = vpop.f32.mrf.mxu3 }
 0x2e1   :  { %v7559_v14 = vpop.f32.mrf.mxu1 }
 0x2e2   :  { %1285 = vmatmul.f32.gmra.mxu2 %v7041_v45  ;;  %1567 = vmatmul.f32.gmra.mxu0 %v7559_v14 }
 0x2e4   :  { %1762 = vmatmul.f32.gmra.mxu3 %v7559_v14 }
 0x2e7   :  { %v7564_v33 = vpop.f32.mrf.mxu3 }
 0x2e9   :  { %v7566_v21 = vpop.f32.mrf.mxu1 }
 0x2ea   :  { %1288 = vmatmul.f32.gmra.mxu2 %v7056_v51  ;;  %1570 = vmatmul.f32.gmra.mxu0 %v7566_v21 }
 0x2ec   :  { %1765 = vmatmul.f32.gmra.mxu3 %v7566_v21 }
 0x2ef   :  { %v7571_v39 = vpop.f32.mrf.mxu3 }
 0x2f1   :  { %v7573_v44 = vpop.f32.mrf.mxu1 }
 0x2f2   :  { %1291 = vmatmul.f32.gmra.mxu2 %v12847_v18  ;;  %1573 = vmatmul.f32.gmra.mxu0 %v7573_v44  ;;  %v1450_v18 = vld [vmem:[%s12693_s7 + $0x3e8] sm:$0xff] }
 0x2f3   :  { %2003 = vmatpush.msrb.mxu3 %v1450_v18  ;;  %v1425_v18 = vld [vmem:[%s12693_s7 + $0x320] sm:$0xff] }
 0x2f4   :  { %1768 = vmatmul.f32.gmra.mxu3 %v7573_v44 }
 0x2f5   :  { %2004 = vmatpush.msrb.mxu3 %v1447_v38  ;;  %v1422_v38 = vld [vmem:[%s12693_s7 + $0x308] sm:$0xff] }
 0x2f7   :  { %v7578_v45 = vpop.f32.mrf.mxu3  ;;  %2005 = vmatpush.msrb.mxu3 %v1444_v6 }
 0x2f9   :  { %v7580_v11 = vpop.f32.mrf.mxu1  ;;  %2006 = vmatpush.msrb.mxu3 %v1441_v43 }
 0x2fa   :  { %1294 = vmatmul.f32.gmra.mxu2 %v12848_v10  ;;  %1576 = vmatmul.f32.gmra.mxu0 %v7580_v11  ;;  %v1445_v10 = vld [vmem:[%s12693_s7 + $0x3c0] sm:$0xff] }
 0x2fb   :  { %1614 = vmatpush.msra.mxu1 %v1445_v10  ;;  %2007 = vmatpush.msrb.mxu3 %v1438_v57  ;;  %v1426_v10 = vld [vmem:[%s12693_s7 + $0x328] sm:$0xff] }
 0x2fc   :  { %1771 = vmatmul.f32.gmra.mxu3 %v7580_v11  ;;  %v12867_v57 = vld [vmem:[#allocation15_spill] sm:$0xff] }
 0x2fd   :  { %1615 = vmatpush.msra.mxu1 %v1442_v34  ;;  %2008 = vmatpush.msrb.mxu3 %v1435_v58  ;;  %v1423_v34 = vld [vmem:[%s12693_s7 + $0x310] sm:$0xff] }
 0x2ff   :  { %v7585_v51 = vpop.f32.mrf.mxu3  ;;  %1616 = vmatpush.msra.mxu1 %v1439_v63 }
 0x301   :  { %v7587_v27 = vpop.f32.mrf.mxu1  ;;  %1617 = vmatpush.msra.mxu1 %v1436_v5  ;;  %v12866_v5 = vld [vmem:[#allocation14_spill] sm:$0xff] }
 0x302   :  { %1297 = vmatmul.f32.gmra.mxu2 %v12849_v55  ;;  %1579 = vmatmul.f32.gmra.mxu0 %v7587_v27  ;;  %v1344_v55 = vld [vmem:[%s12693_s7 + $0x98] sm:$0xff] }
 0x303   :  { %1681 = vmatpush.msra.mxu2 %v1344_v55  ;;  %1618 = vmatpush.msra.mxu1 %v1433_v23 }
 0x304   :  { %1774 = vmatmul.f32.gmra.mxu3 %v7587_v27 }
 0x305   :  { %1682 = vmatpush.msra.mxu2 %v1341_v29  ;;  %1619 = vmatpush.msra.mxu1 %v1430_v30  ;;  %v12868_v30 = vld [vmem:[#allocation16_spill] sm:$0xff] }
 0x307   :  { %v7592_v52 = vpop.f32.mrf.mxu3  ;;  %1683 = vmatpush.msra.mxu2 %v1338_v22  ;;  %v12865_v22 = vld [vmem:[#allocation13_spill] sm:$0xff] }
 0x309   :  { %v7594_v59 = vpop.f32.mrf.mxu1  ;;  %1684 = vmatpush.msra.mxu2 %v1335_v24 }
 0x30a   :  { %1300 = vmatmul.f32.gmra.mxu2 %v12850_v9  ;;  %1582 = vmatmul.f32.gmra.mxu0 %v7594_v59  ;;  %v1446_v9 = vld [vmem:[%s12693_s7 + $0x3c8] sm:$0xff] }
 0x30b   :  { %1809 = vmatpush.msrb.mxu0 %v1446_v9  ;;  %1685 = vmatpush.msra.mxu2 %v1332_v20  ;;  %v1421_v9 = vld [vmem:[%s12693_s7 + $0x300] sm:$0xff] }
 0x30c   :  { %1777 = vmatmul.f32.gmra.mxu3 %v7594_v59 }
 0x30d   :  { %1810 = vmatpush.msrb.mxu0 %v1443_v3  ;;  %1686 = vmatpush.msra.mxu2 %v1329_v62 }
 0x30f   :  { %v7617_v7 = vpop.f32.mrf.mxu3  ;;  %1687 = vmatpush.msra.mxu2 %v1326_v53 }
 0x311   :  { %v7628_v17 = vpop.f32.mrf.mxu1 }
 0x312   :  { %1303 = vmatmul.f32.gmra.mxu2 %v12851_v1  ;;  %1585 = vmatmul.f32.gmra.mxu0 %v7628_v17  ;;  %v1440_v1 = vld [vmem:[%s12693_s7 + $0x398] sm:$0xff] }
 0x313   :  { %1811 = vmatpush.msrb.mxu0 %v1440_v1 }
 0x314   :  { %1780 = vmatmul.f32.gmra.mxu3 %v7628_v17 }
 0x315   :  { %1812 = vmatpush.msrb.mxu0 %v1437_v37 }
 0x317   :  { %v7669_v42 = vpop.f32.mrf.mxu3  ;;  %1813 = vmatpush.msrb.mxu0 %v1434_v25 }
 0x319   :  { %v7677_v47 = vpop.f32.mrf.mxu1  ;;  %1814 = vmatpush.msrb.mxu0 %v1431_v16 }
 0x31a   :  { %12852 = vst [vmem:[#allocation12_spill] sm:$0xff] %v7677_v47  ;;  %1306 = vmatmul.f32.gmra.mxu2 %v12853_v15  ;;  %1588 = vmatmul.f32.gmra.mxu0 %v7677_v47  ;;  %v1432_v15 = vld [vmem:[%s12693_s7 + $0x358] sm:$0xff] }
 0x31b   :  { %2009 = vmatpush.msrb.mxu3 %v1432_v15  ;;  %1815 = vmatpush.msrb.mxu0 %v1428_v35 }
 0x31c   :  { %1783 = vmatmul.f32.gmra.mxu3 %v7677_v47 }
 0x31d   :  { %2010 = vmatpush.msrb.mxu3 %v1429_v19  ;;  %1816 = vmatpush.msrb.mxu0 %v1425_v18 }
 0x31f   :  { %v7715_v36 = vpop.f32.mrf.mxu3  ;;  %2011 = vmatpush.msrb.mxu3 %v1426_v10  ;;  %1817 = vmatpush.msrb.mxu0 %v1422_v38 }
 0x321   :  { %v7723_v32 = vpop.f32.mrf.mxu1  ;;  %2012 = vmatpush.msrb.mxu3 %v1423_v34 }
 0x322   :  { %12854 = vst [vmem:[#allocation11_spill] sm:$0xff] %v7723_v32  ;;  %1309 = vmatmul.f32.gmra.mxu2 %v12855_v26  ;;  %1591 = vmatmul.f32.gmra.mxu0 %v7723_v32 }
 0x324   :  { %1786 = vmatmul.f32.gmra.mxu3 %v7723_v32  ;;  %v1363_v32 = vld [vmem:[%s12693_s7 + $0x130] sm:$0xff] }
 0x327   :  { %v7761_v56 = vpop.f32.mrf.mxu3 }
 0x328   :  { %12856 = vst [vmem:[#allocation10_spill] sm:$0xff] %v7761_v56  ;;  %v2143_v56 = vld [vmem:[%s12694_s9 + $0x108] sm:$0xff] }
 0x329   :  { %v7769_v41 = vpop.f32.mrf.mxu1 }
 0x32a   :  { %12857 = vst [vmem:[#allocation7_spill] sm:$0xff] %v7769_v41  ;;  %1312 = vmatmul.f32.gmra.mxu2 %v7196_v46  ;;  %1594 = vmatmul.f32.gmra.mxu0 %v7769_v41  ;;  %v1427_v46 = vld [vmem:[%s12693_s7 + $0x330] sm:$0xff] }
 0x32b   :  { %1620 = vmatpush.msra.mxu1 %v1427_v46  ;;  %v12869_v46 = vld [vmem:[#allocation17_spill] sm:$0xff] }
 0x32c   :  { %1789 = vmatmul.f32.gmra.mxu3 %v7769_v41  ;;  %v1408_v41 = vld [vmem:[%s12693_s7 + $0x298] sm:$0xff] }
 0x32d   :  { %1621 = vmatpush.msra.mxu1 %v1424_v2  ;;  %v12870_v2 = vld [vmem:[#allocation18_spill] sm:$0xff] }
 0x32f   :  { %v7804_v28 = vpop.f32.mrf.mxu3  ;;  %1622 = vmatpush.msra.mxu1 %v1421_v9  ;;  %v12871_v9 = vld [vmem:[#allocation19_spill] sm:$0xff] }
 0x330   :  { %12858 = vst [vmem:[#allocation8_spill] sm:$0xff] %v7804_v28  ;;  %v2152_v28 = vld [vmem:[%s12694_s9 + $0x150] sm:$0xff] }
 0x331   :  { %v7812_v55 = vpop.f32.mrf.mxu1 }
 0x332   :  { %12859 = vst [vmem:[#allocation2_spill] sm:$0xff] %v7812_v55  ;;  %1315 = vmatmul.f32.gmra.mxu2 %v7225_v12  ;;  %1597 = vmatmul.f32.gmra.mxu0 %v7812_v55 }
 0x334   :  { %1792 = vmatmul.f32.gmra.mxu3 %v7812_v55  ;;  %v2156_v55 = vld [vmem:[%s12694_s9 + $0x170] sm:$0xff] }
 0x335   :  { %2457 = vmatpush.msra.mxu3 %v2156_v55  ;;  %v2149_v55 = vld [vmem:[%s12694_s9 + $0x138] sm:$0xff] }
 0x337   :  { %v7826_v29 = vpop.f32.mrf.mxu3 }
 0x338   :  { %12860 = vst [vmem:[#allocation3_spill] sm:$0xff] %v7826_v29  ;;  %v12874_v29 = vld [vmem:[#allocation22_spill] sm:$0xff] }
 0x339   :  { %v7828_v12 = vpop.f32.mrf.mxu1 }
 0x33a   :  { %12861 = vst [vmem:[#allocation4_spill] sm:$0xff] %v7828_v12  ;;  %1318 = vmatmul.f32.gmra.mxu2 %v7244_v31  ;;  %1600 = vmatmul.f32.gmra.mxu0 %v7828_v12 }
 0x33c   :  { %1795 = vmatmul.f32.gmra.mxu3 %v7828_v12  ;;  %v1372_v12 = vld [vmem:[%s12693_s7 + $0x178] sm:$0xff] }
 0x33d   :  { %1867 = vmatpush.msrb.mxu1 %v1372_v12  ;;  %v1366_v12 = vld [vmem:[%s12693_s7 + $0x148] sm:$0xff] }
 0x33f   :  { %v7833_v3 = vpop.f32.mrf.mxu3 }
 0x340   :  { %12862 = vst [vmem:[#allocation5_spill] sm:$0xff] %v7833_v3  ;;  %v1414_v3 = vld [vmem:[%s12693_s7 + $0x2c8] sm:$0xff] }
 0x341   :  { %v7835_v26 = vpop.f32.mrf.mxu1 }
 0x342   :  { %12863 = vst [vmem:[#allocation6_spill] sm:$0xff] %v7835_v26  ;;  %1321 = vmatmul.f32.gmra.mxu2 %v7262_v0  ;;  %1603 = vmatmul.f32.gmra.mxu0 %v7835_v26 }
 0x344   :  { %1798 = vmatmul.f32.gmra.mxu3 %v7835_v26 }
 0x347   :  { %v7840_v6 = vpop.f32.mrf.mxu3  ;;  %v7842_v63 = vpop.f32.mrf.mxu0 }
 0x348   :  { %12864 = vst [vmem:[#allocation27_spill] sm:$0xff] %v7840_v6  ;;  %v1417_v6 = vld [vmem:[%s12693_s7 + $0x2e0] sm:$0xff] }
 0x34a   :  { %1688 = vmatmul.f32.vlgmr.msra.gmra.mxu2 %v12865_v22 }
 0x34d   :  { %v1277_v31 = vpop.f32.mrf.mxu2 }
 0x34e   :  { %1623 = vmatmul.f32.vlgmr.msra.gmra.mxu1 %v1277_v31  ;;  %1818 = vmatmul.f32.vlgmr.msrb.gmra.mxu0 %v1277_v31 }
 0x34f   :  { %2013 = vmatmul.f32.vlgmr.msrb.gmra.mxu3 %v1277_v31  ;;  %v7845_v1 = vpop.f32.mrf.mxu3  ;;  %v7847_v43 = vpop.f32.mrf.mxu0 }
 0x352   :  { %1691 = vmatmul.f32.gmra.mxu2 %v12866_v5 }
 0x355   :  { %v1280_v0 = vpop.f32.mrf.mxu2 }
 0x356   :  { %1626 = vmatmul.f32.gmra.mxu1 %v1280_v0  ;;  %1821 = vmatmul.f32.gmra.mxu0 %v1280_v0 }
 0x357   :  { %2016 = vmatmul.f32.gmra.mxu3 %v1280_v0  ;;  %v7850_v24 = vpop.f32.mrf.mxu3  ;;  %v7852_v37 = vpop.f32.mrf.mxu0  ;;  %v12872_v0 = vld [vmem:[#allocation20_spill] sm:$0xff] }
 0x35a   :  { %1694 = vmatmul.f32.gmra.mxu2 %v12867_v57 }
 0x35d   :  { %v1283_v23 = vpop.f32.mrf.mxu2 }
 0x35e   :  { %1629 = vmatmul.f32.gmra.mxu1 %v1283_v23  ;;  %1824 = vmatmul.f32.gmra.mxu0 %v1283_v23 }
 0x35f   :  { %2019 = vmatmul.f32.gmra.mxu3 %v1283_v23  ;;  %v7855_v20 = vpop.f32.mrf.mxu3  ;;  %v7857_v25 = vpop.f32.mrf.mxu0 }
 0x362   :  { %1697 = vmatmul.f32.gmra.mxu2 %v12868_v30 }
 0x365   :  { %v1286_v58 = vpop.f32.mrf.mxu2 }
 0x366   :  { %1632 = vmatmul.f32.gmra.mxu1 %v1286_v58  ;;  %1827 = vmatmul.f32.gmra.mxu0 %v1286_v58 }
 0x367   :  { %2022 = vmatmul.f32.gmra.mxu3 %v1286_v58  ;;  %v7860_v62 = vpop.f32.mrf.mxu3  ;;  %v7862_v16 = vpop.f32.mrf.mxu0 }
 0x36a   :  { %1700 = vmatmul.f32.gmra.mxu2 %v12869_v46 }
 0x36d   :  { %v1289_v15 = vpop.f32.mrf.mxu2 }
 0x36e   :  { %1635 = vmatmul.f32.gmra.mxu1 %v1289_v15  ;;  %1830 = vmatmul.f32.gmra.mxu0 %v1289_v15 }
 0x36f   :  { %2025 = vmatmul.f32.gmra.mxu3 %v1289_v15  ;;  %v7865_v53 = vpop.f32.mrf.mxu3  ;;  %v7867_v35 = vpop.f32.mrf.mxu0 }
 0x372   :  { %1703 = vmatmul.f32.gmra.mxu2 %v12870_v2 }
 0x375   :  { %v1292_v19 = vpop.f32.mrf.mxu2 }
 0x376   :  { %1638 = vmatmul.f32.gmra.mxu1 %v1292_v19  ;;  %1833 = vmatmul.f32.gmra.mxu0 %v1292_v19 }
 0x377   :  { %2028 = vmatmul.f32.gmra.mxu3 %v1292_v19  ;;  %v7870_v18 = vpop.f32.mrf.mxu3  ;;  %v7872_v10 = vpop.f32.mrf.mxu0  ;;  %v12873_v19 = vld [vmem:[#allocation21_spill] sm:$0xff] }
 0x37a   :  { %1706 = vmatmul.f32.gmra.mxu2 %v12871_v9 }
 0x37d   :  { %v1295_v38 = vpop.f32.mrf.mxu2 }
 0x37e   :  { %1641 = vmatmul.f32.gmra.mxu1 %v1295_v38  ;;  %1836 = vmatmul.f32.gmra.mxu0 %v1295_v38 }
 0x37f   :  { %2031 = vmatmul.f32.gmra.mxu3 %v1295_v38  ;;  %v7875_v34 = vpop.f32.mrf.mxu0  ;;  %v7877_v31 = vpop.f32.mrf.mxu3  ;;  %v1420_v38 = vld [vmem:[%s12693_s7 + $0x2f8] sm:$0xff] }
 0x380   :  { %1932 = vmatpush.msrb.mxu2 %v1420_v38  ;;  %v1369_v38 = vld [vmem:[%s12693_s7 + $0x160] sm:$0xff] }
 0x381   :  { %1868 = vmatpush.msrb.mxu1 %v1369_v38 }
 0x382   :  { %1709 = vmatmul.f32.gmra.mxu2 %v12872_v0 }
 0x383   :  { %1933 = vmatpush.msrb.mxu2 %v1417_v6  ;;  %v2155_v6 = vld [vmem:[%s12694_s9 + $0x168] sm:$0xff]  ;;  %1869 = vmatpush.msrb.mxu1 %v1366_v12  ;;  %v1360_v12 = vld [vmem:[%s12693_s7 + $0x118] sm:$0xff] }
 0x384   :  { %2262 = vmatpush.msra.mxu0 %v2155_v6 }
 0x385   :  { %v1298_v23 = vpop.f32.mrf.mxu2  ;;  %1934 = vmatpush.msrb.mxu2 %v1414_v3  ;;  %v2153_v3 = vld [vmem:[%s12694_s9 + $0x158] sm:$0xff]  ;;  %1870 = vmatpush.msrb.mxu1 %v1363_v32  ;;  %v1357_v32 = vld [vmem:[%s12693_s7 + $0x100] sm:$0xff] }
 0x386   :  { %1644 = vmatmul.f32.gmra.mxu1 %v1298_v23  ;;  %1839 = vmatmul.f32.gmra.mxu0 %v1298_v23 }
 0x387   :  { %2034 = vmatmul.f32.gmra.mxu3 %v1298_v23  ;;  %v7880_v58 = vpop.f32.mrf.mxu0  ;;  %v7882_v15 = vpop.f32.mrf.mxu3  ;;  %2263 = vmatpush.msra.mxu0 %v2152_v28  ;;  %v2150_v28 = vld [vmem:[%s12694_s9 + $0x140] sm:$0xff] }
 0x388   :  { %2458 = vmatpush.msra.mxu3 %v2153_v3  ;;  %v2146_v3 = vld [vmem:[%s12694_s9 + $0x120] sm:$0xff]  ;;  %1871 = vmatpush.msrb.mxu1 %v1360_v12  ;;  %v1354_v12 = vld [vmem:[%s12693_s7 + $0xe8] sm:$0xff] }
 0x389   :  { %2264 = vmatpush.msra.mxu0 %v2149_v55  ;;  %v1399_v55 = vld [vmem:[%s12693_s7 + $0x250] sm:$0xff] }
 0x38a   :  { %1712 = vmatmul.f32.gmra.mxu2 %v12873_v19  ;;  %2459 = vmatpush.msra.mxu3 %v2150_v28  ;;  %v2144_v28 = vld [vmem:[%s12694_s9 + $0x110] sm:$0xff] }
 0x38b   :  { %2265 = vmatpush.msra.mxu0 %v2146_v3  ;;  %1872 = vmatpush.msrb.mxu1 %v1357_v32  ;;  %v1396_v3 = vld [vmem:[%s12693_s7 + $0x238] sm:$0xff] }
 0x38c   :  { %v2137_v32 = vld [vmem:[%s12694_s9 + $0xd8] sm:$0xff] }
 0x38d   :  { %v1301_v26 = vpop.f32.mrf.mxu2  ;;  %2266 = vmatpush.msra.mxu0 %v2143_v56  ;;  %v2141_v56 = vld [vmem:[%s12694_s9 + $0xf8] sm:$0xff]  ;;  %1873 = vmatpush.msrb.mxu1 %v1354_v12  ;;  %v2134_v12 = vld [vmem:[%s12694_s9 + $0xc0] sm:$0xff] }
 0x38e   :  { %1647 = vmatmul.f32.gmra.mxu1 %v1301_v26  ;;  %1842 = vmatmul.f32.gmra.mxu0 %v1301_v26 }
 0x38f   :  { %2037 = vmatmul.f32.gmra.mxu3 %v1301_v26  ;;  %v7891_v23 = vpop.f32.mrf.mxu0  ;;  %v1411_v26 = vld [vmem:[%s12693_s7 + $0x2b0] sm:$0xff]  ;;  %v7924_v6 = vpop.f32.mrf.mxu3 }
 0x390   :  { %1935 = vmatpush.msrb.mxu2 %v1411_v26  ;;  %12875 = vst [vmem:[#allocation13_spill] sm:$0xff] %v7924_v6  ;;  %v1405_v26 = vld [vmem:[%s12693_s7 + $0x280] sm:$0xff]  ;;  %v1402_v6 = vld [vmem:[%s12693_s7 + $0x268] sm:$0xff] }
 0x392   :  { %1715 = vmatmul.f32.gmra.mxu2 %v12874_v29 }
 0x393   :  { %1936 = vmatpush.msrb.mxu2 %v1408_v41 }
 0x395   :  { %v1304_v38 = vpop.f32.mrf.mxu2  ;;  %1937 = vmatpush.msrb.mxu2 %v1405_v26  ;;  %v12877_v26 = vld [vmem:[#allocation23_spill] sm:$0xff] }
 0x396   :  { %1650 = vmatmul.f32.gmra.mxu1 %v1304_v38  ;;  %1845 = vmatmul.f32.gmra.mxu0 %v1304_v38 }
 0x397   :  { %2040 = vmatmul.f32.gmra.mxu3 %v1304_v38  ;;  %v7938_v41 = vpop.f32.mrf.mxu0  ;;  %v2147_v38 = vld [vmem:[%s12694_s9 + $0x128] sm:$0xff]  ;;  %1938 = vmatpush.msrb.mxu2 %v1402_v6  ;;  %v1351_v6 = vld [vmem:[%s12693_s7 + $0xd0] sm:$0xff] }
 0x398   :  { %12876 = vst [vmem:[#allocation14_spill] sm:$0xff] %v7938_v41  ;;  %2460 = vmatpush.msra.mxu3 %v2147_v38  ;;  %v7974_v41 = vpop.f32.mrf.mxu3  ;;  %1874 = vmatpush.msrb.mxu1 %v1351_v6  ;;  %v1345_v6 = vld [vmem:[%s12693_s7 + $0xa0] sm:$0xff] }
 0x399   :  { %1939 = vmatpush.msrb.mxu2 %v1399_v55  ;;  %12878 = vst [vmem:[#allocation15_spill] sm:$0xff] %v7974_v41  ;;  %v1393_v55 = vld [vmem:[%s12693_s7 + $0x220] sm:$0xff] }
 0x39a   :  { %1718 = vmatmul.f32.gmra.mxu2 %v12877_v26  ;;  %2461 = vmatpush.msra.mxu3 %v2144_v28  ;;  %v2140_v26 = vld [vmem:[%s12694_s9 + $0xf0] sm:$0xff]  ;;  %v2138_v28 = vld [vmem:[%s12694_s9 + $0xe0] sm:$0xff] }
 0x39b   :  { %1940 = vmatpush.msrb.mxu2 %v1396_v3  ;;  %2267 = vmatpush.msra.mxu0 %v2140_v26  ;;  %v12880_v3 = vld [vmem:[#allocation24_spill] sm:$0xff]  ;;  %v1390_v26 = vld [vmem:[%s12693_s7 + $0x208] sm:$0xff] }
 0x39c   :  { %2462 = vmatpush.msra.mxu3 %v2141_v56  ;;  %v2135_v56 = vld [vmem:[%s12694_s9 + $0xc8] sm:$0xff] }
 0x39d   :  { %v1307_v47 = vpop.f32.mrf.mxu2  ;;  %2268 = vmatpush.msra.mxu0 %v2137_v32  ;;  %1941 = vmatpush.msrb.mxu2 %v1393_v55  ;;  %v1387_v32 = vld [vmem:[%s12693_s7 + $0x1f0] sm:$0xff] }
 0x39e   :  { %1653 = vmatmul.f32.gmra.mxu1 %v1307_v47  ;;  %1848 = vmatmul.f32.gmra.mxu0 %v1307_v47  ;;  %v2132_v55 = vld [vmem:[%s12694_s9 + $0xb0] sm:$0xff] }
 0x39f   :  { %2043 = vmatmul.f32.gmra.mxu3 %v1307_v47  ;;  %v7982_v38 = vpop.f32.mrf.mxu0  ;;  %v1348_v47 = vld [vmem:[%s12693_s7 + $0xb8] sm:$0xff]  ;;  %2269 = vmatpush.msra.mxu0 %v2134_v12  ;;  %v2128_v12 = vld [vmem:[%s12694_s9 + $0x90] sm:$0xff] }
 0x3a0   :  { %12879 = vst [vmem:[#allocation16_spill] sm:$0xff] %v7982_v38  ;;  %2463 = vmatpush.msra.mxu3 %v2138_v28  ;;  %1875 = vmatpush.msrb.mxu1 %v1348_v47  ;;  %v1342_v28 = vld [vmem:[%s12693_s7 + $0x88] sm:$0xff]  ;;  %v2129_v38 = vld [vmem:[%s12694_s9 + $0x98] sm:$0xff] }
 0x3a1   :  { %1942 = vmatpush.msrb.mxu2 %v1390_v26  ;;  %v8026_v26 = vpop.f32.mrf.mxu3 }
 0x3a2   :  { %1721 = vmatmul.f32.gmra.mxu2 %v12880_v3  ;;  %2464 = vmatpush.msra.mxu3 %v2135_v56  ;;  %v2131_v3 = vld [vmem:[%s12694_s9 + $0xa8] sm:$0xff]  ;;  %12881 = vst [vmem:[#allocation17_spill] sm:$0xff] %v8026_v26  ;;  %v1384_v56 = vld [vmem:[%s12693_s7 + $0x1d8] sm:$0xff]  ;;  %v2122_v26 = vld [vmem:[%s12694_s9 + $0x60] sm:$0xff] }
 0x3a3   :  { %1876 = vmatpush.msrb.mxu1 %v1345_v6  ;;  %1943 = vmatpush.msrb.mxu2 %v1387_v32  ;;  %v2125_v6 = vld [vmem:[%s12694_s9 + $0x78] sm:$0xff]  ;;  %v2126_v32 = vld [vmem:[%s12694_s9 + $0x80] sm:$0xff] }
 0x3a4   :  { %2270 = vmatpush.msra.mxu0 %v2131_v3  ;;  %2465 = vmatpush.msra.mxu3 %v2132_v55  ;;  %v1381_v3 = vld [vmem:[%s12693_s7 + $0x1c0] sm:$0xff]  ;;  %v1336_v55 = vld [vmem:[%s12693_s7 + $0x58] sm:$0xff] }
 0x3a5   :  { %v1310_v41 = vpop.f32.mrf.mxu2  ;;  %1877 = vmatpush.msrb.mxu1 %v1342_v28  ;;  %1944 = vmatpush.msrb.mxu2 %v1384_v56  ;;  %v1333_v56 = vld [vmem:[%s12693_s7 + $0x40] sm:$0xff] }
 0x3a6   :  { %1656 = vmatmul.f32.gmra.mxu1 %v1310_v41  ;;  %1851 = vmatmul.f32.gmra.mxu0 %v1310_v41 }
 0x3a7   :  { %2046 = vmatmul.f32.gmra.mxu3 %v1310_v41  ;;  %v8021_v47 = vpop.f32.mrf.mxu0  ;;  %v1339_v41 = vld [vmem:[%s12693_s7 + $0x70] sm:$0xff]  ;;  %2271 = vmatpush.msra.mxu0 %v2128_v12  ;;  %v1378_v12 = vld [vmem:[%s12693_s7 + $0x1a8] sm:$0xff] }
 0x3a8   :  { %2466 = vmatpush.msra.mxu3 %v2129_v38  ;;  %1878 = vmatpush.msrb.mxu1 %v1339_v41  ;;  %v2123_v38 = vld [vmem:[%s12694_s9 + $0x68] sm:$0xff] }
 0x3a9   :  { %2272 = vmatpush.msra.mxu0 %v2125_v6  ;;  %1945 = vmatpush.msrb.mxu2 %v1381_v3  ;;  %v2119_v6 = vld [vmem:[%s12694_s9 + $0x48] sm:$0xff]  ;;  %v1375_v3 = vld [vmem:[%s12693_s7 + $0x190] sm:$0xff] }
 0x3aa   :  { %1724 = vmatmul.f32.gmra.mxu2 %v7469_v48  ;;  %2467 = vmatpush.msra.mxu3 %v2126_v32  ;;  %v2120_v32 = vld [vmem:[%s12694_s9 + $0x50] sm:$0xff] }
 0x3ab   :  { %1879 = vmatpush.msrb.mxu1 %v1336_v55  ;;  %1946 = vmatpush.msrb.mxu2 %v1378_v12  ;;  %v1330_v55 = vld [vmem:[%s12693_s7 + $0x28] sm:$0xff]  ;;  %v8079_v12 = vpop.f32.mrf.mxu3 }
 0x3ac   :  { %2273 = vmatpush.msra.mxu0 %v2122_v26  ;;  %2468 = vmatpush.msra.mxu3 %v2123_v38  ;;  %12882 = vst [vmem:[#allocation18_spill] sm:$0xff] %v8079_v12  ;;  %v2117_v26 = vld [vmem:[%s12694_s9 + $0x38] sm:$0xff]  ;;  %v1327_v38 = vld [vmem:[%s12693_s7 + $0x10] sm:$0xff] }
 0x3ad   :  { %v1313_v28 = vpop.f32.mrf.mxu2  ;;  %1880 = vmatpush.msrb.mxu1 %v1333_v56  ;;  %1947 = vmatpush.msrb.mxu2 %v1375_v3  ;;  %v2113_v12 = vld [vmem:[%s12694_s9 + $0x18] sm:$0xff] }
 0x3ae   :  { %1659 = vmatmul.f32.gmra.mxu1 %v1313_v28  ;;  %1854 = vmatmul.f32.gmra.mxu0 %v1313_v28 }
 0x3af   :  { %2049 = vmatmul.f32.gmra.mxu3 %v1313_v28  ;;  %v8062_v41 = vpop.f32.mrf.mxu0  ;;  %v2116_v28 = vld [vmem:[%s12694_s9 + $0x30] sm:$0xff]  ;;  %2274 = vmatpush.msra.mxu0 %v2119_v6  ;;  %v2114_v6 = vld [vmem:[%s12694_s9 + $0x20] sm:$0xff] }
 0x3b0   :  { %2469 = vmatpush.msra.mxu3 %v2120_v32  ;;  %1881 = vmatpush.msrb.mxu1 %v1330_v55  ;;  %v2110_v32 = vld [vmem:[%s12694_s9] sm:$0xff]  ;;  %v2111_v55 = vld [vmem:[%s12694_s9 + $0x8] sm:$0xff] }
 0x3b1   :  { %2275 = vmatpush.msra.mxu0 %v2116_v28 }
 0x3b2   :  { %1727 = vmatmul.f32.gmra.mxu2 %v7501_v61  ;;  %2470 = vmatpush.msra.mxu3 %v2117_v26 }
 0x3b3   :  { %1882 = vmatpush.msrb.mxu1 %v1327_v38  ;;  %2276 = vmatpush.msra.mxu0 %v2113_v12  ;;  %v8103_v28 = vpop.f32.mrf.mxu3  ;;  %v8108_v38 = vld [vmem:[%s12695_s8] sm:$0x7] }
 0x3b4   :  { %2471 = vmatpush.msra.mxu3 %v2114_v6  ;;  %12884 = vst [vmem:[#allocation20_spill] sm:$0xff] %v8103_v28 }
 0x3b5   :  { %v1316_v56 = vpop.f32.mrf.mxu2  ;;  %2277 = vmatpush.msra.mxu0 %v2110_v32 }
 0x3b6   :  { %1662 = vmatmul.f32.gmra.mxu1 %v1316_v56  ;;  %1857 = vmatmul.f32.gmra.mxu0 %v1316_v56 }
 0x3b7   :  { %2052 = vmatmul.f32.gmra.mxu3 %v1316_v56  ;;  %v8094_v3 = vpop.f32.mrf.mxu0  ;;  %v8113_v56 = vperm.slane %v8108_v38, 0 }
 0x3b8   :  { %12883 = vst [vmem:[#allocation19_spill] sm:$0xff] %v8094_v3  ;;  %2472 = vmatpush.msra.mxu3 %v2111_v55 }
 0x3b9   :  { %v1495_v32 = vadd.f32 %v7543_v49, %v8113_v56  ;;  %v1498_v61 = vadd.f32 %v7550_v50, %v8113_v56 }
 0x3ba   :  { %1730 = vmatmul.f32.gmra.mxu2 %v7521_v40 }
 0x3bb   :  { %v8118_v55 = vpop.f32.mrf.mxu3  ;;  %v1560_v28 = vadd.f32 %v7842_v63, %v1495_v32  ;;  %v1563_v63 = vadd.f32 %v7847_v43, %v1498_v61 }
 0x3bc   :  { %12886 = vst [vmem:[#allocation22_spill] sm:$0xff] %v8118_v55 }
 0x3bd   :  { %v1319_v26 = vpop.f32.mrf.mxu2 }
 0x3be   :  { %1665 = vmatmul.f32.gmra.mxu1 %v1319_v26  ;;  %1860 = vmatmul.f32.gmra.mxu0 %v1319_v26 }
 0x3bf   :  { %2055 = vmatmul.f32.gmra.mxu3 %v1319_v26  ;;  %v8110_v12 = vpop.f32.mrf.mxu0  ;;  %v8123_v26 = vperm.slane %v8108_v38, 1 }
 0x3c0   :  { %12885 = vst [vmem:[#allocation21_spill] sm:$0xff] %v8110_v12 }
 0x3c2   :  { %1733 = vmatmul.f32.gmra.mxu2 %v7534_v8 }
 0x3c5   :  { %v1322_v6 = vpop.f32.mrf.mxu2 }
 0x3c6   :  { %1668 = vmatmul.f32.gmra.mxu1 %v1322_v6  ;;  %1863 = vmatmul.f32.gmra.mxu0 %v1322_v6 }
 0x3c7   :  { %2058 = vmatmul.f32.gmra.mxu3 %v1322_v6  ;;  %v8131_v6 = vpop.f32.mrf.mxu3 }
 0x3ca   :  { %1948 = vmatmul.f32.vlgmr.msrb.gmra.mxu2 %v7538_v13 }
 0x3cb   :  { %v1624_v12 = vpop.f32.mrf.mxu1  ;;  %v1819_v40 = vpop.f32.mrf.mxu0 }
 0x3cc   :  { %v1625_v3 = vadd.f32 %v1624_v12, %v1560_v28 }
 0x3cd   :  { %v1689_v8 = vpop.f32.mrf.mxu2 }
 0x3ce   :  { %v8127_v49 = vmax.f32 %v1625_v3, 0.0  ;;  %v1690_v55 = vadd.f32 %v1689_v8, %v8123_v26  ;;  %1883 = vmatmul.f32.vlgmr.msrb.gmra.mxu1 %v12865_v22  ;;  %v1501_v22 = vadd.f32 %v7557_v60, %v8113_v56 }
 0x3d0   :  { %v1755_v13 = vadd.f32 %v7845_v1, %v1690_v55  ;;  %2278 = vmatmul.f32.vlgmr.msra.gmra.mxu0 %v8127_v49  ;;  %2473 = vmatmul.f32.vlgmr.msra.gmra.mxu3 %v8127_v49  ;;  %v1566_v61 = vadd.f32 %v7852_v37, %v1501_v22 }
 0x3d2   :  { %v8137_v28 = vadd.f32 %v1819_v40, %v1755_v13  ;;  %1951 = vmatmul.f32.gmra.mxu2 %v7545_v4  ;;  %v8150_v40 = vpop.f32.mrf.mxu3 }
 0x3d3   :  { %v1627_v50 = vpop.f32.mrf.mxu1  ;;  %v1822_v3 = vpop.f32.mrf.mxu0 }
 0x3d4   :  { %v1628_v12 = vadd.f32 %v1627_v50, %v1563_v63 }
 0x3d5   :  { %v1692_v8 = vpop.f32.mrf.mxu2 }
 0x3d6   :  { %v8142_v32 = vmax.f32 %v1628_v12, 0.0  ;;  %v1693_v1 = vadd.f32 %v1692_v8, %v8123_v26  ;;  %1886 = vmatmul.f32.gmra.mxu1 %v12866_v5  ;;  %v1504_v5 = vadd.f32 %v7564_v33, %v8113_v56 }
 0x3d8   :  { %v1758_v55 = vadd.f32 %v7850_v24, %v1693_v1  ;;  %2281 = vmatmul.f32.gmra.mxu0 %v8142_v32  ;;  %2476 = vmatmul.f32.gmra.mxu3 %v8142_v32 }
 0x3da   :  { %1954 = vmatmul.f32.gmra.mxu2 %v7552_v54  ;;  %v8153_v4 = vadd.f32 %v1822_v3, %v1758_v55  ;;  %v1569_v54 = vadd.f32 %v7857_v25, %v1504_v5  ;;  %v8168_v8 = vpop.f32.mrf.mxu3 }
 0x3db   :  { %v1630_v60 = vpop.f32.mrf.mxu1  ;;  %v1825_v43 = vpop.f32.mrf.mxu0 }
 0x3dc   :  { %v1631_v13 = vadd.f32 %v1630_v60, %v1566_v61 }
 0x3dd   :  { %v1695_v63 = vpop.f32.mrf.mxu2 }
 0x3de   :  { %v8157_v24 = vmax.f32 %v1631_v13, 0.0  ;;  %v1696_v50 = vadd.f32 %v1695_v63, %v8123_v26  ;;  %1889 = vmatmul.f32.gmra.mxu1 %v12867_v57  ;;  %v1507_v57 = vadd.f32 %v7571_v39, %v8113_v56  ;;  %v1510_v63 = vadd.f32 %v7578_v45, %v8113_v56 }
 0x3e0   :  { %v1761_v37 = vadd.f32 %v7855_v20, %v1696_v50  ;;  %2284 = vmatmul.f32.gmra.mxu0 %v8157_v24  ;;  %2479 = vmatmul.f32.gmra.mxu3 %v8157_v24 }
 0x3e2   :  { %1957 = vmatmul.f32.gmra.mxu2 %v7559_v14  ;;  %v8166_v3 = vadd.f32 %v1825_v43, %v1761_v37  ;;  %v1572_v14 = vadd.f32 %v7862_v16, %v1507_v57 }
 0x3e3   :  { %v1633_v12 = vpop.f32.mrf.mxu1  ;;  %v1828_v33 = vpop.f32.mrf.mxu0 }
 0x3e4   :  { %v1634_v22 = vadd.f32 %v1633_v12, %v1569_v54 }
 0x3e5   :  { %v1698_v1 = vpop.f32.mrf.mxu2 }
 0x3e6   :  { %v8172_v20 = vmax.f32 %v1634_v22, 0.0  ;;  %v1699_v55 = vadd.f32 %v1698_v1, %v8123_v26  ;;  %1892 = vmatmul.f32.gmra.mxu1 %v12868_v30  ;;  %v8185_v30 = vpop.f32.mrf.mxu3 }
 0x3e8   :  { %v1764_v25 = vadd.f32 %v7860_v62, %v1699_v55  ;;  %2287 = vmatmul.f32.gmra.mxu0 %v8172_v20  ;;  %2482 = vmatmul.f32.gmra.mxu3 %v8172_v20 }
 0x3ea   :  { %1960 = vmatmul.f32.gmra.mxu2 %v7566_v21  ;;  %v8181_v61 = vadd.f32 %v1828_v33, %v1764_v25  ;;  %v1575_v21 = vadd.f32 %v7867_v35, %v1510_v63  ;;  %v1513_v33 = vadd.f32 %v7585_v51, %v8113_v56 }
 0x3eb   :  { %v1636_v60 = vpop.f32.mrf.mxu1  ;;  %v1831_v39 = vpop.f32.mrf.mxu0 }
 0x3ec   :  { %v1637_v43 = vadd.f32 %v1636_v60, %v1572_v14 }
 0x3ed   :  { %v1701_v13 = vpop.f32.mrf.mxu2 }
 0x3ee   :  { %v8187_v62 = vmax.f32 %v1637_v43, 0.0  ;;  %v1702_v5 = vadd.f32 %v1701_v13, %v8123_v26  ;;  %1895 = vmatmul.f32.gmra.mxu1 %v12869_v46  ;;  %v8204_v22 = vpop.f32.mrf.mxu3 }
 0x3f0   :  { %v1767_v16 = vadd.f32 %v7865_v53, %v1702_v5  ;;  %2290 = vmatmul.f32.gmra.mxu0 %v8187_v62  ;;  %2485 = vmatmul.f32.gmra.mxu3 %v8187_v62 }
 0x3f2   :  { %1963 = vmatmul.f32.gmra.mxu2 %v7573_v44  ;;  %v8196_v50 = vadd.f32 %v1831_v39, %v1767_v16  ;;  %v1578_v44 = vadd.f32 %v7872_v10, %v1513_v33 }
 0x3f3   :  { %v1639_v45 = vpop.f32.mrf.mxu1  ;;  %v1834_v37 = vpop.f32.mrf.mxu0 }
 0x3f4   :  { %v1640_v54 = vadd.f32 %v1639_v45, %v1575_v21 }
 0x3f5   :  { %v1704_v12 = vpop.f32.mrf.mxu2 }
 0x3f6   :  { %v8200_v46 = vmax.f32 %v1640_v54, 0.0  ;;  %v1705_v53 = vadd.f32 %v1704_v12, %v8123_v26  ;;  %1898 = vmatmul.f32.gmra.mxu1 %v12870_v2  ;;  %v1516_v2 = vadd.f32 %v7592_v52, %v8113_v56  ;;  %v8223_v10 = vpop.f32.mrf.mxu3 }
 0x3f8   :  { %v1770_v35 = vadd.f32 %v7870_v18, %v1705_v53  ;;  %2293 = vmatmul.f32.gmra.mxu0 %v8200_v46  ;;  %2488 = vmatmul.f32.gmra.mxu3 %v8200_v46 }
 0x3fa   :  { %1966 = vmatmul.f32.gmra.mxu2 %v7580_v11  ;;  %v8211_v1 = vadd.f32 %v1834_v37, %v1770_v35  ;;  %v1581_v11 = vadd.f32 %v7875_v34, %v1516_v2  ;;  %v2197_v35 = vld [vmem:[%s12694_s9 + $0x2b8] sm:$0xff]  ;;  %v1525_v2 = vadd.f32 %v7715_v36, %v8113_v56  ;;  %v2195_v36 = vld [vmem:[%s12694_s9 + $0x2a8] sm:$0xff] }
 0x3fb   :  { %v1642_v51 = vpop.f32.mrf.mxu1  ;;  %v1837_v57 = vpop.f32.mrf.mxu0 }
 0x3fc   :  { %v1643_v55 = vadd.f32 %v1642_v51, %v1578_v44  ;;  %v2201_v44 = vld [vmem:[%s12694_s9 + $0x2d8] sm:$0xff] }
 0x3fd   :  { %v1707_v25 = vpop.f32.mrf.mxu2 }
 0x3fe   :  { %v8215_v14 = vmax.f32 %v1643_v55, 0.0  ;;  %v1708_v18 = vadd.f32 %v1707_v25, %v8123_v26  ;;  %1901 = vmatmul.f32.gmra.mxu1 %v12871_v9  ;;  %v1519_v9 = vadd.f32 %v7617_v7, %v8113_v56  ;;  %v8243_v45 = vpop.f32.mrf.mxu3  ;;  %v2251_v55 = vld [vmem:[%s12694_s9 + $0x468] sm:$0xff]  ;;  %v2198_v25 = vld [vmem:[%s12694_s9 + $0x2c0] sm:$0xff] }
 0x3ff   :  { %2392 = vmatpush.msra.mxu2 %v2251_v55  ;;  %v2186_v55 = vld [vmem:[%s12694_s9 + $0x260] sm:$0xff] }
 0x400   :  { %v1773_v60 = vadd.f32 %v7877_v31, %v1708_v18  ;;  %2296 = vmatmul.f32.gmra.mxu0 %v8215_v14  ;;  %2491 = vmatmul.f32.gmra.mxu3 %v8215_v14 }
 0x402   :  { %1969 = vmatmul.f32.gmra.mxu2 %v7587_v27  ;;  %v8226_v39 = vadd.f32 %v1837_v57, %v1773_v60  ;;  %v1584_v27 = vadd.f32 %v7880_v58, %v1519_v9  ;;  %v2200_v58 = vld [vmem:[%s12694_s9 + $0x2d0] sm:$0xff]  ;;  %v2194_v57 = vld [vmem:[%s12694_s9 + $0x2a0] sm:$0xff] }
 0x403   :  { %v1645_v52 = vpop.f32.mrf.mxu1  ;;  %v1840_v43 = vpop.f32.mrf.mxu0  ;;  %v12887_v9 = vld [vmem:[#allocation14_spill] sm:$0xff] }
 0x404   :  { %v1646_v13 = vadd.f32 %v1645_v52, %v1581_v11  ;;  %v2199_v11 = vld [vmem:[%s12694_s9 + $0x2c8] sm:$0xff] }
 0x405   :  { %v1710_v63 = vpop.f32.mrf.mxu2  ;;  %v2191_v52 = vld [vmem:[%s12694_s9 + $0x288] sm:$0xff] }
 0x406   :  { %v8230_v31 = vmax.f32 %v1646_v13, 0.0  ;;  %v1711_v5 = vadd.f32 %v1710_v63, %v8123_v26  ;;  %1904 = vmatmul.f32.gmra.mxu1 %v12872_v0  ;;  %v1522_v0 = vadd.f32 %v7669_v42, %v8113_v56  ;;  %v2204_v42 = vld [vmem:[%s12694_s9 + $0x2f0] sm:$0xff]  ;;  %v8292_v18 = vpop.f32.mrf.mxu3 }
 0x407   :  { %2522 = vmatpush.msrb.mxu0 %v2204_v42  ;;  %v2188_v13 = vld [vmem:[%s12694_s9 + $0x270] sm:$0xff]  ;;  %v2185_v42 = vld [vmem:[%s12694_s9 + $0x258] sm:$0xff] }
 0x408   :  { %v1776_v34 = vadd.f32 %v7882_v15, %v1711_v5  ;;  %2299 = vmatmul.f32.gmra.mxu0 %v8230_v31  ;;  %2494 = vmatmul.f32.gmra.mxu3 %v8230_v31  ;;  %v1587_v12 = vadd.f32 %v7891_v23, %v1522_v0  ;;  %v2202_v23 = vld [vmem:[%s12694_s9 + $0x2e0] sm:$0xff]  ;;  %v2192_v63 = vld [vmem:[%s12694_s9 + $0x290] sm:$0xff]  ;;  %v1590_v5 = vadd.f32 %v12887_v9, %v1525_v2  ;;  %v2239_v2 = vld [vmem:[%s12694_s9 + $0x408] sm:$0xff] }
 0x409   :  { %2523 = vmatpush.msrb.mxu0 %v2201_v44  ;;  %v2184_v9 = vld [vmem:[%s12694_s9 + $0x250] sm:$0xff] }
 0x40a   :  { %1972 = vmatmul.f32.gmra.mxu2 %v7594_v59  ;;  %v8239_v16 = vadd.f32 %v1840_v43, %v1776_v34  ;;  %v2203_v59 = vld [vmem:[%s12694_s9 + $0x2e8] sm:$0xff]  ;;  %v2196_v43 = vld [vmem:[%s12694_s9 + $0x2b0] sm:$0xff] }
 0x40b   :  { %v1648_v21 = vpop.f32.mrf.mxu1  ;;  %v8241_v7 = vpop.f32.mrf.mxu0  ;;  %2327 = vmatpush.msra.mxu1 %v2203_v59  ;;  %2524 = vmatpush.msrb.mxu0 %v2198_v25  ;;  %v12888_v34 = vld [vmem:[#allocation12_spill] sm:$0xff]  ;;  %v2189_v59 = vld [vmem:[%s12694_s9 + $0x278] sm:$0xff] }
 0x40c   :  { %v1649_v37 = vadd.f32 %v1648_v21, %v1584_v27  ;;  %v2245_v27 = vld [vmem:[%s12694_s9 + $0x438] sm:$0xff] }
 0x40d   :  { %v8245_v54 = vpop.f32.mrf.mxu2  ;;  %2328 = vmatpush.msra.mxu1 %v2200_v58  ;;  %2525 = vmatpush.msrb.mxu0 %v2195_v36  ;;  %v2193_v21 = vld [vmem:[%s12694_s9 + $0x298] sm:$0xff]  ;;  %v2183_v36 = vld [vmem:[%s12694_s9 + $0x248] sm:$0xff] }
 0x40e   :  { %v8249_v15 = vmax.f32 %v1649_v37, 0.0  ;;  %1907 = vmatmul.f32.gmra.mxu1 %v12873_v19  ;;  %v2205_v19 = vld [vmem:[%s12694_s9 + $0x2f8] sm:$0xff]  ;;  %v8355_v25 = vpop.f32.mrf.mxu3 }
 0x40f   :  { %2717 = vmatpush.msrb.mxu3 %v2205_v19  ;;  %2329 = vmatpush.msra.mxu1 %v2197_v35  ;;  %v2242_v19 = vld [vmem:[%s12694_s9 + $0x420] sm:$0xff] }
 0x410   :  { %2302 = vmatmul.f32.gmra.mxu0 %v8249_v15  ;;  %2497 = vmatmul.f32.gmra.mxu3 %v8249_v15 }
 0x411   :  { %2718 = vmatpush.msrb.mxu3 %v2202_v23  ;;  %2330 = vmatpush.msra.mxu1 %v2194_v57  ;;  %v12890_v23 = vld [vmem:[#allocation23_spill] sm:$0xff]  ;;  %v2182_v57 = vld [vmem:[%s12694_s9 + $0x240] sm:$0xff] }
 0x412   :  { %1975 = vmatmul.f32.gmra.mxu2 %v7628_v17  ;;  %2526 = vmatpush.msrb.mxu0 %v2192_v63  ;;  %v2236_v63 = vld [vmem:[%s12694_s9 + $0x3f0] sm:$0xff] }
 0x413   :  { %v1651_v33 = vpop.f32.mrf.mxu1  ;;  %v8268_v53 = vpop.f32.mrf.mxu0  ;;  %2719 = vmatpush.msrb.mxu3 %v2199_v11  ;;  %2331 = vmatpush.msra.mxu1 %v2191_v52  ;;  %v2187_v11 = vld [vmem:[%s12694_s9 + $0x268] sm:$0xff] }
 0x414   :  { %v1652_v51 = vadd.f32 %v1651_v33, %v1587_v12  ;;  %v12889_v33 = vld [vmem:[#allocation10_spill] sm:$0xff]  ;;  %2527 = vmatpush.msrb.mxu0 %v2189_v59  ;;  %v2179_v52 = vld [vmem:[%s12694_s9 + $0x228] sm:$0xff]  ;;  %v2233_v59 = vld [vmem:[%s12694_s9 + $0x3d8] sm:$0xff] }
 0x415   :  { %v8279_v17 = vpop.f32.mrf.mxu2  ;;  %2720 = vmatpush.msrb.mxu3 %v2196_v43  ;;  %2332 = vmatpush.msra.mxu1 %v2188_v13  ;;  %v1528_v35 = vadd.f32 %v12889_v33, %v8113_v56  ;;  %v12892_v13 = vld [vmem:[#allocation11_spill] sm:$0xff] }
 0x416   :  { %v8294_v60 = vmax.f32 %v1652_v51, 0.0  ;;  %1910 = vmatmul.f32.gmra.mxu1 %v12874_v29  ;;  %v2248_v29 = vld [vmem:[%s12694_s9 + $0x450] sm:$0xff]  ;;  %v2190_v51 = vld [vmem:[%s12694_s9 + $0x280] sm:$0xff]  ;;  %2528 = vmatpush.msrb.mxu0 %v2186_v55 }
 0x417   :  { %2393 = vmatpush.msra.mxu2 %v2248_v29  ;;  %2721 = vmatpush.msrb.mxu3 %v2193_v21  ;;  %v12891_v29 = vld [vmem:[#allocation16_spill] sm:$0xff]  ;;  %v2230_v55 = vld [vmem:[%s12694_s9 + $0x3c0] sm:$0xff] }
 0x418   :  { %2305 = vmatmul.f32.gmra.mxu0 %v8294_v60  ;;  %2500 = vmatmul.f32.gmra.mxu3 %v8294_v60  ;;  %v1593_v43 = vadd.f32 %v12891_v29, %v1528_v35  ;;  %v12894_v35 = vld [vmem:[#allocation24_spill] sm:$0xff]  ;;  %v8421_v29 = vpop.f32.mrf.mxu3 }
 0x419   :  { %2394 = vmatpush.msra.mxu2 %v2245_v27  ;;  %2333 = vmatpush.msra.mxu1 %v2185_v42  ;;  %v2180_v27 = vld [vmem:[%s12694_s9 + $0x230] sm:$0xff] }
 0x41a   :  { %1978 = vmatmul.f32.gmra.mxu2 %v12888_v34  ;;  %2722 = vmatpush.msrb.mxu3 %v2190_v51  ;;  %v12893_v42 = vld [vmem:[#allocation8_spill] sm:$0xff]  ;;  %v2173_v51 = vld [vmem:[%s12694_s9 + $0x1f8] sm:$0xff] }
 0x41b   :  { %v1654_v37 = vpop.f32.mrf.mxu1  ;;  %v8328_v0 = vpop.f32.mrf.mxu0  ;;  %2395 = vmatpush.msra.mxu2 %v2242_v19  ;;  %2334 = vmatpush.msra.mxu1 %v2182_v57  ;;  %v1531_v19 = vadd.f32 %v12893_v42, %v8113_v56  ;;  %v2177_v57 = vld [vmem:[%s12694_s9 + $0x218] sm:$0xff]  ;;  %v12896_v42 = vld [vmem:[#allocation3_spill] sm:$0xff] }
 0x41c   :  { %v1655_v58 = vadd.f32 %v1654_v37, %v1590_v5  ;;  %2723 = vmatpush.msrb.mxu3 %v2187_v11  ;;  %2529 = vmatpush.msrb.mxu0 %v2183_v36  ;;  %v2176_v37 = vld [vmem:[%s12694_s9 + $0x210] sm:$0xff]  ;;  %v2170_v11 = vld [vmem:[%s12694_s9 + $0x1e0] sm:$0xff] }
 0x41d   :  { %v8339_v12 = vpop.f32.mrf.mxu2  ;;  %2396 = vmatpush.msra.mxu2 %v2239_v2  ;;  %2335 = vmatpush.msra.mxu1 %v2179_v52  ;;  %v2178_v2 = vld [vmem:[%s12694_s9 + $0x220] sm:$0xff]  ;;  %v1596_v36 = vadd.f32 %v8021_v47, %v1531_v19  ;;  %v2171_v47 = vld [vmem:[%s12694_s9 + $0x1e8] sm:$0xff]  ;;  %v1534_v19 = vadd.f32 %v12896_v42, %v8113_v56 }
 0x41e   :  { %v8343_v44 = vmax.f32 %v1655_v58, 0.0  ;;  %1913 = vmatmul.f32.gmra.mxu1 %v12890_v23  ;;  %2724 = vmatpush.msrb.mxu3 %v2184_v9  ;;  %v2181_v23 = vld [vmem:[%s12694_s9 + $0x238] sm:$0xff]  ;;  %v2174_v52 = vld [vmem:[%s12694_s9 + $0x200] sm:$0xff] }
 0x41f   :  { %2397 = vmatpush.msra.mxu2 %v2236_v63  ;;  %2530 = vmatpush.msrb.mxu0 %v2180_v27  ;;  %v2175_v63 = vld [vmem:[%s12694_s9 + $0x208] sm:$0xff] }
 0x420   :  { %2308 = vmatmul.f32.gmra.mxu0 %v8343_v44  ;;  %2503 = vmatmul.f32.gmra.mxu3 %v8343_v44 }
 0x421   :  { %2336 = vmatpush.msra.mxu1 %v2176_v37  ;;  %2398 = vmatpush.msra.mxu2 %v2233_v59  ;;  %v2224_v37 = vld [vmem:[%s12694_s9 + $0x390] sm:$0xff] }
 0x422   :  { %1981 = vmatmul.f32.gmra.mxu2 %v12892_v13  ;;  %2725 = vmatpush.msrb.mxu3 %v2181_v23  ;;  %v2227_v13 = vld [vmem:[%s12694_s9 + $0x3a8] sm:$0xff]  ;;  %v2172_v23 = vld [vmem:[%s12694_s9 + $0x1f0] sm:$0xff] }
 0x423   :  { %v1657_v5 = vpop.f32.mrf.mxu1  ;;  %v8379_v34 = vpop.f32.mrf.mxu0  ;;  %2337 = vmatpush.msra.mxu1 %v2173_v51  ;;  %2531 = vmatpush.msrb.mxu0 %v2177_v57  ;;  %v2164_v51 = vld [vmem:[%s12694_s9 + $0x1b0] sm:$0xff] }
 0x424   :  { %v1658_v21 = vadd.f32 %v1657_v5, %v1593_v43  ;;  %v12895_v43 = vld [vmem:[#allocation7_spill] sm:$0xff]  ;;  %2399 = vmatpush.msra.mxu2 %v2230_v55  ;;  %2726 = vmatpush.msrb.mxu3 %v2178_v2  ;;  %v2168_v57 = vld [vmem:[%s12694_s9 + $0x1d0] sm:$0xff]  ;;  %v2169_v55 = vld [vmem:[%s12694_s9 + $0x1d8] sm:$0xff] }
 0x425   :  { %v8390_v58 = vpop.f32.mrf.mxu2  ;;  %2338 = vmatpush.msra.mxu1 %v2170_v11  ;;  %2532 = vmatpush.msrb.mxu0 %v2174_v52  ;;  %v2161_v2 = vld [vmem:[%s12694_s9 + $0x198] sm:$0xff]  ;;  %v1599_v52 = vadd.f32 %v8062_v41, %v1534_v19  ;;  %v2162_v41 = vld [vmem:[%s12694_s9 + $0x1a0] sm:$0xff] }
 0x426   :  { %v8394_v33 = vmax.f32 %v1658_v21, 0.0  ;;  %1916 = vmatmul.f32.gmra.mxu1 %v12894_v35  ;;  %v2167_v21 = vld [vmem:[%s12694_s9 + $0x1c8] sm:$0xff]  ;;  %2400 = vmatpush.msra.mxu2 %v2227_v13  ;;  %v2165_v11 = vld [vmem:[%s12694_s9 + $0x1b8] sm:$0xff]  ;;  %v2166_v13 = vld [vmem:[%s12694_s9 + $0x1c0] sm:$0xff] }
 0x427   :  { %2727 = vmatpush.msrb.mxu3 %v2175_v63  ;;  %2533 = vmatpush.msrb.mxu0 %v2171_v47  ;;  %v8484_v47 = vpop.f32.mrf.mxu3  ;;  %v12898_v19 = vld [vmem:[#allocation5_spill] sm:$0xff] }
 0x428   :  { %2311 = vmatmul.f32.gmra.mxu0 %v8394_v33  ;;  %2506 = vmatmul.f32.gmra.mxu3 %v8394_v33 }
 0x429   :  { %2339 = vmatpush.msra.mxu1 %v2167_v21  ;;  %2401 = vmatpush.msra.mxu2 %v2224_v37  ;;  %v2158_v21 = vld [vmem:[%s12694_s9 + $0x180] sm:$0xff]  ;;  %v2215_v37 = vld [vmem:[%s12694_s9 + $0x348] sm:$0xff] }
 0x42a   :  { %1984 = vmatmul.f32.gmra.mxu2 %v12895_v43  ;;  %2728 = vmatpush.msrb.mxu3 %v2172_v23  ;;  %v2218_v43 = vld [vmem:[%s12694_s9 + $0x360] sm:$0xff]  ;;  %v1537_v23 = vadd.f32 %v12898_v19, %v8113_v56  ;;  %v12903_v19 = vld [vmem:[#allocation27_spill] sm:$0xff] }
 0x42b   :  { %v1660_v9 = vpop.f32.mrf.mxu1  ;;  %v8430_v5 = vpop.f32.mrf.mxu0  ;;  %2340 = vmatpush.msra.mxu1 %v2164_v51  ;;  %2534 = vmatpush.msrb.mxu0 %v2168_v57  ;;  %v12900_v57 = vld [vmem:[#allocation25_spill] sm:$0xff] }
 0x42c   :  { %v1661_v27 = vadd.f32 %v1660_v9, %v1596_v36  ;;  %v12897_v36 = vld [vmem:[#allocation2_spill] sm:$0xff]  ;;  %2729 = vmatpush.msrb.mxu3 %v2169_v55  ;;  %v2212_v55 = vld [vmem:[%s12694_s9 + $0x330] sm:$0xff] }
 0x42d   :  { %v8441_v59 = vpop.f32.mrf.mxu2  ;;  %2341 = vmatpush.msra.mxu1 %v2161_v2  ;;  %2535 = vmatpush.msrb.mxu0 %v2165_v11  ;;  %v2159_v2 = vld [vmem:[%s12694_s9 + $0x188] sm:$0xff]  ;;  %v2160_v11 = vld [vmem:[%s12694_s9 + $0x190] sm:$0xff] }
 0x42e   :  { %v8445_v35 = vmax.f32 %v1661_v27, 0.0  ;;  %1919 = vmatmul.f32.gmra.mxu1 %v7469_v48  ;;  %v2221_v48 = vld [vmem:[%s12694_s9 + $0x378] sm:$0xff]  ;;  %2730 = vmatpush.msrb.mxu3 %v2166_v13  ;;  %v12902_v13 = vld [vmem:[#allocation4_spill] sm:$0xff] }
 0x42f   :  { %2402 = vmatpush.msra.mxu2 %v2221_v48  ;;  %2536 = vmatpush.msrb.mxu0 %v2162_v41  ;;  %v2163_v48 = vld [vmem:[%s12694_s9 + $0x1a8] sm:$0xff] }
 0x430   :  { %2314 = vmatmul.f32.gmra.mxu0 %v8445_v35  ;;  %2509 = vmatmul.f32.gmra.mxu3 %v8445_v35 }
 0x431   :  { %2403 = vmatpush.msra.mxu2 %v2218_v43  ;;  %2342 = vmatpush.msra.mxu1 %v2158_v21 }
 0x432   :  { %1987 = vmatmul.f32.gmra.mxu2 %v12897_v36  ;;  %2731 = vmatpush.msrb.mxu3 %v2163_v48  ;;  %v12901_v36 = vld [vmem:[#allocation19_spill] sm:$0xff] }
 0x433   :  { %v1663_v63 = vpop.f32.mrf.mxu1  ;;  %v8479_v9 = vpop.f32.mrf.mxu0  ;;  %2404 = vmatpush.msra.mxu2 %v2215_v37  ;;  %v1602_v43 = vadd.f32 %v12901_v36, %v1537_v23  ;;  %2537 = vmatpush.msrb.mxu0 %v2159_v2  ;;  %v12906_v2 = vld [vmem:[#allocation21_spill] sm:$0xff] }
 0x434   :  { %v1664_v27 = vadd.f32 %v1663_v63, %v1599_v52  ;;  %v2209_v52 = vld [vmem:[%s12694_s9 + $0x318] sm:$0xff]  ;;  %v2206_v63 = vld [vmem:[%s12694_s9 + $0x300] sm:$0xff]  ;;  %2732 = vmatpush.msrb.mxu3 %v2160_v11  ;;  %v8527_v23 = vpop.f32.mrf.mxu3 }
 0x435   :  { %v8492_v42 = vpop.f32.mrf.mxu2  ;;  %2405 = vmatpush.msra.mxu2 %v2212_v55  ;;  %v12905_v55 = vld [vmem:[#allocation26_spill] sm:$0xff] }
 0x436   :  { %v8496_v51 = vmax.f32 %v1664_v27, 0.0  ;;  %1922 = vmatmul.f32.gmra.mxu1 %v12900_v57  ;;  %v1540_v57 = vadd.f32 %v12903_v19, %v8113_v56  ;;  %v8548_v19 = vperm.slane %v8108_v38, 2 }
 0x437   :  { %2406 = vmatpush.msra.mxu2 %v2209_v52  ;;  %v12907_v52 = vld [vmem:[#allocation6_spill] sm:$0xff] }
 0x438   :  { %12899 = vst [vmem:[#allocation14_spill] sm:$0xff] %v8496_v51  ;;  %2317 = vmatmul.f32.gmra.mxu0 %v8496_v51  ;;  %2512 = vmatmul.f32.gmra.mxu3 %v8496_v51  ;;  %v1605_v11 = vadd.f32 %v12906_v2, %v1540_v57 }
 0x439   :  { %2407 = vmatpush.msra.mxu2 %v2206_v63 }
 0x43a   :  { %1990 = vmatmul.f32.gmra.mxu2 %v12902_v13 }
 0x43b   :  { %v1666_v41 = vpop.f32.mrf.mxu1  ;;  %v8521_v27 = vpop.f32.mrf.mxu0 }
 0x43c   :  { %v1667_v21 = vadd.f32 %v1666_v41, %v1602_v43  ;;  %v12909_v41 = vld [vmem:[#allocation9_spill] sm:$0xff] }
 0x43d   :  { %v8523_v37 = vpop.f32.mrf.mxu2 }
 0x43e   :  { %v8529_v48 = vmax.f32 %v1667_v21, 0.0  ;;  %1925 = vmatmul.f32.gmra.mxu1 %v12905_v55  ;;  %v8543_v21 = vpop.f32.mrf.mxu3  ;;  %v2063_v55 = vmax.f32 %v8137_v28, 0.0  ;;  %v2066_v28 = vmax.f32 %v8153_v4, 0.0  ;;  %v2069_v4 = vmax.f32 %v8166_v3, 0.0 }
 0x440   :  { %12904 = vst [vmem:[#allocation12_spill] sm:$0xff] %v8529_v48  ;;  %2320 = vmatmul.f32.gmra.mxu0 %v8529_v48  ;;  %2515 = vmatmul.f32.gmra.mxu3 %v8529_v48 }
 0x442   :  { %1993 = vmatmul.f32.gmra.mxu2 %v12907_v52 }
 0x443   :  { %v1669_v36 = vpop.f32.mrf.mxu1  ;;  %v8536_v13 = vpop.f32.mrf.mxu0 }
 0x444   :  { %v1670_v43 = vadd.f32 %v1669_v36, %v1605_v11 }
 0x445   :  { %v8538_v63 = vpop.f32.mrf.mxu2 }
 0x446   :  { %v8540_v56 = vmax.f32 %v1670_v43, 0.0  ;;  %1928 = vmatmul.f32.gmra.mxu1 %v12909_v41  ;;  %v8555_v41 = vpop.f32.mrf.mxu3 }
 0x448   :  { %12908 = vst [vmem:[#allocation10_spill] sm:$0xff] %v8540_v56  ;;  %2323 = vmatmul.f32.gmra.mxu0 %v8540_v56  ;;  %2518 = vmatmul.f32.gmra.mxu3 %v8540_v56 }
 0x44b   :  { %v1884_v57 = vpop.f32.mrf.mxu1 }
 0x44c   :  { %v1885_v2 = vadd.f32 %v1884_v57, %v8548_v19 }
 0x44d   :  { %v1949_v11 = vpop.f32.mrf.mxu2  ;;  %v8552_v52 = vpop.f32.mrf.mxu0 }
 0x44e   :  { %12910 = vst [vmem:[#allocation23_spill] sm:$0xff] %v8552_v52  ;;  %v1950_v36 = vadd.f32 %v1949_v11, %v1885_v2  ;;  %2343 = vmatmul.f32.vlgmr.msra.gmra.mxu1 %v2063_v55 }
 0x450   :  { %v2015_v43 = vadd.f32 %v8168_v8, %v1950_v36  ;;  %2538 = vmatmul.f32.vlgmr.msrb.gmra.mxu0 %v2063_v55  ;;  %2733 = vmatmul.f32.vlgmr.msrb.gmra.mxu3 %v2063_v55  ;;  %v8567_v36 = vpop.f32.mrf.mxu3 }
 0x452   :  { %v8557_v56 = vmax.f32 %v2015_v43, 0.0 }
 0x453   :  { %v1887_v38 = vpop.f32.mrf.mxu1 }
 0x454   :  { %v1888_v48 = vadd.f32 %v1887_v38, %v8548_v19  ;;  %2408 = vmatmul.f32.vlgmr.msra.gmra.mxu2 %v8557_v56 }
 0x455   :  { %v1952_v57 = vpop.f32.mrf.mxu2  ;;  %v8562_v51 = vpop.f32.mrf.mxu0 }
 0x456   :  { %12911 = vst [vmem:[#allocation16_spill] sm:$0xff] %v8562_v51  ;;  %v1953_v2 = vadd.f32 %v1952_v57, %v1888_v48  ;;  %2346 = vmatmul.f32.gmra.mxu1 %v2066_v28 }
 0x458   :  { %v2018_v8 = vadd.f32 %v8185_v30, %v1953_v2  ;;  %2541 = vmatmul.f32.gmra.mxu0 %v2066_v28  ;;  %2736 = vmatmul.f32.gmra.mxu3 %v2066_v28  ;;  %v8582_v51 = vpop.f32.mrf.mxu3 }
 0x45a   :  { %v8565_v55 = vmax.f32 %v2018_v8, 0.0  ;;  %v2072_v8 = vmax.f32 %v8181_v61, 0.0  ;;  %v2075_v61 = vmax.f32 %v8196_v50, 0.0  ;;  %v2078_v50 = vmax.f32 %v8211_v1, 0.0 }
 0x45b   :  { %v1890_v11 = vpop.f32.mrf.mxu1  ;;  %v2081_v1 = vmax.f32 %v8226_v39, 0.0 }
 0x45c   :  { %v1891_v43 = vadd.f32 %v1890_v11, %v8548_v19  ;;  %2411 = vmatmul.f32.gmra.mxu2 %v8565_v55 }
 0x45d   :  { %v1955_v38 = vpop.f32.mrf.mxu2  ;;  %v8572_v52 = vpop.f32.mrf.mxu0 }
 0x45e   :  { %12912 = vst [vmem:[#allocation11_spill] sm:$0xff] %v8572_v52  ;;  %v1956_v48 = vadd.f32 %v1955_v38, %v1891_v43  ;;  %2349 = vmatmul.f32.gmra.mxu1 %v2069_v4 }
 0x460   :  { %v2021_v30 = vadd.f32 %v8204_v22, %v1956_v48  ;;  %2544 = vmatmul.f32.gmra.mxu0 %v2069_v4  ;;  %2739 = vmatmul.f32.gmra.mxu3 %v2069_v4 }
 0x462   :  { %v8575_v28 = vmax.f32 %v2021_v30, 0.0 }
 0x463   :  { %v1893_v57 = vpop.f32.mrf.mxu1 }
 0x464   :  { %v1894_v2 = vadd.f32 %v1893_v57, %v8548_v19  ;;  %2414 = vmatmul.f32.gmra.mxu2 %v8575_v28 }
 0x465   :  { %v1958_v11 = vpop.f32.mrf.mxu2  ;;  %v8580_v3 = vpop.f32.mrf.mxu0 }
 0x466   :  { %12913 = vst [vmem:[#allocation8_spill] sm:$0xff] %v8580_v3  ;;  %v1959_v43 = vadd.f32 %v1958_v11, %v1894_v2  ;;  %2352 = vmatmul.f32.gmra.mxu1 %v2072_v8  ;;  %v8592_v2 = vpop.f32.mrf.mxu3 }
 0x468   :  { %v2024_v22 = vadd.f32 %v8223_v10, %v1959_v43  ;;  %2547 = vmatmul.f32.gmra.mxu0 %v2072_v8  ;;  %2742 = vmatmul.f32.gmra.mxu3 %v2072_v8 }
 0x46a   :  { %v8585_v4 = vmax.f32 %v2024_v22, 0.0 }
 0x46b   :  { %v1896_v38 = vpop.f32.mrf.mxu1 }
 0x46c   :  { %v1897_v48 = vadd.f32 %v1896_v38, %v8548_v19  ;;  %2417 = vmatmul.f32.gmra.mxu2 %v8585_v4 }
 0x46d   :  { %v1961_v30 = vpop.f32.mrf.mxu2  ;;  %v8590_v57 = vpop.f32.mrf.mxu0 }
 0x46e   :  { %12914 = vst [vmem:[#allocation24_spill] sm:$0xff] %v8590_v57  ;;  %v1962_v52 = vadd.f32 %v1961_v30, %v1897_v48  ;;  %2355 = vmatmul.f32.gmra.mxu1 %v2075_v61 }
 0x470   :  { %v2027_v10 = vadd.f32 %v8243_v45, %v1962_v52  ;;  %2550 = vmatmul.f32.gmra.mxu0 %v2075_v61  ;;  %2745 = vmatmul.f32.gmra.mxu3 %v2075_v61  ;;  %v8603_v45 = vpop.f32.mrf.mxu3 }
 0x472   :  { %v8595_v8 = vmax.f32 %v2027_v10, 0.0 }
 0x473   :  { %v1899_v11 = vpop.f32.mrf.mxu1 }
 0x474   :  { %v1900_v43 = vadd.f32 %v1899_v11, %v8548_v19  ;;  %2420 = vmatmul.f32.gmra.mxu2 %v8595_v8 }
 0x475   :  { %v1964_v22 = vpop.f32.mrf.mxu2  ;;  %v8600_v38 = vpop.f32.mrf.mxu0 }
 0x476   :  { %12915 = vst [vmem:[#allocation7_spill] sm:$0xff] %v8600_v38  ;;  %v1965_v48 = vadd.f32 %v1964_v22, %v1900_v43  ;;  %2358 = vmatmul.f32.gmra.mxu1 %v2078_v50 }
 0x478   :  { %v2030_v30 = vadd.f32 %v8292_v18, %v1965_v48  ;;  %2553 = vmatmul.f32.gmra.mxu0 %v2078_v50  ;;  %2748 = vmatmul.f32.gmra.mxu3 %v2078_v50  ;;  %v1714_v18 = vadd.f32 %v8245_v54, %v8123_v26  ;;  %v8615_v22 = vpop.f32.mrf.mxu3 }
 0x479   :  { %12916 = vst [vmem:[#allocation3_spill] sm:$0xff] %v8615_v22 }
 0x47a   :  { %v8605_v52 = vmax.f32 %v2030_v30, 0.0 }
 0x47b   :  { %v1902_v61 = vpop.f32.mrf.mxu1 }
 0x47c   :  { %v1903_v10 = vadd.f32 %v1902_v61, %v8548_v19  ;;  %2423 = vmatmul.f32.gmra.mxu2 %v8605_v52  ;;  %v12917_v61 = vld [vmem:[#allocation13_spill] sm:$0xff] }
 0x47d   :  { %v1967_v11 = vpop.f32.mrf.mxu2  ;;  %v8610_v3 = vpop.f32.mrf.mxu0  ;;  %v1779_v57 = vadd.f32 %v12917_v61, %v1714_v18 }
 0x47e   :  { %v1968_v43 = vadd.f32 %v1967_v11, %v1903_v10  ;;  %2361 = vmatmul.f32.gmra.mxu1 %v2081_v1  ;;  %v2084_v10 = vmax.f32 %v8239_v16, 0.0 }
 0x480   :  { %v2033_v50 = vadd.f32 %v8355_v25, %v1968_v43  ;;  %2556 = vmatmul.f32.gmra.mxu0 %v2081_v1  ;;  %2751 = vmatmul.f32.gmra.mxu3 %v2081_v1  ;;  %v1717_v25 = vadd.f32 %v8279_v17, %v8123_v26  ;;  %v1844_v43 = vadd.f32 %v8241_v7, %v1779_v57  ;;  %v8632_v16 = vpop.f32.mrf.mxu3  ;;  %v2252_v7 = vld [vmem:[%s12694_s9 + $0x470] sm:$0xff] }
 0x481   :  { %12919 = vst [vmem:[#allocation2_spill] sm:$0xff] %v8632_v16  ;;  %v1720_v57 = vadd.f32 %v8339_v12, %v8123_v26  ;;  %2587 = vmatpush.msrb.mxu1 %v2252_v7  ;;  %v2246_v12 = vld [vmem:[%s12694_s9 + $0x440] sm:$0xff]  ;;  %v2157_v7 = vld [vmem:[%s12694_s9 + $0x178] sm:$0xff] }
 0x482   :  { %v8617_v48 = vmax.f32 %v2033_v50, 0.0  ;;  %2652 = vmatpush.msrb.mxu2 %v2157_v7  ;;  %v12922_v7 = vld [vmem:[#allocation18_spill] sm:$0xff] }
 0x483   :  { %v1905_v30 = vpop.f32.mrf.mxu1 }
 0x484   :  { %v1906_v39 = vadd.f32 %v1905_v30, %v8548_v19  ;;  %2426 = vmatmul.f32.gmra.mxu2 %v8617_v48  ;;  %v12918_v30 = vld [vmem:[#allocation15_spill] sm:$0xff] }
 0x485   :  { %v1970_v11 = vpop.f32.mrf.mxu2  ;;  %v8623_v38 = vpop.f32.mrf.mxu0  ;;  %v1782_v61 = vadd.f32 %v12918_v30, %v1717_v25  ;;  %v2249_v25 = vld [vmem:[%s12694_s9 + $0x458] sm:$0xff] }
 0x486   :  { %v1971_v54 = vadd.f32 %v1970_v11, %v1906_v39  ;;  %2364 = vmatmul.f32.gmra.mxu1 %v2084_v10  ;;  %v2087_v39 = vmax.f32 %v1844_v43, 0.0 }
 0x487   :  { %2588 = vmatpush.msrb.mxu1 %v2249_v25  ;;  %v2240_v25 = vld [vmem:[%s12694_s9 + $0x410] sm:$0xff] }
 0x488   :  { %v2036_v1 = vadd.f32 %v8421_v29, %v1971_v54  ;;  %2559 = vmatmul.f32.gmra.mxu0 %v2084_v10  ;;  %2754 = vmatmul.f32.gmra.mxu3 %v2084_v10  ;;  %v1847_v54 = vadd.f32 %v8268_v53, %v1782_v61  ;;  %v2250_v53 = vld [vmem:[%s12694_s9 + $0x460] sm:$0xff] }
 0x489   :  { %2589 = vmatpush.msrb.mxu1 %v2246_v12  ;;  %v1723_v12 = vadd.f32 %v8390_v58, %v8123_v26  ;;  %v2241_v58 = vld [vmem:[%s12694_s9 + $0x418] sm:$0xff] }
 0x48a   :  { %v8629_v18 = vmax.f32 %v2036_v1, 0.0  ;;  %v2090_v61 = vmax.f32 %v1847_v54, 0.0 }
 0x48b   :  { %v1908_v50 = vpop.f32.mrf.mxu1 }
 0x48c   :  { %v1909_v22 = vadd.f32 %v1908_v50, %v8548_v19  ;;  %2429 = vmatmul.f32.gmra.mxu2 %v8629_v18 }
 0x48d   :  { %v1973_v11 = vpop.f32.mrf.mxu2  ;;  %v8636_v17 = vpop.f32.mrf.mxu0 }
 0x48e   :  { %v1974_v29 = vadd.f32 %v1973_v11, %v1909_v22  ;;  %2367 = vmatmul.f32.gmra.mxu1 %v2087_v39  ;;  %v2253_v22 = vld [vmem:[%s12694_s9 + $0x478] sm:$0xff] }
 0x48f   :  { %2782 = vmatpush.msra.mxu0 %v2253_v22  ;;  %v2154_v22 = vld [vmem:[%s12694_s9 + $0x160] sm:$0xff] }
 0x490   :  { %v2039_v10 = vadd.f32 %v8484_v47, %v1974_v29  ;;  %2562 = vmatmul.f32.gmra.mxu0 %v2087_v39  ;;  %2757 = vmatmul.f32.gmra.mxu3 %v2087_v39  ;;  %v12920_v47 = vld [vmem:[#allocation17_spill] sm:$0xff]  ;;  %v2243_v29 = vld [vmem:[%s12694_s9 + $0x428] sm:$0xff] }
 0x491   :  { %v1785_v50 = vadd.f32 %v12920_v47, %v1720_v57  ;;  %2783 = vmatpush.msra.mxu0 %v2250_v53  ;;  %v2247_v57 = vld [vmem:[%s12694_s9 + $0x448] sm:$0xff]  ;;  %2590 = vmatpush.msrb.mxu1 %v2243_v29 }
 0x492   :  { %v8651_v1 = vmax.f32 %v2039_v10, 0.0  ;;  %v8673_v10 = vpop.f32.mrf.mxu3  ;;  %2653 = vmatpush.msrb.mxu2 %v2154_v22 }
 0x493   :  { %v1911_v43 = vpop.f32.mrf.mxu1  ;;  %12921 = vst [vmem:[#allocation5_spill] sm:$0xff] %v8673_v10  ;;  %2784 = vmatpush.msra.mxu0 %v2247_v57  ;;  %v1850_v47 = vadd.f32 %v8328_v0, %v1785_v50  ;;  %2591 = vmatpush.msrb.mxu1 %v2240_v25  ;;  %v2234_v0 = vld [vmem:[%s12694_s9 + $0x3e0] sm:$0xff]  ;;  %v2148_v50 = vld [vmem:[%s12694_s9 + $0x130] sm:$0xff]  ;;  %v1788_v57 = vadd.f32 %v12922_v7, %v1723_v12 }
 0x494   :  { %v1912_v30 = vadd.f32 %v1911_v43, %v8548_v19  ;;  %2432 = vmatmul.f32.gmra.mxu2 %v8651_v1  ;;  %v2244_v43 = vld [vmem:[%s12694_s9 + $0x430] sm:$0xff] }
 0x495   :  { %v1976_v39 = vpop.f32.mrf.mxu2  ;;  %v8662_v11 = vpop.f32.mrf.mxu0  ;;  %2785 = vmatpush.msra.mxu0 %v2244_v43  ;;  %v2093_v25 = vmax.f32 %v1850_v47, 0.0  ;;  %v2235_v47 = vld [vmem:[%s12694_s9 + $0x3e8] sm:$0xff]  ;;  %v2232_v7 = vld [vmem:[%s12694_s9 + $0x3d0] sm:$0xff] }
 0x496   :  { %v1977_v54 = vadd.f32 %v1976_v39, %v1912_v30  ;;  %2370 = vmatmul.f32.gmra.mxu1 %v2090_v61  ;;  %v2237_v30 = vld [vmem:[%s12694_s9 + $0x3f8] sm:$0xff]  ;;  %v2151_v39 = vld [vmem:[%s12694_s9 + $0x148] sm:$0xff] }
 0x497   :  { %2592 = vmatpush.msrb.mxu1 %v2237_v30  ;;  %2654 = vmatpush.msrb.mxu2 %v2151_v39  ;;  %v2145_v30 = vld [vmem:[%s12694_s9 + $0x118] sm:$0xff]  ;;  %v2228_v39 = vld [vmem:[%s12694_s9 + $0x3b0] sm:$0xff] }
 0x498   :  { %v2042_v53 = vadd.f32 %v8527_v23, %v1977_v54  ;;  %2565 = vmatmul.f32.gmra.mxu0 %v2090_v61  ;;  %2760 = vmatmul.f32.gmra.mxu3 %v2090_v61  ;;  %v2238_v61 = vld [vmem:[%s12694_s9 + $0x400] sm:$0xff] }
 0x499   :  { %2786 = vmatpush.msra.mxu0 %v2241_v58  ;;  %2593 = vmatpush.msrb.mxu1 %v2234_v0  ;;  %v2142_v58 = vld [vmem:[%s12694_s9 + $0x100] sm:$0xff] }
 0x49a   :  { %v8697_v29 = vmax.f32 %v2042_v53, 0.0  ;;  %2655 = vmatpush.msrb.mxu2 %v2148_v50  ;;  %v2231_v53 = vld [vmem:[%s12694_s9 + $0x3c8] sm:$0xff]  ;;  %v8730_v0 = vpop.f32.mrf.mxu3 }
 0x49b   :  { %v1914_v23 = vpop.f32.mrf.mxu1  ;;  %2787 = vmatpush.msra.mxu0 %v2238_v61  ;;  %2594 = vmatpush.msrb.mxu1 %v2231_v53  ;;  %12923 = vst [vmem:[#allocation25_spill] sm:$0xff] %v8730_v0  ;;  %v1853_v61 = vadd.f32 %v8379_v34, %v1788_v57  ;;  %v2229_v34 = vld [vmem:[%s12694_s9 + $0x3b8] sm:$0xff]  ;;  %v12924_v57 = vld [vmem:[#allocation20_spill] sm:$0xff] }
 0x49c   :  { %v1915_v54 = vadd.f32 %v1914_v23, %v8548_v19  ;;  %2435 = vmatmul.f32.gmra.mxu2 %v8697_v29  ;;  %v1726_v23 = vadd.f32 %v8441_v59, %v8123_v26  ;;  %v2139_v59 = vld [vmem:[%s12694_s9 + $0xe8] sm:$0xff] }
 0x49d   :  { %v1979_v22 = vpop.f32.mrf.mxu2  ;;  %v8711_v43 = vpop.f32.mrf.mxu0  ;;  %2656 = vmatpush.msrb.mxu2 %v2145_v30  ;;  %2788 = vmatpush.msra.mxu0 %v2235_v47  ;;  %v2096_v30 = vmax.f32 %v1853_v61, 0.0  ;;  %v2136_v47 = vld [vmem:[%s12694_s9 + $0xd0] sm:$0xff]  ;;  %v2219_v61 = vld [vmem:[%s12694_s9 + $0x368] sm:$0xff] }
 0x49e   :  { %v1980_v12 = vadd.f32 %v1979_v22, %v1915_v54  ;;  %2373 = vmatmul.f32.gmra.mxu1 %v2093_v25  ;;  %v2225_v54 = vld [vmem:[%s12694_s9 + $0x398] sm:$0xff] }
 0x49f   :  { %2595 = vmatpush.msrb.mxu1 %v2228_v39  ;;  %2657 = vmatpush.msrb.mxu2 %v2142_v58 }
 0x4a0   :  { %v2045_v50 = vadd.f32 %v8543_v21, %v1980_v12  ;;  %2568 = vmatmul.f32.gmra.mxu0 %v2093_v25  ;;  %2763 = vmatmul.f32.gmra.mxu3 %v2093_v25  ;;  %v1791_v25 = vadd.f32 %v12924_v57, %v1726_v23  ;;  %v2222_v12 = vld [vmem:[%s12694_s9 + $0x380] sm:$0xff]  ;;  %v2216_v57 = vld [vmem:[%s12694_s9 + $0x350] sm:$0xff] }
 0x4a1   :  { %2789 = vmatpush.msra.mxu0 %v2232_v7  ;;  %2596 = vmatpush.msrb.mxu1 %v2225_v54  ;;  %v2226_v23 = vld [vmem:[%s12694_s9 + $0x3a0] sm:$0xff]  ;;  %v2133_v7 = vld [vmem:[%s12694_s9 + $0xb8] sm:$0xff]  ;;  %v1729_v54 = vadd.f32 %v8492_v42, %v8123_v26 }
 0x4a2   :  { %v8740_v22 = vmax.f32 %v2045_v50, 0.0  ;;  %2658 = vmatpush.msrb.mxu2 %v2139_v59  ;;  %v2130_v42 = vld [vmem:[%s12694_s9 + $0xa0] sm:$0xff] }
 0x4a3   :  { %v1917_v21 = vpop.f32.mrf.mxu1  ;;  %2790 = vmatpush.msra.mxu0 %v2229_v34  ;;  %2597 = vmatpush.msrb.mxu1 %v2222_v12  ;;  %v1856_v34 = vadd.f32 %v8430_v5, %v1791_v25  ;;  %v2220_v5 = vld [vmem:[%s12694_s9 + $0x370] sm:$0xff]  ;;  %v12926_v25 = vld [vmem:[#allocation22_spill] sm:$0xff] }
 0x4a4   :  { %v1918_v53 = vadd.f32 %v1917_v21, %v8548_v19  ;;  %2438 = vmatmul.f32.gmra.mxu2 %v8740_v22  ;;  %v2223_v21 = vld [vmem:[%s12694_s9 + $0x388] sm:$0xff] }
 0x4a5   :  { %v1982_v39 = vpop.f32.mrf.mxu2  ;;  %v8757_v58 = vpop.f32.mrf.mxu0  ;;  %2659 = vmatpush.msrb.mxu2 %v2136_v47  ;;  %2791 = vmatpush.msra.mxu0 %v2226_v23  ;;  %v2127_v23 = vld [vmem:[%s12694_s9 + $0x88] sm:$0xff] }
 0x4a6   :  { %v1983_v50 = vadd.f32 %v1982_v39, %v1918_v53  ;;  %2376 = vmatmul.f32.gmra.mxu1 %v2096_v30  ;;  %v8778_v53 = vpop.f32.mrf.mxu3  ;;  %v2099_v39 = vmax.f32 %v1856_v34, 0.0  ;;  %v2210_v34 = vld [vmem:[%s12694_s9 + $0x320] sm:$0xff] }
 0x4a7   :  { %2598 = vmatpush.msrb.mxu1 %v2219_v61  ;;  %12925 = vst [vmem:[#allocation19_spill] sm:$0xff] %v8778_v53  ;;  %2660 = vmatpush.msrb.mxu2 %v2133_v7  ;;  %v12948_v53 = vld [vmem:[#allocation14_spill] sm:$0xff] }
 0x4a8   :  { %v2048_v59 = vadd.f32 %v8555_v41, %v1983_v50  ;;  %2571 = vmatmul.f32.gmra.mxu0 %v2096_v30  ;;  %2766 = vmatmul.f32.gmra.mxu3 %v2096_v30  ;;  %v1794_v30 = vadd.f32 %v12926_v25, %v1729_v54  ;;  %v2213_v50 = vld [vmem:[%s12694_s9 + $0x338] sm:$0xff]  ;;  %v2207_v25 = vld [vmem:[%s12694_s9 + $0x308] sm:$0xff] }
 0x4a9   :  { %2792 = vmatpush.msra.mxu0 %v2223_v21  ;;  %2599 = vmatpush.msrb.mxu1 %v2216_v57  ;;  %v2217_v54 = vld [vmem:[%s12694_s9 + $0x358] sm:$0xff]  ;;  %v2124_v21 = vld [vmem:[%s12694_s9 + $0x70] sm:$0xff]  ;;  %v1732_v57 = vadd.f32 %v8523_v37, %v8123_v26 }
 0x4aa   :  { %v8780_v12 = vmax.f32 %v2048_v59, 0.0  ;;  %2661 = vmatpush.msrb.mxu2 %v2130_v42  ;;  %v2121_v37 = vld [vmem:[%s12694_s9 + $0x58] sm:$0xff] }
 0x4ab   :  { %v1920_v41 = vpop.f32.mrf.mxu1  ;;  %2793 = vmatpush.msra.mxu0 %v2220_v5  ;;  %2600 = vmatpush.msrb.mxu1 %v2213_v50  ;;  %v1859_v5 = vadd.f32 %v8479_v9, %v1794_v30  ;;  %v2211_v9 = vld [vmem:[%s12694_s9 + $0x328] sm:$0xff]  ;;  %v1797_v30 = vadd.f32 %v8131_v6, %v1732_v57  ;;  %v1735_v57 = vadd.f32 %v8538_v63, %v8123_v26 }
 0x4ac   :  { %v1921_v47 = vadd.f32 %v1920_v41, %v8548_v19  ;;  %2441 = vmatmul.f32.gmra.mxu2 %v8780_v12  ;;  %v2214_v41 = vld [vmem:[%s12694_s9 + $0x340] sm:$0xff] }
 0x4ad   :  { %v1985_v61 = vpop.f32.mrf.mxu2  ;;  %v8797_v7 = vpop.f32.mrf.mxu0  ;;  %2662 = vmatpush.msrb.mxu2 %v2127_v23  ;;  %2794 = vmatpush.msra.mxu0 %v2217_v54  ;;  %v2102_v23 = vmax.f32 %v1859_v5, 0.0  ;;  %v1862_v5 = vadd.f32 %v8521_v27, %v1797_v30 }
 0x4ae   :  { %v1986_v59 = vadd.f32 %v1985_v61, %v1921_v47  ;;  %2379 = vmatmul.f32.gmra.mxu1 %v2099_v39  ;;  %v2118_v61 = vld [vmem:[%s12694_s9 + $0x40] sm:$0xff] }
 0x4af   :  { %2601 = vmatpush.msrb.mxu1 %v2210_v34  ;;  %2663 = vmatpush.msrb.mxu2 %v2124_v21  ;;  %v2115_v21 = vld [vmem:[%s12694_s9 + $0x28] sm:$0xff]  ;;  %v2105_v26 = vmax.f32 %v1862_v5, 0.0 }
 0x4b0   :  { %v2051_v42 = vadd.f32 %v8567_v36, %v1986_v59  ;;  %2574 = vmatmul.f32.gmra.mxu0 %v2099_v39  ;;  %2769 = vmatmul.f32.gmra.mxu3 %v2099_v39  ;;  %v8827_v39 = vpop.f32.mrf.mxu3  ;;  %v2208_v59 = vld [vmem:[%s12694_s9 + $0x310] sm:$0xff] }
 0x4b1   :  { %2795 = vmatpush.msra.mxu0 %v2214_v41  ;;  %2602 = vmatpush.msrb.mxu1 %v2207_v25  ;;  %12927 = vst [vmem:[#allocation4_spill] sm:$0xff] %v8827_v39  ;;  %v2112_v41 = vld [vmem:[%s12694_s9 + $0x10] sm:$0xff] }
 0x4b2   :  { %v8818_v47 = vmax.f32 %v2051_v42, 0.0  ;;  %2664 = vmatpush.msrb.mxu2 %v2121_v37  ;;  %v12949_v39 = vld [vmem:[#allocation12_spill] sm:$0xff] }
 0x4b3   :  { %v1923_v36 = vpop.f32.mrf.mxu1  ;;  %2796 = vmatpush.msra.mxu0 %v2211_v9  ;;  %v1800_v9 = vadd.f32 %v8150_v40, %v1735_v57 }
 0x4b4   :  { %v1924_v50 = vadd.f32 %v1923_v36, %v8548_v19  ;;  %2444 = vmatmul.f32.gmra.mxu2 %v8818_v47 }
 0x4b5   :  { %v1988_v54 = vpop.f32.mrf.mxu2  ;;  %v8837_v34 = vpop.f32.mrf.mxu0  ;;  %2665 = vmatpush.msrb.mxu2 %v2118_v61  ;;  %2797 = vmatpush.msra.mxu0 %v2208_v59 }
 0x4b6   :  { %v1989_v6 = vadd.f32 %v1988_v54, %v1924_v50  ;;  %2382 = vmatmul.f32.gmra.mxu1 %v2102_v23 }
 0x4b7   :  { %2666 = vmatpush.msrb.mxu2 %v2115_v21 }
 0x4b8   :  { %v2054_v42 = vadd.f32 %v8582_v51, %v1989_v6  ;;  %2577 = vmatmul.f32.gmra.mxu0 %v2102_v23  ;;  %2772 = vmatmul.f32.gmra.mxu3 %v2102_v23  ;;  %v8856_v27 = vpop.f32.mrf.mxu3  ;;  %v1865_v23 = vadd.f32 %v8536_v13, %v1800_v9 }
 0x4b9   :  { %2667 = vmatpush.msrb.mxu2 %v2112_v41  ;;  %12928 = vst [vmem:[#allocation27_spill] sm:$0xff] %v8856_v27 }
 0x4ba   :  { %v8849_v25 = vmax.f32 %v2054_v42, 0.0  ;;  %v2108_v54 = vmax.f32 %v1865_v23, 0.0 }
 0x4bb   :  { %v1926_v37 = vpop.f32.mrf.mxu1 }
 0x4bc   :  { %v1927_v36 = vadd.f32 %v1926_v37, %v8548_v19  ;;  %2447 = vmatmul.f32.gmra.mxu2 %v8849_v25 }
 0x4bd   :  { %v1991_v51 = vpop.f32.mrf.mxu2  ;;  %v8854_v63 = vpop.f32.mrf.mxu0 }
 0x4be   :  { %v1992_v30 = vadd.f32 %v1991_v51, %v1927_v36  ;;  %2385 = vmatmul.f32.gmra.mxu1 %v2105_v26 }
 0x4c0   :  { %v2057_v50 = vadd.f32 %v8592_v2, %v1992_v30  ;;  %2580 = vmatmul.f32.gmra.mxu0 %v2105_v26  ;;  %2775 = vmatmul.f32.gmra.mxu3 %v2105_v26  ;;  %v8866_v42 = vpop.f32.mrf.mxu3 }
 0x4c1   :  { %12929 = vst [vmem:[#allocation26_spill] sm:$0xff] %v8866_v42 }
 0x4c2   :  { %v8860_v61 = vmax.f32 %v2057_v50, 0.0 }
 0x4c3   :  { %v1929_v40 = vpop.f32.mrf.mxu1 }
 0x4c4   :  { %v1930_v59 = vadd.f32 %v1929_v40, %v8548_v19  ;;  %2450 = vmatmul.f32.gmra.mxu2 %v8860_v61 }
 0x4c5   :  { %v1994_v6 = vpop.f32.mrf.mxu2  ;;  %v8864_v21 = vpop.f32.mrf.mxu0 }
 0x4c6   :  { %v1995_v57 = vadd.f32 %v1994_v6, %v1930_v59  ;;  %2388 = vmatmul.f32.gmra.mxu1 %v2108_v54 }
 0x4c8   :  { %v2060_v2 = vadd.f32 %v8603_v45, %v1995_v57  ;;  %2583 = vmatmul.f32.gmra.mxu0 %v2108_v54  ;;  %2778 = vmatmul.f32.gmra.mxu3 %v2108_v54 }
 0x4ca   :  { %v8869_v13 = vmax.f32 %v2060_v2, 0.0 }
 0x4cb   :  { %v8871_v5 = vpop.f32.mrf.mxu1 }
 0x4cc   :  { %2453 = vmatmul.f32.gmra.mxu2 %v8869_v13 }
 0x4cd   :  { %v8874_v19 = vpop.f32.mrf.mxu0 }
 0x4ce   :  { %12930 = vst [vmem:[#allocation21_spill] sm:$0xff] %v8874_v19  ;;  %2603 = vmatmul.f32.vlgmr.msrb.gmra.mxu1 %v8557_v56 }
 0x4d0   :  { %2798 = vmatmul.f32.vlgmr.msra.gmra.mxu0 %v8557_v56 }
 0x4d3   :  { %v8878_v41 = vpop.f32.mrf.mxu1 }
 0x4d4   :  { %2668 = vmatmul.f32.vlgmr.msrb.gmra.mxu2 %v8127_v49 }
 0x4d5   :  { %v8881_v37 = vpop.f32.mrf.mxu0 }
 0x4d6   :  { %12931 = vst [vmem:[#allocation6_spill] sm:$0xff] %v8881_v37  ;;  %2606 = vmatmul.f32.gmra.mxu1 %v8565_v55 }
 0x4d7   :  { %v8884_v45 = vpop.f32.mrf.mxu2 }
 0x4d8   :  { %2801 = vmatmul.f32.gmra.mxu0 %v8565_v55 }
 0x4db   :  { %v8887_v9 = vpop.f32.mrf.mxu1 }
 0x4dc   :  { %2671 = vmatmul.f32.gmra.mxu2 %v8142_v32  ;;  %v8905_v32 = vpop.f32.mrf.mxu3 }
 0x4dd   :  { %v8890_v36 = vpop.f32.mrf.mxu0  ;;  %12934 = vst [vmem:[#allocation15_spill] sm:$0xff] %v8905_v32 }
 0x4de   :  { %12932 = vst [vmem:[#allocation9_spill] sm:$0xff] %v8890_v36  ;;  %2609 = vmatmul.f32.gmra.mxu1 %v8575_v28 }
 0x4df   :  { %v8893_v56 = vpop.f32.mrf.mxu2 }
 0x4e0   :  { %2804 = vmatmul.f32.gmra.mxu0 %v8575_v28 }
 0x4e3   :  { %v8896_v49 = vpop.f32.mrf.mxu1 }
 0x4e4   :  { %2674 = vmatmul.f32.gmra.mxu2 %v8157_v24  ;;  %v8919_v50 = vpop.f32.mrf.mxu3 }
 0x4e5   :  { %v8899_v26 = vpop.f32.mrf.mxu0  ;;  %12936 = vst [vmem:[#allocation18_spill] sm:$0xff] %v8919_v50 }
 0x4e6   :  { %12933 = vst [vmem:[#allocation13_spill] sm:$0xff] %v8899_v26  ;;  %2612 = vmatmul.f32.gmra.mxu1 %v8585_v4 }
 0x4e7   :  { %v8902_v55 = vpop.f32.mrf.mxu2 }
 0x4e8   :  { %2807 = vmatmul.f32.gmra.mxu0 %v8585_v4 }
 0x4eb   :  { %v8907_v51 = vpop.f32.mrf.mxu1 }
 0x4ec   :  { %2677 = vmatmul.f32.gmra.mxu2 %v8172_v20 }
 0x4ed   :  { %v8910_v30 = vpop.f32.mrf.mxu0 }
 0x4ee   :  { %12935 = vst [vmem:[#allocation17_spill] sm:$0xff] %v8910_v30  ;;  %2615 = vmatmul.f32.gmra.mxu1 %v8595_v8 }
 0x4ef   :  { %v8913_v28 = vpop.f32.mrf.mxu2 }
 0x4f0   :  { %2810 = vmatmul.f32.gmra.mxu0 %v8595_v8  ;;  %v8933_v8 = vpop.f32.mrf.mxu3 }
 0x4f1   :  { %12939 = vst [vmem:[#allocation28_spill] sm:$0xff] %v8933_v8 }
 0x4f3   :  { %v8916_v24 = vpop.f32.mrf.mxu1 }
 0x4f4   :  { %2680 = vmatmul.f32.gmra.mxu2 %v8187_v62 }
 0x4f5   :  { %v8921_v4 = vpop.f32.mrf.mxu0 }
 0x4f6   :  { %12937 = vst [vmem:[#allocation20_spill] sm:$0xff] %v8921_v4  ;;  %2618 = vmatmul.f32.gmra.mxu1 %v8605_v52 }
 0x4f7   :  { %v8924_v23 = vpop.f32.mrf.mxu2 }
 0x4f8   :  { %2813 = vmatmul.f32.gmra.mxu0 %v8605_v52 }
 0x4fb   :  { %v8927_v20 = vpop.f32.mrf.mxu1 }
 0x4fc   :  { %2683 = vmatmul.f32.gmra.mxu2 %v8200_v46  ;;  %v8947_v46 = vpop.f32.mrf.mxu3 }
 0x4fd   :  { %v8930_v40 = vpop.f32.mrf.mxu0  ;;  %12941 = vst [vmem:[#allocation30_spill] sm:$0xff] %v8947_v46 }
 0x4fe   :  { %12938 = vst [vmem:[#allocation22_spill] sm:$0xff] %v8930_v40  ;;  %2621 = vmatmul.f32.gmra.mxu1 %v8617_v48 }
 0x4ff   :  { %v8935_v62 = vpop.f32.mrf.mxu2 }
 0x500   :  { %2816 = vmatmul.f32.gmra.mxu0 %v8617_v48 }
 0x503   :  { %v8938_v59 = vpop.f32.mrf.mxu1 }
 0x504   :  { %2686 = vmatmul.f32.gmra.mxu2 %v8215_v14  ;;  %v8958_v14 = vpop.f32.mrf.mxu3 }
 0x505   :  { %v8941_v54 = vpop.f32.mrf.mxu0 }
 0x506   :  { %12940 = vst [vmem:[#allocation29_spill] sm:$0xff] %v8941_v54  ;;  %2624 = vmatmul.f32.gmra.mxu1 %v8629_v18 }
 0x507   :  { %v8944_v52 = vpop.f32.mrf.mxu2 }
 0x508   :  { %2819 = vmatmul.f32.gmra.mxu0 %v8629_v18 }
 0x50b   :  { %v8949_v6 = vpop.f32.mrf.mxu1 }
 0x50c   :  { %2689 = vmatmul.f32.gmra.mxu2 %v8230_v31  ;;  %v8972_v37 = vpop.f32.mrf.mxu3 }
 0x50d   :  { %v8952_v57 = vpop.f32.mrf.mxu0 }
 0x50e   :  { %12942 = vst [vmem:[#allocation31_spill] sm:$0xff] %v8952_v57  ;;  %2627 = vmatmul.f32.gmra.mxu1 %v8651_v1  ;;  %v12952_v57 = vld [vmem:[#allocation10_spill] sm:$0xff] }
 0x50f   :  { %v8955_v48 = vpop.f32.mrf.mxu2 }
 0x510   :  { %2822 = vmatmul.f32.gmra.mxu0 %v8651_v1 }
 0x513   :  { %v8960_v2 = vpop.f32.mrf.mxu1 }
 0x514   :  { %2692 = vmatmul.f32.gmra.mxu2 %v8249_v15 }
 0x515   :  { %v8963_v18 = vpop.f32.mrf.mxu0 }
 0x516   :  { %12943 = vst [vmem:[#allocation32_spill] sm:$0xff] %v8963_v18  ;;  %2630 = vmatmul.f32.gmra.mxu1 %v8697_v29 }
 0x517   :  { %v8966_v19 = vpop.f32.mrf.mxu2 }
 0x518   :  { %2825 = vmatmul.f32.gmra.mxu0 %v8697_v29  ;;  %v8984_v29 = vpop.f32.mrf.mxu3 }
 0x51b   :  { %v8969_v31 = vpop.f32.mrf.mxu1 }
 0x51c   :  { %2695 = vmatmul.f32.gmra.mxu2 %v8294_v60 }
 0x51d   :  { %v8974_v1 = vpop.f32.mrf.mxu0 }
 0x51e   :  { %12944 = vst [vmem:[#allocation33_spill] sm:$0xff] %v8974_v1  ;;  %2633 = vmatmul.f32.gmra.mxu1 %v8740_v22 }
 0x51f   :  { %v8977_v36 = vpop.f32.mrf.mxu2 }
 0x520   :  { %2828 = vmatmul.f32.gmra.mxu0 %v8740_v22 }
 0x523   :  { %v2377_v15 = vpop.f32.mrf.mxu1 }
 0x524   :  { %2698 = vmatmul.f32.gmra.mxu2 %v8343_v44  ;;  %v8994_v44 = vpop.f32.mrf.mxu3 }
 0x525   :  { %v8981_v16 = vpop.f32.mrf.mxu0 }
 0x526   :  { %12945 = vst [vmem:[#allocation34_spill] sm:$0xff] %v8981_v16  ;;  %2636 = vmatmul.f32.gmra.mxu1 %v8780_v12 }
 0x527   :  { %v8986_v60 = vpop.f32.mrf.mxu2 }
 0x528   :  { %2831 = vmatmul.f32.gmra.mxu0 %v8780_v12 }
 0x52b   :  { %v2380_v26 = vpop.f32.mrf.mxu1 }
 0x52c   :  { %2701 = vmatmul.f32.gmra.mxu2 %v8394_v33  ;;  %v9001_v33 = vpop.f32.mrf.mxu3 }
 0x52d   :  { %v8990_v10 = vpop.f32.mrf.mxu0  ;;  %12947 = vst [vmem:[#allocation36_spill] sm:$0xff] %v9001_v33 }
 0x52e   :  { %12946 = vst [vmem:[#allocation35_spill] sm:$0xff] %v8990_v10  ;;  %2639 = vmatmul.f32.gmra.mxu1 %v8818_v47 }
 0x52f   :  { %v2442_v22 = vpop.f32.mrf.mxu2 }
 0x530   :  { %2834 = vmatmul.f32.gmra.mxu0 %v8818_v47 }
 0x533   :  { %v2383_v30 = vpop.f32.mrf.mxu1 }
 0x534   :  { %2704 = vmatmul.f32.gmra.mxu2 %v8445_v35  ;;  %v9009_v54 = vpop.f32.mrf.mxu3 }
 0x535   :  { %v8997_v0 = vpop.f32.mrf.mxu0  ;;  %12950 = vst [vmem:[#allocation14_spill] sm:$0xff] %v9009_v54 }
 0x536   :  { %2642 = vmatmul.f32.gmra.mxu1 %v8849_v25 }
 0x537   :  { %v2445_v12 = vpop.f32.mrf.mxu2 }
 0x538   :  { %2837 = vmatmul.f32.gmra.mxu0 %v8849_v25 }
 0x53b   :  { %v2386_v4 = vpop.f32.mrf.mxu1 }
 0x53c   :  { %2707 = vmatmul.f32.gmra.mxu2 %v12948_v53  ;;  %v9017_v53 = vld [vmem:[%s12696_s10] sm:$0x7]  ;;  %v9034_v1 = vpop.f32.mrf.mxu3 }
 0x53d   :  { %v9004_v40 = vpop.f32.mrf.mxu0  ;;  %v9021_v33 = vperm.slane %v9017_v53, 0  ;;  %12954 = vst [vmem:[#allocation37_spill] sm:$0xff] %v9034_v1 }
 0x53e   :  { %2645 = vmatmul.f32.gmra.mxu1 %v8860_v61 }
 0x53f   :  { %v2448_v47 = vpop.f32.mrf.mxu2  ;;  %v2325_v54 = vadd.f32 %v8864_v21, %v9021_v33  ;;  %v2319_v18 = vadd.f32 %v8837_v34, %v9021_v33  ;;  %v2313_v21 = vadd.f32 %v8757_v58, %v9021_v33  ;;  %v2310_v34 = vadd.f32 %v8711_v43, %v9021_v33 }
 0x540   :  { %2840 = vmatmul.f32.gmra.mxu0 %v8860_v61 }
 0x541   :  { %v2384_v16 = vadd.f32 %v2383_v30, %v2319_v18  ;;  %v2304_v30 = vadd.f32 %v8636_v17, %v9021_v33  ;;  %v2298_v17 = vadd.f32 %v8610_v3, %v9021_v33  ;;  %v12961_v3 = vld [vmem:[#allocation24_spill] sm:$0xff] }
 0x543   :  { %v2389_v35 = vpop.f32.mrf.mxu1  ;;  %v2449_v10 = vadd.f32 %v2448_v47, %v2384_v16  ;;  %v2369_v18 = vadd.f32 %v8949_v6, %v2304_v30 }
 0x544   :  { %2710 = vmatmul.f32.gmra.mxu2 %v12949_v39  ;;  %v2322_v39 = vadd.f32 %v8854_v63, %v9021_v33 }
 0x545   :  { %v9011_v27 = vpop.f32.mrf.mxu0 }
 0x546   :  { %2648 = vmatmul.f32.gmra.mxu1 %v8869_v13  ;;  %v2387_v32 = vadd.f32 %v2386_v4, %v2322_v39  ;;  %v2378_v4 = vadd.f32 %v2377_v15, %v2313_v21  ;;  %v12962_v21 = vld [vmem:[#allocation8_spill] sm:$0xff] }
 0x547   :  { %v2451_v25 = vpop.f32.mrf.mxu2 }
 0x548   :  { %2843 = vmatmul.f32.gmra.mxu0 %v8869_v13  ;;  %v2390_v13 = vadd.f32 %v2389_v35, %v2325_v54  ;;  %v2452_v63 = vadd.f32 %v2451_v25, %v2387_v32  ;;  %v2375_v32 = vadd.f32 %v8969_v31, %v2310_v34  ;;  %v2443_v58 = vadd.f32 %v2442_v22, %v2378_v4 }
 0x54a   :  { %v2889_v35 = vmax.f32 %v2452_v63, 0.0  ;;  %v2880_v31 = vmax.f32 %v2443_v58, 0.0 }
 0x54b   :  { %v9023_v61 = vpop.f32.mrf.mxu1 }
 0x54c   :  { %12951 = vst [vmem:[#allocation12_spill] sm:$0xff] %v9023_v61  ;;  %2713 = vmatmul.f32.gmra.mxu2 %v12952_v57  ;;  %v2316_v61 = vadd.f32 %v8797_v7, %v9021_v33  ;;  %v2307_v7 = vadd.f32 %v8662_v11, %v9021_v33  ;;  %v2301_v11 = vadd.f32 %v8623_v38, %v9021_v33  ;;  %v12959_v38 = vld [vmem:[#allocation7_spill] sm:$0xff] }
 0x54d   :  { %v9030_v42 = vpop.f32.mrf.mxu0  ;;  %v2295_v6 = vadd.f32 %v12959_v38, %v9021_v33 }
 0x54e   :  { %12953 = vst [vmem:[#allocation10_spill] sm:$0xff] %v9030_v42  ;;  %v2381_v57 = vadd.f32 %v2380_v26, %v2316_v61  ;;  %v2886_v26 = vmax.f32 %v2449_v10, 0.0  ;;  %v2372_v43 = vadd.f32 %v8960_v2, %v2307_v7  ;;  %v2366_v2 = vadd.f32 %v8938_v59, %v2301_v11 }
 0x54f   :  { %v2454_v50 = vpop.f32.mrf.mxu2  ;;  %v2292_v59 = vadd.f32 %v12961_v3, %v9021_v33 }
 0x550   :  { %v2455_v8 = vadd.f32 %v2454_v50, %v2390_v13  ;;  %v2446_v54 = vadd.f32 %v2445_v12, %v2381_v57  ;;  %v2440_v50 = vadd.f32 %v8986_v60, %v2375_v32  ;;  %v2437_v10 = vadd.f32 %v8977_v36, %v2372_v43 }
 0x551   :  { %v2434_v60 = vadd.f32 %v8966_v19, %v2369_v18  ;;  %v2363_v36 = vadd.f32 %v8927_v20, %v2298_v17  ;;  %v2431_v47 = vadd.f32 %v8955_v48, %v2366_v2  ;;  %v2360_v19 = vadd.f32 %v8916_v24, %v2295_v6 }
 0x552   :  { %v2892_v42 = vmax.f32 %v2455_v8, 0.0  ;;  %v9055_v8 = vpop.f32.mrf.mxu3  ;;  %v2877_v22 = vmax.f32 %v2440_v50, 0.0  ;;  %v2874_v25 = vmax.f32 %v2437_v10, 0.0  ;;  %v2289_v57 = vadd.f32 %v12962_v21, %v9021_v33 }
 0x553   :  { %v9040_v46 = vpop.f32.mrf.mxu1  ;;  %12957 = vst [vmem:[#allocation40_spill] sm:$0xff] %v9055_v8  ;;  %v2428_v13 = vadd.f32 %v8944_v52, %v2363_v36  ;;  %v2871_v63 = vmax.f32 %v2434_v60, 0.0  ;;  %v2357_v20 = vadd.f32 %v8907_v51, %v2292_v59  ;;  %v2425_v48 = vadd.f32 %v8935_v62, %v2360_v19  ;;  %v12965_v51 = vld [vmem:[#allocation16_spill] sm:$0xff] }
 0x554   :  { %2895 = vmatpush.msra.mxu1 %v2892_v42  ;;  %v2883_v42 = vmax.f32 %v2446_v54, 0.0  ;;  %v2868_v34 = vmax.f32 %v2431_v47, 0.0  ;;  %v2354_v52 = vadd.f32 %v8896_v49, %v2289_v57  ;;  %v2283_v62 = vadd.f32 %v12965_v51, %v9021_v33  ;;  %v9133_v47 = vld [vmem:[%s12692_s1 + $0x8] sm:$0xff] }
 0x555   :  { %v9044_v39 = vpop.f32.mrf.mxu0  ;;  %v2422_v7 = vadd.f32 %v8924_v23, %v2357_v20  ;;  %v2865_v32 = vmax.f32 %v2428_v13, 0.0  ;;  %v2862_v43 = vmax.f32 %v2425_v48, 0.0  ;;  %v9147_v13 = vld [vmem:[%s12692_s1 + $0x10] sm:$0xff]  ;;  %v9161_v48 = vld [vmem:[%s12692_s1 + $0x18] sm:$0xff] }
 0x556   :  { %12955 = vst [vmem:[#allocation38_spill] sm:$0xff] %v9044_v39  ;;  %2896 = vmatpush.msra.mxu1 %v2889_v35  ;;  %v12963_v35 = vld [vmem:[#allocation11_spill] sm:$0xff]  ;;  %v2419_v30 = vadd.f32 %v8913_v28, %v2354_v52  ;;  %v2348_v23 = vadd.f32 %v8878_v41, %v2283_v62  ;;  %v9173_v52 = vld [vmem:[%s12692_s1 + $0x20] sm:$0xff]  ;;  %v3117_v39 = vld [vmem:[%s12697_s11 + $0xd8] sm:$0xff] }
 0x557   :  { %v9049_v16 = vpop.f32.mrf.mxu2  ;;  %v2286_v24 = vadd.f32 %v12963_v35, %v9021_v33  ;;  %v2859_v18 = vmax.f32 %v2422_v7, 0.0  ;;  %12971 = vst [vmem:[#allocation42_spill] sm:$0xff] %v9147_v13 }
 0x558   :  { %12956 = vst [vmem:[#allocation39_spill] sm:$0xff] %v9049_v16  ;;  %2897 = vmatpush.msra.mxu1 %v2886_v26 }
 0x559   :  { %v2351_v26 = vadd.f32 %v8887_v9, %v2286_v24  ;;  %v2856_v9 = vmax.f32 %v2419_v30, 0.0  ;;  %12972 = vst [vmem:[#allocation43_spill] sm:$0xff] %v9161_v48 }
 0x55a   :  { %2898 = vmatpush.msra.mxu1 %v2883_v42  ;;  %v9083_v4 = vpop.f32.mrf.mxu3  ;;  %v12966_v42 = vld [vmem:[#allocation23_spill] sm:$0xff]  ;;  %12973 = vst [vmem:[#allocation44_spill] sm:$0xff] %v9173_v52 }
 0x55b   :  { %v9061_v15 = vpop.f32.mrf.mxu1  ;;  %v2280_v49 = vadd.f32 %v12966_v42, %v9021_v33  ;;  %v2416_v11 = vadd.f32 %v8902_v55, %v2351_v26  ;;  %12970 = vst [vmem:[#allocation23_spill] sm:$0xff] %v9133_v47  ;;  %v9187_v26 = vld [vmem:[%s12692_s1 + $0x28] sm:$0xff] }
 0x55c   :  { %2899 = vmatpush.msra.mxu1 %v2880_v31  ;;  %v2413_v31 = vadd.f32 %v8893_v56, %v2348_v23  ;;  %v9119_v56 = vld [vmem:[%s12692_s1] sm:$0xff]  ;;  %12974 = vst [vmem:[#allocation45_spill] sm:$0xff] %v9187_v26  ;;  %v9201_v23 = vld [vmem:[%s12692_s1 + $0x30] sm:$0xff] }
 0x55d   :  { %v9067_v12 = vpop.f32.mrf.mxu0  ;;  %v2345_v10 = vadd.f32 %v8871_v5, %v2280_v49  ;;  %v2853_v2 = vmax.f32 %v2416_v11, 0.0  ;;  %12968 = vst [vmem:[#allocation11_spill] sm:$0xff] %v9119_v56 }
 0x55e   :  { %12958 = vst [vmem:[#allocation41_spill] sm:$0xff] %v9067_v12  ;;  %2900 = vmatpush.msra.mxu1 %v2877_v22  ;;  %v2850_v41 = vmax.f32 %v2413_v31, 0.0 }
 0x55f   :  { %v9073_v61 = vpop.f32.mrf.mxu2  ;;  %v2410_v17 = vadd.f32 %v8884_v45, %v2345_v10  ;;  %12975 = vst [vmem:[#allocation46_spill] sm:$0xff] %v9201_v23 }
 0x560   :  { %12960 = vst [vmem:[#allocation7_spill] sm:$0xff] %v9073_v61  ;;  %2901 = vmatpush.msra.mxu1 %v2874_v25 }
 0x561   :  { %v2847_v22 = vmax.f32 %v2410_v17, 0.0 }
 0x562   :  { %2902 = vmatpush.msra.mxu1 %v2871_v63  ;;  %v9108_v60 = vpop.f32.mrf.mxu3 }
 0x563   :  { %v9085_v54 = vpop.f32.mrf.mxu1 }
 0x564   :  { %2903 = vmatpush.msra.mxu1 %v2868_v34 }
 0x565   :  { %v9091_v58 = vpop.f32.mrf.mxu0 }
 0x566   :  { %12964 = vst [vmem:[#allocation24_spill] sm:$0xff] %v9091_v58  ;;  %2904 = vmatpush.msra.mxu1 %v2865_v32 }
 0x567   :  { %v9097_v50 = vpop.f32.mrf.mxu2 }
 0x568   :  { %2905 = vmatpush.msra.mxu1 %v2862_v43 }
 0x56a   :  { %2906 = vmatpush.msra.mxu1 %v2859_v18  ;;  %v9124_v38 = vpop.f32.mrf.mxu3 }
 0x56b   :  { %v9105_v28 = vpop.f32.mrf.mxu1 }
 0x56c   :  { %2907 = vmatpush.msra.mxu1 %v2856_v9  ;;  %v9213_v9 = vld [vmem:[%s12692_s1 + $0x38] sm:$0xff] }
 0x56d   :  { %v9110_v33 = vpop.f32.mrf.mxu0  ;;  %12976 = vst [vmem:[#allocation47_spill] sm:$0xff] %v9213_v9 }
 0x56e   :  { %12967 = vst [vmem:[#allocation8_spill] sm:$0xff] %v9110_v33  ;;  %2908 = vmatpush.msra.mxu1 %v2853_v2  ;;  %v3135_v2 = vld [vmem:[%s12697_s11 + $0x168] sm:$0xff] }
 0x56f   :  { %v9112_v55 = vpop.f32.mrf.mxu2  ;;  %3242 = vmatpush.msrb.mxu0 %v3135_v2  ;;  %v3123_v2 = vld [vmem:[%s12697_s11 + $0x108] sm:$0xff] }
 0x570   :  { %2909 = vmatpush.msra.mxu1 %v2850_v41 }
 0x572   :  { %2910 = vmatpush.msra.mxu1 %v2847_v22  ;;  %v9140_v59 = vpop.f32.mrf.mxu3 }
 0x573   :  { %v9114_v5 = vpop.f32.mrf.mxu1  ;;  %2911 = vmatmul.f32.vlgmr.msra.gmra.mxu1 %v9119_v56 }
 0x575   :  { %v9122_v45 = vpop.f32.mrf.mxu0 }
 0x576   :  { %12969 = vst [vmem:[#allocation16_spill] sm:$0xff] %v9122_v45  ;;  %v12981_v45 = vld [vmem:[#allocation35_spill] sm:$0xff] }
 0x577   :  { %v9126_v6 = vpop.f32.mrf.mxu2 }
 0x57a   :  { %v9154_v57 = vpop.f32.mrf.mxu3 }
 0x57b   :  { %v9128_v36 = vpop.f32.mrf.mxu1  ;;  %2914 = vmatmul.f32.gmra.mxu1 %v9133_v47 }
 0x57d   :  { %v9136_v25 = vpop.f32.mrf.mxu0 }
 0x57f   :  { %v9138_v3 = vpop.f32.mrf.mxu2 }
 0x582   :  { %v9176_v7 = vpop.f32.mrf.mxu3 }
 0x583   :  { %v9142_v19 = vpop.f32.mrf.mxu1  ;;  %2917 = vmatmul.f32.gmra.mxu1 %v9147_v13  ;;  %v3126_v13 = vld [vmem:[%s12697_s11 + $0x120] sm:$0xff] }
 0x585   :  { %v9150_v63 = vpop.f32.mrf.mxu0 }
 0x587   :  { %v9152_v21 = vpop.f32.mrf.mxu2 }
 0x58a   :  { %v9190_v30 = vpop.f32.mrf.mxu3 }
 0x58b   :  { %v9156_v20 = vpop.f32.mrf.mxu1  ;;  %2920 = vmatmul.f32.gmra.mxu1 %v9161_v48 }
 0x58d   :  { %v9164_v34 = vpop.f32.mrf.mxu0 }
 0x58f   :  { %v9166_v35 = vpop.f32.mrf.mxu2 }
 0x592   :  { %v9206_v18 = vpop.f32.mrf.mxu3 }
 0x593   :  { %v9168_v24 = vpop.f32.mrf.mxu1  ;;  %2923 = vmatmul.f32.gmra.mxu1 %v9173_v52  ;;  %v3129_v52 = vld [vmem:[%s12697_s11 + $0x138] sm:$0xff] }
 0x595   :  { %v9178_v32 = vpop.f32.mrf.mxu0 }
 0x597   :  { %v9180_v51 = vpop.f32.mrf.mxu2 }
 0x59a   :  { %v9221_v41 = vpop.f32.mrf.mxu3 }
 0x59b   :  { %v9182_v62 = vpop.f32.mrf.mxu1  ;;  %2926 = vmatmul.f32.gmra.mxu1 %v9187_v26 }
 0x59d   :  { %v9194_v42 = vpop.f32.mrf.mxu0 }
 0x59f   :  { %v9192_v43 = vpop.f32.mrf.mxu2 }
 0x5a2   :  { %v9254_v47 = vpop.f32.mrf.mxu3 }
 0x5a3   :  { %v9196_v49 = vpop.f32.mrf.mxu1  ;;  %2929 = vmatmul.f32.gmra.mxu1 %v9201_v23  ;;  %v9226_v23 = vld [vmem:[%s12692_s1 + $0x40] sm:$0xff] }
 0x5a4   :  { %12977 = vst [vmem:[#allocation48_spill] sm:$0xff] %v9226_v23 }
 0x5a5   :  { %v9208_v10 = vpop.f32.mrf.mxu0 }
 0x5a7   :  { %v9204_v11 = vpop.f32.mrf.mxu2 }
 0x5ab   :  { %v2640_v31 = vpop.f32.mrf.mxu1  ;;  %2932 = vmatmul.f32.gmra.mxu1 %v9213_v9  ;;  %v3132_v9 = vld [vmem:[%s12697_s11 + $0x150] sm:$0xff] }
 0x5ac   :  { %3243 = vmatpush.msrb.mxu0 %v3132_v9  ;;  %v9248_v9 = vld [vmem:[%s12692_s1 + $0x48] sm:$0xff] }
 0x5ad   :  { %v9232_v26 = vpop.f32.mrf.mxu0  ;;  %12978 = vst [vmem:[#allocation49_spill] sm:$0xff] %v9248_v9 }
 0x5ae   :  { %3244 = vmatpush.msrb.mxu0 %v3129_v52  ;;  %v3120_v52 = vld [vmem:[%s12697_s11 + $0xf0] sm:$0xff] }
 0x5af   :  { %v9216_v17 = vpop.f32.mrf.mxu2 }
 0x5b0   :  { %3245 = vmatpush.msrb.mxu0 %v3126_v13  ;;  %v9257_v13 = vperm.slane %v9017_v53, 1 }
 0x5b2   :  { %3246 = vmatpush.msrb.mxu0 %v3123_v2  ;;  %v2517_v2 = vadd.f32 %v8984_v29, %v9257_v13  ;;  %v2514_v33 = vadd.f32 %v8972_v37, %v9257_v13  ;;  %v2511_v37 = vadd.f32 %v8958_v14, %v9257_v13  ;;  %v3105_v14 = vld [vmem:[%s12697_s11 + $0x78] sm:$0xff] }
 0x5b3   :  { %v2643_v22 = vpop.f32.mrf.mxu1  ;;  %2935 = vmatmul.f32.gmra.mxu1 %v9226_v23 }
 0x5b4   :  { %3247 = vmatpush.msrb.mxu0 %v3120_v52  ;;  %v3114_v52 = vld [vmem:[%s12697_s11 + $0xc0] sm:$0xff]  ;;  %v2582_v1 = vadd.f32 %v9004_v40, %v2517_v2  ;;  %v2579_v40 = vadd.f32 %v8997_v0, %v2514_v33  ;;  %v2576_v8 = vadd.f32 %v12981_v45, %v2511_v37 }
 0x5b5   :  { %v9262_v12 = vpop.f32.mrf.mxu0  ;;  %v12983_v33 = vld [vmem:[#allocation34_spill] sm:$0xff] }
 0x5b6   :  { %3248 = vmatpush.msrb.mxu0 %v3117_v39  ;;  %v3111_v39 = vld [vmem:[%s12697_s11 + $0xa8] sm:$0xff]  ;;  %v2644_v61 = vadd.f32 %v2643_v22, %v2579_v40  ;;  %v3102_v45 = vld [vmem:[%s12697_s11 + $0x60] sm:$0xff] }
 0x5b7   :  { %v9237_v48 = vpop.f32.mrf.mxu2  ;;  %v12984_v22 = vld [vmem:[#allocation18_spill] sm:$0xff] }
 0x5b8   :  { %3249 = vmatpush.msrb.mxu0 %v3114_v52  ;;  %v12980_v52 = vld [vmem:[#allocation30_spill] sm:$0xff]  ;;  %v2502_v37 = vadd.f32 %v12984_v22, %v9257_v13  ;;  %v12989_v22 = vld [vmem:[#allocation31_spill] sm:$0xff] }
 0x5b9   :  { %v2508_v56 = vadd.f32 %v12980_v52, %v9257_v13 }
 0x5ba   :  { %3250 = vmatpush.msrb.mxu0 %v3111_v39  ;;  %v2776_v39 = vpop.f32.mrf.mxu3 }
 0x5bb   :  { %v2646_v23 = vpop.f32.mrf.mxu1  ;;  %2938 = vmatmul.f32.gmra.mxu1 %v9248_v9  ;;  %v2520_v9 = vadd.f32 %v8994_v44, %v9257_v13  ;;  %v9281_v44 = vld [vmem:[%s12692_s1 + $0x50] sm:$0xff] }
 0x5bc   :  { %12979 = vst [vmem:[#allocation50_spill] sm:$0xff] %v9281_v44  ;;  %v2647_v2 = vadd.f32 %v2646_v23, %v2582_v1  ;;  %v12982_v1 = vld [vmem:[#allocation28_spill] sm:$0xff]  ;;  %v2573_v23 = vadd.f32 %v12983_v33, %v2508_v56  ;;  %v2887_v56 = vmax.f32 %v2644_v61, 0.0 }
 0x5bd   :  { %v2585_v16 = vadd.f32 %v9011_v27, %v2520_v9  ;;  %v3108_v9 = vld [vmem:[%s12697_s11 + $0x90] sm:$0xff]  ;;  %v2841_v40 = vpop.f32.mrf.mxu0 }
 0x5be   :  { %3251 = vmatpush.msrb.mxu0 %v3108_v9  ;;  %v2890_v9 = vmax.f32 %v2647_v2, 0.0  ;;  %v9317_v2 = vld [vmem:[%s12692_s1 + $0x58] sm:$0xff] }
 0x5bf   :  { %v2708_v58 = vpop.f32.mrf.mxu2 }
 0x5c0   :  { %3252 = vmatpush.msrb.mxu0 %v3105_v14  ;;  %v9306_v14 = vperm.slane %v9017_v53, 2  ;;  %v12987_v53 = vld [vmem:[#allocation32_spill] sm:$0xff] }
 0x5c2   :  { %3253 = vmatpush.msrb.mxu0 %v3102_v45 }
 0x5c3   :  { %v2649_v29 = vpop.f32.mrf.mxu1  ;;  %2941 = vmatmul.f32.gmra.mxu1 %v9281_v44 }
 0x5c4   :  { %v2650_v27 = vadd.f32 %v2649_v29, %v2585_v16  ;;  %v2505_v16 = vadd.f32 %v12982_v1, %v9257_v13  ;;  %v2641_v29 = vadd.f32 %v2640_v31, %v2576_v8  ;;  %v2638_v1 = vadd.f32 %v9196_v49, %v2573_v23  ;;  %v3099_v8 = vld [vmem:[%s12697_s11 + $0x48] sm:$0xff]  ;;  %v3096_v23 = vld [vmem:[%s12697_s11 + $0x30] sm:$0xff] }
 0x5c5   :  { %v12986_v31 = vld [vmem:[#allocation15_spill] sm:$0xff]  ;;  %3254 = vmatpush.msrb.mxu0 %v3099_v8 }
 0x5c6   :  { %v2893_v44 = vmax.f32 %v2650_v27, 0.0  ;;  %v12985_v27 = vld [vmem:[#allocation33_spill] sm:$0xff]  ;;  %v2884_v49 = vmax.f32 %v2641_v29, 0.0 }
 0x5c7   :  { %v2711_v0 = vpop.f32.mrf.mxu2  ;;  %v2570_v52 = vadd.f32 %v12985_v27, %v2505_v16  ;;  %v2567_v16 = vadd.f32 %v12987_v53, %v2502_v37  ;;  %3255 = vmatpush.msrb.mxu0 %v3096_v23  ;;  %v2709_v37 = vadd.f32 %v2708_v58, %v9306_v14 }
 0x5c8   :  { %2960 = vmatpush.msra.mxu2 %v2893_v44  ;;  %v2499_v44 = vadd.f32 %v12986_v31, %v9257_v13  ;;  %v2712_v33 = vadd.f32 %v2711_v0, %v9306_v14  ;;  %v2881_v31 = vmax.f32 %v2638_v1, 0.0  ;;  %v12990_v0 = vld [vmem:[#allocation27_spill] sm:$0xff] }
 0x5c9   :  { %v2635_v61 = vadd.f32 %v9182_v62, %v2570_v52  ;;  %v2632_v8 = vadd.f32 %v9168_v24, %v2567_v16  ;;  %v3093_v62 = vld [vmem:[%s12697_s11 + $0x18] sm:$0xff]  ;;  %v2493_v29 = vadd.f32 %v12990_v0, %v9257_v13  ;;  %v2706_v24 = vadd.f32 %v9237_v48, %v9306_v14  ;;  %v3090_v16 = vld [vmem:[%s12697_s11] sm:$0xff]  ;;  %v12995_v0 = vld [vmem:[#allocation20_spill] sm:$0xff] }
 0x5ca   :  { %2961 = vmatpush.msra.mxu2 %v2890_v9  ;;  %v12988_v9 = vld [vmem:[#allocation26_spill] sm:$0xff]  ;;  %v2564_v27 = vadd.f32 %v12989_v22, %v2499_v44  ;;  %v12991_v52 = vld [vmem:[#allocation29_spill] sm:$0xff]  ;;  %3256 = vmatpush.msrb.mxu0 %v3093_v62  ;;  %v2777_v1 = vadd.f32 %v2776_v39, %v2712_v33  ;;  %v2703_v48 = vadd.f32 %v9216_v17, %v9306_v14 }
 0x5cb   :  { %2944 = vmatmul.f32.gmra.mxu1 %v9317_v2  ;;  %v2496_v45 = vadd.f32 %v12988_v9, %v9257_v13  ;;  %v2878_v44 = vmax.f32 %v2635_v61, 0.0  ;;  %v2875_v61 = vmax.f32 %v2632_v8, 0.0  ;;  %v2774_v39 = vadd.f32 %v9254_v47, %v2709_v37 }
 0x5cc   :  { %2962 = vmatpush.msra.mxu2 %v2887_v56  ;;  %v2629_v53 = vadd.f32 %v9156_v20, %v2564_v27  ;;  %v2779_v20 = vpop.f32.mrf.mxu3  ;;  %3257 = vmatpush.msrb.mxu0 %v3090_v16  ;;  %v2700_v47 = vadd.f32 %v9204_v11, %v9306_v14  ;;  %v2771_v17 = vadd.f32 %v9221_v41, %v2706_v24  ;;  %v12998_v41 = vld [vmem:[#allocation5_spill] sm:$0xff] }
 0x5cd   :  { %v2561_v56 = vadd.f32 %v12991_v52, %v2496_v45  ;;  %v12993_v45 = vld [vmem:[#allocation22_spill] sm:$0xff]  ;;  %v2842_v37 = vadd.f32 %v2841_v40, %v2777_v1  ;;  %v2839_v11 = vadd.f32 %v9262_v12, %v2774_v39  ;;  %v2481_v40 = vadd.f32 %v12998_v41, %v9257_v13  ;;  %v12999_v24 = vld [vmem:[#allocation13_spill] sm:$0xff] }
 0x5ce   :  { %2963 = vmatpush.msra.mxu2 %v2884_v49  ;;  %v12992_v49 = vld [vmem:[#allocation4_spill] sm:$0xff]  ;;  %v2558_v22 = vadd.f32 %v12993_v45, %v2493_v29  ;;  %v2872_v29 = vmax.f32 %v2629_v53, 0.0  ;;  %v12997_v53 = vld [vmem:[#allocation17_spill] sm:$0xff]  ;;  %v2768_v45 = vadd.f32 %v9206_v18, %v2703_v48  ;;  %v2836_v18 = vadd.f32 %v9232_v26, %v2771_v17  ;;  %v13000_v12 = vld [vmem:[#allocation2_spill] sm:$0xff] }
 0x5cf   :  { %v2714_v9 = vpop.f32.mrf.mxu2  ;;  %v2490_v23 = vadd.f32 %v12992_v49, %v9257_v13  ;;  %v2626_v27 = vadd.f32 %v9142_v19, %v2561_v56  ;;  %v2844_v49 = vpop.f32.mrf.mxu0  ;;  %v9358_v19 = vld [vmem:[%s12692_s1 + $0x60] sm:$0xff]  ;;  %v12996_v56 = vld [vmem:[#allocation25_spill] sm:$0xff]  ;;  %v2478_v48 = vadd.f32 %v13000_v12, %v9257_v13  ;;  %v13002_v26 = vld [vmem:[#allocation3_spill] sm:$0xff] }
 0x5d0   :  { %v2715_v58 = vadd.f32 %v2714_v9, %v9306_v14  ;;  %2964 = vmatpush.msra.mxu2 %v2881_v31  ;;  %v12994_v31 = vld [vmem:[#allocation19_spill] sm:$0xff]  ;;  %v2623_v9 = vadd.f32 %v9128_v36, %v2558_v22  ;;  %v2484_v36 = vadd.f32 %v12996_v56, %v9257_v13  ;;  %v13001_v39 = vld [vmem:[#allocation9_spill] sm:$0xff]  ;;  %v2685_v56 = vadd.f32 %v9138_v3, %v9306_v14 }
 0x5d1   :  { %v2487_v62 = vadd.f32 %v12994_v31, %v9257_v13  ;;  %v2555_v52 = vadd.f32 %v12995_v0, %v2490_v23  ;;  %v2869_v16 = vmax.f32 %v2626_v27, 0.0  ;;  %v2697_v23 = vadd.f32 %v9192_v43, %v9306_v14  ;;  %v13004_v17 = vld [vmem:[#allocation21_spill] sm:$0xff] }
 0x5d2   :  { %v2780_v33 = vadd.f32 %v2779_v20, %v2715_v58  ;;  %2965 = vmatpush.msra.mxu2 %v2878_v44  ;;  %v2549_v1 = vadd.f32 %v12999_v24, %v2484_v36  ;;  %v2765_v27 = vadd.f32 %v9190_v30, %v2700_v47  ;;  %v2891_v43 = vmax.f32 %v2842_v37, 0.0 }
 0x5d3   :  { %2947 = vmatmul.f32.gmra.mxu1 %v9358_v19  ;;  %v2552_v44 = vadd.f32 %v12997_v53, %v2487_v62  ;;  %v2620_v58 = vadd.f32 %v9114_v5, %v2555_v52  ;;  %v2694_v5 = vadd.f32 %v9180_v51, %v9306_v14  ;;  %v2762_v51 = vadd.f32 %v9176_v7, %v2697_v23  ;;  %v13005_v53 = vld [vmem:[#allocation12_spill] sm:$0xff] }
 0x5d4   :  { %v2845_v8 = vadd.f32 %v2844_v49, %v2780_v33  ;;  %2966 = vmatpush.msra.mxu2 %v2875_v61  ;;  %v2866_v61 = vmax.f32 %v2623_v9, 0.0  ;;  %v2546_v33 = vadd.f32 %v13001_v39, %v2481_v40  ;;  %v2614_v31 = vadd.f32 %v9085_v54, %v2549_v1  ;;  %v13003_v9 = vld [vmem:[#allocation6_spill] sm:$0xff]  ;;  %v9395_v54 = vld [vmem:[%s12692_s1 + $0x68] sm:$0xff]  ;;  %v13007_v40 = vld [vmem:[#allocation40_spill] sm:$0xff] }
 0x5d5   :  { %v2617_v20 = vadd.f32 %v9105_v28, %v2552_v44  ;;  %v2863_v62 = vmax.f32 %v2620_v58, 0.0  ;;  %v2691_v28 = vadd.f32 %v9166_v35, %v9306_v14  ;;  %v2888_v30 = vmax.f32 %v2839_v11, 0.0 }
 0x5d6   :  { %v2894_v22 = vmax.f32 %v2845_v8, 0.0  ;;  %2967 = vmatpush.msra.mxu2 %v2872_v29  ;;  %v2833_v0 = vadd.f32 %v9208_v10, %v2768_v45  ;;  %v2475_v52 = vadd.f32 %v13002_v26, %v9257_v13  ;;  %v2543_v29 = vadd.f32 %v13003_v9, %v2478_v48  ;;  %v13013_v48 = vld [vmem:[#allocation14_spill] sm:$0xff] }
 0x5d7   :  { %v2611_v49 = vadd.f32 %v9061_v15, %v2546_v33  ;;  %v2860_v47 = vmax.f32 %v2617_v20, 0.0  ;;  %v2688_v35 = vadd.f32 %v9152_v21, %v9306_v14  ;;  %v2759_v7 = vadd.f32 %v9154_v57, %v2694_v5  ;;  %v13008_v20 = vld [vmem:[#allocation16_spill] sm:$0xff]  ;;  %v13009_v5 = vld [vmem:[#allocation11_spill] sm:$0xff]  ;;  %v13017_v9 = vld [vmem:[#allocation38_spill] sm:$0xff] }
 0x5d8   :  { %2968 = vmatpush.msra.mxu2 %v2869_v16  ;;  %3025 = vmatpush.msra.mxu3 %v2894_v22  ;;  %v2885_v10 = vmax.f32 %v2836_v18, 0.0  ;;  %v2830_v13 = vadd.f32 %v9194_v42, %v2765_v27  ;;  %v2540_v15 = vadd.f32 %v13004_v17, %v2475_v52  ;;  %v2608_v8 = vadd.f32 %v9040_v46, %v2543_v29  ;;  %v13011_v27 = vld [vmem:[#allocation37_spill] sm:$0xff] }
 0x5d9   :  { %v2857_v37 = vmax.f32 %v2614_v31, 0.0  ;;  %v2756_v36 = vadd.f32 %v9140_v59, %v2691_v28  ;;  %v2882_v21 = vmax.f32 %v2833_v0, 0.0  ;;  %v2827_v57 = vadd.f32 %v9178_v32, %v2762_v51  ;;  %v13014_v31 = vld [vmem:[#allocation24_spill] sm:$0xff]  ;;  %v9441_v28 = vld [vmem:[%s12692_s1 + $0x78] sm:$0xff] }
 0x5da   :  { %2969 = vmatpush.msra.mxu2 %v2866_v61  ;;  %3026 = vmatpush.msra.mxu3 %v2891_v43  ;;  %v2605_v44 = vadd.f32 %v13005_v53, %v2540_v15  ;;  %v2854_v58 = vmax.f32 %v2611_v49, 0.0  ;;  %v2682_v42 = vadd.f32 %v9126_v6, %v9306_v14  ;;  %v2753_v16 = vadd.f32 %v9124_v38, %v2688_v35  ;;  %v9420_v38 = vld [vmem:[%s12692_s1 + $0x70] sm:$0xff]  ;;  %v13016_v0 = vld [vmem:[#allocation41_spill] sm:$0xff]  ;;  %v13018_v49 = vld [vmem:[#allocation23_spill] sm:$0xff] }
 0x5db   :  { %2950 = vmatmul.f32.gmra.mxu1 %v9395_v54  ;;  %v2879_v46 = vmax.f32 %v2830_v13, 0.0  ;;  %v2824_v3 = vadd.f32 %v9164_v34, %v2759_v7  ;;  %v2851_v23 = vmax.f32 %v2608_v8, 0.0  ;;  %v2679_v59 = vadd.f32 %v9112_v55, %v9306_v14  ;;  %v13019_v7 = vld [vmem:[#allocation10_spill] sm:$0xff] }
 0x5dc   :  { %2970 = vmatpush.msra.mxu2 %v2863_v62  ;;  %3027 = vmatpush.msra.mxu3 %v2888_v30  ;;  %v2750_v45 = vadd.f32 %v9108_v60, %v2685_v56  ;;  %v2876_v32 = vmax.f32 %v2827_v57, 0.0  ;;  %v2821_v22 = vadd.f32 %v9150_v63, %v2756_v36  ;;  %v2848_v11 = vmax.f32 %v2605_v44, 0.0  ;;  %v13006_v63 = vld [vmem:[#allocation7_spill] sm:$0xff]  ;;  %v13020_v15 = vld [vmem:[#allocation42_spill] sm:$0xff]  ;;  %v13022_v36 = vld [vmem:[#allocation44_spill] sm:$0xff] }
 0x5dd   :  { %v2676_v6 = vadd.f32 %v9097_v50, %v9306_v14  ;;  %v2747_v55 = vadd.f32 %v9083_v4, %v2682_v42  ;;  %v2873_v60 = vmax.f32 %v2824_v3, 0.0  ;;  %v2818_v34 = vadd.f32 %v9136_v25, %v2753_v16  ;;  %v13010_v50 = vld [vmem:[#allocation39_spill] sm:$0xff]  ;;  %v13012_v25 = vld [vmem:[#allocation8_spill] sm:$0xff]  ;;  %v13023_v57 = vld [vmem:[#allocation45_spill] sm:$0xff] }
 0x5de   :  { %2971 = vmatpush.msra.mxu2 %v2860_v47  ;;  %3028 = vmatpush.msra.mxu3 %v2885_v10  ;;  %v2673_v41 = vadd.f32 %v13006_v63, %v9306_v14  ;;  %v2744_v24 = vadd.f32 %v13007_v40, %v2679_v59  ;;  %v2870_v1 = vmax.f32 %v2821_v22, 0.0  ;;  %v2815_v61 = vadd.f32 %v13008_v20, %v2750_v45  ;;  %v13024_v44 = vld [vmem:[#allocation46_spill] sm:$0xff]  ;;  %v13025_v42 = vld [vmem:[#allocation47_spill] sm:$0xff]  ;;  %v3180_v59 = vld [vmem:[%s12697_s11 + $0x2d0] sm:$0xff] }
 0x5df   :  { %v2670_v4 = vadd.f32 %v13010_v50, %v9306_v14  ;;  %v2741_v43 = vadd.f32 %v13011_v27, %v2676_v6  ;;  %v2867_v18 = vmax.f32 %v2818_v34, 0.0  ;;  %v2812_v12 = vadd.f32 %v13012_v25, %v2747_v55  ;;  %v13015_v14 = vld [vmem:[#allocation36_spill] sm:$0xff]  ;;  %v13027_v45 = vld [vmem:[#allocation49_spill] sm:$0xff]  ;;  %v3171_v55 = vld [vmem:[%s12697_s11 + $0x288] sm:$0xff] }
 0x5e0   :  { %2972 = vmatpush.msra.mxu2 %v2857_v37  ;;  %3029 = vmatpush.msra.mxu3 %v2882_v21  ;;  %v2738_v39 = vadd.f32 %v13013_v48, %v2673_v41  ;;  %v2864_v33 = vmax.f32 %v2815_v61, 0.0  ;;  %v2809_v62 = vadd.f32 %v13014_v31, %v2744_v24  ;;  %v13021_v37 = vld [vmem:[#allocation43_spill] sm:$0xff]  ;;  %v3177_v22 = vld [vmem:[%s12697_s11 + $0x2b8] sm:$0xff]  ;;  %v3184_v6 = vld [vmem:[%s12697_s11 + $0x2f0] sm:$0xff] }
 0x5e1   :  { %v2735_v51 = vadd.f32 %v13015_v14, %v2670_v4  ;;  %v2861_v30 = vmax.f32 %v2812_v12, 0.0  ;;  %v2806_v26 = vadd.f32 %v13016_v0, %v2741_v43  ;;  %3502 = vmatpush.msra.mxu0 %v3184_v6  ;;  %v3178_v34 = vld [vmem:[%s12697_s11 + $0x2c0] sm:$0xff]  ;;  %v3168_v63 = vld [vmem:[%s12697_s11 + $0x270] sm:$0xff]  ;;  %v3165_v24 = vld [vmem:[%s12697_s11 + $0x258] sm:$0xff] }
 0x5e2   :  { %2973 = vmatpush.msra.mxu2 %v2854_v58  ;;  %3030 = vmatpush.msra.mxu3 %v2879_v46  ;;  %v2858_v52 = vmax.f32 %v2809_v62, 0.0  ;;  %v2803_v29 = vadd.f32 %v13017_v9, %v2738_v39  ;;  %v13026_v46 = vld [vmem:[#allocation48_spill] sm:$0xff]  ;;  %v13028_v41 = vld [vmem:[#allocation50_spill] sm:$0xff]  ;;  %v3175_v20 = vld [vmem:[%s12697_s11 + $0x2a8] sm:$0xff] }
 0x5e3   :  { %2953 = vmatmul.f32.gmra.mxu1 %v9420_v38  ;;  %v2855_v35 = vmax.f32 %v2806_v26, 0.0  ;;  %v2800_v10 = vadd.f32 %v13019_v7, %v2735_v51  ;;  %v3162_v61 = vld [vmem:[%s12697_s11 + $0x240] sm:$0xff]  ;;  %v3172_v50 = vld [vmem:[%s12697_s11 + $0x290] sm:$0xff]  ;;  %v3231_v4 = vld [vmem:[%s12697_s11 + $0x468] sm:$0xff] }
 0x5e4   :  { %2974 = vmatpush.msra.mxu2 %v2851_v23  ;;  %3031 = vmatpush.msra.mxu3 %v2876_v32  ;;  %v2852_v13 = vmax.f32 %v2803_v29, 0.0  ;;  %v3183_v23 = vld [vmem:[%s12697_s11 + $0x2e8] sm:$0xff]  ;;  %v3130_v27 = vld [vmem:[%s12697_s11 + $0x140] sm:$0xff]  ;;  %v3228_v25 = vld [vmem:[%s12697_s11 + $0x450] sm:$0xff] }
 0x5e5   :  { %v2849_v17 = vmax.f32 %v2800_v10, 0.0  ;;  %3307 = vmatpush.msrb.mxu1 %v3183_v23  ;;  %v3159_v43 = vld [vmem:[%s12697_s11 + $0x228] sm:$0xff]  ;;  %v3156_v12 = vld [vmem:[%s12697_s11 + $0x210] sm:$0xff]  ;;  %v3166_v39 = vld [vmem:[%s12697_s11 + $0x260] sm:$0xff] }
 0x5e6   :  { %2975 = vmatpush.msra.mxu2 %v2848_v11  ;;  %3032 = vmatpush.msra.mxu3 %v2873_v60  ;;  %v3174_v11 = vld [vmem:[%s12697_s11 + $0x2a0] sm:$0xff]  ;;  %v3181_v60 = vld [vmem:[%s12697_s11 + $0x2d8] sm:$0xff]  ;;  %v3127_v48 = vld [vmem:[%s12697_s11 + $0x128] sm:$0xff] }
 0x5e7   :  { %2976 = vmatmul.f32.vlgmr.msra.gmra.mxu2 %v13009_v5  ;;  %3308 = vmatpush.msrb.mxu1 %v3180_v59  ;;  %v3153_v31 = vld [vmem:[%s12697_s11 + $0x1f8] sm:$0xff]  ;;  %v3124_v14 = vld [vmem:[%s12697_s11 + $0x110] sm:$0xff]  ;;  %v3163_v51 = vld [vmem:[%s12697_s11 + $0x248] sm:$0xff] }
 0x5e8   :  { %3033 = vmatpush.msra.mxu3 %v2870_v1  ;;  %3503 = vmatpush.msra.mxu0 %v3181_v60  ;;  %v3136_v1 = vld [vmem:[%s12697_s11 + $0x170] sm:$0xff]  ;;  %v3225_v62 = vld [vmem:[%s12697_s11 + $0x438] sm:$0xff]  ;;  %v3222_v0 = vld [vmem:[%s12697_s11 + $0x420] sm:$0xff] }
 0x5e9   :  { %3309 = vmatpush.msrb.mxu1 %v3177_v22  ;;  %3372 = vmatpush.msrb.mxu2 %v3231_v4  ;;  %v3121_v26 = vld [vmem:[%s12697_s11 + $0xf8] sm:$0xff]  ;;  %v3147_v9 = vld [vmem:[%s12697_s11 + $0x1c8] sm:$0xff]  ;;  %v3144_v7 = vld [vmem:[%s12697_s11 + $0x1b0] sm:$0xff] }
 0x5ea   :  { %3034 = vmatpush.msra.mxu3 %v2867_v18  ;;  %3504 = vmatpush.msra.mxu0 %v3178_v34  ;;  %v3169_v18 = vld [vmem:[%s12697_s11 + $0x278] sm:$0xff]  ;;  %v3219_v29 = vld [vmem:[%s12697_s11 + $0x408] sm:$0xff]  ;;  %v3216_v10 = vld [vmem:[%s12697_s11 + $0x3f0] sm:$0xff] }
 0x5eb   :  { %2956 = vmatmul.f32.gmra.mxu1 %v9441_v28  ;;  %3373 = vmatpush.msrb.mxu2 %v3228_v25  ;;  %v3109_v23 = vld [vmem:[%s12697_s11 + $0x98] sm:$0xff]  ;;  %v3148_v59 = vld [vmem:[%s12697_s11 + $0x1d0] sm:$0xff]  ;;  %v3106_v22 = vld [vmem:[%s12697_s11 + $0x80] sm:$0xff] }
 0x5ec   :  { %3035 = vmatpush.msra.mxu3 %v2864_v33  ;;  %3310 = vmatpush.msrb.mxu1 %v3174_v11  ;;  %v3145_v11 = vld [vmem:[%s12697_s11 + $0x1b8] sm:$0xff]  ;;  %v3204_v6 = vld [vmem:[%s12697_s11 + $0x390] sm:$0xff]  ;;  %v3103_v60 = vld [vmem:[%s12697_s11 + $0x68] sm:$0xff] }
 0x5ed   :  { %3505 = vmatpush.msra.mxu0 %v3175_v20  ;;  %3374 = vmatpush.msrb.mxu2 %v3225_v62  ;;  %v3201_v34 = vld [vmem:[%s12697_s11 + $0x378] sm:$0xff]  ;;  %v3195_v20 = vld [vmem:[%s12697_s11 + $0x348] sm:$0xff] }
 0x5ee   :  { %3036 = vmatpush.msra.mxu3 %v2861_v30  ;;  %3311 = vmatpush.msrb.mxu1 %v3171_v55  ;;  %v3150_v30 = vld [vmem:[%s12697_s11 + $0x1e0] sm:$0xff]  ;;  %v3091_v4 = vld [vmem:[%s12697_s11 + $0x8] sm:$0xff] }
 0x5ef   :  { %2979 = vmatmul.f32.gmra.mxu2 %v13018_v49  ;;  %3506 = vmatpush.msra.mxu0 %v3172_v50 }
 0x5f0   :  { %v9448_v47 = vpop.f32.mrf.mxu1  ;;  %3037 = vmatpush.msra.mxu3 %v2858_v52  ;;  %3312 = vmatpush.msrb.mxu1 %v3168_v63  ;;  %v3160_v52 = vld [vmem:[%s12697_s11 + $0x230] sm:$0xff] }
 0x5f1   :  { %3258 = vmatmul.f32.vlgmr.msrb.gmra.mxu0 %v9448_v47  ;;  %3375 = vmatpush.msrb.mxu2 %v3222_v0  ;;  %v3100_v63 = vld [vmem:[%s12697_s11 + $0x50] sm:$0xff] }
 0x5f2   :  { %3038 = vmatpush.msra.mxu3 %v2855_v35  ;;  %3313 = vmatpush.msrb.mxu1 %v3165_v24  ;;  %v3157_v35 = vld [vmem:[%s12697_s11 + $0x218] sm:$0xff]  ;;  %v3198_v24 = vld [vmem:[%s12697_s11 + $0x360] sm:$0xff] }
 0x5f3   :  { %3507 = vmatpush.msra.mxu0 %v3169_v18  ;;  %3376 = vmatpush.msrb.mxu2 %v3219_v29 }
 0x5f4   :  { %3039 = vmatpush.msra.mxu3 %v2852_v13  ;;  %3314 = vmatpush.msrb.mxu1 %v3162_v61  ;;  %v3115_v13 = vld [vmem:[%s12697_s11 + $0xc8] sm:$0xff]  ;;  %v3094_v61 = vld [vmem:[%s12697_s11 + $0x20] sm:$0xff] }
 0x5f5   :  { %3508 = vmatpush.msra.mxu0 %v3166_v39  ;;  %3377 = vmatpush.msrb.mxu2 %v3216_v10 }
 0x5f6   :  { %3040 = vmatpush.msra.mxu3 %v2849_v17  ;;  %3315 = vmatpush.msrb.mxu1 %v3159_v43 }
 0x5f7   :  { %2982 = vmatmul.f32.gmra.mxu2 %v13020_v15  ;;  %3041 = vmatmul.f32.vlgmr.msra.gmra.mxu3 %v13009_v5  ;;  %v3133_v5 = vld [vmem:[%s12697_s11 + $0x158] sm:$0xff] }
 0x5f8   :  { %v9454_v8 = vpop.f32.mrf.mxu1  ;;  %3437 = vmatpush.msrb.mxu3 %v3136_v1  ;;  %3316 = vmatpush.msrb.mxu1 %v3156_v12  ;;  %v3097_v1 = vld [vmem:[%s12697_s11 + $0x38] sm:$0xff] }
 0x5f9   :  { %3261 = vmatmul.f32.gmra.mxu0 %v9454_v8 }
 0x5fa   :  { %3438 = vmatpush.msrb.mxu3 %v3133_v5  ;;  %3317 = vmatpush.msrb.mxu1 %v3153_v31  ;;  %v3192_v5 = vld [vmem:[%s12697_s11 + $0x330] sm:$0xff] }
 0x5fb   :  { %3509 = vmatpush.msra.mxu0 %v3163_v51 }
 0x5fc   :  { %3439 = vmatpush.msrb.mxu3 %v3130_v27  ;;  %3318 = vmatpush.msrb.mxu1 %v3150_v30  ;;  %v3186_v27 = vld [vmem:[%s12697_s11 + $0x300] sm:$0xff] }
 0x5fd   :  { %3510 = vmatpush.msra.mxu0 %v3160_v52 }
 0x5fe   :  { %3440 = vmatpush.msrb.mxu3 %v3127_v48  ;;  %3319 = vmatpush.msrb.mxu1 %v3147_v9 }
 0x5ff   :  { %2985 = vmatmul.f32.gmra.mxu2 %v13021_v37  ;;  %3044 = vmatmul.f32.gmra.mxu3 %v13018_v49  ;;  %v3118_v49 = vld [vmem:[%s12697_s11 + $0xe0] sm:$0xff] }
 0x600   :  { %v9459_v56 = vpop.f32.mrf.mxu1  ;;  %3441 = vmatpush.msrb.mxu3 %v3124_v14  ;;  %3511 = vmatpush.msra.mxu0 %v3157_v35 }
 0x601   :  { %3264 = vmatmul.f32.gmra.mxu0 %v9459_v56  ;;  %3320 = vmatpush.msrb.mxu1 %v3144_v7 }
 0x602   :  { %3442 = vmatpush.msrb.mxu3 %v3121_v26 }
 0x604   :  { %3443 = vmatpush.msrb.mxu3 %v3118_v49 }
 0x606   :  { %3444 = vmatpush.msrb.mxu3 %v3115_v13 }
 0x607   :  { %2988 = vmatmul.f32.gmra.mxu2 %v13022_v36  ;;  %3047 = vmatmul.f32.gmra.mxu3 %v13020_v15  ;;  %v3154_v15 = vld [vmem:[%s12697_s11 + $0x200] sm:$0xff] }
 0x608   :  { %v9464_v21 = vpop.f32.mrf.mxu1  ;;  %3512 = vmatpush.msra.mxu0 %v3154_v15 }
 0x609   :  { %3267 = vmatmul.f32.gmra.mxu0 %v9464_v21 }
 0x60f   :  { %2991 = vmatmul.f32.gmra.mxu2 %v13023_v57  ;;  %3050 = vmatmul.f32.gmra.mxu3 %v13021_v37  ;;  %v3141_v37 = vld [vmem:[%s12697_s11 + $0x198] sm:$0xff] }
 0x610   :  { %v9469_v53 = vpop.f32.mrf.mxu1  ;;  %3321 = vmatpush.msrb.mxu1 %v3141_v37 }
 0x611   :  { %3270 = vmatmul.f32.gmra.mxu0 %v9469_v53 }
 0x617   :  { %2994 = vmatmul.f32.gmra.mxu2 %v13024_v44  ;;  %3053 = vmatmul.f32.gmra.mxu3 %v13022_v36  ;;  %v3213_v36 = vld [vmem:[%s12697_s11 + $0x3d8] sm:$0xff] }
 0x618   :  { %v9474_v58 = vpop.f32.mrf.mxu1  ;;  %3378 = vmatpush.msrb.mxu2 %v3213_v36  ;;  %v3232_v36 = vld [vmem:[%s12697_s11 + $0x470] sm:$0xff] }
 0x619   :  { %3273 = vmatmul.f32.gmra.mxu0 %v9474_v58 }
 0x61f   :  { %2997 = vmatmul.f32.gmra.mxu2 %v13025_v42  ;;  %3056 = vmatmul.f32.gmra.mxu3 %v13023_v57  ;;  %v3112_v57 = vld [vmem:[%s12697_s11 + $0xb0] sm:$0xff] }
 0x620   :  { %v9479_v16 = vpop.f32.mrf.mxu1  ;;  %3445 = vmatpush.msrb.mxu3 %v3112_v57 }
 0x621   :  { %3276 = vmatmul.f32.gmra.mxu0 %v9479_v16 }
 0x622   :  { %3446 = vmatpush.msrb.mxu3 %v3109_v23 }
 0x624   :  { %3447 = vmatpush.msrb.mxu3 %v3106_v22  ;;  %v3220_v22 = vld [vmem:[%s12697_s11 + $0x410] sm:$0xff] }
 0x626   :  { %3448 = vmatpush.msrb.mxu3 %v3103_v60  ;;  %v3217_v60 = vld [vmem:[%s12697_s11 + $0x3f8] sm:$0xff] }
 0x627   :  { %3000 = vmatmul.f32.gmra.mxu2 %v13026_v46  ;;  %3059 = vmatmul.f32.gmra.mxu3 %v13024_v44  ;;  %v3151_v44 = vld [vmem:[%s12697_s11 + $0x1e8] sm:$0xff] }
 0x628   :  { %v9484_v3 = vpop.f32.mrf.mxu1  ;;  %3513 = vmatpush.msra.mxu0 %v3151_v44  ;;  %3449 = vmatpush.msrb.mxu3 %v3100_v63  ;;  %v3229_v44 = vld [vmem:[%s12697_s11 + $0x458] sm:$0xff] }
 0x629   :  { %3279 = vmatmul.f32.gmra.mxu0 %v9484_v3  ;;  %v3185_v63 = vld [vmem:[%s12697_s11 + $0x2f8] sm:$0xff] }
 0x62a   :  { %3514 = vmatpush.msra.mxu0 %v3148_v59  ;;  %3450 = vmatpush.msrb.mxu3 %v3097_v1  ;;  %v3223_v59 = vld [vmem:[%s12697_s11 + $0x428] sm:$0xff] }
 0x62c   :  { %3515 = vmatpush.msra.mxu0 %v3145_v11  ;;  %3451 = vmatpush.msrb.mxu3 %v3094_v61  ;;  %v3230_v11 = vld [vmem:[%s12697_s11 + $0x460] sm:$0xff] }
 0x62d   :  { %v3182_v61 = vld [vmem:[%s12697_s11 + $0x2e0] sm:$0xff] }
 0x62e   :  { %3452 = vmatpush.msrb.mxu3 %v3091_v4  ;;  %v3208_v4 = vld [vmem:[%s12697_s11 + $0x3b0] sm:$0xff] }
 0x62f   :  { %3003 = vmatmul.f32.gmra.mxu2 %v13027_v45  ;;  %3062 = vmatmul.f32.gmra.mxu3 %v13025_v42  ;;  %v3138_v42 = vld [vmem:[%s12697_s11 + $0x180] sm:$0xff] }
 0x630   :  { %v9495_v32 = vpop.f32.mrf.mxu1  ;;  %3322 = vmatpush.msrb.mxu1 %v3138_v42  ;;  %v3226_v42 = vld [vmem:[%s12697_s11 + $0x440] sm:$0xff]  ;;  %3697 = vmatpush.msra.mxu3 %v3185_v63 }
 0x631   :  { %3282 = vmatmul.f32.gmra.mxu0 %v9495_v32 }
 0x632   :  { %3567 = vmatpush.msra.mxu1 %v3232_v36  ;;  %3698 = vmatpush.msra.mxu3 %v3182_v61  ;;  %v3218_v36 = vld [vmem:[%s12697_s11 + $0x400] sm:$0xff]  ;;  %v3128_v61 = vld [vmem:[%s12697_s11 + $0x130] sm:$0xff] }
 0x634   :  { %3568 = vmatpush.msra.mxu1 %v3229_v44 }
 0x636   :  { %3569 = vmatpush.msra.mxu1 %v3226_v42  ;;  %v3205_v42 = vld [vmem:[%s12697_s11 + $0x398] sm:$0xff] }
 0x637   :  { %3006 = vmatmul.f32.gmra.mxu2 %v13028_v41  ;;  %3065 = vmatmul.f32.gmra.mxu3 %v13026_v46  ;;  %v3210_v46 = vld [vmem:[%s12697_s11 + $0x3c0] sm:$0xff] }
 0x638   :  { %v9521_v40 = vpop.f32.mrf.mxu1  ;;  %3379 = vmatpush.msrb.mxu2 %v3210_v46  ;;  %3570 = vmatpush.msra.mxu1 %v3223_v59  ;;  %v3134_v59 = vld [vmem:[%s12697_s11 + $0x160] sm:$0xff] }
 0x639   :  { %3285 = vmatmul.f32.gmra.mxu0 %v9521_v40 }
 0x63a   :  { %3571 = vmatpush.msra.mxu1 %v3220_v22  ;;  %v3215_v22 = vld [vmem:[%s12697_s11 + $0x3e8] sm:$0xff] }
 0x63c   :  { %3572 = vmatpush.msra.mxu1 %v3217_v60  ;;  %v3131_v60 = vld [vmem:[%s12697_s11 + $0x148] sm:$0xff] }
 0x63f   :  { %3009 = vmatmul.f32.gmra.mxu2 %v9317_v2  ;;  %3068 = vmatmul.f32.gmra.mxu3 %v13027_v45  ;;  %v3207_v45 = vld [vmem:[%s12697_s11 + $0x3a8] sm:$0xff] }
 0x640   :  { %v9568_v33 = vpop.f32.mrf.mxu1  ;;  %3380 = vmatpush.msrb.mxu2 %v3207_v45  ;;  %v3233_v45 = vld [vmem:[%s12697_s11 + $0x478] sm:$0xff] }
 0x641   :  { %3288 = vmatmul.f32.gmra.mxu0 %v9568_v33 }
 0x642   :  { %3381 = vmatpush.msrb.mxu2 %v3204_v6 }
 0x644   :  { %3382 = vmatpush.msrb.mxu2 %v3201_v34  ;;  %v3214_v34 = vld [vmem:[%s12697_s11 + $0x3e0] sm:$0xff] }
 0x645   :  { %3573 = vmatpush.msra.mxu1 %v3214_v34 }
 0x646   :  { %3383 = vmatpush.msrb.mxu2 %v3198_v24 }
 0x647   :  { %3012 = vmatmul.f32.gmra.mxu2 %v9358_v19  ;;  %3071 = vmatmul.f32.gmra.mxu3 %v13028_v41  ;;  %v3139_v41 = vld [vmem:[%s12697_s11 + $0x188] sm:$0xff] }
 0x648   :  { %v9618_v17 = vpop.f32.mrf.mxu1  ;;  %3384 = vmatpush.msrb.mxu2 %v3195_v20  ;;  %v3211_v20 = vld [vmem:[%s12697_s11 + $0x3c8] sm:$0xff] }
 0x649   :  { %3291 = vmatmul.f32.gmra.mxu0 %v9618_v17  ;;  %3574 = vmatpush.msra.mxu1 %v3211_v20  ;;  %v3199_v20 = vld [vmem:[%s12697_s11 + $0x368] sm:$0xff] }
 0x64a   :  { %3385 = vmatpush.msrb.mxu2 %v3192_v5  ;;  %v3221_v5 = vld [vmem:[%s12697_s11 + $0x418] sm:$0xff] }
 0x64b   :  { %3575 = vmatpush.msra.mxu1 %v3208_v4  ;;  %v3209_v4 = vld [vmem:[%s12697_s11 + $0x3b8] sm:$0xff] }
 0x64d   :  { %3576 = vmatpush.msra.mxu1 %v3205_v42  ;;  %v3167_v42 = vld [vmem:[%s12697_s11 + $0x268] sm:$0xff] }
 0x64f   :  { %3015 = vmatmul.f32.gmra.mxu2 %v9395_v54  ;;  %3074 = vmatmul.f32.gmra.mxu3 %v9317_v2  ;;  %v3142_v2 = vld [vmem:[%s12697_s11 + $0x1a0] sm:$0xff] }
 0x650   :  { %v9662_v55 = vpop.f32.mrf.mxu1  ;;  %3516 = vmatpush.msra.mxu0 %v3142_v2  ;;  %v3227_v2 = vld [vmem:[%s12697_s11 + $0x448] sm:$0xff] }
 0x651   :  { %3294 = vmatmul.f32.gmra.mxu0 %v9662_v55 }
 0x652   :  { %3517 = vmatpush.msra.mxu0 %v3139_v41  ;;  %v3224_v41 = vld [vmem:[%s12697_s11 + $0x430] sm:$0xff] }
 0x654   :  { %3762 = vmatpush.msrb.mxu0 %v3233_v45  ;;  %v3176_v45 = vld [vmem:[%s12697_s11 + $0x2b0] sm:$0xff] }
 0x656   :  { %3763 = vmatpush.msrb.mxu0 %v3230_v11  ;;  %v3202_v11 = vld [vmem:[%s12697_s11 + $0x380] sm:$0xff] }
 0x657   :  { %3018 = vmatmul.f32.gmra.mxu2 %v9420_v38  ;;  %3077 = vmatmul.f32.gmra.mxu3 %v9358_v19  ;;  %v3189_v19 = vld [vmem:[%s12697_s11 + $0x318] sm:$0xff] }
 0x658   :  { %v9697_v50 = vpop.f32.mrf.mxu1  ;;  %3386 = vmatpush.msrb.mxu2 %v3189_v19  ;;  %3764 = vmatpush.msrb.mxu0 %v3227_v2  ;;  %v3137_v19 = vld [vmem:[%s12697_s11 + $0x178] sm:$0xff] }
 0x659   :  { %3297 = vmatmul.f32.gmra.mxu0 %v9697_v50  ;;  %v3173_v2 = vld [vmem:[%s12697_s11 + $0x298] sm:$0xff]  ;;  %3577 = vmatpush.msra.mxu1 %v3202_v11  ;;  %v3164_v11 = vld [vmem:[%s12697_s11 + $0x250] sm:$0xff] }
 0x65a   :  { %3387 = vmatpush.msrb.mxu2 %v3186_v27  ;;  %3765 = vmatpush.msrb.mxu0 %v3224_v41  ;;  %v3179_v27 = vld [vmem:[%s12697_s11 + $0x2c8] sm:$0xff]  ;;  %v3212_v41 = vld [vmem:[%s12697_s11 + $0x3d0] sm:$0xff] }
 0x65b   :  { %3699 = vmatpush.msra.mxu3 %v3179_v27  ;;  %3578 = vmatpush.msra.mxu1 %v3199_v20  ;;  %v3125_v27 = vld [vmem:[%s12697_s11 + $0x118] sm:$0xff]  ;;  %v3190_v20 = vld [vmem:[%s12697_s11 + $0x320] sm:$0xff] }
 0x65c   :  { %3766 = vmatpush.msrb.mxu0 %v3221_v5  ;;  %3632 = vmatpush.msra.mxu2 %v3137_v19  ;;  %v3170_v5 = vld [vmem:[%s12697_s11 + $0x280] sm:$0xff]  ;;  %v3196_v19 = vld [vmem:[%s12697_s11 + $0x350] sm:$0xff] }
 0x65d   :  { %3700 = vmatpush.msra.mxu3 %v3176_v45  ;;  %v3193_v45 = vld [vmem:[%s12697_s11 + $0x338] sm:$0xff]  ;;  %3579 = vmatpush.msra.mxu1 %v3196_v19  ;;  %v3187_v19 = vld [vmem:[%s12697_s11 + $0x308] sm:$0xff] }
 0x65e   :  { %3767 = vmatpush.msrb.mxu0 %v3218_v36  ;;  %3633 = vmatpush.msra.mxu2 %v3134_v59  ;;  %v3206_v59 = vld [vmem:[%s12697_s11 + $0x3a0] sm:$0xff] }
 0x65f   :  { %3021 = vmatmul.f32.gmra.mxu2 %v9441_v28  ;;  %3080 = vmatmul.f32.gmra.mxu3 %v9395_v54 }
 0x660   :  { %v9711_v43 = vpop.f32.mrf.mxu1  ;;  %3768 = vmatpush.msrb.mxu0 %v3215_v22  ;;  %3634 = vmatpush.msra.mxu2 %v3131_v60  ;;  %v3122_v22 = vld [vmem:[%s12697_s11 + $0x100] sm:$0xff] }
 0x661   :  { %3300 = vmatmul.f32.gmra.mxu0 %v9711_v43  ;;  %3701 = vmatpush.msra.mxu3 %v3173_v2 }
 0x662   :  { %3769 = vmatpush.msrb.mxu0 %v3212_v41  ;;  %3635 = vmatpush.msra.mxu2 %v3128_v61  ;;  %v3203_v41 = vld [vmem:[%s12697_s11 + $0x388] sm:$0xff] }
 0x663   :  { %3702 = vmatpush.msra.mxu3 %v3170_v5  ;;  %3580 = vmatpush.msra.mxu1 %v3193_v45  ;;  %v3119_v61 = vld [vmem:[%s12697_s11 + $0xe8] sm:$0xff]  ;;  %v3161_v5 = vld [vmem:[%s12697_s11 + $0x238] sm:$0xff] }
 0x664   :  { %3770 = vmatpush.msrb.mxu0 %v3209_v4  ;;  %3636 = vmatpush.msra.mxu2 %v3125_v27  ;;  %v3200_v4 = vld [vmem:[%s12697_s11 + $0x370] sm:$0xff]  ;;  %v3197_v45 = vld [vmem:[%s12697_s11 + $0x358] sm:$0xff] }
 0x665   :  { %3703 = vmatpush.msra.mxu3 %v3167_v42  ;;  %3581 = vmatpush.msra.mxu1 %v3190_v20  ;;  %v3116_v27 = vld [vmem:[%s12697_s11 + $0xd0] sm:$0xff] }
 0x666   :  { %3771 = vmatpush.msrb.mxu0 %v3206_v59  ;;  %3637 = vmatpush.msra.mxu2 %v3122_v22  ;;  %v3158_v59 = vld [vmem:[%s12697_s11 + $0x220] sm:$0xff]  ;;  %v3113_v22 = vld [vmem:[%s12697_s11 + $0xb8] sm:$0xff] }
 0x667   :  { %3083 = vmatmul.f32.gmra.mxu3 %v9420_v38  ;;  %3582 = vmatpush.msra.mxu1 %v3187_v19  ;;  %v3191_v19 = vld [vmem:[%s12697_s11 + $0x328] sm:$0xff] }
 0x668   :  { %v9715_v18 = vpop.f32.mrf.mxu1  ;;  %3704 = vmatpush.msra.mxu3 %v3164_v11  ;;  %3772 = vmatpush.msrb.mxu0 %v3203_v41  ;;  %v3155_v11 = vld [vmem:[%s12697_s11 + $0x208] sm:$0xff]  ;;  %v3194_v41 = vld [vmem:[%s12697_s11 + $0x340] sm:$0xff] }
 0x669   :  { %3303 = vmatmul.f32.gmra.mxu0 %v9715_v18  ;;  %3638 = vmatpush.msra.mxu2 %v3119_v61 }
 0x66a   :  { %v9718_v25 = vpop.f32.mrf.mxu2  ;;  %3705 = vmatpush.msra.mxu3 %v3161_v5  ;;  %3773 = vmatpush.msrb.mxu0 %v3200_v4  ;;  %v3110_v5 = vld [vmem:[%s12697_s11 + $0xa0] sm:$0xff]  ;;  %v3152_v4 = vld [vmem:[%s12697_s11 + $0x1f0] sm:$0xff] }
 0x66b   :  { %3323 = vmatmul.f32.vlgmr.msrb.gmra.mxu1 %v9718_v25  ;;  %3639 = vmatpush.msra.mxu2 %v3116_v27  ;;  %v3107_v27 = vld [vmem:[%s12697_s11 + $0x88] sm:$0xff] }
 0x66c   :  { %3706 = vmatpush.msra.mxu3 %v3158_v59  ;;  %3774 = vmatpush.msrb.mxu0 %v3197_v45  ;;  %v3149_v59 = vld [vmem:[%s12697_s11 + $0x1d8] sm:$0xff]  ;;  %v3188_v45 = vld [vmem:[%s12697_s11 + $0x310] sm:$0xff] }
 0x66d   :  { %3640 = vmatpush.msra.mxu2 %v3113_v22 }
 0x66e   :  { %v9721_v12 = vpop.f32.mrf.mxu0  ;;  %3707 = vmatpush.msra.mxu3 %v3155_v11  ;;  %3775 = vmatpush.msrb.mxu0 %v3194_v41  ;;  %v3104_v11 = vld [vmem:[%s12697_s11 + $0x70] sm:$0xff]  ;;  %v3146_v41 = vld [vmem:[%s12697_s11 + $0x1c0] sm:$0xff] }
 0x66f   :  { %3086 = vmatmul.f32.gmra.mxu3 %v9441_v28  ;;  %3641 = vmatpush.msra.mxu2 %v3110_v5  ;;  %v3101_v5 = vld [vmem:[%s12697_s11 + $0x58] sm:$0xff] }
 0x670   :  { %3708 = vmatpush.msra.mxu3 %v3152_v4  ;;  %3776 = vmatpush.msrb.mxu0 %v3191_v19  ;;  %v3143_v4 = vld [vmem:[%s12697_s11 + $0x1a8] sm:$0xff] }
 0x671   :  { %3518 = vmatmul.f32.vlgmr.msra.gmra.mxu0 %v9718_v25  ;;  %3642 = vmatpush.msra.mxu2 %v3107_v27 }
 0x672   :  { %v9725_v54 = vpop.f32.mrf.mxu2  ;;  %3709 = vmatpush.msra.mxu3 %v3149_v59  ;;  %3777 = vmatpush.msrb.mxu0 %v3188_v45  ;;  %v3098_v59 = vld [vmem:[%s12697_s11 + $0x40] sm:$0xff]  ;;  %v3140_v45 = vld [vmem:[%s12697_s11 + $0x190] sm:$0xff] }
 0x673   :  { %3326 = vmatmul.f32.gmra.mxu1 %v9725_v54  ;;  %3643 = vmatpush.msra.mxu2 %v3104_v11  ;;  %v3095_v11 = vld [vmem:[%s12697_s11 + $0x28] sm:$0xff] }
 0x674   :  { %3710 = vmatpush.msra.mxu3 %v3146_v41  ;;  %v3092_v41 = vld [vmem:[%s12697_s11 + $0x10] sm:$0xff] }
 0x675   :  { %3644 = vmatpush.msra.mxu2 %v3101_v5 }
 0x676   :  { %v9728_v48 = vpop.f32.mrf.mxu0  ;;  %3711 = vmatpush.msra.mxu3 %v3143_v4 }
 0x677   :  { %3453 = vmatmul.f32.vlgmr.msrb.gmra.mxu3 %v9448_v47  ;;  %3645 = vmatpush.msra.mxu2 %v3098_v59 }
 0x678   :  { %3712 = vmatpush.msra.mxu3 %v3140_v45 }
 0x679   :  { %3521 = vmatmul.f32.gmra.mxu0 %v9725_v54  ;;  %3646 = vmatpush.msra.mxu2 %v3095_v11 }
 0x67a   :  { %v9732_v38 = vpop.f32.mrf.mxu2  ;;  %v9734_v39 = vpop.f32.mrf.mxu3 }
 0x67b   :  { %3329 = vmatmul.f32.gmra.mxu1 %v9732_v38  ;;  %3388 = vmatmul.f32.vlgmr.msrb.gmra.mxu2 %v9734_v39 }
 0x67c   :  { %3647 = vmatpush.msra.mxu2 %v3092_v41 }
 0x67e   :  { %v9738_v28 = vpop.f32.mrf.mxu0 }
 0x67f   :  { %3456 = vmatmul.f32.gmra.mxu3 %v9454_v8 }
 0x681   :  { %3524 = vmatmul.f32.gmra.mxu0 %v9732_v38 }
 0x682   :  { %v9742_v31 = vpop.f32.mrf.mxu2  ;;  %v9744_v62 = vpop.f32.mrf.mxu3 }
 0x683   :  { %3332 = vmatmul.f32.gmra.mxu1 %v9742_v31  ;;  %3391 = vmatmul.f32.gmra.mxu2 %v9744_v62 }
 0x686   :  { %v9748_v14 = vpop.f32.mrf.mxu0 }
 0x687   :  { %3459 = vmatmul.f32.gmra.mxu3 %v9459_v56 }
 0x689   :  { %3527 = vmatmul.f32.gmra.mxu0 %v9742_v31 }
 0x68a   :  { %v9752_v51 = vpop.f32.mrf.mxu2  ;;  %v9754_v30 = vpop.f32.mrf.mxu3 }
 0x68b   :  { %3335 = vmatmul.f32.gmra.mxu1 %v9752_v51  ;;  %3394 = vmatmul.f32.gmra.mxu2 %v9754_v30 }
 0x68e   :  { %v9758_v0 = vpop.f32.mrf.mxu0 }
 0x68f   :  { %13029 = vst [vmem:[#allocation30_spill] sm:$0xff] %v9758_v0  ;;  %3462 = vmatmul.f32.gmra.mxu3 %v9464_v21 }
 0x691   :  { %3530 = vmatmul.f32.gmra.mxu0 %v9752_v51 }
 0x692   :  { %v9762_v26 = vpop.f32.mrf.mxu2  ;;  %v9764_v52 = vpop.f32.mrf.mxu3 }
 0x693   :  { %3338 = vmatmul.f32.gmra.mxu1 %v9762_v26  ;;  %3397 = vmatmul.f32.gmra.mxu2 %v9764_v52 }
 0x696   :  { %v9768_v9 = vpop.f32.mrf.mxu0 }
 0x697   :  { %13030 = vst [vmem:[#allocation35_spill] sm:$0xff] %v9768_v9  ;;  %3465 = vmatmul.f32.gmra.mxu3 %v9469_v53 }
 0x699   :  { %3533 = vmatmul.f32.gmra.mxu0 %v9762_v26 }
 0x69a   :  { %v9772_v29 = vpop.f32.mrf.mxu2  ;;  %v9774_v49 = vpop.f32.mrf.mxu3 }
 0x69b   :  { %3341 = vmatmul.f32.gmra.mxu1 %v9772_v29  ;;  %3400 = vmatmul.f32.gmra.mxu2 %v9774_v49 }
 0x69e   :  { %v9778_v35 = vpop.f32.mrf.mxu0 }
 0x69f   :  { %13031 = vst [vmem:[#allocation28_spill] sm:$0xff] %v9778_v35  ;;  %3468 = vmatmul.f32.gmra.mxu3 %v9474_v58 }
 0x6a1   :  { %3536 = vmatmul.f32.gmra.mxu0 %v9772_v29 }
 0x6a2   :  { %v9782_v7 = vpop.f32.mrf.mxu2  ;;  %v9784_v10 = vpop.f32.mrf.mxu3 }
 0x6a3   :  { %3344 = vmatmul.f32.gmra.mxu1 %v9782_v7  ;;  %3403 = vmatmul.f32.gmra.mxu2 %v9784_v10 }
 0x6a6   :  { %v9788_v13 = vpop.f32.mrf.mxu0 }
 0x6a7   :  { %13032 = vst [vmem:[#allocation34_spill] sm:$0xff] %v9788_v13  ;;  %3471 = vmatmul.f32.gmra.mxu3 %v9479_v16 }
 0x6a9   :  { %3539 = vmatmul.f32.gmra.mxu0 %v9782_v7 }
 0x6aa   :  { %v9792_v15 = vpop.f32.mrf.mxu2  ;;  %v9794_v37 = vpop.f32.mrf.mxu3 }
 0x6ab   :  { %3347 = vmatmul.f32.gmra.mxu1 %v9792_v15  ;;  %3406 = vmatmul.f32.gmra.mxu2 %v9794_v37 }
 0x6ae   :  { %v9801_v57 = vpop.f32.mrf.mxu0 }
 0x6af   :  { %13033 = vst [vmem:[#allocation18_spill] sm:$0xff] %v9801_v57  ;;  %3474 = vmatmul.f32.gmra.mxu3 %v9484_v3 }
 0x6b1   :  { %3542 = vmatmul.f32.gmra.mxu0 %v9792_v15 }
 0x6b2   :  { %v9811_v46 = vpop.f32.mrf.mxu2  ;;  %v9813_v23 = vpop.f32.mrf.mxu3 }
 0x6b3   :  { %3350 = vmatmul.f32.gmra.mxu1 %v9811_v46  ;;  %3409 = vmatmul.f32.gmra.mxu2 %v9813_v23 }
 0x6b6   :  { %v9829_v6 = vpop.f32.mrf.mxu0 }
 0x6b7   :  { %13034 = vst [vmem:[#allocation33_spill] sm:$0xff] %v9829_v6  ;;  %3477 = vmatmul.f32.gmra.mxu3 %v9495_v32 }
 0x6b9   :  { %3545 = vmatmul.f32.gmra.mxu0 %v9811_v46 }
 0x6ba   :  { %v9848_v24 = vpop.f32.mrf.mxu2  ;;  %v9850_v1 = vpop.f32.mrf.mxu3 }
 0x6bb   :  { %3353 = vmatmul.f32.gmra.mxu1 %v9848_v24  ;;  %3412 = vmatmul.f32.gmra.mxu2 %v9850_v1 }
 0x6be   :  { %v9875_v44 = vpop.f32.mrf.mxu0 }
 0x6bf   :  { %13035 = vst [vmem:[#allocation15_spill] sm:$0xff] %v9875_v44  ;;  %3480 = vmatmul.f32.gmra.mxu3 %v9521_v40 }
 0x6c1   :  { %3548 = vmatmul.f32.gmra.mxu0 %v9848_v24 }
 0x6c2   :  { %v9900_v34 = vpop.f32.mrf.mxu2  ;;  %v9902_v63 = vpop.f32.mrf.mxu3 }
 0x6c3   :  { %3356 = vmatmul.f32.gmra.mxu1 %v9900_v34  ;;  %3415 = vmatmul.f32.gmra.mxu2 %v9902_v63 }
 0x6c6   :  { %v9927_v36 = vpop.f32.mrf.mxu0 }
 0x6c7   :  { %13036 = vst [vmem:[#allocation32_spill] sm:$0xff] %v9927_v36  ;;  %3483 = vmatmul.f32.gmra.mxu3 %v9568_v33 }
 0x6c9   :  { %3551 = vmatmul.f32.gmra.mxu0 %v9900_v34 }
 0x6ca   :  { %v9946_v60 = vpop.f32.mrf.mxu2  ;;  %v9948_v2 = vpop.f32.mrf.mxu3 }
 0x6cb   :  { %3359 = vmatmul.f32.gmra.mxu1 %v9946_v60  ;;  %3418 = vmatmul.f32.gmra.mxu2 %v9948_v2 }
 0x6ce   :  { %v9973_v42 = vpop.f32.mrf.mxu0 }
 0x6cf   :  { %13037 = vst [vmem:[#allocation26_spill] sm:$0xff] %v9973_v42  ;;  %3486 = vmatmul.f32.gmra.mxu3 %v9618_v17 }
 0x6d1   :  { %3554 = vmatmul.f32.gmra.mxu0 %v9946_v60 }
 0x6d2   :  { %v9992_v20 = vpop.f32.mrf.mxu2  ;;  %v9994_v61 = vpop.f32.mrf.mxu3 }
 0x6d3   :  { %3362 = vmatmul.f32.gmra.mxu1 %v9992_v20  ;;  %3421 = vmatmul.f32.gmra.mxu2 %v9994_v61 }
 0x6d6   :  { %v10016_v22 = vpop.f32.mrf.mxu0 }
 0x6d7   :  { %13038 = vst [vmem:[#allocation31_spill] sm:$0xff] %v10016_v22  ;;  %3489 = vmatmul.f32.gmra.mxu3 %v9662_v55 }
 0x6d9   :  { %3557 = vmatmul.f32.gmra.mxu0 %v9992_v20 }
 0x6da   :  { %v10032_v19 = vpop.f32.mrf.mxu2  ;;  %v10034_v27 = vpop.f32.mrf.mxu3 }
 0x6db   :  { %3365 = vmatmul.f32.gmra.mxu1 %v10032_v19  ;;  %3424 = vmatmul.f32.gmra.mxu2 %v10034_v27 }
 0x6de   :  { %v10047_v22 = vpop.f32.mrf.mxu0 }
 0x6df   :  { %13039 = vst [vmem:[#allocation27_spill] sm:$0xff] %v10047_v22  ;;  %3492 = vmatmul.f32.gmra.mxu3 %v9697_v50  ;;  %v10081_v22 = vld [vmem:[%s12698_s12] sm:$0x7] }
 0x6e0   :  { %v10085_v44 = vperm.slane %v10081_v22, 1 }
 0x6e1   :  { %3560 = vmatmul.f32.gmra.mxu0 %v10032_v19 }
 0x6e2   :  { %v10054_v42 = vpop.f32.mrf.mxu2  ;;  %v10056_v5 = vpop.f32.mrf.mxu3 }
 0x6e3   :  { %3368 = vmatmul.f32.gmra.mxu1 %v10054_v42  ;;  %3427 = vmatmul.f32.gmra.mxu2 %v10056_v5 }
 0x6e6   :  { %v10060_v4 = vpop.f32.mrf.mxu0 }
 0x6e7   :  { %13040 = vst [vmem:[#allocation29_spill] sm:$0xff] %v10060_v4  ;;  %3495 = vmatmul.f32.gmra.mxu3 %v9711_v43 }
 0x6e8   :  { %v10063_v59 = vpop.f32.mrf.mxu1 }
 0x6e9   :  { %3563 = vmatmul.f32.gmra.mxu0 %v10054_v42 }
 0x6ea   :  { %v10066_v45 = vpop.f32.mrf.mxu3 }
 0x6eb   :  { %3430 = vmatmul.f32.gmra.mxu2 %v10066_v45  ;;  %3583 = vmatmul.f32.vlgmr.msra.gmra.mxu1 %v9734_v39 }
 0x6ee   :  { %v3519_v11 = vpop.f32.mrf.mxu0 }
 0x6ef   :  { %3498 = vmatmul.f32.gmra.mxu3 %v9715_v18 }
 0x6f0   :  { %v10071_v41 = vpop.f32.mrf.mxu1 }
 0x6f1   :  { %3778 = vmatmul.f32.vlgmr.msrb.gmra.mxu0 %v9734_v39 }
 0x6f2   :  { %v10074_v4 = vpop.f32.mrf.mxu3 }
 0x6f3   :  { %3433 = vmatmul.f32.gmra.mxu2 %v10074_v4  ;;  %3586 = vmatmul.f32.gmra.mxu1 %v9744_v62 }
 0x6f6   :  { %v3522_v36 = vpop.f32.mrf.mxu0 }
 0x6f7   :  { %3713 = vmatmul.f32.vlgmr.msra.gmra.mxu3 %v9718_v25 }
 0x6f8   :  { %v10087_v6 = vpop.f32.mrf.mxu1 }
 0x6f9   :  { %3781 = vmatmul.f32.gmra.mxu0 %v9744_v62 }
 0x6fa   :  { %v3454_v39 = vpop.f32.mrf.mxu3 }
 0x6fb   :  { %v3455_v57 = vadd.f32 %v3454_v39, %v10085_v44  ;;  %3589 = vmatmul.f32.gmra.mxu1 %v9754_v30  ;;  %3648 = vmatmul.f32.vlgmr.msra.gmra.mxu2 %v9448_v47 }
 0x6fd   :  { %v10093_v13 = vadd.f32 %v3519_v11, %v3455_v57 }
 0x6fe   :  { %v10095_v35 = vpop.f32.mrf.mxu2  ;;  %v3525_v9 = vpop.f32.mrf.mxu0 }
 0x6ff   :  { %3716 = vmatmul.f32.gmra.mxu3 %v9725_v54 }
 0x700   :  { %v10098_v25 = vpop.f32.mrf.mxu1 }
 0x701   :  { %3784 = vmatmul.f32.gmra.mxu0 %v9754_v30 }
 0x702   :  { %v3457_v0 = vpop.f32.mrf.mxu3 }
 0x703   :  { %v3458_v62 = vadd.f32 %v3457_v0, %v10085_v44  ;;  %3592 = vmatmul.f32.gmra.mxu1 %v9764_v52  ;;  %3651 = vmatmul.f32.gmra.mxu2 %v9454_v8 }
 0x705   :  { %v10104_v39 = vadd.f32 %v3522_v36, %v3458_v62 }
 0x706   :  { %v10106_v47 = vpop.f32.mrf.mxu2  ;;  %v3528_v57 = vpop.f32.mrf.mxu0 }
 0x707   :  { %3719 = vmatmul.f32.gmra.mxu3 %v9732_v38 }
 0x708   :  { %v10109_v11 = vpop.f32.mrf.mxu1 }
 0x709   :  { %3787 = vmatmul.f32.gmra.mxu0 %v9764_v52 }
 0x70a   :  { %v3460_v54 = vpop.f32.mrf.mxu3 }
 0x70b   :  { %v3461_v30 = vadd.f32 %v3460_v54, %v10085_v44  ;;  %3595 = vmatmul.f32.gmra.mxu1 %v9774_v49  ;;  %3654 = vmatmul.f32.gmra.mxu2 %v9459_v56 }
 0x70d   :  { %v10115_v0 = vadd.f32 %v3525_v9, %v3461_v30 }
 0x70e   :  { %v10117_v8 = vpop.f32.mrf.mxu2  ;;  %v3531_v36 = vpop.f32.mrf.mxu0 }
 0x70f   :  { %3722 = vmatmul.f32.gmra.mxu3 %v9742_v31 }
 0x710   :  { %v10120_v62 = vpop.f32.mrf.mxu1 }
 0x711   :  { %3790 = vmatmul.f32.gmra.mxu0 %v9774_v49 }
 0x712   :  { %v3463_v38 = vpop.f32.mrf.mxu3 }
 0x713   :  { %v3464_v52 = vadd.f32 %v3463_v38, %v10085_v44  ;;  %3598 = vmatmul.f32.gmra.mxu1 %v9784_v10  ;;  %3657 = vmatmul.f32.gmra.mxu2 %v9464_v21 }
 0x715   :  { %v10126_v54 = vadd.f32 %v3528_v57, %v3464_v52 }
 0x716   :  { %v10128_v56 = vpop.f32.mrf.mxu2  ;;  %v3534_v9 = vpop.f32.mrf.mxu0 }
 0x717   :  { %3725 = vmatmul.f32.gmra.mxu3 %v9752_v51 }
 0x718   :  { %v10131_v30 = vpop.f32.mrf.mxu1 }
 0x719   :  { %3793 = vmatmul.f32.gmra.mxu0 %v9784_v10 }
 0x71a   :  { %v3466_v31 = vpop.f32.mrf.mxu3 }
 0x71b   :  { %v3467_v49 = vadd.f32 %v3466_v31, %v10085_v44  ;;  %3601 = vmatmul.f32.gmra.mxu1 %v9794_v37  ;;  %3660 = vmatmul.f32.gmra.mxu2 %v9469_v53 }
 0x71d   :  { %v10137_v38 = vadd.f32 %v3531_v36, %v3467_v49 }
 0x71e   :  { %v10139_v21 = vpop.f32.mrf.mxu2  ;;  %v3537_v57 = vpop.f32.mrf.mxu0 }
 0x71f   :  { %3728 = vmatmul.f32.gmra.mxu3 %v9762_v26 }
 0x720   :  { %v10142_v52 = vpop.f32.mrf.mxu1 }
 0x721   :  { %3796 = vmatmul.f32.gmra.mxu0 %v9794_v37 }
 0x722   :  { %v3469_v51 = vpop.f32.mrf.mxu3 }
 0x723   :  { %v3470_v10 = vadd.f32 %v3469_v51, %v10085_v44  ;;  %3604 = vmatmul.f32.gmra.mxu1 %v9813_v23  ;;  %3663 = vmatmul.f32.gmra.mxu2 %v9474_v58  ;;  %v3920_v58 = vld [vmem:[%s12699_s13 + $0x168] sm:$0xff] }
 0x724   :  { %4027 = vmatpush.msrb.mxu1 %v3920_v58  ;;  %v3918_v58 = vld [vmem:[%s12699_s13 + $0x158] sm:$0xff] }
 0x725   :  { %v10148_v31 = vadd.f32 %v3534_v9, %v3470_v10 }
 0x726   :  { %v10150_v53 = vpop.f32.mrf.mxu2  ;;  %v3540_v36 = vpop.f32.mrf.mxu0 }
 0x727   :  { %3731 = vmatmul.f32.gmra.mxu3 %v9772_v29 }
 0x728   :  { %v10153_v49 = vpop.f32.mrf.mxu1 }
 0x729   :  { %3799 = vmatmul.f32.gmra.mxu0 %v9813_v23  ;;  %v3917_v23 = vld [vmem:[%s12699_s13 + $0x150] sm:$0xff] }
 0x72a   :  { %v3472_v26 = vpop.f32.mrf.mxu3  ;;  %4028 = vmatpush.msrb.mxu1 %v3917_v23 }
 0x72b   :  { %v3473_v37 = vadd.f32 %v3472_v26, %v10085_v44  ;;  %3607 = vmatmul.f32.gmra.mxu1 %v9850_v1  ;;  %3666 = vmatmul.f32.gmra.mxu2 %v9479_v16  ;;  %v3914_v16 = vld [vmem:[%s12699_s13 + $0x138] sm:$0xff]  ;;  %v3911_v26 = vld [vmem:[%s12699_s13 + $0x120] sm:$0xff] }
 0x72c   :  { %4029 = vmatpush.msrb.mxu1 %v3914_v16 }
 0x72d   :  { %v10162_v9 = vadd.f32 %v3537_v57, %v3473_v37  ;;  %v3921_v37 = vld [vmem:[%s12699_s13 + $0x170] sm:$0xff] }
 0x72e   :  { %v10164_v51 = vpop.f32.mrf.mxu2  ;;  %v10166_v29 = vpop.f32.mrf.mxu0  ;;  %4030 = vmatpush.msrb.mxu1 %v3911_v26  ;;  %4222 = vmatpush.msra.mxu0 %v3921_v37  ;;  %v3912_v37 = vld [vmem:[%s12699_s13 + $0x128] sm:$0xff] }
 0x72f   :  { %13041 = vst [vmem:[#allocation4_spill] sm:$0xff] %v10166_v29  ;;  %3734 = vmatmul.f32.gmra.mxu3 %v9782_v7 }
 0x730   :  { %v10172_v10 = vpop.f32.mrf.mxu1  ;;  %4223 = vmatpush.msra.mxu0 %v3918_v58  ;;  %v3968_v58 = vld [vmem:[%s12699_s13 + $0x2e8] sm:$0xff] }
 0x731   :  { %3802 = vmatmul.f32.gmra.mxu0 %v9850_v1  ;;  %v3908_v1 = vld [vmem:[%s12699_s13 + $0x108] sm:$0xff]  ;;  %4092 = vmatpush.msrb.mxu2 %v3968_v58  ;;  %v3962_v58 = vld [vmem:[%s12699_s13 + $0x2b8] sm:$0xff] }
 0x732   :  { %v3475_v57 = vpop.f32.mrf.mxu3  ;;  %4031 = vmatpush.msrb.mxu1 %v3908_v1  ;;  %v3909_v1 = vld [vmem:[%s12699_s13 + $0x110] sm:$0xff] }
 0x733   :  { %v3476_v7 = vadd.f32 %v3475_v57, %v10085_v44  ;;  %3610 = vmatmul.f32.gmra.mxu1 %v9902_v63  ;;  %3669 = vmatmul.f32.gmra.mxu2 %v9484_v3  ;;  %v3905_v3 = vld [vmem:[%s12699_s13 + $0xf0] sm:$0xff]  ;;  %v3915_v57 = vld [vmem:[%s12699_s13 + $0x140] sm:$0xff] }
 0x734   :  { %4032 = vmatpush.msrb.mxu1 %v3905_v3  ;;  %4224 = vmatpush.msra.mxu0 %v3915_v57  ;;  %v3906_v3 = vld [vmem:[%s12699_s13 + $0xf8] sm:$0xff] }
 0x735   :  { %v10193_v23 = vadd.f32 %v3540_v36, %v3476_v7  ;;  %v3902_v36 = vld [vmem:[%s12699_s13 + $0xd8] sm:$0xff] }
 0x736   :  { %v10195_v16 = vpop.f32.mrf.mxu2  ;;  %v10197_v29 = vpop.f32.mrf.mxu0  ;;  %4033 = vmatpush.msrb.mxu1 %v3902_v36  ;;  %4225 = vmatpush.msra.mxu0 %v3912_v37  ;;  %v3965_v37 = vld [vmem:[%s12699_s13 + $0x2d0] sm:$0xff] }
 0x737   :  { %3737 = vmatmul.f32.gmra.mxu3 %v9792_v15  ;;  %v3899_v15 = vld [vmem:[%s12699_s13 + $0xc0] sm:$0xff]  ;;  %4093 = vmatpush.msrb.mxu2 %v3965_v37 }
 0x738   :  { %v10206_v26 = vpop.f32.mrf.mxu1  ;;  %4034 = vmatpush.msrb.mxu1 %v3899_v15  ;;  %4226 = vmatpush.msra.mxu0 %v3909_v1  ;;  %v3903_v15 = vld [vmem:[%s12699_s13 + $0xe0] sm:$0xff] }
 0x739   :  { %3805 = vmatmul.f32.gmra.mxu0 %v9902_v63  ;;  %v3896_v63 = vld [vmem:[%s12699_s13 + $0xa8] sm:$0xff]  ;;  %4094 = vmatpush.msrb.mxu2 %v3962_v58  ;;  %v3959_v37 = vld [vmem:[%s12699_s13 + $0x2a0] sm:$0xff]  ;;  %v3894_v58 = vld [vmem:[%s12699_s13 + $0x98] sm:$0xff] }
 0x73a   :  { %v10215_v7 = vpop.f32.mrf.mxu3  ;;  %4035 = vmatpush.msrb.mxu1 %v3896_v63  ;;  %4227 = vmatpush.msra.mxu0 %v3906_v3  ;;  %v3890_v63 = vld [vmem:[%s12699_s13 + $0x78] sm:$0xff]  ;;  %v3900_v3 = vld [vmem:[%s12699_s13 + $0xc8] sm:$0xff] }
 0x73b   :  { %3613 = vmatmul.f32.gmra.mxu1 %v9948_v2  ;;  %3672 = vmatmul.f32.gmra.mxu2 %v9495_v32  ;;  %v3893_v32 = vld [vmem:[%s12699_s13 + $0x90] sm:$0xff] }
 0x73c   :  { %4036 = vmatpush.msrb.mxu1 %v3893_v32  ;;  %4228 = vmatpush.msra.mxu0 %v3903_v15  ;;  %v3887_v32 = vld [vmem:[%s12699_s13 + $0x60] sm:$0xff]  ;;  %v3897_v15 = vld [vmem:[%s12699_s13 + $0xb0] sm:$0xff] }
 0x73d   :  { %4095 = vmatpush.msrb.mxu2 %v3959_v37  ;;  %v3891_v37 = vld [vmem:[%s12699_s13 + $0x80] sm:$0xff] }
 0x73e   :  { %v10234_v57 = vpop.f32.mrf.mxu2  ;;  %v10236_v36 = vpop.f32.mrf.mxu0  ;;  %4037 = vmatpush.msrb.mxu1 %v3890_v63  ;;  %4229 = vmatpush.msra.mxu0 %v3900_v3  ;;  %v3956_v63 = vld [vmem:[%s12699_s13 + $0x288] sm:$0xff] }
 0x73f   :  { %13042 = vst [vmem:[#allocation22_spill] sm:$0xff] %v10236_v36  ;;  %3740 = vmatmul.f32.gmra.mxu3 %v9811_v46  ;;  %4096 = vmatpush.msrb.mxu2 %v3956_v63  ;;  %v4016_v63 = vld [vmem:[%s12699_s13 + $0x468] sm:$0xff] }
 0x740   :  { %v10248_v1 = vpop.f32.mrf.mxu1  ;;  %4038 = vmatpush.msrb.mxu1 %v3887_v32  ;;  %4230 = vmatpush.msra.mxu0 %v3897_v15  ;;  %v3953_v32 = vld [vmem:[%s12699_s13 + $0x270] sm:$0xff] }
 0x741   :  { %3808 = vmatmul.f32.gmra.mxu0 %v9948_v2  ;;  %v3884_v2 = vld [vmem:[%s12699_s13 + $0x48] sm:$0xff]  ;;  %4097 = vmatpush.msrb.mxu2 %v3953_v32  ;;  %v3875_v32 = vld [vmem:[%s12699_s13] sm:$0xff] }
 0x742   :  { %v10260_v46 = vpop.f32.mrf.mxu3  ;;  %4039 = vmatpush.msrb.mxu1 %v3884_v2  ;;  %4231 = vmatpush.msra.mxu0 %v3894_v58  ;;  %v3878_v2 = vld [vmem:[%s12699_s13 + $0x18] sm:$0xff]  ;;  %v3888_v58 = vld [vmem:[%s12699_s13 + $0x68] sm:$0xff] }
 0x743   :  { %3616 = vmatmul.f32.gmra.mxu1 %v9994_v61  ;;  %3675 = vmatmul.f32.gmra.mxu2 %v9521_v40  ;;  %v3881_v40 = vld [vmem:[%s12699_s13 + $0x30] sm:$0xff] }
 0x744   :  { %4040 = vmatpush.msrb.mxu1 %v3881_v40  ;;  %4157 = vmatpush.msrb.mxu3 %v4016_v63  ;;  %v3947_v63 = vld [vmem:[%s12699_s13 + $0x240] sm:$0xff] }
 0x745   :  { %4232 = vmatpush.msra.mxu0 %v3891_v37  ;;  %v3885_v37 = vld [vmem:[%s12699_s13 + $0x50] sm:$0xff] }
 0x746   :  { %v10282_v3 = vpop.f32.mrf.mxu2  ;;  %v10284_v36 = vpop.f32.mrf.mxu0  ;;  %4041 = vmatpush.msrb.mxu1 %v3878_v2  ;;  %v3944_v2 = vld [vmem:[%s12699_s13 + $0x228] sm:$0xff] }
 0x747   :  { %13043 = vst [vmem:[#allocation19_spill] sm:$0xff] %v10284_v36  ;;  %3743 = vmatmul.f32.gmra.mxu3 %v9848_v24  ;;  %v3950_v24 = vld [vmem:[%s12699_s13 + $0x258] sm:$0xff]  ;;  %4233 = vmatpush.msra.mxu0 %v3888_v58  ;;  %v3941_v58 = vld [vmem:[%s12699_s13 + $0x210] sm:$0xff] }
 0x748   :  { %v10296_v15 = vpop.f32.mrf.mxu1  ;;  %4098 = vmatpush.msrb.mxu2 %v3950_v24  ;;  %4042 = vmatpush.msrb.mxu1 %v3875_v32  ;;  %v3882_v24 = vld [vmem:[%s12699_s13 + $0x38] sm:$0xff] }
 0x749   :  { %13044 = vst [vmem:[#allocation20_spill] sm:$0xff] %v10296_v15  ;;  %3811 = vmatmul.f32.gmra.mxu0 %v9994_v61  ;;  %v4013_v61 = vld [vmem:[%s12699_s13 + $0x450] sm:$0xff] }
 0x74a   :  { %v10311_v40 = vpop.f32.mrf.mxu3  ;;  %4158 = vmatpush.msrb.mxu3 %v4013_v61  ;;  %4099 = vmatpush.msrb.mxu2 %v3947_v63  ;;  %v4007_v61 = vld [vmem:[%s12699_s13 + $0x420] sm:$0xff] }
 0x74b   :  { %3619 = vmatmul.f32.gmra.mxu1 %v10034_v27  ;;  %3678 = vmatmul.f32.gmra.mxu2 %v9568_v33  ;;  %v4010_v33 = vld [vmem:[%s12699_s13 + $0x438] sm:$0xff] }
 0x74c   :  { %4234 = vmatpush.msra.mxu0 %v3885_v37  ;;  %4100 = vmatpush.msrb.mxu2 %v3944_v2  ;;  %v3938_v37 = vld [vmem:[%s12699_s13 + $0x1f8] sm:$0xff]  ;;  %v3876_v2 = vld [vmem:[%s12699_s13 + $0x8] sm:$0xff] }
 0x74d   :  { %4159 = vmatpush.msrb.mxu3 %v4010_v33  ;;  %v3935_v33 = vld [vmem:[%s12699_s13 + $0x1e0] sm:$0xff] }
 0x74e   :  { %v10333_v36 = vpop.f32.mrf.mxu2  ;;  %v10335_v15 = vpop.f32.mrf.mxu0  ;;  %4235 = vmatpush.msra.mxu0 %v3882_v24  ;;  %4101 = vmatpush.msrb.mxu2 %v3941_v58  ;;  %v4001_v24 = vld [vmem:[%s12699_s13 + $0x3f0] sm:$0xff] }
 0x74f   :  { %13045 = vst [vmem:[#allocation25_spill] sm:$0xff] %v10335_v15  ;;  %3746 = vmatmul.f32.gmra.mxu3 %v9900_v34  ;;  %v3879_v34 = vld [vmem:[%s12699_s13 + $0x20] sm:$0xff] }
 0x750   :  { %v10344_v32 = vpop.f32.mrf.mxu1  ;;  %4160 = vmatpush.msrb.mxu3 %v4007_v61  ;;  %4236 = vmatpush.msra.mxu0 %v3879_v34  ;;  %v3932_v61 = vld [vmem:[%s12699_s13 + $0x1c8] sm:$0xff]  ;;  %v3998_v34 = vld [vmem:[%s12699_s13 + $0x3d8] sm:$0xff] }
 0x751   :  { %3814 = vmatmul.f32.gmra.mxu0 %v10034_v27  ;;  %v4004_v27 = vld [vmem:[%s12699_s13 + $0x408] sm:$0xff]  ;;  %4102 = vmatpush.msrb.mxu2 %v3938_v37 }
 0x752   :  { %v10353_v63 = vpop.f32.mrf.mxu3  ;;  %4161 = vmatpush.msrb.mxu3 %v4004_v27  ;;  %4237 = vmatpush.msra.mxu0 %v3876_v2  ;;  %v3929_v27 = vld [vmem:[%s12699_s13 + $0x1b0] sm:$0xff]  ;;  %v3995_v2 = vld [vmem:[%s12699_s13 + $0x3c0] sm:$0xff] }
 0x753   :  { %3622 = vmatmul.f32.gmra.mxu1 %v10056_v5  ;;  %3681 = vmatmul.f32.gmra.mxu2 %v9618_v17 }
 0x754   :  { %4103 = vmatpush.msrb.mxu2 %v3935_v33  ;;  %4162 = vmatpush.msrb.mxu3 %v4001_v24  ;;  %v3992_v33 = vld [vmem:[%s12699_s13 + $0x3a8] sm:$0xff]  ;;  %v10403_v24 = vperm.slane %v10081_v22, 0 }
 0x756   :  { %v10372_v17 = vpop.f32.mrf.mxu2  ;;  %v10374_v58 = vpop.f32.mrf.mxu0  ;;  %4104 = vmatpush.msrb.mxu2 %v3932_v61  ;;  %4163 = vmatpush.msrb.mxu3 %v3998_v34  ;;  %v3923_v61 = vld [vmem:[%s12699_s13 + $0x180] sm:$0xff]  ;;  %v3260_v15 = vadd.f32 %v9721_v12, %v10403_v24 }
 0x757   :  { %13046 = vst [vmem:[#allocation17_spill] sm:$0xff] %v10374_v58  ;;  %3749 = vmatmul.f32.gmra.mxu3 %v9946_v60 }
 0x758   :  { %v10383_v37 = vpop.f32.mrf.mxu1  ;;  %4105 = vmatpush.msrb.mxu2 %v3929_v27  ;;  %4164 = vmatpush.msrb.mxu3 %v3995_v2  ;;  %v3986_v27 = vld [vmem:[%s12699_s13 + $0x378] sm:$0xff] }
 0x759   :  { %3817 = vmatmul.f32.gmra.mxu0 %v10056_v5  ;;  %v3926_v5 = vld [vmem:[%s12699_s13 + $0x198] sm:$0xff] }
 0x75a   :  { %v10392_v60 = vpop.f32.mrf.mxu3  ;;  %4106 = vmatpush.msrb.mxu2 %v3926_v5  ;;  %4165 = vmatpush.msrb.mxu3 %v3992_v33  ;;  %v3983_v5 = vld [vmem:[%s12699_s13 + $0x360] sm:$0xff] }
 0x75b   :  { %3625 = vmatmul.f32.gmra.mxu1 %v10066_v45  ;;  %3684 = vmatmul.f32.gmra.mxu2 %v9662_v55  ;;  %v3989_v55 = vld [vmem:[%s12699_s13 + $0x390] sm:$0xff] }
 0x75c   :  { %4107 = vmatpush.msrb.mxu2 %v3923_v61  ;;  %4166 = vmatpush.msrb.mxu3 %v3989_v55  ;;  %v3980_v61 = vld [vmem:[%s12699_s13 + $0x348] sm:$0xff] }
 0x75e   :  { %v10411_v34 = vpop.f32.mrf.mxu2  ;;  %v10413_v58 = vpop.f32.mrf.mxu0  ;;  %4167 = vmatpush.msrb.mxu3 %v3986_v27 }
 0x75f   :  { %3752 = vmatmul.f32.gmra.mxu3 %v9992_v20  ;;  %v3325_v20 = vadd.f32 %v10063_v59, %v3260_v15 }
 0x760   :  { %v10419_v2 = vpop.f32.mrf.mxu1  ;;  %4168 = vmatpush.msrb.mxu3 %v3983_v5  ;;  %v3971_v5 = vld [vmem:[%s12699_s13 + $0x300] sm:$0xff] }
 0x761   :  { %3820 = vmatmul.f32.gmra.mxu0 %v10066_v45  ;;  %v3390_v12 = vadd.f32 %v10095_v35, %v3325_v20  ;;  %v3977_v45 = vld [vmem:[%s12699_s13 + $0x330] sm:$0xff]  ;;  %v3263_v35 = vadd.f32 %v9728_v48, %v10403_v24 }
 0x762   :  { %v10427_v33 = vpop.f32.mrf.mxu3  ;;  %4169 = vmatpush.msrb.mxu3 %v3980_v61 }
 0x763   :  { %3628 = vmatmul.f32.gmra.mxu1 %v10074_v4  ;;  %3687 = vmatmul.f32.gmra.mxu2 %v9697_v50  ;;  %v3974_v50 = vld [vmem:[%s12699_s13 + $0x318] sm:$0xff]  ;;  %v10449_v15 = vmax.f32 %v3390_v12, 0.0 }
 0x764   :  { %4170 = vmatpush.msrb.mxu3 %v3977_v45  ;;  %v3266_v45 = vadd.f32 %v9738_v28, %v10403_v24 }
 0x765   :  { %13048 = vst [vmem:[#allocation13_spill] sm:$0xff] %v10449_v15 }
 0x766   :  { %v10439_v55 = vpop.f32.mrf.mxu2  ;;  %v10441_v27 = vpop.f32.mrf.mxu0  ;;  %4171 = vmatpush.msrb.mxu3 %v3974_v50 }
 0x767   :  { %13047 = vst [vmem:[#allocation5_spill] sm:$0xff] %v10441_v27  ;;  %3755 = vmatmul.f32.gmra.mxu3 %v10032_v19  ;;  %v3328_v19 = vadd.f32 %v10071_v41, %v3263_v35 }
 0x768   :  { %v3584_v59 = vpop.f32.mrf.mxu1  ;;  %4172 = vmatpush.msrb.mxu3 %v3971_v5  ;;  %v3269_v5 = vadd.f32 %v9748_v14, %v10403_v24 }
 0x769   :  { %3823 = vmatmul.f32.gmra.mxu0 %v10074_v4  ;;  %v3393_v48 = vadd.f32 %v10106_v47, %v3328_v19 }
 0x76a   :  { %v10455_v20 = vpop.f32.mrf.mxu3 }
 0x76b   :  { %3690 = vmatmul.f32.gmra.mxu2 %v9711_v43  ;;  %4043 = vmatmul.f32.vlgmr.msrb.gmra.mxu1 %v10449_v15  ;;  %v10466_v27 = vmax.f32 %v3393_v48, 0.0  ;;  %v3331_v43 = vadd.f32 %v10087_v6, %v3266_v45  ;;  %v3334_v6 = vadd.f32 %v10098_v25, %v3269_v5 }
 0x76d   :  { %13049 = vst [vmem:[#allocation2_spill] sm:$0xff] %v10466_v27  ;;  %v3396_v47 = vadd.f32 %v10117_v8, %v3331_v43  ;;  %v3399_v8 = vadd.f32 %v10128_v56, %v3334_v6 }
 0x76e   :  { %v10461_v61 = vpop.f32.mrf.mxu2  ;;  %v3779_v12 = vpop.f32.mrf.mxu0 }
 0x76f   :  { %3758 = vmatmul.f32.gmra.mxu3 %v10054_v42  ;;  %v3585_v42 = vadd.f32 %v3584_v59, %v10093_v13  ;;  %v10480_v19 = vmax.f32 %v3396_v47, 0.0  ;;  %v10489_v13 = vperm.slane %v10081_v22, 2  ;;  %v10496_v25 = vmax.f32 %v3399_v8, 0.0 }
 0x770   :  { %v3587_v4 = vpop.f32.mrf.mxu1 }
 0x771   :  { %4238 = vmatmul.f32.vlgmr.msra.gmra.mxu0 %v10449_v15  ;;  %v10482_v48 = vmax.f32 %v3585_v42, 0.0  ;;  %v3588_v14 = vadd.f32 %v3587_v4, %v10104_v39  ;;  %v13050_v42 = vld [vmem:[#allocation30_spill] sm:$0xff]  ;;  %13051 = vst [vmem:[#allocation9_spill] sm:$0xff] %v10496_v25 }
 0x772   :  { %v10469_v41 = vpop.f32.mrf.mxu3 }
 0x773   :  { %3693 = vmatmul.f32.gmra.mxu2 %v9715_v18  ;;  %4046 = vmatmul.f32.gmra.mxu1 %v10466_v27  ;;  %v10498_v5 = vmax.f32 %v3588_v14, 0.0 }
 0x776   :  { %v10476_v50 = vpop.f32.mrf.mxu2  ;;  %v3782_v35 = vpop.f32.mrf.mxu0 }
 0x778   :  { %v3590_v28 = vpop.f32.mrf.mxu1 }
 0x779   :  { %4241 = vmatmul.f32.gmra.mxu0 %v10466_v27  ;;  %v3272_v27 = vadd.f32 %v13050_v42, %v10403_v24  ;;  %v3591_v4 = vadd.f32 %v3590_v28, %v10115_v0 }
 0x77a   :  { %v3714_v18 = vpop.f32.mrf.mxu3 }
 0x77b   :  { %4049 = vmatmul.f32.gmra.mxu1 %v10480_v19  ;;  %4108 = vmatmul.f32.vlgmr.msrb.gmra.mxu2 %v10482_v48  ;;  %v3337_v56 = vadd.f32 %v10109_v11, %v3272_v27  ;;  %v13052_v11 = vld [vmem:[#allocation35_spill] sm:$0xff] }
 0x77c   :  { %v3275_v27 = vadd.f32 %v13052_v11, %v10403_v24 }
 0x77d   :  { %v3402_v39 = vadd.f32 %v10139_v21, %v3337_v56 }
 0x77e   :  { %v3649_v59 = vpop.f32.mrf.mxu2  ;;  %v3785_v45 = vpop.f32.mrf.mxu0  ;;  %v3340_v21 = vadd.f32 %v10120_v62, %v3275_v27  ;;  %v13053_v62 = vld [vmem:[#allocation28_spill] sm:$0xff] }
 0x77f   :  { %v3650_v43 = vadd.f32 %v3649_v59, %v10489_v13  ;;  %v3278_v11 = vadd.f32 %v13053_v62, %v10403_v24 }
 0x780   :  { %v3593_v47 = vpop.f32.mrf.mxu1  ;;  %v3405_v56 = vadd.f32 %v10150_v53, %v3340_v21 }
 0x781   :  { %v3715_v15 = vadd.f32 %v3714_v18, %v3650_v43  ;;  %4244 = vmatmul.f32.gmra.mxu0 %v10480_v19  ;;  %v3343_v53 = vadd.f32 %v10131_v30, %v3278_v11  ;;  %v13054_v30 = vld [vmem:[#allocation34_spill] sm:$0xff] }
 0x782   :  { %v3717_v22 = vpop.f32.mrf.mxu3  ;;  %v10528_v27 = vmax.f32 %v3405_v56, 0.0 }
 0x783   :  { %v3780_v6 = vadd.f32 %v3779_v12, %v3715_v15  ;;  %4052 = vmatmul.f32.gmra.mxu1 %v10496_v25  ;;  %4111 = vmatmul.f32.gmra.mxu2 %v10498_v5  ;;  %v10512_v15 = vmax.f32 %v3402_v39, 0.0  ;;  %v10514_v12 = vmax.f32 %v3591_v4, 0.0 }
 0x785   :  { %v10506_v59 = vmax.f32 %v3780_v6, 0.0  ;;  %v3594_v6 = vadd.f32 %v3593_v47, %v10126_v54 }
 0x786   :  { %v3652_v8 = vpop.f32.mrf.mxu2  ;;  %v3788_v14 = vpop.f32.mrf.mxu0 }
 0x787   :  { %v3653_v18 = vadd.f32 %v3652_v8, %v10489_v13  ;;  %4173 = vmatmul.f32.vlgmr.msrb.gmra.mxu3 %v10506_v59 }
 0x788   :  { %v3596_v43 = vpop.f32.mrf.mxu1 }
 0x789   :  { %v3718_v42 = vadd.f32 %v3717_v22, %v3653_v18  ;;  %4247 = vmatmul.f32.gmra.mxu0 %v10496_v25  ;;  %v10530_v25 = vmax.f32 %v3594_v6, 0.0  ;;  %v3597_v21 = vadd.f32 %v3596_v43, %v10137_v38 }
 0x78a   :  { %v3720_v0 = vpop.f32.mrf.mxu3 }
 0x78b   :  { %4055 = vmatmul.f32.gmra.mxu1 %v10512_v15  ;;  %4114 = vmatmul.f32.gmra.mxu2 %v10514_v12  ;;  %v3783_v28 = vadd.f32 %v3782_v35, %v3718_v42  ;;  %v3408_v42 = vadd.f32 %v10164_v51, %v3343_v53  ;;  %v10546_v11 = vmax.f32 %v3597_v21, 0.0 }
 0x78d   :  { %v10522_v8 = vmax.f32 %v3783_v28, 0.0  ;;  %v10544_v62 = vmax.f32 %v3408_v42, 0.0 }
 0x78e   :  { %v3655_v39 = vpop.f32.mrf.mxu2  ;;  %v3791_v4 = vpop.f32.mrf.mxu0 }
 0x78f   :  { %v3656_v22 = vadd.f32 %v3655_v39, %v10489_v13  ;;  %4176 = vmatmul.f32.gmra.mxu3 %v10522_v8 }
 0x790   :  { %v3599_v18 = vpop.f32.mrf.mxu1 }
 0x791   :  { %v3721_v35 = vadd.f32 %v3720_v0, %v3656_v22  ;;  %4250 = vmatmul.f32.gmra.mxu0 %v10512_v15  ;;  %v3281_v22 = vadd.f32 %v13054_v30, %v10403_v24  ;;  %v3600_v53 = vadd.f32 %v3599_v18, %v10148_v31 }
 0x792   :  { %v3723_v54 = vpop.f32.mrf.mxu3 }
 0x793   :  { %4058 = vmatmul.f32.gmra.mxu1 %v10528_v27  ;;  %4117 = vmatmul.f32.gmra.mxu2 %v10530_v25  ;;  %v3786_v47 = vadd.f32 %v3785_v45, %v3721_v35  ;;  %v3346_v51 = vadd.f32 %v10142_v52, %v3281_v22  ;;  %v13055_v52 = vld [vmem:[#allocation18_spill] sm:$0xff]  ;;  %v10562_v22 = vmax.f32 %v3600_v53, 0.0 }
 0x795   :  { %v10538_v28 = vmax.f32 %v3786_v47, 0.0  ;;  %v3411_v35 = vadd.f32 %v10195_v16, %v3346_v51 }
 0x796   :  { %v3658_v56 = vpop.f32.mrf.mxu2  ;;  %v3794_v6 = vpop.f32.mrf.mxu0 }
 0x797   :  { %v3659_v0 = vadd.f32 %v3658_v56, %v10489_v13  ;;  %4179 = vmatmul.f32.gmra.mxu3 %v10538_v28  ;;  %v10560_v30 = vmax.f32 %v3411_v35, 0.0 }
 0x798   :  { %v3602_v39 = vpop.f32.mrf.mxu1 }
 0x799   :  { %v3724_v45 = vadd.f32 %v3723_v54, %v3659_v0  ;;  %4253 = vmatmul.f32.gmra.mxu0 %v10528_v27  ;;  %v3284_v0 = vadd.f32 %v13055_v52, %v10403_v24  ;;  %v3603_v51 = vadd.f32 %v3602_v39, %v10162_v9 }
 0x79a   :  { %v3726_v38 = vpop.f32.mrf.mxu3 }
 0x79b   :  { %4061 = vmatmul.f32.gmra.mxu1 %v10544_v62  ;;  %4120 = vmatmul.f32.gmra.mxu2 %v10546_v11  ;;  %v3789_v43 = vadd.f32 %v3788_v14, %v3724_v45  ;;  %v3349_v16 = vadd.f32 %v10153_v49, %v3284_v0  ;;  %v10578_v52 = vmax.f32 %v3603_v51, 0.0  ;;  %v3479_v51 = vadd.f32 %v10215_v7, %v10085_v44 }
 0x79d   :  { %v10554_v47 = vmax.f32 %v3789_v43, 0.0  ;;  %v3414_v45 = vadd.f32 %v10234_v57, %v3349_v16 }
 0x79e   :  { %v3661_v42 = vpop.f32.mrf.mxu2  ;;  %v3797_v54 = vpop.f32.mrf.mxu0 }
 0x79f   :  { %v3662_v21 = vadd.f32 %v3661_v42, %v10489_v13  ;;  %4182 = vmatmul.f32.gmra.mxu3 %v10554_v47  ;;  %v13056_v42 = vld [vmem:[#allocation33_spill] sm:$0xff] }
 0x7a0   :  { %v3605_v56 = vpop.f32.mrf.mxu1  ;;  %v3287_v49 = vadd.f32 %v13056_v42, %v10403_v24 }
 0x7a1   :  { %v3727_v14 = vadd.f32 %v3726_v38, %v3662_v21  ;;  %4256 = vmatmul.f32.gmra.mxu0 %v10544_v62  ;;  %v10576_v21 = vmax.f32 %v3414_v45, 0.0 }
 0x7a2   :  { %v3729_v31 = vpop.f32.mrf.mxu3  ;;  %v3352_v39 = vadd.f32 %v10172_v10, %v3287_v49  ;;  %v3966_v10 = vld [vmem:[%s12699_s13 + $0x2d8] sm:$0xff] }
 0x7a3   :  { %4064 = vmatmul.f32.gmra.mxu1 %v10560_v30  ;;  %4123 = vmatmul.f32.gmra.mxu2 %v10562_v22  ;;  %v3792_v18 = vadd.f32 %v3791_v4, %v3727_v14  ;;  %v3969_v14 = vld [vmem:[%s12699_s13 + $0x2f0] sm:$0xff] }
 0x7a4   :  { %4287 = vmatpush.msra.mxu1 %v3969_v14  ;;  %v3417_v16 = vadd.f32 %v10282_v3, %v3352_v39  ;;  %v13057_v3 = vld [vmem:[#allocation15_spill] sm:$0xff]  ;;  %v3970_v39 = vld [vmem:[%s12699_s13 + $0x2f8] sm:$0xff]  ;;  %v13058_v14 = vld [vmem:[#allocation4_spill] sm:$0xff] }
 0x7a5   :  { %v10570_v43 = vmax.f32 %v3792_v18, 0.0  ;;  %4482 = vmatpush.msrb.mxu0 %v3970_v39  ;;  %v13059_v39 = vld [vmem:[#allocation32_spill] sm:$0xff] }
 0x7a6   :  { %v3664_v35 = vpop.f32.mrf.mxu2  ;;  %v10581_v57 = vpop.f32.mrf.mxu0  ;;  %4288 = vmatpush.msra.mxu1 %v3966_v10 }
 0x7a7   :  { %v3665_v53 = vadd.f32 %v3664_v35, %v10489_v13  ;;  %4185 = vmatmul.f32.gmra.mxu3 %v10570_v43 }
 0x7a8   :  { %v3608_v38 = vpop.f32.mrf.mxu1 }
 0x7a9   :  { %v3730_v4 = vadd.f32 %v3729_v31, %v3665_v53  ;;  %4259 = vmatmul.f32.gmra.mxu0 %v10560_v30  ;;  %v3606_v31 = vadd.f32 %v3605_v56, %v10193_v23  ;;  %v3963_v23 = vld [vmem:[%s12699_s13 + $0x2c0] sm:$0xff]  ;;  %v3290_v56 = vadd.f32 %v13057_v3, %v10403_v24  ;;  %v10605_v53 = vmax.f32 %v3417_v16, 0.0  ;;  %v3964_v3 = vld [vmem:[%s12699_s13 + $0x2c8] sm:$0xff] }
 0x7aa   :  { %v3732_v9 = vpop.f32.mrf.mxu3  ;;  %4289 = vmatpush.msra.mxu1 %v3963_v23  ;;  %v3544_v16 = vadd.f32 %v13058_v14, %v3479_v51 }
 0x7ab   :  { %4067 = vmatmul.f32.gmra.mxu1 %v10576_v21  ;;  %4126 = vmatmul.f32.gmra.mxu2 %v10578_v52  ;;  %v3795_v0 = vadd.f32 %v3794_v6, %v3730_v4  ;;  %v10607_v42 = vmax.f32 %v3606_v31, 0.0  ;;  %v3960_v4 = vld [vmem:[%s12699_s13 + $0x2a8] sm:$0xff]  ;;  %v3957_v31 = vld [vmem:[%s12699_s13 + $0x290] sm:$0xff] }
 0x7ac   :  { %4290 = vmatpush.msra.mxu1 %v3960_v4  ;;  %v3609_v51 = vadd.f32 %v3608_v38, %v3544_v16  ;;  %v3951_v38 = vld [vmem:[%s12699_s13 + $0x260] sm:$0xff]  ;;  %v3961_v4 = vld [vmem:[%s12699_s13 + $0x2b0] sm:$0xff] }
 0x7ad   :  { %v10591_v18 = vmax.f32 %v3795_v0, 0.0  ;;  %v3355_v0 = vadd.f32 %v10206_v26, %v3290_v56  ;;  %v3482_v56 = vadd.f32 %v10260_v46, %v10085_v44 }
 0x7ae   :  { %v3667_v45 = vpop.f32.mrf.mxu2  ;;  %v10626_v10 = vpop.f32.mrf.mxu0  ;;  %4291 = vmatpush.msra.mxu1 %v3957_v31  ;;  %v10653_v14 = vmax.f32 %v3609_v51, 0.0  ;;  %v3948_v31 = vld [vmem:[%s12699_s13 + $0x248] sm:$0xff]  ;;  %v3945_v51 = vld [vmem:[%s12699_s13 + $0x230] sm:$0xff] }
 0x7af   :  { %v3668_v6 = vadd.f32 %v3667_v45, %v10489_v13  ;;  %4188 = vmatmul.f32.gmra.mxu3 %v10591_v18  ;;  %v3967_v45 = vld [vmem:[%s12699_s13 + $0x2e0] sm:$0xff]  ;;  %v3420_v26 = vadd.f32 %v10333_v36, %v3355_v0  ;;  %v3293_v0 = vadd.f32 %v13059_v39, %v10403_v24 }
 0x7b0   :  { %v3611_v35 = vpop.f32.mrf.mxu1  ;;  %4483 = vmatpush.msrb.mxu0 %v3967_v45  ;;  %v3958_v45 = vld [vmem:[%s12699_s13 + $0x298] sm:$0xff] }
 0x7b1   :  { %v3733_v49 = vadd.f32 %v3732_v9, %v3668_v6  ;;  %4262 = vmatmul.f32.gmra.mxu0 %v10576_v21  ;;  %v10651_v46 = vmax.f32 %v3420_v26, 0.0  ;;  %v3547_v26 = vadd.f32 %v10197_v29, %v3482_v56 }
 0x7b2   :  { %v3735_v7 = vpop.f32.mrf.mxu3  ;;  %4484 = vmatpush.msrb.mxu0 %v3964_v3 }
 0x7b3   :  { %4070 = vmatmul.f32.gmra.mxu1 %v10605_v53  ;;  %4129 = vmatmul.f32.gmra.mxu2 %v10607_v42  ;;  %v3798_v9 = vadd.f32 %v3797_v54, %v3733_v49  ;;  %v3954_v54 = vld [vmem:[%s12699_s13 + $0x278] sm:$0xff]  ;;  %v3612_v3 = vadd.f32 %v3611_v35, %v3547_v26  ;;  %v3485_v35 = vadd.f32 %v10311_v40, %v10085_v44  ;;  %v3949_v40 = vld [vmem:[%s12699_s13 + $0x250] sm:$0xff] }
 0x7b4   :  { %4292 = vmatpush.msra.mxu1 %v3954_v54  ;;  %4485 = vmatpush.msrb.mxu0 %v3961_v4  ;;  %v4017_v54 = vld [vmem:[%s12699_s13 + $0x470] sm:$0xff]  ;;  %v4014_v4 = vld [vmem:[%s12699_s13 + $0x458] sm:$0xff] }
 0x7b5   :  { %v10629_v6 = vmax.f32 %v3798_v9, 0.0  ;;  %4352 = vmatpush.msra.mxu2 %v4017_v54 }
 0x7b6   :  { %v3670_v23 = vpop.f32.mrf.mxu2  ;;  %4293 = vmatpush.msra.mxu1 %v3951_v38  ;;  %4486 = vmatpush.msrb.mxu0 %v3958_v45  ;;  %v3942_v38 = vld [vmem:[%s12699_s13 + $0x218] sm:$0xff]  ;;  %v13060_v45 = vld [vmem:[#allocation26_spill] sm:$0xff] }
 0x7b7   :  { %v3671_v49 = vadd.f32 %v3670_v23, %v10489_v13  ;;  %4191 = vmatmul.f32.gmra.mxu3 %v10629_v6  ;;  %v3358_v23 = vadd.f32 %v10248_v1, %v3293_v0  ;;  %v3955_v1 = vld [vmem:[%s12699_s13 + $0x280] sm:$0xff]  ;;  %4353 = vmatpush.msra.mxu2 %v4014_v4 }
 0x7b8   :  { %v10641_v36 = vpop.f32.mrf.mxu1  ;;  %4294 = vmatpush.msra.mxu1 %v3948_v31  ;;  %4487 = vmatpush.msrb.mxu0 %v3955_v1  ;;  %v4011_v31 = vld [vmem:[%s12699_s13 + $0x440] sm:$0xff]  ;;  %v3936_v1 = vld [vmem:[%s12699_s13 + $0x1e8] sm:$0xff] }
 0x7b9   :  { %v3736_v16 = vadd.f32 %v3735_v7, %v3671_v49  ;;  %4265 = vmatmul.f32.gmra.mxu0 %v10605_v53  ;;  %v3423_v29 = vadd.f32 %v10372_v17, %v3358_v23  ;;  %v3952_v17 = vld [vmem:[%s12699_s13 + $0x268] sm:$0xff]  ;;  %v3296_v23 = vadd.f32 %v13060_v45, %v10403_v24  ;;  %4354 = vmatpush.msra.mxu2 %v4011_v31 }
 0x7ba   :  { %v3738_v9 = vpop.f32.mrf.mxu3  ;;  %4295 = vmatpush.msra.mxu1 %v3945_v51  ;;  %4488 = vmatpush.msrb.mxu0 %v3952_v17 }
 0x7bb   :  { %4073 = vmatmul.f32.gmra.mxu1 %v10651_v46  ;;  %4132 = vmatmul.f32.gmra.mxu2 %v10653_v14  ;;  %v3801_v7 = vadd.f32 %v10581_v57, %v3736_v16  ;;  %v10679_v57 = vpop.f32.mrf.mxu0  ;;  %v3939_v16 = vld [vmem:[%s12699_s13 + $0x200] sm:$0xff]  ;;  %v10707_v26 = vmax.f32 %v3423_v29, 0.0  ;;  %v3946_v29 = vld [vmem:[%s12699_s13 + $0x238] sm:$0xff] }
 0x7bc   :  { %4296 = vmatpush.msra.mxu1 %v3942_v38  ;;  %4489 = vmatpush.msrb.mxu0 %v3949_v40  ;;  %v13062_v38 = vld [vmem:[#allocation22_spill] sm:$0xff] }
 0x7bd   :  { %v10677_v56 = vmax.f32 %v3801_v7, 0.0  ;;  %v10709_v7 = vmax.f32 %v3612_v3, 0.0  ;;  %v13061_v3 = vld [vmem:[#allocation20_spill] sm:$0xff]  ;;  %v3550_v4 = vadd.f32 %v13062_v38, %v3485_v35  ;;  %v3943_v35 = vld [vmem:[%s12699_s13 + $0x220] sm:$0xff] }
 0x7be   :  { %v3673_v49 = vpop.f32.mrf.mxu2  ;;  %4297 = vmatpush.msra.mxu1 %v3939_v16  ;;  %v4005_v16 = vld [vmem:[%s12699_s13 + $0x410] sm:$0xff]  ;;  %4490 = vmatpush.msrb.mxu0 %v3946_v29 }
 0x7bf   :  { %v3674_v39 = vadd.f32 %v3673_v49, %v10489_v13  ;;  %4194 = vmatmul.f32.gmra.mxu3 %v10677_v56  ;;  %v4008_v49 = vld [vmem:[%s12699_s13 + $0x428] sm:$0xff]  ;;  %v3615_v40 = vadd.f32 %v10641_v36, %v3550_v4 }
 0x7c0   :  { %v10694_v0 = vpop.f32.mrf.mxu1  ;;  %4298 = vmatpush.msra.mxu1 %v3936_v1  ;;  %4355 = vmatpush.msra.mxu2 %v4008_v49  ;;  %v3488_v1 = vadd.f32 %v10353_v63, %v10085_v44  ;;  %v3940_v36 = vld [vmem:[%s12699_s13 + $0x208] sm:$0xff]  ;;  %v3922_v63 = vld [vmem:[%s12699_s13 + $0x178] sm:$0xff] }
 0x7c1   :  { %v3739_v51 = vadd.f32 %v3738_v9, %v3674_v39  ;;  %4268 = vmatmul.f32.gmra.mxu0 %v10651_v46  ;;  %v3361_v9 = vadd.f32 %v13061_v3, %v3296_v23  ;;  %v3933_v39 = vld [vmem:[%s12699_s13 + $0x1d0] sm:$0xff]  ;;  %v3930_v23 = vld [vmem:[%s12699_s13 + $0x1b8] sm:$0xff]  ;;  %v3927_v3 = vld [vmem:[%s12699_s13 + $0x1a0] sm:$0xff]  ;;  %4417 = vmatpush.msra.mxu3 %v3922_v63 }
 0x7c2   :  { %v3741_v54 = vpop.f32.mrf.mxu3  ;;  %4299 = vmatpush.msra.mxu1 %v3933_v39  ;;  %4356 = vmatpush.msra.mxu2 %v4005_v16  ;;  %v3999_v16 = vld [vmem:[%s12699_s13 + $0x3e0] sm:$0xff] }
 0x7c3   :  { %4076 = vmatmul.f32.gmra.mxu1 %v10707_v26  ;;  %4135 = vmatmul.f32.gmra.mxu2 %v10709_v7  ;;  %v3804_v17 = vadd.f32 %v10626_v10, %v3739_v51  ;;  %v3426_v31 = vadd.f32 %v10411_v34, %v3361_v9  ;;  %v4002_v51 = vld [vmem:[%s12699_s13 + $0x3f8] sm:$0xff]  ;;  %v3809_v49 = vpop.f32.mrf.mxu0  ;;  %v13063_v9 = vld [vmem:[#allocation31_spill] sm:$0xff] }
 0x7c4   :  { %4491 = vmatpush.msrb.mxu0 %v3943_v35  ;;  %4300 = vmatpush.msra.mxu1 %v3930_v23  ;;  %v3299_v38 = vadd.f32 %v13063_v9, %v10403_v24  ;;  %v3937_v35 = vld [vmem:[%s12699_s13 + $0x1f0] sm:$0xff]  ;;  %v13064_v23 = vld [vmem:[#allocation19_spill] sm:$0xff] }
 0x7c5   :  { %v10737_v45 = vmax.f32 %v3804_v17, 0.0  ;;  %4357 = vmatpush.msra.mxu2 %v4002_v51  ;;  %v10762_v4 = vmax.f32 %v3426_v31, 0.0  ;;  %v10764_v17 = vmax.f32 %v3615_v40, 0.0  ;;  %v3924_v31 = vld [vmem:[%s12699_s13 + $0x188] sm:$0xff]  ;;  %v3553_v51 = vadd.f32 %v13064_v23, %v3488_v1 }
 0x7c6   :  { %v3676_v10 = vpop.f32.mrf.mxu2  ;;  %4492 = vmatpush.msrb.mxu0 %v3940_v36  ;;  %4301 = vmatpush.msra.mxu1 %v3927_v3  ;;  %v3364_v40 = vadd.f32 %v10344_v32, %v3299_v38  ;;  %v3996_v36 = vld [vmem:[%s12699_s13 + $0x3c8] sm:$0xff]  ;;  %v3934_v3 = vld [vmem:[%s12699_s13 + $0x1d8] sm:$0xff] }
 0x7c7   :  { %v3677_v34 = vadd.f32 %v3676_v10, %v10489_v13  ;;  %4197 = vmatmul.f32.gmra.mxu3 %v10737_v45  ;;  %4358 = vmatpush.msra.mxu2 %v3999_v16  ;;  %v3618_v1 = vadd.f32 %v10694_v0, %v3553_v51  ;;  %v3916_v9 = vld [vmem:[%s12699_s13 + $0x148] sm:$0xff]  ;;  %v3990_v16 = vld [vmem:[%s12699_s13 + $0x398] sm:$0xff]  ;;  %v3913_v51 = vld [vmem:[%s12699_s13 + $0x130] sm:$0xff] }
 0x7c8   :  { %v10752_v29 = vpop.f32.mrf.mxu1  ;;  %4493 = vmatpush.msrb.mxu0 %v3937_v35  ;;  %v3429_v32 = vadd.f32 %v10439_v55, %v3364_v40  ;;  %4302 = vmatpush.msra.mxu1 %v3924_v31  ;;  %v3491_v55 = vadd.f32 %v10392_v60, %v10085_v44  ;;  %v13065_v31 = vld [vmem:[#allocation27_spill] sm:$0xff] }
 0x7c9   :  { %v3742_v39 = vadd.f32 %v3741_v54, %v3677_v34  ;;  %4271 = vmatmul.f32.gmra.mxu0 %v10707_v26  ;;  %v3919_v54 = vld [vmem:[%s12699_s13 + $0x160] sm:$0xff]  ;;  %4359 = vmatpush.msra.mxu2 %v3996_v36  ;;  %v10814_v60 = vmax.f32 %v3618_v1, 0.0  ;;  %v13066_v1 = vld [vmem:[#allocation25_spill] sm:$0xff] }
 0x7ca   :  { %v3744_v10 = vpop.f32.mrf.mxu3  ;;  %4418 = vmatpush.msra.mxu3 %v3919_v54  ;;  %4494 = vmatpush.msrb.mxu0 %v3934_v3  ;;  %v3302_v54 = vadd.f32 %v13065_v31, %v10403_v24  ;;  %v10812_v40 = vmax.f32 %v3429_v32, 0.0  ;;  %v3987_v32 = vld [vmem:[%s12699_s13 + $0x380] sm:$0xff] }
 0x7cb   :  { %4079 = vmatmul.f32.gmra.mxu1 %v10762_v4  ;;  %4138 = vmatmul.f32.gmra.mxu2 %v10764_v17  ;;  %v3807_v34 = vadd.f32 %v10679_v57, %v3742_v39  ;;  %v3993_v57 = vld [vmem:[%s12699_s13 + $0x3b0] sm:$0xff]  ;;  %v3931_v39 = vld [vmem:[%s12699_s13 + $0x1c0] sm:$0xff]  ;;  %v3812_v36 = vpop.f32.mrf.mxu0 }
 0x7cc   :  { %4360 = vmatpush.msra.mxu2 %v3993_v57  ;;  %4419 = vmatpush.msra.mxu3 %v3916_v9  ;;  %v3556_v57 = vadd.f32 %v13066_v1, %v3491_v55 }
 0x7cd   :  { %v10792_v63 = vmax.f32 %v3807_v34, 0.0  ;;  %v3928_v34 = vld [vmem:[%s12699_s13 + $0x1a8] sm:$0xff]  ;;  %4495 = vmatpush.msrb.mxu0 %v3931_v39 }
 0x7ce   :  { %v3679_v38 = vpop.f32.mrf.mxu2  ;;  %4361 = vmatpush.msra.mxu2 %v3990_v16  ;;  %4420 = vmatpush.msra.mxu3 %v3913_v51  ;;  %v3621_v39 = vadd.f32 %v10752_v29, %v3556_v57  ;;  %v3904_v29 = vld [vmem:[%s12699_s13 + $0xe8] sm:$0xff] }
 0x7cf   :  { %v3680_v0 = vadd.f32 %v3679_v38, %v10489_v13  ;;  %4200 = vmatmul.f32.gmra.mxu3 %v10792_v63  ;;  %v3910_v38 = vld [vmem:[%s12699_s13 + $0x118] sm:$0xff]  ;;  %4496 = vmatpush.msrb.mxu0 %v3928_v34 }
 0x7d0   :  { %v3623_v35 = vpop.f32.mrf.mxu1  ;;  %4362 = vmatpush.msra.mxu2 %v3987_v32  ;;  %4421 = vmatpush.msra.mxu3 %v3910_v38  ;;  %v13067_v34 = vld [vmem:[#allocation29_spill] sm:$0xff]  ;;  %v10860_v1 = vmax.f32 %v3621_v39, 0.0 }
 0x7d1   :  { %v3745_v23 = vadd.f32 %v3744_v10, %v3680_v0  ;;  %4274 = vmatmul.f32.gmra.mxu0 %v10762_v4  ;;  %v3367_v10 = vadd.f32 %v10383_v37, %v3302_v54  ;;  %v3925_v0 = vld [vmem:[%s12699_s13 + $0x190] sm:$0xff]  ;;  %v3984_v37 = vld [vmem:[%s12699_s13 + $0x368] sm:$0xff]  ;;  %v3305_v32 = vadd.f32 %v13067_v34, %v10403_v24  ;;  %v3898_v39 = vld [vmem:[%s12699_s13 + $0xb8] sm:$0xff] }
 0x7d2   :  { %v3747_v3 = vpop.f32.mrf.mxu3  ;;  %4497 = vmatpush.msrb.mxu0 %v3925_v0  ;;  %v3981_v54 = vld [vmem:[%s12699_s13 + $0x350] sm:$0xff]  ;;  %4363 = vmatpush.msra.mxu2 %v3984_v37  ;;  %v13068_v0 = vld [vmem:[#allocation17_spill] sm:$0xff] }
 0x7d3   :  { %4082 = vmatmul.f32.gmra.mxu1 %v10812_v40  ;;  %4141 = vmatmul.f32.gmra.mxu2 %v10814_v60  ;;  %v3810_v9 = vadd.f32 %v3809_v49, %v3745_v23  ;;  %v3432_v55 = vadd.f32 %v10461_v61, %v3367_v10  ;;  %v3907_v49 = vld [vmem:[%s12699_s13 + $0x100] sm:$0xff]  ;;  %v3494_v23 = vadd.f32 %v10427_v33, %v10085_v44  ;;  %v3978_v33 = vld [vmem:[%s12699_s13 + $0x338] sm:$0xff] }
 0x7d4   :  { %4422 = vmatpush.msra.mxu3 %v3907_v49  ;;  %4364 = vmatpush.msra.mxu2 %v3981_v54  ;;  %v3370_v24 = vadd.f32 %v10419_v2, %v3305_v32  ;;  %v3815_v49 = vpop.f32.mrf.mxu0 }
 0x7d5   :  { %v10841_v16 = vmax.f32 %v3810_v9, 0.0  ;;  %v10858_v10 = vmax.f32 %v3432_v55, 0.0  ;;  %v3901_v9 = vld [vmem:[%s12699_s13 + $0xd0] sm:$0xff]  ;;  %v3559_v37 = vadd.f32 %v13068_v0, %v3494_v23  ;;  %v3975_v55 = vld [vmem:[%s12699_s13 + $0x320] sm:$0xff]  ;;  %v3886_v0 = vld [vmem:[%s12699_s13 + $0x58] sm:$0xff] }
 0x7d6   :  { %v3682_v31 = vpop.f32.mrf.mxu2  ;;  %4423 = vmatpush.msra.mxu3 %v3904_v29  ;;  %4365 = vmatpush.msra.mxu2 %v3978_v33  ;;  %v3435_v2 = vadd.f32 %v10476_v50, %v3370_v24  ;;  %v3895_v23 = vld [vmem:[%s12699_s13 + $0xa0] sm:$0xff]  ;;  %v3497_v29 = vadd.f32 %v10455_v20, %v10085_v44  ;;  %v3892_v50 = vld [vmem:[%s12699_s13 + $0x88] sm:$0xff]  ;;  %v3889_v20 = vld [vmem:[%s12699_s13 + $0x70] sm:$0xff] }
 0x7d7   :  { %v3683_v61 = vadd.f32 %v3682_v31, %v10489_v13  ;;  %4203 = vmatmul.f32.gmra.mxu3 %v10841_v16  ;;  %v3624_v31 = vadd.f32 %v3623_v35, %v3559_v37 }
 0x7d8   :  { %v3626_v51 = vpop.f32.mrf.mxu1  ;;  %4424 = vmatpush.msra.mxu3 %v3901_v9  ;;  %4366 = vmatpush.msra.mxu2 %v3975_v55  ;;  %v10895_v32 = vmax.f32 %v3435_v2, 0.0  ;;  %v3562_v9 = vadd.f32 %v10413_v58, %v3497_v29  ;;  %v3883_v55 = vld [vmem:[%s12699_s13 + $0x40] sm:$0xff]  ;;  %v3500_v2 = vadd.f32 %v10469_v41, %v10085_v44  ;;  %v13069_v44 = vld [vmem:[#allocation5_spill] sm:$0xff] }
 0x7d9   :  { %v3748_v57 = vadd.f32 %v3747_v3, %v3683_v61  ;;  %4277 = vmatmul.f32.gmra.mxu0 %v10812_v40 }
 0x7da   :  { %v3750_v38 = vpop.f32.mrf.mxu3  ;;  %4425 = vmatpush.msra.mxu3 %v3898_v39  ;;  %v3565_v41 = vadd.f32 %v13069_v44, %v3500_v2 }
 0x7db   :  { %4085 = vmatmul.f32.gmra.mxu1 %v10858_v10  ;;  %4144 = vmatmul.f32.gmra.mxu2 %v10860_v1  ;;  %v3813_v3 = vadd.f32 %v3812_v36, %v3748_v57  ;;  %v3972_v36 = vld [vmem:[%s12699_s13 + $0x308] sm:$0xff]  ;;  %v10897_v57 = vmax.f32 %v3624_v31, 0.0 }
 0x7dc   :  { %4367 = vmatpush.msra.mxu2 %v3972_v36  ;;  %4426 = vmatpush.msra.mxu3 %v3895_v23  ;;  %v3818_v39 = vpop.f32.mrf.mxu0 }
 0x7dd   :  { %v10880_v54 = vmax.f32 %v3813_v3, 0.0 }
 0x7de   :  { %v3685_v61 = vpop.f32.mrf.mxu2  ;;  %4427 = vmatpush.msra.mxu3 %v3892_v50 }
 0x7df   :  { %v3686_v34 = vadd.f32 %v3685_v61, %v10489_v13  ;;  %4206 = vmatmul.f32.gmra.mxu3 %v10880_v54  ;;  %v3877_v61 = vld [vmem:[%s12699_s13 + $0x10] sm:$0xff] }
 0x7e0   :  { %v3629_v35 = vpop.f32.mrf.mxu1  ;;  %4428 = vmatpush.msra.mxu3 %v3889_v20 }
 0x7e1   :  { %v3751_v33 = vadd.f32 %v3750_v38, %v3686_v34  ;;  %4280 = vmatmul.f32.gmra.mxu0 %v10858_v10  ;;  %v3627_v38 = vadd.f32 %v3626_v51, %v3562_v9  ;;  %v3880_v51 = vld [vmem:[%s12699_s13 + $0x28] sm:$0xff]  ;;  %v3630_v34 = vadd.f32 %v3629_v35, %v3565_v41 }
 0x7e2   :  { %v3753_v37 = vpop.f32.mrf.mxu3  ;;  %4429 = vmatpush.msra.mxu3 %v3886_v0 }
 0x7e3   :  { %4088 = vmatmul.f32.gmra.mxu1 %v10895_v32  ;;  %4147 = vmatmul.f32.gmra.mxu2 %v10897_v57  ;;  %v3816_v24 = vadd.f32 %v3815_v49, %v3751_v33  ;;  %v10921_v36 = vmax.f32 %v3627_v38, 0.0 }
 0x7e4   :  { %4430 = vmatpush.msra.mxu3 %v3883_v55 }
 0x7e5   :  { %v10909_v3 = vmax.f32 %v3816_v24, 0.0  ;;  %v3821_v24 = vpop.f32.mrf.mxu0 }
 0x7e6   :  { %v3688_v58 = vpop.f32.mrf.mxu2  ;;  %4431 = vmatpush.msra.mxu3 %v3880_v51 }
 0x7e7   :  { %v3689_v49 = vadd.f32 %v3688_v58, %v10489_v13  ;;  %4209 = vmatmul.f32.gmra.mxu3 %v10909_v3 }
 0x7e8   :  { %v4044_v31 = vpop.f32.mrf.mxu1  ;;  %4432 = vmatpush.msra.mxu3 %v3877_v61 }
 0x7e9   :  { %v3754_v23 = vadd.f32 %v3753_v37, %v3689_v49  ;;  %4283 = vmatmul.f32.gmra.mxu0 %v10895_v32  ;;  %v10934_v37 = vmax.f32 %v3630_v34, 0.0 }
 0x7ea   :  { %v3756_v33 = vpop.f32.mrf.mxu3 }
 0x7eb   :  { %4150 = vmatmul.f32.gmra.mxu2 %v10921_v36  ;;  %4303 = vmatmul.f32.vlgmr.msra.gmra.mxu1 %v10482_v48  ;;  %v3819_v29 = vadd.f32 %v3818_v39, %v3754_v23 }
 0x7ed   :  { %v10930_v50 = vmax.f32 %v3819_v29, 0.0  ;;  %v3824_v23 = vpop.f32.mrf.mxu0 }
 0x7ee   :  { %v3691_v20 = vpop.f32.mrf.mxu2 }
 0x7ef   :  { %v3692_v9 = vadd.f32 %v3691_v20, %v10489_v13  ;;  %4212 = vmatmul.f32.gmra.mxu3 %v10930_v50 }
 0x7f0   :  { %v4047_v0 = vpop.f32.mrf.mxu1 }
 0x7f1   :  { %v3757_v38 = vadd.f32 %v3756_v33, %v3692_v9  ;;  %4498 = vmatmul.f32.vlgmr.msrb.gmra.mxu0 %v10482_v48  ;;  %v13070_v33 = vld [vmem:[#allocation13_spill] sm:$0xff] }
 0x7f2   :  { %v3759_v2 = vpop.f32.mrf.mxu3 }
 0x7f3   :  { %4153 = vmatmul.f32.gmra.mxu2 %v10934_v37  ;;  %4306 = vmatmul.f32.gmra.mxu1 %v10498_v5  ;;  %v3822_v35 = vadd.f32 %v3821_v24, %v3757_v38 }
 0x7f5   :  { %v10939_v55 = vmax.f32 %v3822_v35, 0.0 }
 0x7f6   :  { %v3694_v39 = vpop.f32.mrf.mxu2 }
 0x7f7   :  { %v3695_v58 = vadd.f32 %v3694_v39, %v10489_v13  ;;  %4215 = vmatmul.f32.gmra.mxu3 %v10939_v55  ;;  %v10952_v13 = vld [vmem:[%s12700_s14] sm:$0x7] }
 0x7f8   :  { %v4050_v49 = vpop.f32.mrf.mxu1  ;;  %v13071_v39 = vld [vmem:[#allocation2_spill] sm:$0xff] }
 0x7f9   :  { %v3760_v51 = vadd.f32 %v3759_v2, %v3695_v58  ;;  %4501 = vmatmul.f32.gmra.mxu0 %v10498_v5  ;;  %v10956_v5 = vperm.slane %v10952_v13, 0 }
 0x7fb   :  { %4309 = vmatmul.f32.gmra.mxu1 %v10514_v12  ;;  %4368 = vmatmul.f32.vlgmr.msra.gmra.mxu2 %v10506_v59  ;;  %v3825_v48 = vadd.f32 %v3824_v23, %v3760_v51  ;;  %v4045_v34 = vadd.f32 %v4044_v31, %v10956_v5  ;;  %v4048_v35 = vadd.f32 %v4047_v0, %v10956_v5 }
 0x7fc   :  { %v4051_v23 = vadd.f32 %v4050_v49, %v10956_v5 }
 0x7fd   :  { %v10946_v61 = vmax.f32 %v3825_v48, 0.0 }
 0x7fe   :  { %v4109_v44 = vpop.f32.mrf.mxu2 }
 0x7ff   :  { %4218 = vmatmul.f32.gmra.mxu3 %v10946_v61  ;;  %v4110_v9 = vadd.f32 %v4109_v44, %v4045_v34 }
 0x800   :  { %v4053_v41 = vpop.f32.mrf.mxu1 }
 0x801   :  { %4504 = vmatmul.f32.gmra.mxu0 %v10514_v12  ;;  %v4054_v34 = vadd.f32 %v4053_v41, %v10956_v5 }
 0x803   :  { %4312 = vmatmul.f32.gmra.mxu1 %v10530_v25  ;;  %4371 = vmatmul.f32.gmra.mxu2 %v10522_v8 }
 0x806   :  { %v4112_v29 = vpop.f32.mrf.mxu2 }
 0x807   :  { %4433 = vmatmul.f32.vlgmr.msra.gmra.mxu3 %v13070_v33  ;;  %v4113_v31 = vadd.f32 %v4112_v29, %v4048_v35  ;;  %v13072_v33 = vld [vmem:[#allocation9_spill] sm:$0xff] }
 0x808   :  { %v4056_v20 = vpop.f32.mrf.mxu1 }
 0x809   :  { %4507 = vmatmul.f32.gmra.mxu0 %v10530_v25  ;;  %v4057_v35 = vadd.f32 %v4056_v20, %v10956_v5  ;;  %v4015_v20 = vld [vmem:[%s12699_s13 + $0x460] sm:$0xff] }
 0x80a   :  { %v4174_v24 = vpop.f32.mrf.mxu3 }
 0x80b   :  { %v10963_v38 = vadd.f32 %v4174_v24, %v4110_v9  ;;  %4315 = vmatmul.f32.gmra.mxu1 %v10546_v11  ;;  %4374 = vmatmul.f32.gmra.mxu2 %v10538_v28  ;;  %v10984_v24 = vpop.f32.mrf.mxu0 }
 0x80c   :  { %13073 = vst [vmem:[#allocation3_spill] sm:$0xff] %v10984_v24 }
 0x80e   :  { %v4115_v12 = vpop.f32.mrf.mxu2 }
 0x80f   :  { %4436 = vmatmul.f32.gmra.mxu3 %v13071_v39  ;;  %v4116_v0 = vadd.f32 %v4115_v12, %v4051_v23 }
 0x810   :  { %v4059_v58 = vpop.f32.mrf.mxu1 }
 0x811   :  { %4510 = vmatmul.f32.gmra.mxu0 %v10546_v11 }
 0x812   :  { %v4177_v2 = vpop.f32.mrf.mxu3 }
 0x813   :  { %v10970_v51 = vadd.f32 %v4177_v2, %v4113_v31  ;;  %4318 = vmatmul.f32.gmra.mxu1 %v10562_v22  ;;  %4377 = vmatmul.f32.gmra.mxu2 %v10554_v47  ;;  %v4018_v2 = vld [vmem:[%s12699_s13 + $0x478] sm:$0xff] }
 0x814   :  { %4547 = vmatpush.msrb.mxu1 %v4018_v2  ;;  %v3997_v2 = vld [vmem:[%s12699_s13 + $0x3d0] sm:$0xff] }
 0x816   :  { %v4118_v25 = vpop.f32.mrf.mxu2  ;;  %4548 = vmatpush.msrb.mxu1 %v4015_v20 }
 0x817   :  { %4439 = vmatmul.f32.gmra.mxu3 %v10480_v19  ;;  %v4119_v49 = vadd.f32 %v4118_v25, %v4054_v34  ;;  %v11002_v25 = vpop.f32.mrf.mxu0  ;;  %v4009_v34 = vld [vmem:[%s12699_s13 + $0x430] sm:$0xff] }
 0x818   :  { %v4062_v48 = vpop.f32.mrf.mxu1  ;;  %13074 = vst [vmem:[#allocation6_spill] sm:$0xff] %v11002_v25 }
 0x819   :  { %4513 = vmatmul.f32.gmra.mxu0 %v10562_v22 }
 0x81a   :  { %v4180_v44 = vpop.f32.mrf.mxu3 }
 0x81b   :  { %v10977_v29 = vadd.f32 %v4180_v44, %v4116_v0  ;;  %4321 = vmatmul.f32.gmra.mxu1 %v10578_v52  ;;  %4380 = vmatmul.f32.gmra.mxu2 %v10570_v43  ;;  %v4012_v0 = vld [vmem:[%s12699_s13 + $0x448] sm:$0xff] }
 0x81c   :  { %4549 = vmatpush.msrb.mxu1 %v4012_v0  ;;  %v3988_v0 = vld [vmem:[%s12699_s13 + $0x388] sm:$0xff] }
 0x81e   :  { %v4121_v11 = vpop.f32.mrf.mxu2  ;;  %4550 = vmatpush.msrb.mxu1 %v4009_v34 }
 0x81f   :  { %4442 = vmatmul.f32.gmra.mxu3 %v13072_v33  ;;  %v4122_v39 = vadd.f32 %v4121_v11, %v4057_v35  ;;  %v4000_v35 = vld [vmem:[%s12699_s13 + $0x3e8] sm:$0xff] }
 0x820   :  { %v4065_v9 = vpop.f32.mrf.mxu1 }
 0x821   :  { %4516 = vmatmul.f32.gmra.mxu0 %v10578_v52 }
 0x822   :  { %v4183_v19 = vpop.f32.mrf.mxu3 }
 0x823   :  { %v10986_v22 = vadd.f32 %v4183_v19, %v4119_v49  ;;  %4324 = vmatmul.f32.gmra.mxu1 %v10607_v42  ;;  %4383 = vmatmul.f32.gmra.mxu2 %v10591_v18  ;;  %v11028_v49 = vpop.f32.mrf.mxu0  ;;  %v4063_v19 = vadd.f32 %v4062_v48, %v10956_v5 }
 0x824   :  { %13075 = vst [vmem:[#allocation21_spill] sm:$0xff] %v11028_v49 }
 0x826   :  { %v4124_v12 = vpop.f32.mrf.mxu2 }
 0x827   :  { %4445 = vmatmul.f32.gmra.mxu3 %v10512_v15 }
 0x828   :  { %v10992_v41 = vpop.f32.mrf.mxu1 }
 0x829   :  { %4519 = vmatmul.f32.gmra.mxu0 %v10607_v42  ;;  %v4060_v42 = vadd.f32 %v4059_v58, %v10956_v5 }
 0x82a   :  { %v4186_v52 = vpop.f32.mrf.mxu3 }
 0x82b   :  { %v10995_v31 = vadd.f32 %v4186_v52, %v4122_v39  ;;  %4327 = vmatmul.f32.gmra.mxu1 %v10653_v14  ;;  %4386 = vmatmul.f32.gmra.mxu2 %v10629_v6  ;;  %v4125_v44 = vadd.f32 %v4124_v12, %v4060_v42 }
 0x82e   :  { %v4127_v15 = vpop.f32.mrf.mxu2 }
 0x82f   :  { %4448 = vmatmul.f32.gmra.mxu3 %v10528_v27  ;;  %v4006_v27 = vld [vmem:[%s12699_s13 + $0x418] sm:$0xff]  ;;  %v4128_v39 = vadd.f32 %v4127_v15, %v4063_v19  ;;  %v4066_v15 = vadd.f32 %v4065_v9, %v10956_v5  ;;  %v3985_v9 = vld [vmem:[%s12699_s13 + $0x370] sm:$0xff]  ;;  %v3976_v19 = vld [vmem:[%s12699_s13 + $0x328] sm:$0xff] }
 0x830   :  { %v11009_v23 = vpop.f32.mrf.mxu1  ;;  %4551 = vmatpush.msrb.mxu1 %v4006_v27 }
 0x831   :  { %4522 = vmatmul.f32.gmra.mxu0 %v10653_v14  ;;  %v4003_v14 = vld [vmem:[%s12699_s13 + $0x400] sm:$0xff] }
 0x832   :  { %v4189_v11 = vpop.f32.mrf.mxu3  ;;  %4552 = vmatpush.msrb.mxu1 %v4003_v14 }
 0x833   :  { %v11018_v33 = vadd.f32 %v4189_v11, %v4125_v44  ;;  %4330 = vmatmul.f32.gmra.mxu1 %v10709_v7  ;;  %4389 = vmatmul.f32.gmra.mxu2 %v10677_v56  ;;  %v11060_v44 = vpop.f32.mrf.mxu0 }
 0x834   :  { %4553 = vmatpush.msrb.mxu1 %v4000_v35  ;;  %13076 = vst [vmem:[#allocation12_spill] sm:$0xff] %v11060_v44 }
 0x836   :  { %v4130_v58 = vpop.f32.mrf.mxu2  ;;  %4554 = vmatpush.msrb.mxu1 %v3997_v2 }
 0x837   :  { %4451 = vmatmul.f32.gmra.mxu3 %v10544_v62  ;;  %v3994_v62 = vld [vmem:[%s12699_s13 + $0x3b8] sm:$0xff]  ;;  %v4131_v11 = vadd.f32 %v4130_v58, %v4066_v15 }
 0x838   :  { %v11032_v12 = vpop.f32.mrf.mxu1  ;;  %4555 = vmatpush.msrb.mxu1 %v3994_v62 }
 0x839   :  { %4525 = vmatmul.f32.gmra.mxu0 %v10709_v7  ;;  %v3991_v7 = vld [vmem:[%s12699_s13 + $0x3a0] sm:$0xff] }
 0x83a   :  { %v4192_v52 = vpop.f32.mrf.mxu3  ;;  %4556 = vmatpush.msrb.mxu1 %v3991_v7 }
 0x83b   :  { %v11041_v20 = vadd.f32 %v4192_v52, %v4128_v39  ;;  %4333 = vmatmul.f32.gmra.mxu1 %v10764_v17  ;;  %4392 = vmatmul.f32.gmra.mxu2 %v10737_v45  ;;  %v3973_v39 = vld [vmem:[%s12699_s13 + $0x310] sm:$0xff]  ;;  %v11090_v52 = vpop.f32.mrf.mxu0 }
 0x83c   :  { %4557 = vmatpush.msrb.mxu1 %v3988_v0 }
 0x83e   :  { %v11048_v48 = vpop.f32.mrf.mxu2  ;;  %4558 = vmatpush.msrb.mxu1 %v3985_v9 }
 0x83f   :  { %4454 = vmatmul.f32.gmra.mxu3 %v10560_v30  ;;  %v3982_v30 = vld [vmem:[%s12699_s13 + $0x358] sm:$0xff] }
 0x840   :  { %v11055_v42 = vpop.f32.mrf.mxu1  ;;  %4559 = vmatpush.msrb.mxu1 %v3982_v30 }
 0x841   :  { %4528 = vmatmul.f32.gmra.mxu0 %v10764_v17  ;;  %v3979_v17 = vld [vmem:[%s12699_s13 + $0x340] sm:$0xff] }
 0x842   :  { %v4195_v34 = vpop.f32.mrf.mxu3  ;;  %4560 = vmatpush.msrb.mxu1 %v3979_v17 }
 0x843   :  { %v11066_v27 = vadd.f32 %v4195_v34, %v4131_v11  ;;  %4336 = vmatmul.f32.gmra.mxu1 %v10814_v60  ;;  %4395 = vmatmul.f32.gmra.mxu2 %v10792_v63  ;;  %v11102_v62 = vpop.f32.mrf.mxu0 }
 0x844   :  { %4561 = vmatpush.msrb.mxu1 %v3976_v19 }
 0x846   :  { %v11073_v58 = vpop.f32.mrf.mxu2  ;;  %4562 = vmatpush.msrb.mxu1 %v3973_v39 }
 0x847   :  { %4457 = vmatmul.f32.gmra.mxu3 %v10576_v21 }
 0x848   :  { %v11079_v14 = vpop.f32.mrf.mxu1 }
 0x849   :  { %4531 = vmatmul.f32.gmra.mxu0 %v10814_v60 }
 0x84a   :  { %v11085_v35 = vpop.f32.mrf.mxu3 }
 0x84b   :  { %4339 = vmatmul.f32.gmra.mxu1 %v10860_v1  ;;  %4398 = vmatmul.f32.gmra.mxu2 %v10841_v16 }
 0x84e   :  { %v11094_v21 = vpop.f32.mrf.mxu2 }
 0x84f   :  { %4460 = vmatmul.f32.gmra.mxu3 %v10605_v53 }
 0x850   :  { %v4083_v2 = vpop.f32.mrf.mxu1 }
 0x851   :  { %4534 = vmatmul.f32.gmra.mxu0 %v10860_v1  ;;  %v11110_v1 = vpop.f32.mrf.mxu0 }
 0x852   :  { %v11098_v60 = vpop.f32.mrf.mxu3 }
 0x853   :  { %4342 = vmatmul.f32.gmra.mxu1 %v10897_v57  ;;  %4401 = vmatmul.f32.gmra.mxu2 %v10880_v54 }
 0x856   :  { %v4142_v7 = vpop.f32.mrf.mxu2 }
 0x857   :  { %4463 = vmatmul.f32.gmra.mxu3 %v10651_v46 }
 0x858   :  { %v4086_v15 = vpop.f32.mrf.mxu1 }
 0x859   :  { %4537 = vmatmul.f32.gmra.mxu0 %v10897_v57  ;;  %v11119_v9 = vpop.f32.mrf.mxu0 }
 0x85a   :  { %v11106_v0 = vpop.f32.mrf.mxu3 }
 0x85b   :  { %4345 = vmatmul.f32.gmra.mxu1 %v10921_v36  ;;  %4404 = vmatmul.f32.gmra.mxu2 %v10909_v3 }
 0x85e   :  { %v4145_v53 = vpop.f32.mrf.mxu2 }
 0x85f   :  { %4466 = vmatmul.f32.gmra.mxu3 %v10707_v26 }
 0x860   :  { %v4089_v11 = vpop.f32.mrf.mxu1 }
 0x861   :  { %4540 = vmatmul.f32.gmra.mxu0 %v10921_v36  ;;  %v11130_v19 = vpop.f32.mrf.mxu0 }
 0x862   :  { %v4207_v34 = vpop.f32.mrf.mxu3 }
 0x863   :  { %4348 = vmatmul.f32.gmra.mxu1 %v10934_v37  ;;  %4407 = vmatmul.f32.gmra.mxu2 %v10930_v50 }
 0x866   :  { %v4148_v46 = vpop.f32.mrf.mxu2 }
 0x867   :  { %4469 = vmatmul.f32.gmra.mxu3 %v10762_v4 }
 0x868   :  { %v11117_v57 = vpop.f32.mrf.mxu1 }
 0x869   :  { %13077 = vst [vmem:[#allocation7_spill] sm:$0xff] %v11117_v57  ;;  %4543 = vmatmul.f32.gmra.mxu0 %v10934_v37  ;;  %v4090_v57 = vadd.f32 %v4089_v11, %v10956_v5  ;;  %v11143_v25 = vpop.f32.mrf.mxu0 }
 0x86a   :  { %v4210_v30 = vpop.f32.mrf.mxu3 }
 0x86b   :  { %4410 = vmatmul.f32.gmra.mxu2 %v10939_v55  ;;  %4563 = vmatmul.f32.vlgmr.msrb.gmra.mxu1 %v10506_v59 }
 0x86e   :  { %v4151_v26 = vpop.f32.mrf.mxu2 }
 0x86f   :  { %4472 = vmatmul.f32.gmra.mxu3 %v10812_v40  ;;  %v4087_v40 = vadd.f32 %v4086_v15, %v10956_v5 }
 0x870   :  { %v11125_v36 = vpop.f32.mrf.mxu1 }
 0x871   :  { %13078 = vst [vmem:[#allocation40_spill] sm:$0xff] %v11125_v36 }
 0x872   :  { %v4213_v17 = vpop.f32.mrf.mxu3 }
 0x873   :  { %4413 = vmatmul.f32.gmra.mxu2 %v10946_v61  ;;  %4566 = vmatmul.f32.gmra.mxu1 %v10522_v8  ;;  %v4084_v8 = vadd.f32 %v4083_v2, %v10956_v5 }
 0x875   :  { %v4149_v49 = vadd.f32 %v4148_v46, %v4084_v8  ;;  %v11164_v46 = vpop.f32.mrf.mxu0 }
 0x876   :  { %v4154_v4 = vpop.f32.mrf.mxu2 }
 0x877   :  { %4475 = vmatmul.f32.gmra.mxu3 %v10858_v10  ;;  %v4152_v10 = vadd.f32 %v4151_v26, %v4087_v40  ;;  %v4155_v24 = vadd.f32 %v4154_v4, %v4090_v57  ;;  %v4214_v11 = vadd.f32 %v4213_v17, %v4149_v49  ;;  %v4075_v57 = vadd.f32 %v11032_v12, %v10956_v5 }
 0x878   :  { %v11132_v37 = vpop.f32.mrf.mxu1  ;;  %v4069_v49 = vadd.f32 %v10992_v41, %v10956_v5  ;;  %v4630_v17 = vmax.f32 %v11041_v20, 0.0 }
 0x879   :  { %13079 = vst [vmem:[#allocation16_spill] sm:$0xff] %v11132_v37 }
 0x87a   :  { %v4216_v39 = vpop.f32.mrf.mxu3 }
 0x87b   :  { %4569 = vmatmul.f32.gmra.mxu1 %v10538_v28  ;;  %v4081_v28 = vadd.f32 %v11079_v14, %v10956_v5 }
 0x87d   :  { %v4146_v15 = vadd.f32 %v4145_v53, %v4081_v28  ;;  %v4651_v53 = vmax.f32 %v4214_v11, 0.0 }
 0x87e   :  { %v11135_v59 = vpop.f32.mrf.mxu2 }
 0x87f   :  { %13080 = vst [vmem:[#allocation11_spill] sm:$0xff] %v11135_v59  ;;  %4478 = vmatmul.f32.gmra.mxu3 %v10895_v32  ;;  %v4217_v59 = vadd.f32 %v4216_v39, %v4152_v10  ;;  %v4078_v32 = vadd.f32 %v11055_v42, %v10956_v5  ;;  %v4211_v4 = vadd.f32 %v4210_v30, %v4146_v15  ;;  %v4624_v39 = vmax.f32 %v10995_v31, 0.0 }
 0x880   :  { %v11140_v36 = vpop.f32.mrf.mxu1  ;;  %v4612_v31 = vmax.f32 %v10963_v38, 0.0 }
 0x881   :  { %13081 = vst [vmem:[#allocation39_spill] sm:$0xff] %v11140_v36  ;;  %v4143_v26 = vadd.f32 %v4142_v7, %v4078_v32  ;;  %v4654_v40 = vmax.f32 %v4217_v59, 0.0  ;;  %v4648_v7 = vmax.f32 %v4211_v4, 0.0  ;;  %v4618_v59 = vmax.f32 %v10977_v29, 0.0  ;;  %v11201_v29 = vld [vmem:[%s12692_s1] sm:$0xff] }
 0x882   :  { %v4219_v37 = vpop.f32.mrf.mxu3 }
 0x883   :  { %v4220_v44 = vadd.f32 %v4219_v37, %v4155_v24  ;;  %4572 = vmatmul.f32.gmra.mxu1 %v10554_v47  ;;  %v4072_v47 = vadd.f32 %v11009_v23, %v10956_v5  ;;  %v4140_v24 = vadd.f32 %v11094_v21, %v4075_v57  ;;  %v4208_v42 = vadd.f32 %v4207_v34, %v4143_v26 }
 0x884   :  { %v4134_v23 = vadd.f32 %v11048_v48, %v4069_v49  ;;  %v4633_v48 = vmax.f32 %v11066_v27, 0.0  ;;  %v4627_v37 = vmax.f32 %v11018_v33, 0.0  ;;  %v4615_v33 = vmax.f32 %v10970_v51, 0.0 }
 0x885   :  { %v4657_v36 = vmax.f32 %v4220_v44, 0.0  ;;  %v4137_v44 = vadd.f32 %v11073_v58, %v4072_v47  ;;  %v4205_v12 = vadd.f32 %v11106_v0, %v4140_v24  ;;  %v4645_v34 = vmax.f32 %v4208_v42, 0.0 }
 0x886   :  { %v11150_v2 = vpop.f32.mrf.mxu2  ;;  %v4199_v5 = vadd.f32 %v11085_v35, %v4134_v23 }
 0x887   :  { %4660 = vmatpush.msrb.mxu2 %v4657_v36  ;;  %v4202_v21 = vadd.f32 %v11098_v60, %v4137_v44  ;;  %v4642_v41 = vmax.f32 %v4205_v12, 0.0  ;;  %v11175_v60 = vpop.f32.mrf.mxu0 }
 0x888   :  { %v11154_v14 = vpop.f32.mrf.mxu1 }
 0x889   :  { %4661 = vmatpush.msrb.mxu2 %v4654_v40  ;;  %v4639_v0 = vmax.f32 %v4202_v21, 0.0 }
 0x88a   :  { %v11241_v4 = vpop.f32.mrf.mxu3 }
 0x88b   :  { %4575 = vmatmul.f32.gmra.mxu1 %v10570_v43  ;;  %4662 = vmatpush.msrb.mxu2 %v4651_v53  ;;  %v4636_v43 = vmax.f32 %v4199_v5, 0.0  ;;  %13082 = vst [vmem:[#allocation37_spill] sm:$0xff] %v11241_v4 }
 0x88d   :  { %4663 = vmatpush.msrb.mxu2 %v4648_v7 }
 0x88e   :  { %v11168_v30 = vpop.f32.mrf.mxu2 }
 0x88f   :  { %4664 = vmatpush.msrb.mxu2 %v4645_v34  ;;  %v11189_v20 = vpop.f32.mrf.mxu0 }
 0x890   :  { %v11171_v58 = vpop.f32.mrf.mxu1 }
 0x891   :  { %4665 = vmatpush.msrb.mxu2 %v4642_v41 }
 0x892   :  { %v11257_v42 = vpop.f32.mrf.mxu3 }
 0x893   :  { %4578 = vmatmul.f32.gmra.mxu1 %v10591_v18  ;;  %4666 = vmatpush.msrb.mxu2 %v4639_v0  ;;  %v4621_v18 = vmax.f32 %v10986_v22, 0.0  ;;  %13084 = vst [vmem:[#allocation14_spill] sm:$0xff] %v11257_v42 }
 0x895   :  { %4667 = vmatpush.msrb.mxu2 %v4636_v43 }
 0x896   :  { %v11177_v36 = vpop.f32.mrf.mxu2 }
 0x897   :  { %4668 = vmatpush.msrb.mxu2 %v4633_v48  ;;  %v11206_v10 = vpop.f32.mrf.mxu0 }
 0x898   :  { %v11180_v35 = vpop.f32.mrf.mxu1 }
 0x899   :  { %4669 = vmatpush.msrb.mxu2 %v4630_v17 }
 0x89a   :  { %v11270_v12 = vpop.f32.mrf.mxu3 }
 0x89b   :  { %4581 = vmatmul.f32.gmra.mxu1 %v10629_v6  ;;  %4670 = vmatpush.msrb.mxu2 %v4627_v37  ;;  %v4900_v37 = vld [vmem:[%s12701_s15 + $0x168] sm:$0xff] }
 0x89c   :  { %5007 = vmatpush.msra.mxu1 %v4900_v37  ;;  %v11324_v37 = vperm.slane %v10952_v13, 1 }
 0x89d   :  { %4671 = vmatpush.msrb.mxu2 %v4624_v39 }
 0x89e   :  { %v11186_v27 = vpop.f32.mrf.mxu2 }
 0x89f   :  { %4672 = vmatpush.msrb.mxu2 %v4621_v18  ;;  %v4281_v28 = vpop.f32.mrf.mxu0  ;;  %v11313_v18 = vld [vmem:[%s12692_s1 + $0x48] sm:$0xff] }
 0x8a0   :  { %v11191_v8 = vpop.f32.mrf.mxu1 }
 0x8a1   :  { %4673 = vmatpush.msrb.mxu2 %v4618_v59  ;;  %v4894_v59 = vld [vmem:[%s12701_s15 + $0x138] sm:$0xff] }
 0x8a2   :  { %v11289_v5 = vpop.f32.mrf.mxu3 }
 0x8a3   :  { %4584 = vmatmul.f32.gmra.mxu1 %v10677_v56  ;;  %4674 = vmatpush.msrb.mxu2 %v4615_v33  ;;  %v11214_v56 = vld [vmem:[%s12692_s1 + $0x8] sm:$0xff] }
 0x8a5   :  { %4675 = vmatpush.msrb.mxu2 %v4612_v31 }
 0x8a6   :  { %v11196_v6 = vpop.f32.mrf.mxu2  ;;  %4676 = vmatmul.f32.vlgmr.msrb.gmra.mxu2 %v11201_v29 }
 0x8a7   :  { %v4284_v11 = vpop.f32.mrf.mxu0 }
 0x8a8   :  { %v11204_v22 = vpop.f32.mrf.mxu1 }
 0x8aa   :  { %v11302_v17 = vpop.f32.mrf.mxu3 }
 0x8ab   :  { %4587 = vmatmul.f32.gmra.mxu1 %v10737_v45  ;;  %v11225_v45 = vld [vmem:[%s12692_s1 + $0x10] sm:$0xff] }
 0x8ae   :  { %v11209_v38 = vpop.f32.mrf.mxu2  ;;  %4679 = vmatmul.f32.gmra.mxu2 %v11214_v56 }
 0x8af   :  { %v11252_v47 = vpop.f32.mrf.mxu0 }
 0x8b0   :  { %v11217_v51 = vpop.f32.mrf.mxu1  ;;  %13083 = vst [vmem:[#allocation8_spill] sm:$0xff] %v11252_v47  ;;  %v4282_v47 = vadd.f32 %v4281_v28, %v11324_v37  ;;  %v11344_v28 = vld [vmem:[%s12692_s1 + $0x50] sm:$0xff] }
 0x8b3   :  { %4590 = vmatmul.f32.gmra.mxu1 %v10792_v63  ;;  %v11236_v63 = vld [vmem:[%s12692_s1 + $0x18] sm:$0xff] }
 0x8b6   :  { %v11220_v32 = vpop.f32.mrf.mxu2  ;;  %4682 = vmatmul.f32.gmra.mxu2 %v11225_v45 }
 0x8b7   :  { %v11267_v44 = vpop.f32.mrf.mxu0 }
 0x8b8   :  { %v11228_v15 = vpop.f32.mrf.mxu1  ;;  %13085 = vst [vmem:[#allocation24_spill] sm:$0xff] %v11267_v44  ;;  %v4888_v44 = vld [vmem:[%s12701_s15 + $0x108] sm:$0xff] }
 0x8bb   :  { %4593 = vmatmul.f32.gmra.mxu1 %v10841_v16  ;;  %v11249_v16 = vld [vmem:[%s12692_s1 + $0x20] sm:$0xff] }
 0x8be   :  { %v11231_v57 = vpop.f32.mrf.mxu2  ;;  %4685 = vmatmul.f32.gmra.mxu2 %v11236_v63 }
 0x8bf   :  { %v11281_v21 = vpop.f32.mrf.mxu0 }
 0x8c0   :  { %v11239_v26 = vpop.f32.mrf.mxu1  ;;  %13086 = vst [vmem:[#allocation36_spill] sm:$0xff] %v11281_v21  ;;  %v11334_v21 = vpop.f32.mrf.mxu3 }
 0x8c3   :  { %4596 = vmatmul.f32.gmra.mxu1 %v10880_v54  ;;  %v11264_v54 = vld [vmem:[%s12692_s1 + $0x28] sm:$0xff] }
 0x8c6   :  { %v11244_v40 = vpop.f32.mrf.mxu2  ;;  %4688 = vmatmul.f32.gmra.mxu2 %v11249_v16 }
 0x8c7   :  { %v11292_v0 = vpop.f32.mrf.mxu0 }
 0x8c8   :  { %v11254_v24 = vpop.f32.mrf.mxu1  ;;  %13088 = vst [vmem:[#allocation38_spill] sm:$0xff] %v11292_v0 }
 0x8cb   :  { %4599 = vmatmul.f32.gmra.mxu1 %v10909_v3  ;;  %v11277_v3 = vld [vmem:[%s12692_s1 + $0x30] sm:$0xff] }
 0x8ce   :  { %v11259_v53 = vpop.f32.mrf.mxu2  ;;  %4691 = vmatmul.f32.gmra.mxu2 %v11264_v54 }
 0x8cf   :  { %v11319_v33 = vpop.f32.mrf.mxu0 }
 0x8d0   :  { %v4343_v49 = vpop.f32.mrf.mxu1  ;;  %13091 = vst [vmem:[#allocation42_spill] sm:$0xff] %v11319_v33 }
 0x8d3   :  { %4602 = vmatmul.f32.gmra.mxu1 %v10930_v50  ;;  %v11286_v50 = vld [vmem:[%s12692_s1 + $0x38] sm:$0xff] }
 0x8d4   :  { %13087 = vst [vmem:[#allocation41_spill] sm:$0xff] %v11286_v50 }
 0x8d6   :  { %v11272_v7 = vpop.f32.mrf.mxu2  ;;  %4694 = vmatmul.f32.gmra.mxu2 %v11277_v3 }
 0x8d8   :  { %v4346_v23 = vpop.f32.mrf.mxu1 }
 0x8db   :  { %4605 = vmatmul.f32.gmra.mxu1 %v10939_v55  ;;  %v11297_v55 = vld [vmem:[%s12692_s1 + $0x40] sm:$0xff] }
 0x8dc   :  { %13089 = vst [vmem:[#allocation23_spill] sm:$0xff] %v11297_v55 }
 0x8de   :  { %v4405_v34 = vpop.f32.mrf.mxu2  ;;  %4697 = vmatmul.f32.gmra.mxu2 %v11286_v50 }
 0x8e0   :  { %v4349_v41 = vpop.f32.mrf.mxu1 }
 0x8e3   :  { %4608 = vmatmul.f32.gmra.mxu1 %v10946_v61  ;;  %v4897_v61 = vld [vmem:[%s12701_s15 + $0x150] sm:$0xff] }
 0x8e4   :  { %5008 = vmatpush.msra.mxu1 %v4897_v61  ;;  %v4285_v61 = vadd.f32 %v4284_v11, %v11324_v37  ;;  %v4276_v11 = vadd.f32 %v11189_v20, %v11324_v37  ;;  %v4879_v20 = vld [vmem:[%s12701_s15 + $0xc0] sm:$0xff] }
 0x8e6   :  { %v4408_v43 = vpop.f32.mrf.mxu2  ;;  %4700 = vmatmul.f32.gmra.mxu2 %v11297_v55  ;;  %5009 = vmatpush.msra.mxu1 %v4894_v59  ;;  %v4279_v59 = vadd.f32 %v11206_v10, %v11324_v37  ;;  %v4350_v4 = vadd.f32 %v4349_v41, %v4285_v61  ;;  %v4273_v61 = vadd.f32 %v11175_v60, %v11324_v37  ;;  %v4876_v60 = vld [vmem:[%s12701_s15 + $0xa8] sm:$0xff] }
 0x8e7   :  { %v4341_v42 = vadd.f32 %v11254_v24, %v4276_v11  ;;  %v4267_v24 = vadd.f32 %v11143_v25, %v11324_v37  ;;  %v4264_v25 = vadd.f32 %v11130_v19, %v11324_v37 }
 0x8e8   :  { %v11300_v48 = vpop.f32.mrf.mxu1 }
 0x8e9   :  { %13090 = vst [vmem:[#allocation10_spill] sm:$0xff] %v11300_v48  ;;  %v4891_v48 = vld [vmem:[%s12701_s15 + $0x120] sm:$0xff] }
 0x8ea   :  { %5010 = vmatpush.msra.mxu1 %v4891_v48  ;;  %v4885_v48 = vld [vmem:[%s12701_s15 + $0xf0] sm:$0xff] }
 0x8ec   :  { %5011 = vmatpush.msra.mxu1 %v4888_v44  ;;  %v4344_v44 = vadd.f32 %v4343_v49, %v4279_v59  ;;  %v11360_v49 = vpop.f32.mrf.mxu0 }
 0x8ee   :  { %v4411_v39 = vpop.f32.mrf.mxu2  ;;  %4703 = vmatmul.f32.gmra.mxu2 %v11313_v18  ;;  %5012 = vmatpush.msra.mxu1 %v4885_v48  ;;  %v4409_v33 = vadd.f32 %v4408_v43, %v4344_v44 }
 0x8f0   :  { %v11321_v31 = vpop.f32.mrf.mxu1  ;;  %v4652_v11 = vmax.f32 %v4409_v33, 0.0  ;;  %v4870_v33 = vld [vmem:[%s12701_s15 + $0x78] sm:$0xff] }
 0x8f1   :  { %13092 = vst [vmem:[#allocation43_spill] sm:$0xff] %v11321_v31  ;;  %v4347_v31 = vadd.f32 %v4346_v23, %v4282_v47  ;;  %v4882_v23 = vld [vmem:[%s12701_s15 + $0xd8] sm:$0xff] }
 0x8f2   :  { %5013 = vmatpush.msra.mxu1 %v4882_v23 }
 0x8f3   :  { %v4412_v10 = vadd.f32 %v4411_v39, %v4347_v31  ;;  %v4406_v39 = vadd.f32 %v4405_v34, %v4341_v42  ;;  %v11380_v42 = vld [vmem:[%s12692_s1 + $0x58] sm:$0xff] }
 0x8f4   :  { %5014 = vmatpush.msra.mxu1 %v4879_v20 }
 0x8f5   :  { %v4655_v31 = vmax.f32 %v4412_v10, 0.0  ;;  %v4649_v34 = vmax.f32 %v4406_v39, 0.0  ;;  %v4261_v10 = vadd.f32 %v11119_v9, %v11324_v37  ;;  %v4864_v9 = vld [vmem:[%s12701_s15 + $0x48] sm:$0xff] }
 0x8f6   :  { %v4414_v0 = vpop.f32.mrf.mxu2  ;;  %4706 = vmatmul.f32.gmra.mxu2 %v11344_v28  ;;  %5015 = vmatpush.msra.mxu1 %v4876_v60 }
 0x8f7   :  { %v4415_v47 = vadd.f32 %v4414_v0, %v4350_v4  ;;  %v4270_v4 = vadd.f32 %v11164_v46, %v11324_v37  ;;  %v4338_v0 = vadd.f32 %v11239_v26, %v4273_v61  ;;  %v4873_v46 = vld [vmem:[%s12701_s15 + $0x90] sm:$0xff]  ;;  %v11375_v26 = vpop.f32.mrf.mxu3  ;;  %v4326_v61 = vadd.f32 %v11191_v8, %v4261_v10 }
 0x8f8   :  { %v11352_v41 = vpop.f32.mrf.mxu1  ;;  %5016 = vmatpush.msra.mxu1 %v4873_v46  ;;  %v4861_v8 = vld [vmem:[%s12701_s15 + $0x30] sm:$0xff]  ;;  %v13094_v46 = vld [vmem:[#allocation21_spill] sm:$0xff] }
 0x8f9   :  { %v4658_v48 = vmax.f32 %v4415_v47, 0.0  ;;  %v4335_v43 = vadd.f32 %v11228_v15, %v4270_v4  ;;  %v4403_v59 = vadd.f32 %v11272_v7, %v4338_v0  ;;  %v4332_v15 = vadd.f32 %v11217_v51, %v4267_v24  ;;  %v4867_v51 = vld [vmem:[%s12701_s15 + $0x60] sm:$0xff] }
 0x8fa   :  { %5017 = vmatpush.msra.mxu1 %v4870_v33  ;;  %v4329_v47 = vadd.f32 %v11204_v22, %v4264_v25  ;;  %v11406_v22 = vpop.f32.mrf.mxu0  ;;  %v4246_v25 = vadd.f32 %v13094_v46, %v11324_v37 }
 0x8fb   :  { %4725 = vmatpush.msrb.mxu3 %v4658_v48  ;;  %v4400_v7 = vadd.f32 %v11259_v53, %v4335_v43  ;;  %v4397_v19 = vadd.f32 %v11244_v40, %v4332_v15  ;;  %v4646_v23 = vmax.f32 %v4403_v59, 0.0  ;;  %v4258_v53 = vadd.f32 %v11110_v1, %v11324_v37  ;;  %v13093_v43 = vld [vmem:[#allocation12_spill] sm:$0xff]  ;;  %v13095_v15 = vld [vmem:[#allocation39_spill] sm:$0xff] }
 0x8fc   :  { %5018 = vmatpush.msra.mxu1 %v4867_v51  ;;  %v4394_v48 = vadd.f32 %v11231_v57, %v4329_v47  ;;  %v4255_v40 = vadd.f32 %v11102_v62, %v11324_v37  ;;  %v4391_v1 = vadd.f32 %v11220_v32, %v4326_v61  ;;  %v11418_v57 = vld [vmem:[%s12692_s1 + $0x60] sm:$0xff]  ;;  %v4252_v62 = vadd.f32 %v11090_v52, %v11324_v37 }
 0x8fd   :  { %4726 = vmatpush.msrb.mxu3 %v4655_v31  ;;  %v4643_v20 = vmax.f32 %v4400_v7, 0.0  ;;  %v4323_v4 = vadd.f32 %v11180_v35, %v4258_v53  ;;  %v4640_v0 = vmax.f32 %v4397_v19, 0.0  ;;  %v4858_v31 = vld [vmem:[%s12701_s15 + $0x18] sm:$0xff]  ;;  %v4249_v59 = vadd.f32 %v13093_v43, %v11324_v37  ;;  %v11452_v53 = vld [vmem:[%s12692_s1 + $0x68] sm:$0xff] }
 0x8fe   :  { %4709 = vmatmul.f32.gmra.mxu2 %v11380_v42  ;;  %5019 = vmatpush.msra.mxu1 %v4864_v9  ;;  %v4320_v35 = vadd.f32 %v11171_v58, %v4255_v40  ;;  %v4637_v39 = vmax.f32 %v4394_v48, 0.0  ;;  %v4317_v52 = vadd.f32 %v11154_v14, %v4252_v62  ;;  %v13096_v14 = vld [vmem:[#allocation6_spill] sm:$0xff]  ;;  %v13099_v48 = vld [vmem:[#allocation40_spill] sm:$0xff] }
 0x8ff   :  { %4727 = vmatpush.msrb.mxu3 %v4652_v11  ;;  %v4388_v32 = vadd.f32 %v11209_v38, %v4323_v4  ;;  %v11428_v60 = vpop.f32.mrf.mxu3  ;;  %v4634_v11 = vmax.f32 %v4391_v1, 0.0  ;;  %v4855_v38 = vld [vmem:[%s12701_s15] sm:$0xff]  ;;  %v4314_v7 = vadd.f32 %v13095_v15, %v4249_v59  ;;  %v4243_v10 = vadd.f32 %v13096_v14, %v11324_v37  ;;  %v13100_v4 = vld [vmem:[#allocation7_spill] sm:$0xff] }
 0x900   :  { %v11390_v44 = vpop.f32.mrf.mxu1  ;;  %5020 = vmatpush.msra.mxu1 %v4861_v8  ;;  %v4385_v58 = vadd.f32 %v11196_v6, %v4320_v35  ;;  %v13097_v6 = vld [vmem:[#allocation16_spill] sm:$0xff]  ;;  %v13101_v35 = vld [vmem:[#allocation11_spill] sm:$0xff] }
 0x901   :  { %4728 = vmatpush.msrb.mxu3 %v4649_v34  ;;  %v4382_v34 = vadd.f32 %v11186_v27, %v4317_v52  ;;  %v4631_v33 = vmax.f32 %v4388_v32, 0.0  ;;  %v4311_v47 = vadd.f32 %v13097_v6, %v4246_v25  ;;  %v4379_v19 = vadd.f32 %v11177_v36, %v4314_v7  ;;  %v13098_v27 = vld [vmem:[#allocation3_spill] sm:$0xff]  ;;  %v11482_v52 = vld [vmem:[%s12692_s1 + $0x78] sm:$0xff] }
 0x902   :  { %5021 = vmatpush.msra.mxu1 %v4858_v31  ;;  %v11447_v51 = vpop.f32.mrf.mxu0  ;;  %v4240_v61 = vadd.f32 %v13098_v27, %v11324_v37 }
 0x903   :  { %4729 = vmatpush.msrb.mxu3 %v4646_v23  ;;  %v4628_v23 = vmax.f32 %v4385_v58, 0.0  ;;  %v4376_v9 = vadd.f32 %v11168_v30, %v4311_v47  ;;  %v4625_v40 = vmax.f32 %v4382_v34, 0.0  ;;  %v4622_v8 = vmax.f32 %v4379_v19, 0.0  ;;  %v11469_v30 = vld [vmem:[%s12692_s1 + $0x70] sm:$0xff] }
 0x904   :  { %5022 = vmatpush.msra.mxu1 %v4855_v38  ;;  %v4305_v1 = vadd.f32 %v13100_v4, %v4240_v61 }
 0x905   :  { %4730 = vmatpush.msrb.mxu3 %v4643_v20  ;;  %v4308_v20 = vadd.f32 %v13099_v48, %v4243_v10 }
 0x906   :  { %4712 = vmatmul.f32.gmra.mxu2 %v11418_v57  ;;  %v4370_v32 = vadd.f32 %v13101_v35, %v4305_v1 }
 0x907   :  { %4731 = vmatpush.msrb.mxu3 %v4640_v0  ;;  %v4373_v0 = vadd.f32 %v11150_v2, %v4308_v20  ;;  %v11463_v62 = vpop.f32.mrf.mxu3 }
 0x908   :  { %v11430_v24 = vpop.f32.mrf.mxu1  ;;  %v4613_v31 = vmax.f32 %v4370_v32, 0.0  ;;  %v11523_v32 = vperm.slane %v10952_v13, 2  ;;  %v4948_v13 = vld [vmem:[%s12701_s15 + $0x2e8] sm:$0xff] }
 0x909   :  { %4732 = vmatpush.msrb.mxu3 %v4637_v39  ;;  %v4619_v39 = vmax.f32 %v4376_v9, 0.0  ;;  %v4616_v37 = vmax.f32 %v4373_v0, 0.0  ;;  %5072 = vmatpush.msra.mxu2 %v4948_v13 }
 0x90a   :  { %v11472_v2 = vpop.f32.mrf.mxu0 }
 0x90b   :  { %4733 = vmatpush.msrb.mxu3 %v4634_v11 }
 0x90d   :  { %4734 = vmatpush.msrb.mxu3 %v4631_v33 }
 0x90e   :  { %4715 = vmatmul.f32.gmra.mxu2 %v11452_v53 }
 0x90f   :  { %4735 = vmatpush.msrb.mxu3 %v4628_v23  ;;  %v11477_v59 = vpop.f32.mrf.mxu3 }
 0x910   :  { %v11459_v36 = vpop.f32.mrf.mxu1 }
 0x911   :  { %4736 = vmatpush.msrb.mxu3 %v4625_v40 }
 0x912   :  { %v11487_v11 = vpop.f32.mrf.mxu0 }
 0x913   :  { %4737 = vmatpush.msrb.mxu3 %v4622_v8 }
 0x915   :  { %4738 = vmatpush.msrb.mxu3 %v4619_v39 }
 0x916   :  { %4718 = vmatmul.f32.gmra.mxu2 %v11469_v30 }
 0x917   :  { %4739 = vmatpush.msrb.mxu3 %v4616_v37  ;;  %v4464_v38 = vpop.f32.mrf.mxu3 }
 0x918   :  { %v11474_v43 = vpop.f32.mrf.mxu1 }
 0x919   :  { %4740 = vmatpush.msrb.mxu3 %v4613_v31 }
 0x91a   :  { %4741 = vmatmul.f32.vlgmr.msrb.gmra.mxu3 %v11201_v29  ;;  %v11496_v15 = vpop.f32.mrf.mxu0 }
 0x91e   :  { %4721 = vmatmul.f32.gmra.mxu2 %v11482_v52 }
 0x91f   :  { %v4467_v7 = vpop.f32.mrf.mxu3 }
 0x920   :  { %v11485_v58 = vpop.f32.mrf.mxu1 }
 0x922   :  { %4744 = vmatmul.f32.gmra.mxu3 %v11214_v56  ;;  %v4532_v14 = vpop.f32.mrf.mxu0 }
 0x927   :  { %v4470_v47 = vpop.f32.mrf.mxu3 }
 0x928   :  { %v11490_v46 = vpop.f32.mrf.mxu1 }
 0x929   :  { %v11492_v25 = vpop.f32.mrf.mxu2 }
 0x92a   :  { %13102 = vst [vmem:[#allocation44_spill] sm:$0xff] %v11492_v25  ;;  %4747 = vmatmul.f32.gmra.mxu3 %v11225_v45  ;;  %5023 = vmatmul.f32.vlgmr.msra.gmra.mxu1 %v11492_v25  ;;  %v4535_v19 = vpop.f32.mrf.mxu0 }
 0x92f   :  { %v4473_v61 = vpop.f32.mrf.mxu3 }
 0x930   :  { %v11498_v34 = vpop.f32.mrf.mxu1 }
 0x931   :  { %v11500_v33 = vpop.f32.mrf.mxu2 }
 0x932   :  { %13103 = vst [vmem:[#allocation45_spill] sm:$0xff] %v11500_v33  ;;  %4750 = vmatmul.f32.gmra.mxu3 %v11236_v63  ;;  %5026 = vmatmul.f32.gmra.mxu1 %v11500_v33  ;;  %v4538_v9 = vpop.f32.mrf.mxu0 }
 0x937   :  { %v4476_v40 = vpop.f32.mrf.mxu3 }
 0x938   :  { %v11504_v10 = vpop.f32.mrf.mxu1  ;;  %v4477_v37 = vadd.f32 %v4476_v40, %v11523_v32 }
 0x939   :  { %v11506_v6 = vpop.f32.mrf.mxu2 }
 0x93a   :  { %13104 = vst [vmem:[#allocation46_spill] sm:$0xff] %v11506_v6  ;;  %4753 = vmatmul.f32.gmra.mxu3 %v11249_v16  ;;  %5029 = vmatmul.f32.gmra.mxu1 %v11506_v6  ;;  %v4541_v0 = vpop.f32.mrf.mxu0 }
 0x93b   :  { %v4542_v6 = vadd.f32 %v4541_v0, %v4477_v37 }
 0x93f   :  { %v4479_v8 = vpop.f32.mrf.mxu3 }
 0x940   :  { %v4597_v23 = vpop.f32.mrf.mxu1  ;;  %v4480_v31 = vadd.f32 %v4479_v8, %v11523_v32 }
 0x941   :  { %v11510_v27 = vpop.f32.mrf.mxu2 }
 0x942   :  { %13105 = vst [vmem:[#allocation47_spill] sm:$0xff] %v11510_v27  ;;  %4756 = vmatmul.f32.gmra.mxu3 %v11264_v54  ;;  %5032 = vmatmul.f32.gmra.mxu1 %v11510_v27  ;;  %v4544_v27 = vpop.f32.mrf.mxu0 }
 0x943   :  { %v4545_v33 = vadd.f32 %v4544_v27, %v4480_v31  ;;  %v4927_v31 = vld [vmem:[%s12701_s15 + $0x240] sm:$0xff] }
 0x948   :  { %v4600_v48 = vpop.f32.mrf.mxu1 }
 0x949   :  { %v11514_v20 = vpop.f32.mrf.mxu2 }
 0x94a   :  { %13106 = vst [vmem:[#allocation48_spill] sm:$0xff] %v11514_v20  ;;  %4759 = vmatmul.f32.gmra.mxu3 %v11277_v3  ;;  %5035 = vmatmul.f32.gmra.mxu1 %v11514_v20  ;;  %v4474_v20 = vadd.f32 %v4473_v61, %v11523_v32  ;;  %v4945_v61 = vld [vmem:[%s12701_s15 + $0x2d0] sm:$0xff] }
 0x94b   :  { %5073 = vmatpush.msra.mxu2 %v4945_v61  ;;  %v4946_v61 = vld [vmem:[%s12701_s15 + $0x2d8] sm:$0xff] }
 0x950   :  { %v4603_v4 = vpop.f32.mrf.mxu1 }
 0x951   :  { %v11518_v1 = vpop.f32.mrf.mxu2 }
 0x952   :  { %13107 = vst [vmem:[#allocation49_spill] sm:$0xff] %v11518_v1  ;;  %4762 = vmatmul.f32.gmra.mxu3 %v11286_v50  ;;  %5038 = vmatmul.f32.gmra.mxu1 %v11518_v1  ;;  %v4471_v1 = vadd.f32 %v4470_v47, %v11523_v32  ;;  %v4465_v47 = vadd.f32 %v4464_v38, %v11523_v32 }
 0x954   :  { %v4536_v27 = vadd.f32 %v4535_v19, %v4471_v1  ;;  %v4936_v19 = vld [vmem:[%s12701_s15 + $0x288] sm:$0xff] }
 0x958   :  { %v4606_v35 = vpop.f32.mrf.mxu1 }
 0x959   :  { %v11525_v39 = vpop.f32.mrf.mxu2  ;;  %v4607_v50 = vadd.f32 %v4606_v35, %v4542_v6 }
 0x95a   :  { %13108 = vst [vmem:[#allocation50_spill] sm:$0xff] %v11525_v39  ;;  %4765 = vmatmul.f32.gmra.mxu3 %v11297_v55  ;;  %5041 = vmatmul.f32.gmra.mxu1 %v11525_v39  ;;  %v4468_v55 = vadd.f32 %v4467_v7, %v11523_v32  ;;  %v4539_v39 = vadd.f32 %v4538_v9, %v4474_v20  ;;  %v4942_v7 = vld [vmem:[%s12701_s15 + $0x2b8] sm:$0xff] }
 0x95b   :  { %5074 = vmatpush.msra.mxu2 %v4942_v7  ;;  %v4601_v20 = vadd.f32 %v4600_v48, %v4536_v27  ;;  %v4656_v38 = vmax.f32 %v4607_v50, 0.0  ;;  %v4459_v9 = vadd.f32 %v11463_v62, %v11523_v32  ;;  %v4456_v50 = vadd.f32 %v11428_v60, %v11523_v32  ;;  %v4921_v27 = vld [vmem:[%s12701_s15 + $0x210] sm:$0xff] }
 0x95c   :  { %v4604_v0 = vadd.f32 %v4603_v4, %v4539_v39  ;;  %v4533_v6 = vadd.f32 %v4532_v14, %v4468_v55  ;;  %v4530_v4 = vadd.f32 %v11496_v15, %v4465_v47  ;;  %v4933_v55 = vld [vmem:[%s12701_s15 + $0x270] sm:$0xff]  ;;  %v4930_v15 = vld [vmem:[%s12701_s15 + $0x258] sm:$0xff]  ;;  %v4447_v47 = vadd.f32 %v11302_v17, %v11523_v32 }
 0x95d   :  { %v4650_v48 = vmax.f32 %v4601_v20, 0.0  ;;  %v4524_v60 = vadd.f32 %v11472_v2, %v4459_v9  ;;  %v4521_v2 = vadd.f32 %v11447_v51, %v4456_v50  ;;  %v4934_v50 = vld [vmem:[%s12701_s15 + $0x278] sm:$0xff] }
 0x95e   :  { %v4598_v1 = vadd.f32 %v4597_v23, %v4533_v6  ;;  %v4653_v35 = vmax.f32 %v4604_v0, 0.0  ;;  %v4595_v14 = vadd.f32 %v11504_v10, %v4530_v4  ;;  %v4453_v23 = vadd.f32 %v11375_v26, %v11523_v32  ;;  %v4949_v10 = vld [vmem:[%s12701_s15 + $0x2f0] sm:$0xff]  ;;  %v4943_v0 = vld [vmem:[%s12701_s15 + $0x2c0] sm:$0xff] }
 0x95f   :  { %5267 = vmatpush.msrb.mxu1 %v4949_v10  ;;  %v4450_v26 = vadd.f32 %v11334_v21, %v11523_v32  ;;  %v4586_v51 = vadd.f32 %v11485_v58, %v4521_v2  ;;  %v13111_v4 = vld [vmem:[#allocation38_spill] sm:$0xff]  ;;  %v13115_v2 = vld [vmem:[#allocation8_spill] sm:$0xff] }
 0x960   :  { %v4609_v25 = vpop.f32.mrf.mxu1  ;;  %v4647_v39 = vmax.f32 %v4598_v1, 0.0  ;;  %v4644_v13 = vmax.f32 %v4595_v14, 0.0  ;;  %v4518_v21 = vadd.f32 %v11406_v22, %v4453_v23 }
 0x961   :  { %v4610_v40 = vadd.f32 %v4609_v25, %v4545_v33  ;;  %v11540_v8 = vpop.f32.mrf.mxu2  ;;  %v4939_v25 = vld [vmem:[%s12701_s15 + $0x2a0] sm:$0xff]  ;;  %v4462_v33 = vadd.f32 %v11477_v59, %v11523_v32  ;;  %5268 = vmatpush.msrb.mxu1 %v4946_v61  ;;  %v4515_v17 = vadd.f32 %v11360_v49, %v4450_v26  ;;  %v4635_v20 = vmax.f32 %v4586_v51, 0.0  ;;  %v4928_v61 = vld [vmem:[%s12701_s15 + $0x248] sm:$0xff] }
 0x962   :  { %4768 = vmatmul.f32.gmra.mxu3 %v11313_v18  ;;  %5044 = vmatmul.f32.gmra.mxu1 %v11540_v8  ;;  %v4583_v22 = vadd.f32 %v11474_v43, %v4518_v21  ;;  %v13109_v49 = vld [vmem:[#allocation42_spill] sm:$0xff] }
 0x963   :  { %v4659_v37 = vmax.f32 %v4610_v40, 0.0  ;;  %5075 = vmatpush.msra.mxu2 %v4939_v25  ;;  %v4527_v59 = vadd.f32 %v11487_v11, %v4462_v33  ;;  %v4924_v40 = vld [vmem:[%s12701_s15 + $0x228] sm:$0xff]  ;;  %5269 = vmatpush.msrb.mxu1 %v4943_v0  ;;  %v4918_v33 = vld [vmem:[%s12701_s15 + $0x1f8] sm:$0xff]  ;;  %v4512_v43 = vadd.f32 %v13109_v49, %v4447_v47  ;;  %v4580_v6 = vadd.f32 %v11459_v36, %v4515_v17  ;;  %v13117_v47 = vld [vmem:[#allocation10_spill] sm:$0xff] }
 0x964   :  { %v4940_v25 = vld [vmem:[%s12701_s15 + $0x2a8] sm:$0xff] }
 0x965   :  { %4790 = vmatpush.msra.mxu0 %v4659_v37  ;;  %5076 = vmatpush.msra.mxu2 %v4936_v19  ;;  %v4592_v11 = vadd.f32 %v11498_v34, %v4527_v59  ;;  %v4589_v34 = vadd.f32 %v11490_v46, %v4524_v60  ;;  %v4444_v37 = vadd.f32 %v11289_v5, %v11523_v32  ;;  %v4915_v19 = vld [vmem:[%s12701_s15 + $0x1e0] sm:$0xff]  ;;  %v13112_v59 = vld [vmem:[#allocation37_spill] sm:$0xff]  ;;  %v4909_v60 = vld [vmem:[%s12701_s15 + $0x1b0] sm:$0xff] }
 0x966   :  { %v4441_v5 = vadd.f32 %v11270_v12, %v11523_v32  ;;  %5270 = vmatpush.msrb.mxu1 %v4940_v25  ;;  %v13110_v12 = vld [vmem:[#allocation14_spill] sm:$0xff]  ;;  %v4577_v36 = vadd.f32 %v11430_v24, %v4512_v43  ;;  %v4435_v14 = vadd.f32 %v13112_v59, %v11523_v32  ;;  %v4629_v24 = vmax.f32 %v4580_v6, 0.0  ;;  %v4916_v25 = vld [vmem:[%s12701_s15 + $0x1e8] sm:$0xff]  ;;  %v4898_v59 = vld [vmem:[%s12701_s15 + $0x158] sm:$0xff] }
 0x967   :  { %4791 = vmatpush.msra.mxu0 %v4656_v38  ;;  %5077 = vmatpush.msra.mxu2 %v4933_v55  ;;  %v4641_v46 = vmax.f32 %v4592_v11, 0.0  ;;  %v4638_v58 = vmax.f32 %v4589_v34, 0.0  ;;  %v4937_v38 = vld [vmem:[%s12701_s15 + $0x290] sm:$0xff]  ;;  %v4438_v9 = vadd.f32 %v13110_v12, %v11523_v32  ;;  %v4509_v1 = vadd.f32 %v13111_v4, %v4444_v37  ;;  %v4912_v55 = vld [vmem:[%s12701_s15 + $0x1c8] sm:$0xff]  ;;  %v4906_v32 = vld [vmem:[%s12701_s15 + $0x198] sm:$0xff] }
 0x968   :  { %5271 = vmatpush.msrb.mxu1 %v4937_v38  ;;  %v13114_v11 = vld [vmem:[#allocation24_spill] sm:$0xff]  ;;  %v4500_v34 = vadd.f32 %v13115_v2, %v4435_v14  ;;  %v4922_v37 = vld [vmem:[%s12701_s15 + $0x218] sm:$0xff]  ;;  %v4907_v43 = vld [vmem:[%s12701_s15 + $0x1a0] sm:$0xff] }
 0x969   :  { %4792 = vmatpush.msra.mxu0 %v4653_v35  ;;  %v11566_v62 = vpop.f32.mrf.mxu2  ;;  %5078 = vmatpush.msra.mxu2 %v4930_v15  ;;  %v4632_v35 = vmax.f32 %v4583_v22, 0.0  ;;  %v4574_v23 = vadd.f32 %v11390_v44, %v4509_v1  ;;  %v4931_v44 = vld [vmem:[%s12701_s15 + $0x260] sm:$0xff]  ;;  %v4880_v2 = vld [vmem:[%s12701_s15 + $0xc8] sm:$0xff] }
 0x96a   :  { %4771 = vmatmul.f32.gmra.mxu3 %v11344_v28  ;;  %5047 = vmatmul.f32.gmra.mxu1 %v11566_v62  ;;  %v4565_v21 = vadd.f32 %v13117_v47, %v4500_v34  ;;  %v4987_v14 = vld [vmem:[%s12701_s15 + $0x420] sm:$0xff] }
 0x96b   :  { %4793 = vmatpush.msra.mxu0 %v4650_v48  ;;  %5079 = vmatpush.msra.mxu2 %v4927_v31  ;;  %v13113_v48 = vld [vmem:[#allocation36_spill] sm:$0xff]  ;;  %v4626_v31 = vmax.f32 %v4577_v36, 0.0  ;;  %v4963_v47 = vld [vmem:[%s12701_s15 + $0x360] sm:$0xff] }
 0x96c   :  { %v4506_v15 = vadd.f32 %v13113_v48, %v4441_v5  ;;  %5272 = vmatpush.msrb.mxu1 %v4934_v50  ;;  %v4614_v17 = vmax.f32 %v4565_v21, 0.0  ;;  %v4910_v5 = vld [vmem:[%s12701_s15 + $0x1b8] sm:$0xff]  ;;  %v4895_v48 = vld [vmem:[%s12701_s15 + $0x140] sm:$0xff] }
 0x96d   :  { %4794 = vmatpush.msra.mxu0 %v4647_v39  ;;  %5080 = vmatpush.msra.mxu2 %v4924_v40  ;;  %v4503_v39 = vadd.f32 %v13114_v11, %v4438_v9  ;;  %v13118_v9 = vld [vmem:[#allocation41_spill] sm:$0xff]  ;;  %v4981_v11 = vld [vmem:[%s12701_s15 + $0x3f0] sm:$0xff]  ;;  %v4871_v21 = vld [vmem:[%s12701_s15 + $0x80] sm:$0xff] }
 0x96e   :  { %v4571_v10 = vadd.f32 %v11352_v41, %v4506_v15  ;;  %v4623_v41 = vmax.f32 %v4574_v23, 0.0  ;;  %5273 = vmatpush.msrb.mxu1 %v4931_v44  ;;  %v4990_v50 = vld [vmem:[%s12701_s15 + $0x438] sm:$0xff]  ;;  %v4984_v23 = vld [vmem:[%s12701_s15 + $0x408] sm:$0xff] }
 0x96f   :  { %4795 = vmatpush.msra.mxu0 %v4644_v13  ;;  %5081 = vmatpush.msra.mxu2 %v4921_v27  ;;  %v13116_v13 = vld [vmem:[#allocation43_spill] sm:$0xff]  ;;  %v4925_v27 = vld [vmem:[%s12701_s15 + $0x230] sm:$0xff] }
 0x970   :  { %v4568_v40 = vadd.f32 %v13116_v13, %v4503_v39  ;;  %v4620_v51 = vmax.f32 %v4571_v10, 0.0  ;;  %5274 = vmatpush.msrb.mxu1 %v4928_v61  ;;  %v4889_v39 = vld [vmem:[%s12701_s15 + $0x110] sm:$0xff]  ;;  %v4978_v10 = vld [vmem:[%s12701_s15 + $0x3d8] sm:$0xff]  ;;  %v4972_v44 = vld [vmem:[%s12701_s15 + $0x3a8] sm:$0xff] }
 0x971   :  { %4796 = vmatpush.msra.mxu0 %v4641_v46  ;;  %v11607_v7 = vpop.f32.mrf.mxu2  ;;  %5082 = vmatpush.msra.mxu2 %v4918_v33  ;;  %v4903_v46 = vld [vmem:[%s12701_s15 + $0x180] sm:$0xff]  ;;  %v4913_v33 = vld [vmem:[%s12701_s15 + $0x1d0] sm:$0xff]  ;;  %v4966_v61 = vld [vmem:[%s12701_s15 + $0x378] sm:$0xff] }
 0x972   :  { %4774 = vmatmul.f32.gmra.mxu3 %v11380_v42  ;;  %5050 = vmatmul.f32.gmra.mxu1 %v11607_v7  ;;  %v4617_v0 = vmax.f32 %v4568_v40, 0.0  ;;  %v4969_v40 = vld [vmem:[%s12701_s15 + $0x390] sm:$0xff] }
 0x973   :  { %4797 = vmatpush.msra.mxu0 %v4638_v58  ;;  %5083 = vmatpush.msra.mxu2 %v4915_v19  ;;  %v4919_v58 = vld [vmem:[%s12701_s15 + $0x200] sm:$0xff] }
 0x974   :  { %5275 = vmatpush.msrb.mxu1 %v4925_v27 }
 0x975   :  { %4798 = vmatpush.msra.mxu0 %v4635_v20  ;;  %5084 = vmatpush.msra.mxu2 %v4912_v55  ;;  %v4901_v55 = vld [vmem:[%s12701_s15 + $0x170] sm:$0xff] }
 0x976   :  { %5276 = vmatpush.msrb.mxu1 %v4922_v37  ;;  %v4957_v37 = vld [vmem:[%s12701_s15 + $0x330] sm:$0xff] }
 0x977   :  { %4799 = vmatpush.msra.mxu0 %v4632_v35  ;;  %5085 = vmatpush.msra.mxu2 %v4909_v60  ;;  %v4993_v35 = vld [vmem:[%s12701_s15 + $0x450] sm:$0xff] }
 0x978   :  { %5277 = vmatpush.msrb.mxu1 %v4919_v58  ;;  %v4862_v58 = vld [vmem:[%s12701_s15 + $0x38] sm:$0xff] }
 0x979   :  { %4800 = vmatpush.msra.mxu0 %v4629_v24  ;;  %v11649_v26 = vpop.f32.mrf.mxu2  ;;  %5086 = vmatpush.msra.mxu2 %v4906_v32  ;;  %v4892_v24 = vld [vmem:[%s12701_s15 + $0x128] sm:$0xff]  ;;  %v4883_v32 = vld [vmem:[%s12701_s15 + $0xe0] sm:$0xff] }
 0x97a   :  { %4777 = vmatmul.f32.gmra.mxu3 %v11418_v57  ;;  %5053 = vmatmul.f32.gmra.mxu1 %v11649_v26 }
 0x97b   :  { %4801 = vmatpush.msra.mxu0 %v4626_v31  ;;  %5087 = vmatpush.msra.mxu2 %v4903_v46  ;;  %v4975_v31 = vld [vmem:[%s12701_s15 + $0x3c0] sm:$0xff]  ;;  %v4868_v46 = vld [vmem:[%s12701_s15 + $0x68] sm:$0xff] }
 0x97c   :  { %5278 = vmatpush.msrb.mxu1 %v4916_v25  ;;  %v4997_v25 = vld [vmem:[%s12701_s15 + $0x470] sm:$0xff] }
 0x97d   :  { %4802 = vmatpush.msra.mxu0 %v4623_v41  ;;  %v4877_v41 = vld [vmem:[%s12701_s15 + $0xb0] sm:$0xff]  ;;  %5332 = vmatpush.msrb.mxu2 %v4997_v25 }
 0x97e   :  { %5279 = vmatpush.msrb.mxu1 %v4913_v33  ;;  %v4951_v33 = vld [vmem:[%s12701_s15 + $0x300] sm:$0xff]  ;;  %v13121_v25 = vld [vmem:[#allocation44_spill] sm:$0xff] }
 0x97f   :  { %4803 = vmatpush.msra.mxu0 %v4620_v51  ;;  %v4960_v51 = vld [vmem:[%s12701_s15 + $0x348] sm:$0xff] }
 0x980   :  { %5280 = vmatpush.msrb.mxu1 %v4910_v5  ;;  %v4859_v5 = vld [vmem:[%s12701_s15 + $0x20] sm:$0xff] }
 0x981   :  { %4804 = vmatpush.msra.mxu0 %v4617_v0  ;;  %v11671_v22 = vpop.f32.mrf.mxu2 }
 0x982   :  { %4780 = vmatmul.f32.gmra.mxu3 %v11452_v53  ;;  %5056 = vmatmul.f32.gmra.mxu1 %v11671_v22 }
 0x983   :  { %4805 = vmatpush.msra.mxu0 %v4614_v17  ;;  %5281 = vmatpush.msrb.mxu1 %v4907_v43  ;;  %v4865_v17 = vld [vmem:[%s12701_s15 + $0x50] sm:$0xff]  ;;  %v4994_v43 = vld [vmem:[%s12701_s15 + $0x458] sm:$0xff] }
 0x984   :  { %4806 = vmatmul.f32.vlgmr.msra.gmra.mxu0 %v11201_v29  ;;  %v4904_v29 = vld [vmem:[%s12701_s15 + $0x188] sm:$0xff]  ;;  %5333 = vmatpush.msrb.mxu2 %v4994_v43  ;;  %v4959_v43 = vld [vmem:[%s12701_s15 + $0x340] sm:$0xff] }
 0x985   :  { %5282 = vmatpush.msrb.mxu1 %v4904_v29  ;;  %5202 = vmatpush.msrb.mxu0 %v4901_v55  ;;  %v4856_v29 = vld [vmem:[%s12701_s15 + $0x8] sm:$0xff] }
 0x987   :  { %5203 = vmatpush.msrb.mxu0 %v4898_v59  ;;  %v4998_v59 = vld [vmem:[%s12701_s15 + $0x478] sm:$0xff] }
 0x988   :  { %5527 = vmatpush.msra.mxu1 %v4998_v59 }
 0x989   :  { %v11688_v49 = vpop.f32.mrf.mxu2  ;;  %5204 = vmatpush.msrb.mxu0 %v4895_v48  ;;  %v4976_v48 = vld [vmem:[%s12701_s15 + $0x3c8] sm:$0xff] }
 0x98a   :  { %4783 = vmatmul.f32.gmra.mxu3 %v11469_v30  ;;  %5059 = vmatmul.f32.gmra.mxu1 %v11688_v49 }
 0x98b   :  { %5205 = vmatpush.msrb.mxu0 %v4892_v24  ;;  %v4973_v24 = vld [vmem:[%s12701_s15 + $0x3b0] sm:$0xff] }
 0x98c   :  { %4809 = vmatmul.f32.gmra.mxu0 %v11214_v56 }
 0x98d   :  { %5206 = vmatpush.msrb.mxu0 %v4889_v39  ;;  %v4970_v39 = vld [vmem:[%s12701_s15 + $0x398] sm:$0xff] }
 0x991   :  { %v11699_v6 = vpop.f32.mrf.mxu2 }
 0x992   :  { %4786 = vmatmul.f32.gmra.mxu3 %v11482_v52  ;;  %5062 = vmatmul.f32.gmra.mxu1 %v11699_v6 }
 0x994   :  { %4812 = vmatmul.f32.gmra.mxu0 %v11225_v45 }
 0x999   :  { %v11704_v20 = vpop.f32.mrf.mxu2 }
 0x99a   :  { %5065 = vmatmul.f32.gmra.mxu1 %v11704_v20 }
 0x99c   :  { %4815 = vmatmul.f32.gmra.mxu0 %v11236_v63 }
 0x99d   :  { %v11708_v38 = vpop.f32.mrf.mxu3 }
 0x99e   :  { %5088 = vmatmul.f32.vlgmr.msra.gmra.mxu2 %v11708_v38 }
 0x9a1   :  { %v11711_v56 = vpop.f32.mrf.mxu2 }
 0x9a2   :  { %5068 = vmatmul.f32.gmra.mxu1 %v11711_v56 }
 0x9a4   :  { %4818 = vmatmul.f32.gmra.mxu0 %v11249_v16 }
 0x9a5   :  { %v11715_v19 = vpop.f32.mrf.mxu3 }
 0x9a6   :  { %5091 = vmatmul.f32.gmra.mxu2 %v11715_v19 }
 0x9a7   :  { %v11718_v45 = vpop.f32.mrf.mxu1 }
 0x9aa   :  { %5283 = vmatmul.f32.vlgmr.msrb.gmra.mxu1 %v11708_v38 }
 0x9ac   :  { %4821 = vmatmul.f32.gmra.mxu0 %v11264_v54  ;;  %v4996_v54 = vld [vmem:[%s12701_s15 + $0x468] sm:$0xff] }
 0x9ad   :  { %v11722_v63 = vpop.f32.mrf.mxu3  ;;  %5137 = vmatpush.msra.mxu3 %v4996_v54 }
 0x9ae   :  { %5094 = vmatmul.f32.gmra.mxu2 %v11722_v63 }
 0x9af   :  { %v11727_v12 = vpop.f32.mrf.mxu1  ;;  %5138 = vmatpush.msra.mxu3 %v4993_v35  ;;  %v4985_v35 = vld [vmem:[%s12701_s15 + $0x410] sm:$0xff] }
 0x9b1   :  { %5139 = vmatpush.msra.mxu3 %v4990_v50  ;;  %v4979_v50 = vld [vmem:[%s12701_s15 + $0x3e0] sm:$0xff] }
 0x9b2   :  { %5286 = vmatmul.f32.gmra.mxu1 %v11715_v19 }
 0x9b3   :  { %5140 = vmatpush.msra.mxu3 %v4987_v14 }
 0x9b4   :  { %4824 = vmatmul.f32.gmra.mxu0 %v11277_v3  ;;  %v13119_v3 = vld [vmem:[#allocation23_spill] sm:$0xff] }
 0x9b5   :  { %v11729_v16 = vpop.f32.mrf.mxu3  ;;  %5141 = vmatpush.msra.mxu3 %v4984_v23  ;;  %v4995_v23 = vld [vmem:[%s12701_s15 + $0x460] sm:$0xff] }
 0x9b6   :  { %5097 = vmatmul.f32.gmra.mxu2 %v11729_v16  ;;  %5528 = vmatpush.msra.mxu1 %v4995_v23 }
 0x9b7   :  { %v11740_v1 = vpop.f32.mrf.mxu1  ;;  %5142 = vmatpush.msra.mxu3 %v4981_v11 }
 0x9b9   :  { %5143 = vmatpush.msra.mxu3 %v4978_v10  ;;  %v4989_v10 = vld [vmem:[%s12701_s15 + $0x430] sm:$0xff] }
 0x9ba   :  { %5289 = vmatmul.f32.gmra.mxu1 %v11722_v63 }
 0x9bb   :  { %5144 = vmatpush.msra.mxu3 %v4975_v31  ;;  %v4986_v31 = vld [vmem:[%s12701_s15 + $0x418] sm:$0xff] }
 0x9bc   :  { %4827 = vmatmul.f32.gmra.mxu0 %v13118_v9  ;;  %v4991_v9 = vld [vmem:[%s12701_s15 + $0x440] sm:$0xff] }
 0x9bd   :  { %v11734_v4 = vpop.f32.mrf.mxu3  ;;  %5145 = vmatpush.msra.mxu3 %v4972_v44  ;;  %5334 = vmatpush.msrb.mxu2 %v4991_v9  ;;  %v4964_v44 = vld [vmem:[%s12701_s15 + $0x368] sm:$0xff] }
 0x9be   :  { %5100 = vmatmul.f32.gmra.mxu2 %v11734_v4 }
 0x9bf   :  { %v11765_v15 = vpop.f32.mrf.mxu1  ;;  %5146 = vmatpush.msra.mxu3 %v4969_v40  ;;  %v4961_v40 = vld [vmem:[%s12701_s15 + $0x350] sm:$0xff] }
 0x9c1   :  { %5147 = vmatpush.msra.mxu3 %v4966_v61  ;;  %v4977_v61 = vld [vmem:[%s12701_s15 + $0x3d0] sm:$0xff] }
 0x9c2   :  { %5292 = vmatmul.f32.gmra.mxu1 %v11729_v16 }
 0x9c3   :  { %5148 = vmatpush.msra.mxu3 %v4963_v47 }
 0x9c4   :  { %4830 = vmatmul.f32.gmra.mxu0 %v13119_v3  ;;  %v4988_v3 = vld [vmem:[%s12701_s15 + $0x428] sm:$0xff] }
 0x9c5   :  { %v11744_v36 = vpop.f32.mrf.mxu3  ;;  %5149 = vmatpush.msra.mxu3 %v4960_v51  ;;  %5335 = vmatpush.msrb.mxu2 %v4988_v3  ;;  %v4952_v51 = vld [vmem:[%s12701_s15 + $0x308] sm:$0xff]  ;;  %v4953_v3 = vld [vmem:[%s12701_s15 + $0x310] sm:$0xff] }
 0x9c6   :  { %5103 = vmatmul.f32.gmra.mxu2 %v11744_v36 }
 0x9c7   :  { %v11802_v34 = vpop.f32.mrf.mxu1  ;;  %5150 = vmatpush.msra.mxu3 %v4957_v37  ;;  %5336 = vmatpush.msrb.mxu2 %v4985_v35  ;;  %v4971_v37 = vld [vmem:[%s12701_s15 + $0x3a0] sm:$0xff]  ;;  %v13122_v35 = vld [vmem:[#allocation45_spill] sm:$0xff] }
 0x9ca   :  { %5295 = vmatmul.f32.gmra.mxu1 %v11734_v4 }
 0x9cc   :  { %4833 = vmatmul.f32.gmra.mxu0 %v11313_v18  ;;  %v4886_v18 = vld [vmem:[%s12701_s15 + $0xf8] sm:$0xff] }
 0x9cd   :  { %v11775_v60 = vpop.f32.mrf.mxu3  ;;  %5207 = vmatpush.msrb.mxu0 %v4886_v18  ;;  %v4967_v18 = vld [vmem:[%s12701_s15 + $0x380] sm:$0xff] }
 0x9ce   :  { %5106 = vmatmul.f32.gmra.mxu2 %v11775_v60 }
 0x9cf   :  { %5208 = vmatpush.msrb.mxu0 %v4883_v32  ;;  %v11835_v27 = vpop.f32.mrf.mxu1 }
 0x9d1   :  { %5209 = vmatpush.msrb.mxu0 %v4880_v2  ;;  %v4983_v2 = vld [vmem:[%s12701_s15 + $0x400] sm:$0xff] }
 0x9d2   :  { %5298 = vmatmul.f32.gmra.mxu1 %v11744_v36 }
 0x9d3   :  { %5210 = vmatpush.msrb.mxu0 %v4877_v41  ;;  %v4958_v41 = vld [vmem:[%s12701_s15 + $0x338] sm:$0xff] }
 0x9d4   :  { %4836 = vmatmul.f32.gmra.mxu0 %v11344_v28  ;;  %v4874_v28 = vld [vmem:[%s12701_s15 + $0x98] sm:$0xff] }
 0x9d5   :  { %v11806_v13 = vpop.f32.mrf.mxu3  ;;  %5211 = vmatpush.msrb.mxu0 %v4874_v28  ;;  %v4955_v28 = vld [vmem:[%s12701_s15 + $0x320] sm:$0xff] }
 0x9d6   :  { %5109 = vmatmul.f32.gmra.mxu2 %v11806_v13 }
 0x9d7   :  { %5212 = vmatpush.msrb.mxu0 %v4871_v21  ;;  %v11881_v55 = vpop.f32.mrf.mxu1  ;;  %v4974_v21 = vld [vmem:[%s12701_s15 + $0x3b8] sm:$0xff] }
 0x9d9   :  { %5213 = vmatpush.msrb.mxu0 %v4868_v46 }
 0x9da   :  { %5301 = vmatmul.f32.gmra.mxu1 %v11775_v60 }
 0x9db   :  { %5214 = vmatpush.msrb.mxu0 %v4865_v17 }
 0x9dc   :  { %4839 = vmatmul.f32.gmra.mxu0 %v11380_v42  ;;  %v4954_v42 = vld [vmem:[%s12701_s15 + $0x318] sm:$0xff] }
 0x9dd   :  { %v11837_v0 = vpop.f32.mrf.mxu3  ;;  %5151 = vmatpush.msra.mxu3 %v4954_v42  ;;  %5215 = vmatpush.msrb.mxu0 %v4862_v58  ;;  %v4965_v42 = vld [vmem:[%s12701_s15 + $0x370] sm:$0xff]  ;;  %v4962_v58 = vld [vmem:[%s12701_s15 + $0x358] sm:$0xff] }
 0x9de   :  { %5112 = vmatmul.f32.gmra.mxu2 %v11837_v0 }
 0x9df   :  { %5152 = vmatpush.msra.mxu3 %v4951_v33  ;;  %5216 = vmatpush.msrb.mxu0 %v4859_v5  ;;  %v11909_v11 = vpop.f32.mrf.mxu1 }
 0x9e1   :  { %5217 = vmatpush.msrb.mxu0 %v4856_v29  ;;  %v4956_v29 = vld [vmem:[%s12701_s15 + $0x328] sm:$0xff] }
 0x9e2   :  { %5304 = vmatmul.f32.gmra.mxu1 %v11806_v13 }
 0x9e4   :  { %4842 = vmatmul.f32.gmra.mxu0 %v11418_v57  ;;  %v4982_v57 = vld [vmem:[%s12701_s15 + $0x3f8] sm:$0xff] }
 0x9e5   :  { %v11872_v54 = vpop.f32.mrf.mxu3  ;;  %5337 = vmatpush.msrb.mxu2 %v4982_v57 }
 0x9e6   :  { %5115 = vmatmul.f32.gmra.mxu2 %v11872_v54 }
 0x9e7   :  { %5338 = vmatpush.msrb.mxu2 %v4979_v50  ;;  %v11949_v47 = vpop.f32.mrf.mxu1 }
 0x9e8   :  { %13120 = vst [vmem:[#allocation30_spill] sm:$0xff] %v11949_v47 }
 0x9e9   :  { %5339 = vmatpush.msrb.mxu2 %v4976_v48  ;;  %v13123_v48 = vld [vmem:[#allocation46_spill] sm:$0xff] }
 0x9ea   :  { %5307 = vmatmul.f32.gmra.mxu1 %v11837_v0 }
 0x9eb   :  { %5340 = vmatpush.msrb.mxu2 %v4973_v24 }
 0x9ec   :  { %4845 = vmatmul.f32.gmra.mxu0 %v11452_v53  ;;  %v4992_v53 = vld [vmem:[%s12701_s15 + $0x448] sm:$0xff] }
 0x9ed   :  { %v11894_v14 = vpop.f32.mrf.mxu3  ;;  %5529 = vmatpush.msra.mxu1 %v4992_v53  ;;  %5341 = vmatpush.msrb.mxu2 %v4970_v39  ;;  %v12007_v53 = vld [vmem:[%s12702_s16] sm:$0x7] }
 0x9ee   :  { %5118 = vmatmul.f32.gmra.mxu2 %v11894_v14 }
 0x9ef   :  { %5530 = vmatpush.msra.mxu1 %v4989_v10  ;;  %5342 = vmatpush.msrb.mxu2 %v4967_v18  ;;  %v11976_v33 = vpop.f32.mrf.mxu1  ;;  %v12011_v10 = vperm.slane %v12007_v53, 0  ;;  %v13124_v18 = vld [vmem:[#allocation47_spill] sm:$0xff] }
 0x9f1   :  { %5531 = vmatpush.msra.mxu1 %v4986_v31  ;;  %5343 = vmatpush.msrb.mxu2 %v4964_v44  ;;  %v5025_v31 = vadd.f32 %v11718_v45, %v12011_v10 }
 0x9f2   :  { %5310 = vmatmul.f32.gmra.mxu1 %v11872_v54 }
 0x9f3   :  { %5532 = vmatpush.msra.mxu1 %v4983_v2  ;;  %5344 = vmatpush.msrb.mxu2 %v4961_v40 }
 0x9f4   :  { %4848 = vmatmul.f32.gmra.mxu0 %v11469_v30  ;;  %v4980_v30 = vld [vmem:[%s12701_s15 + $0x3e8] sm:$0xff] }
 0x9f5   :  { %v11925_v32 = vpop.f32.mrf.mxu3  ;;  %5533 = vmatpush.msra.mxu1 %v4980_v30  ;;  %5345 = vmatpush.msrb.mxu2 %v4958_v41  ;;  %v13125_v41 = vld [vmem:[#allocation48_spill] sm:$0xff] }
 0x9f6   :  { %5121 = vmatmul.f32.gmra.mxu2 %v11925_v32 }
 0x9f7   :  { %5534 = vmatpush.msra.mxu1 %v4977_v61  ;;  %5346 = vmatpush.msrb.mxu2 %v4955_v28  ;;  %v11995_v50 = vpop.f32.mrf.mxu1  ;;  %v5028_v61 = vadd.f32 %v11727_v12, %v12011_v10 }
 0x9f9   :  { %5535 = vmatpush.msra.mxu1 %v4974_v21  ;;  %5347 = vmatpush.msrb.mxu2 %v4952_v51  ;;  %v13126_v51 = vld [vmem:[#allocation49_spill] sm:$0xff] }
 0x9fa   :  { %5313 = vmatmul.f32.gmra.mxu1 %v11894_v14 }
 0x9fb   :  { %5536 = vmatpush.msra.mxu1 %v4971_v37 }
 0x9fc   :  { %4851 = vmatmul.f32.gmra.mxu0 %v11482_v52  ;;  %v4968_v52 = vld [vmem:[%s12701_s15 + $0x388] sm:$0xff] }
 0x9fd   :  { %v11959_v46 = vpop.f32.mrf.mxu3  ;;  %5537 = vmatpush.msra.mxu1 %v4968_v52  ;;  %v5031_v52 = vadd.f32 %v11740_v1, %v12011_v10 }
 0x9fe   :  { %5124 = vmatmul.f32.gmra.mxu2 %v11959_v46 }
 0x9ff   :  { %5538 = vmatpush.msra.mxu1 %v4965_v42  ;;  %v12002_v24 = vpop.f32.mrf.mxu1 }
 0xa01   :  { %v4807_v17 = vpop.f32.mrf.mxu0  ;;  %5539 = vmatpush.msra.mxu1 %v4962_v58 }
 0xa02   :  { %5153 = vmatmul.f32.vlgmr.msra.gmra.mxu3 %v4807_v17  ;;  %5316 = vmatmul.f32.gmra.mxu1 %v11925_v32 }
 0xa03   :  { %5540 = vmatpush.msra.mxu1 %v4959_v43  ;;  %v13127_v43 = vld [vmem:[#allocation50_spill] sm:$0xff] }
 0xa04   :  { %5218 = vmatmul.f32.vlgmr.msrb.gmra.mxu0 %v13121_v25 }
 0xa05   :  { %v11978_v5 = vpop.f32.mrf.mxu3  ;;  %5541 = vmatpush.msra.mxu1 %v4956_v29  ;;  %v5034_v29 = vadd.f32 %v11765_v15, %v12011_v10 }
 0xa06   :  { %5127 = vmatmul.f32.gmra.mxu2 %v11978_v5 }
 0xa07   :  { %5542 = vmatpush.msra.mxu1 %v4953_v3  ;;  %v12021_v30 = vpop.f32.mrf.mxu1 }
 0xa09   :  { %v4810_v9 = vpop.f32.mrf.mxu0 }
 0xa0a   :  { %5156 = vmatmul.f32.gmra.mxu3 %v4810_v9  ;;  %5319 = vmatmul.f32.gmra.mxu1 %v11959_v46 }
 0xa0c   :  { %5221 = vmatmul.f32.gmra.mxu0 %v13122_v35 }
 0xa0d   :  { %v11992_v57 = vpop.f32.mrf.mxu3 }
 0xa0e   :  { %5130 = vmatmul.f32.gmra.mxu2 %v11992_v57 }
 0xa0f   :  { %v12033_v37 = vpop.f32.mrf.mxu1 }
 0xa11   :  { %v4813_v59 = vpop.f32.mrf.mxu0 }
 0xa12   :  { %5159 = vmatmul.f32.gmra.mxu3 %v4813_v59  ;;  %5322 = vmatmul.f32.gmra.mxu1 %v11978_v5 }
 0xa14   :  { %5224 = vmatmul.f32.gmra.mxu0 %v13123_v48 }
 0xa15   :  { %v11999_v23 = vpop.f32.mrf.mxu3 }
 0xa16   :  { %5133 = vmatmul.f32.gmra.mxu2 %v11999_v23 }
 0xa19   :  { %v4816_v39 = vpop.f32.mrf.mxu0 }
 0xa1a   :  { %5162 = vmatmul.f32.gmra.mxu3 %v4816_v39  ;;  %5325 = vmatmul.f32.gmra.mxu1 %v11992_v57 }
 0xa1c   :  { %5227 = vmatmul.f32.gmra.mxu0 %v13124_v18 }
 0xa1e   :  { %5348 = vmatmul.f32.vlgmr.msrb.gmra.mxu2 %v4807_v17 }
 0xa21   :  { %v12016_v44 = vpop.f32.mrf.mxu0  ;;  %v5089_v2 = vpop.f32.mrf.mxu2 }
 0xa22   :  { %v12018_v40 = vadd.f32 %v5089_v2, %v5025_v31  ;;  %5165 = vmatmul.f32.gmra.mxu3 %v12016_v44  ;;  %5328 = vmatmul.f32.gmra.mxu1 %v11999_v23 }
 0xa24   :  { %5230 = vmatmul.f32.gmra.mxu0 %v13125_v41 }
 0xa26   :  { %5351 = vmatmul.f32.gmra.mxu2 %v4810_v9 }
 0xa29   :  { %v12027_v28 = vpop.f32.mrf.mxu0  ;;  %v5092_v45 = vpop.f32.mrf.mxu2 }
 0xa2a   :  { %v12029_v21 = vadd.f32 %v5092_v45, %v5028_v61  ;;  %5168 = vmatmul.f32.gmra.mxu3 %v12027_v28  ;;  %5543 = vmatmul.f32.vlgmr.msra.gmra.mxu1 %v4807_v17  ;;  %v12043_v17 = vpop.f32.mrf.mxu1 }
 0xa2c   :  { %5233 = vmatmul.f32.gmra.mxu0 %v13126_v51 }
 0xa2e   :  { %5354 = vmatmul.f32.gmra.mxu2 %v4813_v59 }
 0xa31   :  { %v12037_v42 = vpop.f32.mrf.mxu0  ;;  %v5095_v58 = vpop.f32.mrf.mxu2 }
 0xa32   :  { %v12039_v12 = vadd.f32 %v5095_v58, %v5031_v52  ;;  %5171 = vmatmul.f32.gmra.mxu3 %v12037_v42  ;;  %5546 = vmatmul.f32.gmra.mxu1 %v4810_v9  ;;  %v5037_v9 = vadd.f32 %v11802_v34, %v12011_v10  ;;  %v12056_v2 = vpop.f32.mrf.mxu1  ;;  %v4899_v34 = vld [vmem:[%s12701_s15 + $0x160] sm:$0xff]  ;;  %v4950_v52 = vld [vmem:[%s12701_s15 + $0x2f8] sm:$0xff]  ;;  %v4896_v58 = vld [vmem:[%s12701_s15 + $0x148] sm:$0xff] }
 0xa33   :  { %5462 = vmatpush.msra.mxu0 %v4950_v52 }
 0xa34   :  { %5236 = vmatmul.f32.gmra.mxu0 %v13127_v43 }
 0xa36   :  { %5357 = vmatmul.f32.gmra.mxu2 %v4816_v39 }
 0xa39   :  { %v12047_v3 = vpop.f32.mrf.mxu0  ;;  %v5098_v31 = vpop.f32.mrf.mxu2 }
 0xa3a   :  { %v12049_v1 = vadd.f32 %v5098_v31, %v5034_v29  ;;  %5174 = vmatmul.f32.gmra.mxu3 %v12047_v3  ;;  %5549 = vmatmul.f32.gmra.mxu1 %v4813_v59  ;;  %v4902_v59 = vld [vmem:[%s12701_s15 + $0x178] sm:$0xff]  ;;  %v5040_v29 = vadd.f32 %v11835_v27, %v12011_v10  ;;  %v12093_v52 = vpop.f32.mrf.mxu1 }
 0xa3b   :  { %5397 = vmatpush.msrb.mxu3 %v4902_v59  ;;  %v4944_v59 = vld [vmem:[%s12701_s15 + $0x2c8] sm:$0xff]  ;;  %13128 = vst [vmem:[#allocation35_spill] sm:$0xff] %v12093_v52  ;;  %v4890_v27 = vld [vmem:[%s12701_s15 + $0x118] sm:$0xff] }
 0xa3c   :  { %5239 = vmatmul.f32.gmra.mxu0 %v11540_v8 }
 0xa3d   :  { %5398 = vmatpush.msrb.mxu3 %v4899_v34 }
 0xa3e   :  { %5360 = vmatmul.f32.gmra.mxu2 %v12016_v44 }
 0xa3f   :  { %5399 = vmatpush.msrb.mxu3 %v4896_v58  ;;  %v4941_v58 = vld [vmem:[%s12701_s15 + $0x2b0] sm:$0xff] }
 0xa41   :  { %v12058_v61 = vpop.f32.mrf.mxu0  ;;  %v5101_v15 = vpop.f32.mrf.mxu2 }
 0xa42   :  { %v12060_v45 = vadd.f32 %v5101_v15, %v5037_v9  ;;  %5177 = vmatmul.f32.gmra.mxu3 %v12058_v61  ;;  %5552 = vmatmul.f32.gmra.mxu1 %v4816_v39  ;;  %v4947_v39 = vld [vmem:[%s12701_s15 + $0x2e0] sm:$0xff]  ;;  %v4893_v15 = vld [vmem:[%s12701_s15 + $0x130] sm:$0xff] }
 0xa43   :  { %5463 = vmatpush.msra.mxu0 %v4947_v39  ;;  %5400 = vmatpush.msrb.mxu3 %v4893_v15  ;;  %v4887_v39 = vld [vmem:[%s12701_s15 + $0x100] sm:$0xff]  ;;  %v5043_v15 = vadd.f32 %v11881_v55, %v12011_v10  ;;  %v4878_v55 = vld [vmem:[%s12701_s15 + $0xb8] sm:$0xff] }
 0xa44   :  { %5242 = vmatmul.f32.gmra.mxu0 %v11566_v62 }
 0xa45   :  { %5464 = vmatpush.msra.mxu0 %v4944_v59  ;;  %5401 = vmatpush.msrb.mxu3 %v4890_v27  ;;  %v4881_v27 = vld [vmem:[%s12701_s15 + $0xd0] sm:$0xff] }
 0xa46   :  { %5363 = vmatmul.f32.gmra.mxu2 %v12027_v28 }
 0xa47   :  { %5465 = vmatpush.msra.mxu0 %v4941_v58  ;;  %5402 = vmatpush.msrb.mxu3 %v4887_v39  ;;  %v4932_v58 = vld [vmem:[%s12701_s15 + $0x268] sm:$0xff]  ;;  %v4929_v39 = vld [vmem:[%s12701_s15 + $0x250] sm:$0xff] }
 0xa49   :  { %v12082_v31 = vpop.f32.mrf.mxu0  ;;  %v5104_v9 = vpop.f32.mrf.mxu2 }
 0xa4a   :  { %v12090_v34 = vadd.f32 %v5104_v9, %v5040_v29  ;;  %5180 = vmatmul.f32.gmra.mxu3 %v12082_v31  ;;  %5555 = vmatmul.f32.gmra.mxu1 %v12016_v44  ;;  %v4938_v29 = vld [vmem:[%s12701_s15 + $0x298] sm:$0xff]  ;;  %v4884_v9 = vld [vmem:[%s12701_s15 + $0xe8] sm:$0xff]  ;;  %v4935_v44 = vld [vmem:[%s12701_s15 + $0x280] sm:$0xff] }
 0xa4b   :  { %5466 = vmatpush.msra.mxu0 %v4938_v29  ;;  %5403 = vmatpush.msrb.mxu3 %v4884_v9  ;;  %v12136_v29 = vpop.f32.mrf.mxu1  ;;  %v4926_v9 = vld [vmem:[%s12701_s15 + $0x238] sm:$0xff] }
 0xa4c   :  { %5245 = vmatmul.f32.gmra.mxu0 %v11607_v7  ;;  %13129 = vst [vmem:[#allocation28_spill] sm:$0xff] %v12136_v29 }
 0xa4d   :  { %5467 = vmatpush.msra.mxu0 %v4935_v44  ;;  %5404 = vmatpush.msrb.mxu3 %v4881_v27  ;;  %v4872_v44 = vld [vmem:[%s12701_s15 + $0x88] sm:$0xff]  ;;  %v5046_v27 = vadd.f32 %v11909_v11, %v12011_v10  ;;  %v4866_v11 = vld [vmem:[%s12701_s15 + $0x58] sm:$0xff] }
 0xa4e   :  { %5366 = vmatmul.f32.gmra.mxu2 %v12037_v42 }
 0xa4f   :  { %5468 = vmatpush.msra.mxu0 %v4932_v58  ;;  %5405 = vmatpush.msrb.mxu3 %v4878_v55  ;;  %v4869_v55 = vld [vmem:[%s12701_s15 + $0x70] sm:$0xff] }
 0xa51   :  { %v12118_v59 = vpop.f32.mrf.mxu0  ;;  %v5107_v52 = vpop.f32.mrf.mxu2  ;;  %5469 = vmatpush.msra.mxu0 %v4929_v39  ;;  %v4920_v39 = vld [vmem:[%s12701_s15 + $0x208] sm:$0xff] }
 0xa52   :  { %v12126_v47 = vadd.f32 %v5107_v52, %v5043_v15  ;;  %5183 = vmatmul.f32.gmra.mxu3 %v12118_v59  ;;  %v4875_v52 = vld [vmem:[%s12701_s15 + $0xa0] sm:$0xff]  ;;  %5558 = vmatmul.f32.gmra.mxu1 %v12027_v28 }
 0xa53   :  { %v4923_v15 = vld [vmem:[%s12701_s15 + $0x220] sm:$0xff]  ;;  %5406 = vmatpush.msrb.mxu3 %v4875_v52  ;;  %5470 = vmatpush.msra.mxu0 %v4926_v9  ;;  %v4917_v52 = vld [vmem:[%s12701_s15 + $0x1f0] sm:$0xff] }
 0xa54   :  { %5248 = vmatmul.f32.gmra.mxu0 %v11649_v26  ;;  %v4863_v9 = vld [vmem:[%s12701_s15 + $0x40] sm:$0xff] }
 0xa55   :  { %5407 = vmatpush.msrb.mxu3 %v4872_v44  ;;  %5471 = vmatpush.msra.mxu0 %v4923_v15  ;;  %v4914_v44 = vld [vmem:[%s12701_s15 + $0x1d8] sm:$0xff]  ;;  %v12180_v15 = vpop.f32.mrf.mxu1 }
 0xa56   :  { %5369 = vmatmul.f32.gmra.mxu2 %v12047_v3  ;;  %13130 = vst [vmem:[#allocation34_spill] sm:$0xff] %v12180_v15 }
 0xa57   :  { %5408 = vmatpush.msrb.mxu3 %v4869_v55  ;;  %5472 = vmatpush.msra.mxu0 %v4920_v39 }
 0xa59   :  { %v12154_v58 = vpop.f32.mrf.mxu0  ;;  %v5110_v28 = vpop.f32.mrf.mxu2  ;;  %5409 = vmatpush.msrb.mxu3 %v4866_v11  ;;  %5473 = vmatpush.msra.mxu0 %v4917_v52  ;;  %v4908_v11 = vld [vmem:[%s12701_s15 + $0x1a8] sm:$0xff]  ;;  %v4905_v52 = vld [vmem:[%s12701_s15 + $0x190] sm:$0xff] }
 0xa5a   :  { %v12162_v29 = vadd.f32 %v5110_v28, %v5046_v27  ;;  %5186 = vmatmul.f32.gmra.mxu3 %v12154_v58  ;;  %5561 = vmatmul.f32.gmra.mxu1 %v12037_v42  ;;  %v4860_v27 = vld [vmem:[%s12701_s15 + $0x28] sm:$0xff]  ;;  %v4911_v28 = vld [vmem:[%s12701_s15 + $0x1c0] sm:$0xff]  ;;  %v4857_v42 = vld [vmem:[%s12701_s15 + $0x10] sm:$0xff] }
 0xa5b   :  { %5410 = vmatpush.msrb.mxu3 %v4863_v9  ;;  %5474 = vmatpush.msra.mxu0 %v4914_v44 }
 0xa5c   :  { %5251 = vmatmul.f32.gmra.mxu0 %v11671_v22 }
 0xa5d   :  { %5411 = vmatpush.msrb.mxu3 %v4860_v27  ;;  %5475 = vmatpush.msra.mxu0 %v4911_v28  ;;  %v12202_v9 = vpop.f32.mrf.mxu1 }
 0xa5e   :  { %5372 = vmatmul.f32.gmra.mxu2 %v12058_v61  ;;  %13132 = vst [vmem:[#allocation33_spill] sm:$0xff] %v12202_v9 }
 0xa5f   :  { %5412 = vmatpush.msrb.mxu3 %v4857_v42  ;;  %5476 = vmatpush.msra.mxu0 %v4908_v11  ;;  %v5058_v11 = vadd.f32 %v12002_v24, %v12011_v10 }
 0xa61   :  { %v4843_v55 = vpop.f32.mrf.mxu0  ;;  %v12188_v39 = vpop.f32.mrf.mxu2  ;;  %5477 = vmatpush.msra.mxu0 %v4905_v52 }
 0xa62   :  { %13131 = vst [vmem:[#allocation18_spill] sm:$0xff] %v12188_v39  ;;  %5189 = vmatmul.f32.gmra.mxu3 %v4843_v55  ;;  %5564 = vmatmul.f32.gmra.mxu1 %v12047_v3 }
 0xa64   :  { %5254 = vmatmul.f32.gmra.mxu0 %v11688_v49 }
 0xa65   :  { %v12211_v3 = vpop.f32.mrf.mxu1 }
 0xa66   :  { %5375 = vmatmul.f32.gmra.mxu2 %v12082_v31  ;;  %13134 = vst [vmem:[#allocation4_spill] sm:$0xff] %v12211_v3 }
 0xa69   :  { %v4846_v44 = vpop.f32.mrf.mxu0  ;;  %v12204_v27 = vpop.f32.mrf.mxu2 }
 0xa6a   :  { %13133 = vst [vmem:[#allocation15_spill] sm:$0xff] %v12204_v27  ;;  %5192 = vmatmul.f32.gmra.mxu3 %v4846_v44  ;;  %5567 = vmatmul.f32.gmra.mxu1 %v12058_v61 }
 0xa6c   :  { %5257 = vmatmul.f32.gmra.mxu0 %v11699_v6 }
 0xa6d   :  { %v12221_v9 = vpop.f32.mrf.mxu1 }
 0xa6e   :  { %5378 = vmatmul.f32.gmra.mxu2 %v12118_v59 }
 0xa71   :  { %v4849_v28 = vpop.f32.mrf.mxu0  ;;  %v12209_v42 = vpop.f32.mrf.mxu2 }
 0xa72   :  { %5195 = vmatmul.f32.gmra.mxu3 %v4849_v28  ;;  %5570 = vmatmul.f32.gmra.mxu1 %v12082_v31  ;;  %v5061_v31 = vadd.f32 %v12021_v30, %v12011_v10  ;;  %v5064_v30 = vadd.f32 %v12033_v37, %v12011_v10 }
 0xa74   :  { %5260 = vmatmul.f32.gmra.mxu0 %v11704_v20 }
 0xa76   :  { %5381 = vmatmul.f32.gmra.mxu2 %v12154_v58 }
 0xa79   :  { %v4852_v52 = vpop.f32.mrf.mxu0  ;;  %v5122_v15 = vpop.f32.mrf.mxu2 }
 0xa7a   :  { %v12218_v61 = vadd.f32 %v5122_v15, %v5058_v11  ;;  %5198 = vmatmul.f32.gmra.mxu3 %v4852_v52  ;;  %5573 = vmatmul.f32.gmra.mxu1 %v12118_v59  ;;  %v12236_v59 = vpop.f32.mrf.mxu1 }
 0xa7c   :  { %5263 = vmatmul.f32.gmra.mxu0 %v11711_v56 }
 0xa7e   :  { %5384 = vmatmul.f32.gmra.mxu2 %v4843_v55 }
 0xa81   :  { %v5125_v3 = vpop.f32.mrf.mxu2  ;;  %v12226_v39 = vpop.f32.mrf.mxu0 }
 0xa82   :  { %13135 = vst [vmem:[#allocation32_spill] sm:$0xff] %v12226_v39  ;;  %v12228_v27 = vadd.f32 %v5125_v3, %v5061_v31  ;;  %5413 = vmatmul.f32.vlgmr.msrb.gmra.mxu3 %v13121_v25  ;;  %5576 = vmatmul.f32.gmra.mxu1 %v12154_v58  ;;  %v12251_v58 = vpop.f32.mrf.mxu1 }
 0xa84   :  { %5478 = vmatmul.f32.vlgmr.msra.gmra.mxu0 %v11708_v38 }
 0xa85   :  { %v5154_v24 = vpop.f32.mrf.mxu3 }
 0xa86   :  { %v12234_v15 = vadd.f32 %v5154_v24, %v12018_v40  ;;  %5387 = vmatmul.f32.gmra.mxu2 %v4846_v44  ;;  %v5067_v40 = vadd.f32 %v12043_v17, %v12011_v10 }
 0xa89   :  { %v5128_v11 = vpop.f32.mrf.mxu2  ;;  %v12240_v39 = vpop.f32.mrf.mxu0 }
 0xa8a   :  { %13136 = vst [vmem:[#allocation26_spill] sm:$0xff] %v12240_v39  ;;  %v12242_v3 = vadd.f32 %v5128_v11, %v5064_v30  ;;  %5416 = vmatmul.f32.gmra.mxu3 %v13122_v35  ;;  %5579 = vmatmul.f32.gmra.mxu1 %v4843_v55  ;;  %v5308_v11 = vpop.f32.mrf.mxu1 }
 0xa8c   :  { %5481 = vmatmul.f32.gmra.mxu0 %v11715_v19 }
 0xa8d   :  { %v5157_v38 = vpop.f32.mrf.mxu3 }
 0xa8e   :  { %v12247_v25 = vadd.f32 %v5157_v38, %v12029_v21  ;;  %5390 = vmatmul.f32.gmra.mxu2 %v4849_v28  ;;  %v5070_v21 = vadd.f32 %v12056_v2, %v12011_v10 }
 0xa91   :  { %v5131_v37 = vpop.f32.mrf.mxu2  ;;  %v12253_v31 = vpop.f32.mrf.mxu0 }
 0xa92   :  { %13137 = vst [vmem:[#allocation20_spill] sm:$0xff] %v12253_v31  ;;  %v12255_v24 = vadd.f32 %v5131_v37, %v5067_v40  ;;  %5419 = vmatmul.f32.gmra.mxu3 %v13123_v48  ;;  %5582 = vmatmul.f32.gmra.mxu1 %v4846_v44  ;;  %v12279_v2 = vpop.f32.mrf.mxu1 }
 0xa94   :  { %5484 = vmatmul.f32.gmra.mxu0 %v11722_v63 }
 0xa95   :  { %v5160_v19 = vpop.f32.mrf.mxu3 }
 0xa96   :  { %v12260_v35 = vadd.f32 %v5160_v19, %v12039_v12  ;;  %5393 = vmatmul.f32.gmra.mxu2 %v4852_v52 }
 0xa99   :  { %v5134_v17 = vpop.f32.mrf.mxu2  ;;  %v12264_v55 = vpop.f32.mrf.mxu0 }
 0xa9a   :  { %v12266_v30 = vadd.f32 %v5134_v17, %v5070_v21  ;;  %5422 = vmatmul.f32.gmra.mxu3 %v13124_v18  ;;  %5585 = vmatmul.f32.gmra.mxu1 %v4849_v28 }
 0xa9c   :  { %5487 = vmatmul.f32.gmra.mxu0 %v11729_v16 }
 0xa9d   :  { %v5163_v63 = vpop.f32.mrf.mxu3 }
 0xa9e   :  { %v12271_v48 = vadd.f32 %v5163_v63, %v12049_v1 }
 0xaa1   :  { %v12273_v12 = vpop.f32.mrf.mxu0  ;;  %v12275_v44 = vpop.f32.mrf.mxu2 }
 0xaa2   :  { %13138 = vst [vmem:[#allocation22_spill] sm:$0xff] %v12275_v44  ;;  %5425 = vmatmul.f32.gmra.mxu3 %v13125_v41  ;;  %5588 = vmatmul.f32.gmra.mxu1 %v4852_v52 }
 0xaa4   :  { %5490 = vmatmul.f32.gmra.mxu0 %v11734_v4  ;;  %v12293_v4 = vpop.f32.mrf.mxu1 }
 0xaa5   :  { %v5166_v18 = vpop.f32.mrf.mxu3 }
 0xaa6   :  { %v12282_v38 = vadd.f32 %v5166_v18, %v12060_v45 }
 0xaa9   :  { %v12284_v16 = vpop.f32.mrf.mxu0  ;;  %v12286_v28 = vpop.f32.mrf.mxu2 }
 0xaaa   :  { %13139 = vst [vmem:[#allocation31_spill] sm:$0xff] %v12286_v28  ;;  %5428 = vmatmul.f32.gmra.mxu3 %v13126_v51 }
 0xaac   :  { %5493 = vmatmul.f32.gmra.mxu0 %v11744_v36  ;;  %v12304_v51 = vpop.f32.mrf.mxu1 }
 0xaad   :  { %v5169_v1 = vpop.f32.mrf.mxu3 }
 0xaae   :  { %v12291_v41 = vadd.f32 %v5169_v1, %v12090_v34 }
 0xab1   :  { %v12295_v40 = vpop.f32.mrf.mxu0  ;;  %v12297_v52 = vpop.f32.mrf.mxu2 }
 0xab2   :  { %13140 = vst [vmem:[#allocation19_spill] sm:$0xff] %v12297_v52  ;;  %5431 = vmatmul.f32.gmra.mxu3 %v13127_v43 }
 0xab4   :  { %5496 = vmatmul.f32.gmra.mxu0 %v11775_v60  ;;  %v12317_v17 = vpop.f32.mrf.mxu1 }
 0xab5   :  { %v5172_v45 = vpop.f32.mrf.mxu3 }
 0xab6   :  { %v12302_v37 = vadd.f32 %v5172_v45, %v12126_v47 }
 0xab9   :  { %v12306_v36 = vpop.f32.mrf.mxu0  ;;  %v12308_v34 = vpop.f32.mrf.mxu2 }
 0xaba   :  { %13141 = vst [vmem:[#allocation27_spill] sm:$0xff] %v12308_v34  ;;  %5434 = vmatmul.f32.gmra.mxu3 %v11540_v8 }
 0xabc   :  { %5499 = vmatmul.f32.gmra.mxu0 %v11806_v13  ;;  %v12328_v13 = vpop.f32.mrf.mxu1 }
 0xabd   :  { %v5175_v19 = vpop.f32.mrf.mxu3 }
 0xabe   :  { %v12313_v21 = vadd.f32 %v5175_v19, %v12162_v29  ;;  %v12346_v19 = vperm.slane %v12007_v53, 1 }
 0xac1   :  { %v5243_v43 = vpop.f32.mrf.mxu0  ;;  %v12315_v60 = vpop.f32.mrf.mxu2 }
 0xac2   :  { %13142 = vst [vmem:[#allocation25_spill] sm:$0xff] %v12315_v60  ;;  %5437 = vmatmul.f32.gmra.mxu3 %v11566_v62 }
 0xac4   :  { %5502 = vmatmul.f32.gmra.mxu0 %v11837_v0  ;;  %v12339_v0 = vpop.f32.mrf.mxu1 }
 0xac5   :  { %v12321_v47 = vpop.f32.mrf.mxu3 }
 0xac9   :  { %v12323_v63 = vpop.f32.mrf.mxu0  ;;  %v12325_v8 = vpop.f32.mrf.mxu2 }
 0xaca   :  { %13143 = vst [vmem:[#allocation29_spill] sm:$0xff] %v12325_v8  ;;  %5440 = vmatmul.f32.gmra.mxu3 %v11607_v7 }
 0xacc   :  { %5505 = vmatmul.f32.gmra.mxu0 %v11872_v54  ;;  %v5244_v54 = vadd.f32 %v5243_v43, %v12346_v19 }
 0xacd   :  { %v12331_v29 = vpop.f32.mrf.mxu3 }
 0xad1   :  { %v12333_v18 = vpop.f32.mrf.mxu0  ;;  %v12335_v1 = vpop.f32.mrf.mxu2 }
 0xad2   :  { %13144 = vst [vmem:[#allocation17_spill] sm:$0xff] %v12335_v1  ;;  %5443 = vmatmul.f32.gmra.mxu3 %v11649_v26  ;;  %v12351_v26 = vpop.f32.mrf.mxu1 }
 0xad4   :  { %5508 = vmatmul.f32.gmra.mxu0 %v11894_v14  ;;  %v5309_v14 = vadd.f32 %v5308_v11, %v5244_v54 }
 0xad5   :  { %v5184_v62 = vpop.f32.mrf.mxu3 }
 0xad9   :  { %v12341_v45 = vpop.f32.mrf.mxu0  ;;  %v12343_v7 = vpop.f32.mrf.mxu2 }
 0xada   :  { %5446 = vmatmul.f32.gmra.mxu3 %v11671_v22  ;;  %v12363_v43 = vpop.f32.mrf.mxu1 }
 0xadb   :  { %13146 = vst [vmem:[#allocation13_spill] sm:$0xff] %v12363_v43 }
 0xadc   :  { %5511 = vmatmul.f32.gmra.mxu0 %v11925_v32 }
 0xadd   :  { %v5187_v44 = vpop.f32.mrf.mxu3 }
 0xae1   :  { %v12353_v28 = vpop.f32.mrf.mxu0  ;;  %v5373_v52 = vpop.f32.mrf.mxu2 }
 0xae2   :  { %v12355_v34 = vadd.f32 %v5373_v52, %v5309_v14  ;;  %5449 = vmatmul.f32.gmra.mxu3 %v11688_v49  ;;  %v12370_v49 = vpop.f32.mrf.mxu1 }
 0xae3   :  { %13147 = vst [vmem:[#allocation2_spill] sm:$0xff] %v12370_v49 }
 0xae4   :  { %13145 = vst [vmem:[#allocation5_spill] sm:$0xff] %v12355_v34  ;;  %5514 = vmatmul.f32.gmra.mxu0 %v11959_v46  ;;  %v5055_v34 = vadd.f32 %v11995_v50, %v12011_v10 }
 0xae5   :  { %v5190_v60 = vpop.f32.mrf.mxu3 }
 0xae9   :  { %v12359_v39 = vpop.f32.mrf.mxu0  ;;  %v12361_v22 = vpop.f32.mrf.mxu2 }
 0xaea   :  { %5452 = vmatmul.f32.gmra.mxu3 %v11699_v6 }
 0xaec   :  { %5517 = vmatmul.f32.gmra.mxu0 %v11978_v5  ;;  %v12377_v5 = vpop.f32.mrf.mxu1 }
 0xaed   :  { %v5193_v32 = vpop.f32.mrf.mxu3  ;;  %13148 = vst [vmem:[#allocation9_spill] sm:$0xff] %v12377_v5 }
 0xaf1   :  { %v5261_v11 = vpop.f32.mrf.mxu0  ;;  %v12367_v54 = vpop.f32.mrf.mxu2 }
 0xaf2   :  { %5455 = vmatmul.f32.gmra.mxu3 %v11704_v20  ;;  %v5194_v20 = vadd.f32 %v5193_v32, %v12242_v3  ;;  %v5188_v3 = vadd.f32 %v5187_v44, %v12218_v61  ;;  %v13149_v32 = vld [vmem:[#allocation30_spill] sm:$0xff] }
 0xaf4   :  { %5520 = vmatmul.f32.gmra.mxu0 %v11992_v57 }
 0xaf5   :  { %v5196_v46 = vpop.f32.mrf.mxu3 }
 0xaf6   :  { %v5197_v43 = vadd.f32 %v5196_v46, %v12255_v24  ;;  %v5052_v24 = vadd.f32 %v11976_v33, %v12011_v10  ;;  %v5049_v46 = vadd.f32 %v13149_v32, %v12011_v10  ;;  %v5610_v32 = vmax.f32 %v12302_v37, 0.0 }
 0xaf7   :  { %v5601_v37 = vmax.f32 %v12271_v48, 0.0 }
 0xaf8   :  { %v5634_v1 = vmax.f32 %v5197_v43, 0.0 }
 0xaf9   :  { %v5264_v52 = vpop.f32.mrf.mxu0  ;;  %v12373_v14 = vpop.f32.mrf.mxu2 }
 0xafa   :  { %5458 = vmatmul.f32.gmra.mxu3 %v11711_v56  ;;  %v5191_v56 = vadd.f32 %v5190_v60, %v12228_v27 }
 0xafc   :  { %5523 = vmatmul.f32.gmra.mxu0 %v11999_v23  ;;  %v12388_v23 = vperm.slane %v12007_v53, 2  ;;  %v5628_v43 = vmax.f32 %v5191_v56, 0.0 }
 0xafd   :  { %v5199_v6 = vpop.f32.mrf.mxu3 }
 0xafe   :  { %v5200_v8 = vadd.f32 %v5199_v6, %v12266_v30  ;;  %v5120_v30 = vadd.f32 %v12209_v42, %v5055_v34  ;;  %v13150_v6 = vld [vmem:[#allocation15_spill] sm:$0xff]  ;;  %v5625_v42 = vmax.f32 %v5188_v3, 0.0  ;;  %v12400_v34 = vpop.f32.mrf.mxu1 }
 0xaff   :  { %v5117_v27 = vadd.f32 %v13150_v6, %v5052_v24 }
 0xb00   :  { %v5637_v49 = vmax.f32 %v5200_v8, 0.0  ;;  %v5631_v8 = vmax.f32 %v5194_v20, 0.0  ;;  %v5185_v60 = vadd.f32 %v5184_v62, %v5120_v30 }
 0xb01   :  { %v12382_v31 = vpop.f32.mrf.mxu2  ;;  %v5479_v57 = vpop.f32.mrf.mxu0  ;;  %v5182_v33 = vadd.f32 %v12331_v29, %v5117_v27  ;;  %v5613_v29 = vmax.f32 %v12313_v21, 0.0  ;;  %v5604_v21 = vmax.f32 %v12282_v38, 0.0  ;;  %v5259_v27 = vadd.f32 %v12359_v39, %v12346_v19 }
 0xb02   :  { %5641 = vmatpush.msra.mxu2 %v5637_v49  ;;  %v13151_v49 = vld [vmem:[#allocation18_spill] sm:$0xff]  ;;  %v5622_v20 = vmax.f32 %v5185_v60, 0.0  ;;  %v5598_v38 = vmax.f32 %v12260_v35, 0.0  ;;  %v5253_v39 = vadd.f32 %v12341_v45, %v12346_v19  ;;  %v5592_v35 = vmax.f32 %v12234_v15, 0.0 }
 0xb03   :  { %v5114_v5 = vadd.f32 %v13151_v49, %v5049_v46  ;;  %v5619_v62 = vmax.f32 %v5182_v33, 0.0  ;;  %v5262_v46 = vadd.f32 %v5261_v11, %v12346_v19  ;;  %v5324_v33 = vadd.f32 %v12328_v13, %v5259_v27  ;;  %v13152_v27 = vld [vmem:[#allocation17_spill] sm:$0xff] }
 0xb04   :  { %5642 = vmatpush.msra.mxu2 %v5634_v1  ;;  %v5247_v45 = vadd.f32 %v12323_v63, %v12346_v19 }
 0xb05   :  { %v5414_v50 = vpop.f32.mrf.mxu3  ;;  %v5179_v1 = vadd.f32 %v12321_v47, %v5114_v5  ;;  %v5607_v5 = vmax.f32 %v12291_v41, 0.0  ;;  %v5327_v41 = vadd.f32 %v12339_v0, %v5262_v46  ;;  %v5250_v0 = vadd.f32 %v12333_v18, %v12346_v19 }
 0xb06   :  { %v5415_v53 = vadd.f32 %v5414_v50, %v12388_v23  ;;  %5643 = vmatpush.msra.mxu2 %v5631_v8  ;;  %v12410_v47 = vpop.f32.mrf.mxu1  ;;  %v5265_v50 = vadd.f32 %v5264_v52, %v12346_v19 }
 0xb07   :  { %v5616_v24 = vmax.f32 %v5179_v1, 0.0 }
 0xb08   :  { %v12402_v61 = vadd.f32 %v5479_v57, %v5415_v53  ;;  %5644 = vmatpush.msra.mxu2 %v5628_v43  ;;  %v5256_v43 = vadd.f32 %v12353_v28, %v12346_v19  ;;  %v5330_v52 = vadd.f32 %v12351_v26, %v5265_v50  ;;  %v5595_v28 = vmax.f32 %v12247_v25, 0.0 }
 0xb09   :  { %v5388_v44 = vpop.f32.mrf.mxu2  ;;  %v5482_v10 = vpop.f32.mrf.mxu0 }
 0xb0a   :  { %5645 = vmatpush.msra.mxu2 %v5625_v42  ;;  %v5389_v26 = vadd.f32 %v5388_v44, %v5324_v33  ;;  %v13158_v33 = vld [vmem:[#allocation33_spill] sm:$0xff] }
 0xb0c   :  { %5646 = vmatpush.msra.mxu2 %v5622_v20  ;;  %v5632_v15 = vmax.f32 %v5389_v26, 0.0 }
 0xb0d   :  { %v5417_v56 = vpop.f32.mrf.mxu3 }
 0xb0e   :  { %v5418_v30 = vadd.f32 %v5417_v56, %v12388_v23  ;;  %5647 = vmatpush.msra.mxu2 %v5619_v62  ;;  %v12437_v20 = vpop.f32.mrf.mxu1  ;;  %v5318_v62 = vadd.f32 %v12304_v51, %v5253_v39  ;;  %v5241_v51 = vadd.f32 %v12306_v36, %v12346_v19 }
 0xb10   :  { %v12407_v3 = vadd.f32 %v5482_v10, %v5418_v30  ;;  %5648 = vmatpush.msra.mxu2 %v5616_v24  ;;  %v5321_v10 = vadd.f32 %v12317_v17, %v5256_v43  ;;  %v5315_v17 = vadd.f32 %v12293_v4, %v5250_v0  ;;  %v5383_v44 = vadd.f32 %v12373_v14, %v5318_v62  ;;  %v13154_v43 = vld [vmem:[#allocation20_spill] sm:$0xff] }
 0xb11   :  { %v5391_v57 = vpop.f32.mrf.mxu2  ;;  %v5485_v8 = vpop.f32.mrf.mxu0  ;;  %v5238_v4 = vadd.f32 %v12295_v40, %v12346_v19 }
 0xb12   :  { %5649 = vmatpush.msra.mxu2 %v5613_v29  ;;  %v5392_v48 = vadd.f32 %v5391_v57, %v5327_v41  ;;  %v5386_v25 = vadd.f32 %v12382_v31, %v5321_v10  ;;  %v5312_v31 = vadd.f32 %v12279_v2, %v5247_v45  ;;  %v5380_v30 = vadd.f32 %v12367_v54, %v5315_v17  ;;  %v13155_v41 = vld [vmem:[#allocation4_spill] sm:$0xff]  ;;  %v13162_v45 = vld [vmem:[#allocation27_spill] sm:$0xff] }
 0xb13   :  { %v5626_v57 = vmax.f32 %v5383_v44, 0.0  ;;  %v5232_v54 = vadd.f32 %v12273_v12, %v12346_v19  ;;  %v5303_v40 = vadd.f32 %v12236_v59, %v5238_v4  ;;  %v5226_v59 = vadd.f32 %v13154_v43, %v12346_v19  ;;  %v13160_v10 = vld [vmem:[#allocation32_spill] sm:$0xff] }
 0xb14   :  { %5650 = vmatpush.msra.mxu2 %v5610_v32  ;;  %v5635_v56 = vmax.f32 %v5392_v48, 0.0  ;;  %v5629_v29 = vmax.f32 %v5386_v25, 0.0  ;;  %v5377_v14 = vadd.f32 %v12361_v22, %v5312_v31  ;;  %v5235_v32 = vadd.f32 %v12284_v16, %v12346_v19  ;;  %v13159_v48 = vld [vmem:[#allocation25_spill] sm:$0xff]  ;;  %v13163_v17 = vld [vmem:[#allocation28_spill] sm:$0xff]  ;;  %v13165_v31 = vld [vmem:[#allocation35_spill] sm:$0xff] }
 0xb15   :  { %v5420_v6 = vpop.f32.mrf.mxu3  ;;  %v5623_v36 = vmax.f32 %v5380_v30, 0.0  ;;  %v5220_v26 = vadd.f32 %v13160_v10, %v12346_v19 }
 0xb16   :  { %v5421_v60 = vadd.f32 %v5420_v6, %v12388_v23  ;;  %5651 = vmatpush.msra.mxu2 %v5607_v5  ;;  %v5306_v5 = vadd.f32 %v12251_v58, %v5241_v51  ;;  %v12459_v46 = vpop.f32.mrf.mxu1  ;;  %v5620_v50 = vmax.f32 %v5377_v14, 0.0  ;;  %v5229_v58 = vadd.f32 %v12264_v55, %v12346_v19 }
 0xb17   :  { %v5285_v30 = vadd.f32 %v13165_v31, %v5220_v26 }
 0xb18   :  { %v12423_v11 = vadd.f32 %v5485_v8, %v5421_v60  ;;  %5652 = vmatpush.msra.mxu2 %v5604_v21  ;;  %v5371_v22 = vadd.f32 %v12343_v7, %v5306_v5  ;;  %v5300_v21 = vadd.f32 %v12221_v9, %v5235_v32  ;;  %v5368_v60 = vadd.f32 %v13152_v27, %v5303_v40 }
 0xb19   :  { %v5394_v53 = vpop.f32.mrf.mxu2  ;;  %v5488_v49 = vpop.f32.mrf.mxu0  ;;  %v5297_v7 = vadd.f32 %v13155_v41, %v5232_v54  ;;  %v5294_v9 = vadd.f32 %v13158_v33, %v5229_v58 }
 0xb1a   :  { %v5395_v42 = vadd.f32 %v5394_v53, %v5330_v52  ;;  %5653 = vmatpush.msra.mxu2 %v5601_v37  ;;  %v13153_v37 = vld [vmem:[#allocation5_spill] sm:$0xff]  ;;  %v5614_v53 = vmax.f32 %v5371_v22, 0.0 }
 0xb1b   :  { %v5617_v12 = vmax.f32 %v13153_v37, 0.0  ;;  %v13156_v52 = vld [vmem:[#allocation29_spill] sm:$0xff] }
 0xb1c   :  { %v5638_v1 = vmax.f32 %v5395_v42, 0.0  ;;  %5654 = vmatpush.msra.mxu2 %v5598_v38  ;;  %v5365_v38 = vadd.f32 %v13156_v52, %v5300_v21  ;;  %v5362_v42 = vadd.f32 %v13159_v48, %v5297_v7 }
 0xb1d   :  { %v5423_v13 = vpop.f32.mrf.mxu3 }
 0xb1e   :  { %v5424_v18 = vadd.f32 %v5423_v13, %v12388_v23  ;;  %5655 = vmatpush.msra.mxu2 %v5595_v28  ;;  %5661 = vmatpush.msra.mxu3 %v5638_v1  ;;  %v5611_v28 = vmax.f32 %v5368_v60, 0.0  ;;  %v13161_v1 = vld [vmem:[#allocation34_spill] sm:$0xff]  ;;  %v5359_v13 = vadd.f32 %v13162_v45, %v5294_v9  ;;  %v5608_v62 = vmax.f32 %v5365_v38, 0.0 }
 0xb1f   :  { %v5605_v51 = vmax.f32 %v5362_v42, 0.0 }
 0xb20   :  { %v12444_v24 = vadd.f32 %v5488_v49, %v5424_v18  ;;  %5656 = vmatpush.msra.mxu2 %v5592_v35  ;;  %5662 = vmatpush.msra.mxu3 %v5635_v56  ;;  %v13157_v49 = vld [vmem:[#allocation26_spill] sm:$0xff]  ;;  %v5291_v35 = vadd.f32 %v13161_v1, %v5226_v59  ;;  %v12485_v56 = vpop.f32.mrf.mxu1  ;;  %v5602_v4 = vmax.f32 %v5359_v13, 0.0 }
 0xb21   :  { %v5491_v63 = vpop.f32.mrf.mxu0  ;;  %v5223_v39 = vadd.f32 %v13157_v49, %v12346_v19  ;;  %v13166_v19 = vld [vmem:[#allocation31_spill] sm:$0xff] }
 0xb22   :  { %5663 = vmatpush.msra.mxu3 %v5632_v15  ;;  %v13164_v15 = vld [vmem:[#allocation19_spill] sm:$0xff] }
 0xb23   :  { %v5288_v44 = vadd.f32 %v13163_v17, %v5223_v39 }
 0xb24   :  { %5664 = vmatpush.msra.mxu3 %v5629_v29 }
 0xb25   :  { %v5426_v8 = vpop.f32.mrf.mxu3  ;;  %v5353_v29 = vadd.f32 %v13166_v19, %v5288_v44  ;;  %v12510_v44 = vld [vmem:[%s12703_s2] sm:$0xff] }
 0xb26   :  { %v5427_v2 = vadd.f32 %v5426_v8, %v12388_v23  ;;  %5665 = vmatpush.msra.mxu3 %v5626_v57  ;;  %v13167_v57 = vld [vmem:[#allocation22_spill] sm:$0xff]  ;;  %5657 = vmatmul.f32.vlgmr.msra.gmra.mxu2 %v12510_v44 }
 0xb27   :  { %v5350_v8 = vadd.f32 %v13167_v57, %v5285_v30  ;;  %5701 = vadd.xlane.f32.xlu0 %v12510_v44 }
 0xb28   :  { %v12463_v6 = vadd.f32 %v5491_v63, %v5427_v2  ;;  %5666 = vmatpush.msra.mxu3 %v5623_v36  ;;  %v5356_v63 = vadd.f32 %v13164_v15, %v5291_v35  ;;  %v5596_v36 = vmax.f32 %v5353_v29, 0.0  ;;  %v5568_v22 = vpop.f32.mrf.mxu1 }
 0xb29   :  { %v5494_v16 = vpop.f32.mrf.mxu0  ;;  %v5593_v40 = vmax.f32 %v5350_v8, 0.0 }
 0xb2a   :  { %5667 = vmatpush.msra.mxu3 %v5620_v50  ;;  %v5599_v32 = vmax.f32 %v5356_v63, 0.0 }
 0xb2c   :  { %5668 = vmatpush.msra.mxu3 %v5617_v12 }
 0xb2d   :  { %v5429_v55 = vpop.f32.mrf.mxu3 }
 0xb2e   :  { %v5430_v0 = vadd.f32 %v5429_v55, %v12388_v23  ;;  %5669 = vmatpush.msra.mxu3 %v5614_v53 }
 0xb30   :  { %v12483_v25 = vadd.f32 %v5494_v16, %v5430_v0  ;;  %5670 = vmatpush.msra.mxu3 %v5611_v28  ;;  %v12498_v27 = vpop.f32.mrf.mxu1 }
 0xb31   :  { %v5497_v18 = vpop.f32.mrf.mxu0 }
 0xb32   :  { %5671 = vmatpush.msra.mxu3 %v5608_v62 }
 0xb34   :  { %5672 = vmatpush.msra.mxu3 %v5605_v51 }
 0xb35   :  { %v5432_v14 = vpop.f32.mrf.mxu3 }
 0xb36   :  { %v5433_v5 = vadd.f32 %v5432_v14, %v12388_v23  ;;  %5673 = vmatpush.msra.mxu3 %v5602_v4 }
 0xb38   :  { %v12493_v2 = vadd.f32 %v5497_v18, %v5433_v5  ;;  %5674 = vmatpush.msra.mxu3 %v5599_v32  ;;  %v5574_v7 = vpop.f32.mrf.mxu1  ;;  %v5718_v5 = vld [vmem:[%s12704_s17 + $0x78] sm:$0xff] }
 0xb39   :  { %v5500_v54 = vpop.f32.mrf.mxu0 }
 0xb3a   :  { %5675 = vmatpush.msra.mxu3 %v5596_v36  ;;  %v5717_v36 = vld [vmem:[%s12704_s17 + $0x70] sm:$0xff] }
 0xb3c   :  { %5676 = vmatpush.msra.mxu3 %v5593_v40 }
 0xb3d   :  { %v5435_v50 = vpop.f32.mrf.mxu3  ;;  %5677 = vmatmul.f32.vlgmr.msra.gmra.mxu3 %v12510_v44 }
 0xb3e   :  { %v5436_v16 = vadd.f32 %v5435_v50, %v12388_v23  ;;  %5756 = vmatpush.msrb.mxu3 %v5718_v5  ;;  %v5742_v5 = vld [vmem:[%s12704_s17 + $0x138] sm:$0xff] }
 0xb40   :  { %v12496_v58 = vadd.f32 %v5500_v54, %v5436_v16  ;;  %v5577_v53 = vpop.f32.mrf.mxu1  ;;  %5757 = vmatpush.msrb.mxu3 %v5717_v36  ;;  %v5726_v36 = vld [vmem:[%s12704_s17 + $0xb8] sm:$0xff] }
 0xb41   :  { %v5503_v21 = vpop.f32.mrf.mxu0 }
 0xb45   :  { %v5438_v60 = vpop.f32.mrf.mxu3 }
 0xb46   :  { %v5439_v37 = vadd.f32 %v5438_v60, %v12388_v23  ;;  %v5715_v60 = vld [vmem:[%s12704_s17 + $0x60] sm:$0xff] }
 0xb48   :  { %v5504_v12 = vadd.f32 %v5503_v21, %v5439_v37  ;;  %v5580_v33 = vpop.f32.mrf.mxu1 }
 0xb49   :  { %v5506_v43 = vpop.f32.mrf.mxu0 }
 0xb4a   :  { %v12501_v59 = vadd.f32 %v5568_v22, %v5504_v12 }
 0xb4d   :  { %v5441_v41 = vpop.f32.mrf.mxu3 }
 0xb4e   :  { %v5442_v14 = vadd.f32 %v5441_v41, %v12388_v23  ;;  %v5714_v41 = vld [vmem:[%s12704_s17 + $0x58] sm:$0xff] }
 0xb50   :  { %v5583_v42 = vpop.f32.mrf.mxu1  ;;  %v5507_v50 = vadd.f32 %v5506_v43, %v5442_v14  ;;  %v5744_v14 = vld [vmem:[%s12704_s17 + $0x148] sm:$0xff] }
 0xb51   :  { %v5509_v52 = vpop.f32.mrf.mxu0 }
 0xb52   :  { %v5572_v43 = vadd.f32 %v12498_v27, %v5507_v50  ;;  %v5711_v27 = vld [vmem:[%s12704_s17 + $0x40] sm:$0xff] }
 0xb53   :  { %v5723_v50 = vld [vmem:[%s12704_s17 + $0xa0] sm:$0xff] }
 0xb55   :  { %v5444_v38 = vpop.f32.mrf.mxu3 }
 0xb56   :  { %v5445_v30 = vadd.f32 %v5444_v38, %v12388_v23  ;;  %v5713_v38 = vld [vmem:[%s12704_s17 + $0x50] sm:$0xff] }
 0xb58   :  { %v5586_v26 = vpop.f32.mrf.mxu1  ;;  %v5510_v54 = vadd.f32 %v5509_v52, %v5445_v30  ;;  %v5746_v30 = vld [vmem:[%s12704_s17 + $0x158] sm:$0xff] }
 0xb59   :  { %v5512_v49 = vpop.f32.mrf.mxu0 }
 0xb5a   :  { %v5575_v12 = vadd.f32 %v5574_v7, %v5510_v54  ;;  %v5712_v7 = vld [vmem:[%s12704_s17 + $0x48] sm:$0xff]  ;;  %v5741_v54 = vld [vmem:[%s12704_s17 + $0x130] sm:$0xff] }
 0xb5d   :  { %v5447_v39 = vpop.f32.mrf.mxu3 }
 0xb5e   :  { %v5448_v15 = vadd.f32 %v5447_v39, %v12388_v23  ;;  %v5566_v39 = vadd.f32 %v12485_v56, %v12496_v58  ;;  %v5560_v56 = vadd.f32 %v12437_v20, %v12483_v25  ;;  %v5709_v58 = vld [vmem:[%s12704_s17 + $0x30] sm:$0xff]  ;;  %v5554_v20 = vadd.f32 %v12400_v34, %v12444_v24  ;;  %v5707_v25 = vld [vmem:[%s12704_s17 + $0x20] sm:$0xff] }
 0xb5f   :  { %v5705_v24 = vld [vmem:[%s12704_s17 + $0x10] sm:$0xff] }
 0xb60   :  { %v5589_v31 = vpop.f32.mrf.mxu1  ;;  %v5513_v57 = vadd.f32 %v5512_v49, %v5448_v15  ;;  %v5621_v49 = vmax.f32 %v5572_v43, 0.0  ;;  %v5733_v15 = vld [vmem:[%s12704_s17 + $0xf0] sm:$0xff]  ;;  %v5736_v43 = vld [vmem:[%s12704_s17 + $0x108] sm:$0xff] }
 0xb61   :  { %v5515_v55 = vpop.f32.mrf.mxu0 }
 0xb62   :  { %v5578_v21 = vadd.f32 %v5577_v53, %v5513_v57  ;;  %v5624_v53 = vmax.f32 %v5575_v12, 0.0  ;;  %v5728_v57 = vld [vmem:[%s12704_s17 + $0xc8] sm:$0xff] }
 0xb63   :  { %v5720_v12 = vld [vmem:[%s12704_s17 + $0x88] sm:$0xff] }
 0xb64   :  { %v5627_v52 = vmax.f32 %v5578_v21, 0.0  ;;  %v5739_v21 = vld [vmem:[%s12704_s17 + $0x120] sm:$0xff] }
 0xb65   :  { %v5450_v9 = vpop.f32.mrf.mxu3 }
 0xb66   :  { %v5451_v13 = vadd.f32 %v5450_v9, %v12388_v23  ;;  %v5710_v9 = vld [vmem:[%s12704_s17 + $0x38] sm:$0xff] }
 0xb68   :  { %v5516_v19 = vadd.f32 %v5515_v55, %v5451_v13  ;;  %v5618_v55 = vmax.f32 %v12501_v59, 0.0 }
 0xb69   :  { %v5518_v48 = vpop.f32.mrf.mxu0 }
 0xb6a   :  { %v5581_v22 = vadd.f32 %v5580_v33, %v5516_v19  ;;  %v5563_v33 = vadd.f32 %v12459_v46, %v12493_v2  ;;  %v5557_v46 = vadd.f32 %v12410_v47, %v12463_v6  ;;  %v5708_v2 = vld [vmem:[%s12704_s17 + $0x28] sm:$0xff]  ;;  %v5706_v6 = vld [vmem:[%s12704_s17 + $0x18] sm:$0xff] }
 0xb6b   :  { %v5730_v19 = vld [vmem:[%s12704_s17 + $0xd8] sm:$0xff] }
 0xb6c   :  { %v5630_v37 = vmax.f32 %v5581_v22, 0.0  ;;  %v5612_v59 = vmax.f32 %v5563_v33, 0.0  ;;  %v5740_v22 = vld [vmem:[%s12704_s17 + $0x128] sm:$0xff] }
 0xb6d   :  { %v5453_v28 = vpop.f32.mrf.mxu3 }
 0xb6e   :  { %v5454_v35 = vadd.f32 %v5453_v28, %v12388_v23  ;;  %v5606_v28 = vmax.f32 %v5557_v46, 0.0 }
 0xb70   :  { %v5519_v63 = vadd.f32 %v5518_v48, %v5454_v35  ;;  %v5615_v48 = vmax.f32 %v5566_v39, 0.0  ;;  %v13170_v35 = vld [vmem:[#allocation13_spill] sm:$0xff]  ;;  %v5821_v39 = vld [vmem:[%s12705_s18] ss:$0 sm:$0xff] }
 0xb71   :  { %v5521_v0 = vpop.f32.mrf.mxu0 }
 0xb72   :  { %v5584_v32 = vadd.f32 %v5583_v42, %v5519_v63  ;;  %v5609_v42 = vmax.f32 %v5560_v56, 0.0  ;;  %v5748_v63 = vld [vmem:[%s12704_s17 + $0x168] sm:$0xff] }
 0xb74   :  { %v5633_v16 = vmax.f32 %v5584_v32, 0.0  ;;  %v5727_v32 = vld [vmem:[%s12704_s17 + $0xc0] sm:$0xff] }
 0xb75   :  { %v5456_v10 = vpop.f32.mrf.mxu3 }
 0xb76   :  { %v5457_v1 = vadd.f32 %v5456_v10, %v12388_v23  ;;  %v5603_v10 = vmax.f32 %v5554_v20, 0.0 }
 0xb78   :  { %v5522_v62 = vadd.f32 %v5521_v0, %v5457_v1  ;;  %v13168_v0 = vld [vmem:[#allocation9_spill] sm:$0xff] }
 0xb79   :  { %v5524_v17 = vpop.f32.mrf.mxu0  ;;  %v5551_v47 = vadd.f32 %v13168_v0, %v12423_v11  ;;  %v5545_v11 = vadd.f32 %v13170_v35, %v12402_v61  ;;  %v5734_v61 = vld [vmem:[%s12704_s17 + $0xf8] sm:$0xff] }
 0xb7a   :  { %v5587_v4 = vadd.f32 %v5586_v26, %v5522_v62  ;;  %v13169_v26 = vld [vmem:[#allocation2_spill] sm:$0xff] }
 0xb7b   :  { %v5548_v34 = vadd.f32 %v13169_v26, %v12407_v3  ;;  %v5600_v1 = vmax.f32 %v5551_v47, 0.0  ;;  %v5703_v3 = vld [vmem:[%s12704_s17] sm:$0xff]  ;;  %v5594_v62 = vmax.f32 %v5545_v11, 0.0 }
 0xb7c   :  { %v5636_v40 = vmax.f32 %v5587_v4, 0.0  ;;  %v5729_v4 = vld [vmem:[%s12704_s17 + $0xd0] sm:$0xff] }
 0xb7d   :  { %v5459_v45 = vpop.f32.mrf.mxu3  ;;  %v5597_v13 = vmax.f32 %v5548_v34, 0.0 }
 0xb7e   :  { %v5460_v18 = vadd.f32 %v5459_v45, %v12388_v23  ;;  %v5716_v23 = vld [vmem:[%s12704_s17 + $0x68] sm:$0xff] }
 0xb7f   :  { %5758 = vmatpush.msrb.mxu3 %v5716_v23  ;;  %v5704_v45 = vld [vmem:[%s12704_s17 + $0x8] sm:$0xff] }
 0xb80   :  { %v5525_v51 = vadd.f32 %v5524_v17, %v5460_v18  ;;  %v5750_v18 = vld [vmem:[%s12704_s17 + $0x178] sm:$0xff]  ;;  %v5749_v17 = vld [vmem:[%s12704_s17 + $0x170] sm:$0xff]  ;;  %v5724_v23 = vld [vmem:[%s12704_s17 + $0xa8] sm:$0xff] }
 0xb81   :  { %5759 = vmatpush.msrb.mxu3 %v5715_v60  ;;  %v5721_v60 = vld [vmem:[%s12704_s17 + $0x90] sm:$0xff] }
 0xb82   :  { %v5590_v29 = vadd.f32 %v5589_v31, %v5525_v51  ;;  %v5732_v51 = vld [vmem:[%s12704_s17 + $0xe8] sm:$0xff]  ;;  %v5731_v31 = vld [vmem:[%s12704_s17 + $0xe0] sm:$0xff] }
 0xb83   :  { %5760 = vmatpush.msrb.mxu3 %v5714_v41  ;;  %v5737_v41 = vld [vmem:[%s12704_s17 + $0x110] sm:$0xff] }
 0xb84   :  { %v5639_v8 = vmax.f32 %v5590_v29, 0.0  ;;  %v5745_v29 = vld [vmem:[%s12704_s17 + $0x150] sm:$0xff] }
 0xb85   :  { %5761 = vmatpush.msrb.mxu3 %v5713_v38 }
 0xb86   :  { %5681 = vmatpush.msrb.mxu2 %v5639_v8  ;;  %v5743_v8 = vld [vmem:[%s12704_s17 + $0x140] sm:$0xff] }
 0xb87   :  { %5762 = vmatpush.msrb.mxu3 %v5712_v7  ;;  %v5735_v7 = vld [vmem:[%s12704_s17 + $0x100] sm:$0xff] }
 0xb88   :  { %5682 = vmatpush.msrb.mxu2 %v5636_v40  ;;  %v5725_v40 = vld [vmem:[%s12704_s17 + $0xb0] sm:$0xff] }
 0xb89   :  { %5763 = vmatpush.msrb.mxu3 %v5711_v27 }
 0xb8a   :  { %5683 = vmatpush.msrb.mxu2 %v5633_v16  ;;  %v5722_v16 = vld [vmem:[%s12704_s17 + $0x98] sm:$0xff] }
 0xb8b   :  { %5764 = vmatpush.msrb.mxu3 %v5710_v9 }
 0xb8c   :  { %5684 = vmatpush.msrb.mxu2 %v5630_v37  ;;  %v5738_v37 = vld [vmem:[%s12704_s17 + $0x118] sm:$0xff] }
 0xb8d   :  { %5765 = vmatpush.msrb.mxu3 %v5709_v58 }
 0xb8e   :  { %5685 = vmatpush.msrb.mxu2 %v5627_v52  ;;  %v5719_v52 = vld [vmem:[%s12704_s17 + $0x80] sm:$0xff] }
 0xb8f   :  { %5766 = vmatpush.msrb.mxu3 %v5708_v2 }
 0xb90   :  { %5686 = vmatpush.msrb.mxu2 %v5624_v53 }
 0xb91   :  { %5767 = vmatpush.msrb.mxu3 %v5707_v25 }
 0xb92   :  { %5687 = vmatpush.msrb.mxu2 %v5621_v49 }
 0xb93   :  { %5768 = vmatpush.msrb.mxu3 %v5706_v6 }
 0xb94   :  { %5688 = vmatpush.msrb.mxu2 %v5618_v55 }
 0xb95   :  { %5769 = vmatpush.msrb.mxu3 %v5705_v24 }
 0xb96   :  { %5689 = vmatpush.msrb.mxu2 %v5615_v48 }
 0xb97   :  { %5770 = vmatpush.msrb.mxu3 %v5704_v45 }
 0xb98   :  { %5690 = vmatpush.msrb.mxu2 %v5612_v59 }
 0xb99   :  { %5771 = vmatpush.msrb.mxu3 %v5703_v3 }
 0xb9a   :  { %5691 = vmatpush.msrb.mxu2 %v5609_v42  ;;  %v5702_v27 = vpop.xlane.xlu0 %5701 }
 0xb9b   :  { %5796 = vmatpush.msra.mxu3 %v5750_v18  ;;  %v5755_v33 = vmul.f32 %v5821_v39, %v5702_v27 }
 0xb9c   :  { %5692 = vmatpush.msrb.mxu2 %v5606_v28 }
 0xb9d   :  { %5797 = vmatpush.msra.mxu3 %v5749_v17 }
 0xb9e   :  { %5693 = vmatpush.msrb.mxu2 %v5603_v10 }
 0xb9f   :  { %5798 = vmatpush.msra.mxu3 %v5748_v63 }
 0xba0   :  { %5694 = vmatpush.msrb.mxu2 %v5600_v1 }
 0xba2   :  { %5695 = vmatpush.msrb.mxu2 %v5597_v13 }
 0xba4   :  { %5696 = vmatpush.msrb.mxu2 %v5594_v62 }
 0xba5   :  { %5697 = vmatmul.f32.vlgmr.msrb.gmra.mxu2 %v12510_v44  ;;  %v5747_v44 = vld [vmem:[%s12704_s17 + $0x160] sm:$0xff] }
 0xba6   :  { %5776 = vmatpush.msra.mxu2 %v5734_v61  ;;  %5799 = vmatpush.msra.mxu3 %v5747_v44 }
 0xba8   :  { %5777 = vmatpush.msra.mxu2 %v5733_v15  ;;  %5800 = vmatpush.msra.mxu3 %v5746_v30 }
 0xba9   :  { %v5658_v38 = vpop.f32.mrf.mxu2 }
 0xbaa   :  { %5778 = vmatpush.msra.mxu2 %v5732_v51  ;;  %5801 = vmatpush.msra.mxu3 %v5745_v29 }
 0xbab   :  { %5772 = vmatmul.f32.vlgmr.msrb.gmra.mxu3 %v5658_v38 }
 0xbac   :  { %5779 = vmatpush.msra.mxu2 %v5731_v31  ;;  %5802 = vmatpush.msra.mxu3 %v5744_v14 }
 0xbae   :  { %5780 = vmatpush.msra.mxu2 %v5730_v19  ;;  %5803 = vmatpush.msra.mxu3 %v5743_v8 }
 0xbb0   :  { %5781 = vmatpush.msra.mxu2 %v5729_v4  ;;  %5804 = vmatpush.msra.mxu3 %v5742_v5 }
 0xbb2   :  { %5782 = vmatpush.msra.mxu2 %v5728_v57  ;;  %5805 = vmatpush.msra.mxu3 %v5741_v54 }
 0xbb4   :  { %5783 = vmatpush.msra.mxu2 %v5727_v32  ;;  %5806 = vmatpush.msra.mxu3 %v5740_v22 }
 0xbb6   :  { %5784 = vmatpush.msra.mxu2 %v5726_v36  ;;  %5807 = vmatpush.msra.mxu3 %v5739_v21 }
 0xbb8   :  { %5785 = vmatpush.msra.mxu2 %v5725_v40  ;;  %5808 = vmatpush.msra.mxu3 %v5738_v37 }
 0xbba   :  { %5786 = vmatpush.msra.mxu2 %v5724_v23  ;;  %5809 = vmatpush.msra.mxu3 %v5737_v41 }
 0xbbc   :  { %5787 = vmatpush.msra.mxu2 %v5723_v50  ;;  %5810 = vmatpush.msra.mxu3 %v5736_v43 }
 0xbbe   :  { %5788 = vmatpush.msra.mxu2 %v5722_v16  ;;  %5811 = vmatpush.msra.mxu3 %v5735_v7 }
 0xbc0   :  { %5789 = vmatpush.msra.mxu2 %v5721_v60  ;;  %v5678_v53 = vpop.f32.mrf.mxu3 }
 0xbc2   :  { %5790 = vmatpush.msra.mxu2 %v5720_v12 }
 0xbc4   :  { %5791 = vmatpush.msra.mxu2 %v5719_v52 }
 0xbc5   :  { %5792 = vmatmul.f32.vlgmr.msra.gmra.mxu2 %v5678_v53 }
 0xc28   :  { %v5698_v49 = vpop.f32.mrf.mxu2 }
 0xc29   :  { %5812 = vmatmul.f32.vlgmr.msra.gmra.mxu3 %v5698_v49 }
 0xc2e   :  { %v5773_v55 = vpop.f32.mrf.mxu3 }
 0xc2f   :  { %v5774_v9 = vadd.f32 %v5773_v55, %v5755_v33 }
 0xc48   :  { %v5793_v48 = vpop.f32.mrf.mxu2 }
 0xc49   :  { %v5794_v56 = vadd.f32 %v5793_v48, %v5774_v9 }
 0xcac   :  { %v5813_v58 = vpop.f32.mrf.mxu3 }
 0xcad   :  { %v5814_v59 = vadd.f32 %v5813_v58, %v5794_v56 }
 0xcaf   :  { %5816 = vst [vmem:[%s12706_s19] sm:$0xff] %v5814_v59 }

</bundles_post_ra>
